<compile_context>
chip_gen: v6e
topology: v6e:2x2x1
jax: 0.10.0
libtpu: 0.0.40
codegen_flags: <defaults>
</compile_context>

<pallas_src>
import functools

import jax
import jax.numpy as jnp
import numpy as np
from jax.experimental import pallas as pl
from jax.experimental.pallas import tpu as pltpu


def _round_up(v, m):
    return ((v + m - 1) // m) * m


def _default_core_splits():
    """2 on multi-TensorCore chips (v7x), else 1.  Never raises."""
    try:
        info = pltpu.get_tpu_info()
        for attr in ("num_cores", "num_tensorcores", "tensorcore_count",
                     "cores_per_chip", "num_cores_per_chip"):
            v = getattr(info, attr, None)
            if isinstance(v, int) and v > 0:
                return max(1, min(int(v), 2))
    except Exception:
        pass
    return 1


def _kmeans_kernel(x_ref, c_ref, y_ref,
                   loss_ref, hist_ref, yp_ref,
                   c2_sc, loss_sc, hist_sc,
                   *, n_clusters, num_classes, n_valid, steps, tile_n, op):
    c_idx = pl.program_id(0)
    j = pl.program_id(1)

    @pl.when(j == 0)
    def _init():
        c_f32 = c_ref[...].astype(jnp.float32)
        # |c_k|^2 as a (K, 1) column -- broadcasts directly against (K, TN).
        c2_sc[...] = jnp.sum(c_f32 * c_f32, axis=1, keepdims=True)
        loss_sc[...] = jnp.zeros_like(loss_sc)
        hist_sc[...] = jnp.zeros_like(hist_sc)

    base = (c_idx * steps + j) * tile_n          # global index of first point in tile

    x_nat = x_ref[...]                           # native dtype (f32 / bf16)
    x_f32 = x_nat.astype(jnp.float32)

    # Lane-dense ground-truth one-hot: (L, TN).
    y_row = y_ref[...]                                           # (1, TN) int32
    iota_l = jax.lax.broadcasted_iota(jnp.int32, (num_classes, tile_n), 0)
    onehot_lab = (iota_l == y_row).astype(jnp.float32)           # (L, TN)

    if op == 'l2':
        # caldis (MXU form): s[k, i] = |c_k|^2 - 2 c_k . x_i ; true dist = |x_i|^2 + s.
        # The |x_i|^2 shift is row-constant, so argmin is unchanged; its total is
        # added to the loss separately (padded rows are exactly zero, so they add 0).
        cx = jax.lax.dot_general(
            c_ref[...], x_nat,
            dimension_numbers=(((1,), (1,)), ((), ())),          # (K,D) x (TN,D) -> (K,TN)
            preferred_element_type=jnp.float32)
        s = c2_sc[...] - 2.0 * cx                                # (K, TN)

        # calwei2: per-point min / argmin over clusters, first index on ties.
        min_s = jnp.min(s, axis=0, keepdims=True)                # (1, TN)
        iota_k = jax.lax.broadcasted_iota(jnp.int32, s.shape, 0)
        yp_row = jnp.min(jnp.where(s == min_s, iota_k, jnp.int32(n_clusters)),
                         axis=0, keepdims=True)                  # (1, TN) lane-dense
        yp_ref[...] = yp_row

        iota_n = jax.lax.broadcasted_iota(jnp.int32, (1, tile_n), 1)
        valid = (base + iota_n) < n_valid                        # (1, TN) bool

        # calloss: sum over valid points of min distance.  NOTE: the reconstructed
        # per-point distance |x|^2 + min_s can lose a few ulps to cancellation when
        # a point coincides with a center; accepted (loss checked to rtol ~1e-4).
        x2_total = jnp.sum(x_f32 * x_f32, keepdims=True)         # (1, 1)
        loss_sc[...] += x2_total + jnp.sum(jnp.where(valid, min_s, 0.0),
                                           keepdims=True)

        # calacc building block: hist[k, l] = #{i valid : argmin_i == k and y_i == l}.
        onehot_pred = ((iota_k == yp_row) & valid).astype(jnp.float32)   # (K, TN)
        hist_sc[...] += jax.lax.dot_general(
            onehot_pred, onehot_lab,
            dimension_numbers=(((1,), (1,)), ((), ())),          # contract TN -> (K, L)
            preferred_element_type=jnp.float32)

    elif op == 'l1':
        # No MXU trick for L1.  Unrolled static loop over K (small) with online
        # min/argmin in column form; no (K, TN, D) broadcast is materialized.
        c_f32 = c_ref[...].astype(jnp.float32)
        best = jnp.full((tile_n, 1), jnp.inf, dtype=jnp.float32)
        besti = jnp.zeros((tile_n, 1), dtype=jnp.int32)
        for kk in range(n_clusters):
            col = jnp.sum(jnp.abs(x_f32 - c_f32[kk:kk + 1, :]),
                          axis=1, keepdims=True)                 # (TN, 1)
            better = col < best                                  # strict < keeps first index on ties
            best = jnp.where(better, col, best)
            besti = jnp.where(better, kk, besti)
        yp_ref[...] = besti                                      # (TN, 1)

        iota_n = jax.lax.broadcasted_iota(jnp.int32, (tile_n, 1), 0)
        valid = (base + iota_n) < n_valid                        # (TN, 1) bool
        loss_sc[...] += jnp.sum(jnp.where(valid, best, 0.0), keepdims=True)

        iota_k = jax.lax.broadcasted_iota(jnp.int32, (tile_n, n_clusters), 1)
        onehot_pred = ((iota_k == besti) & valid).astype(jnp.float32)    # (TN, K)
        # (L, TN) @ (TN, K) -> (L, K); transposed back to (K, L) in the wrapper.
        hist_sc[...] += jnp.dot(onehot_lab, onehot_pred,
                                preferred_element_type=jnp.float32)
    else:
        raise ValueError(f"unsupported op: {op}")

    @pl.when(j == pl.num_programs(1) - 1)
    def _final():
        loss_ref[...] = loss_sc[...]
        hist_ref[...] = hist_sc[...]


def kmeans_forward(x, centers, y, num_classes, *, op='l2', tile_n=4096,
                   core_splits=None):
    """Pallas implementation of KMEANS.forward -> (loss, acc, y_p, hist).

    tile_n is sweepable per generation (v5e: 2048-4096, v6e: 4096-8192,
    v7x: 8192+); it must be a multiple of 128.  Pass x as bf16 to halve the
    dominant HBM stream (accumulation stays f32).
    """
    N, D = x.shape
    K = centers.shape[0]
    L = int(num_classes)

    tile_n = min(int(tile_n), _round_up(N, 128))
    assert tile_n % 128 == 0, "tile_n must be a multiple of 128 (dense lane stores)"
    num_tiles = -(-N // tile_n)
    n_pad = num_tiles * tile_n

    if core_splits is None:
        core_splits = _default_core_splits()
    core_splits = max(1, min(int(core_splits), num_tiles))
    if num_tiles % core_splits != 0:
        core_splits = 1
    steps = num_tiles // core_splits

    centers = centers.astype(x.dtype)            # keep the distance matmul single-dtype
    x_pad = jnp.pad(x, ((0, n_pad - N), (0, 0))) if n_pad != N else x
    y32 = y.astype(jnp.int32)
    y_pad = jnp.pad(y32, (0, n_pad - N)) if n_pad != N else y32
    y3d = y_pad.reshape(num_tiles, 1, tile_n)    # lane-dense label blocks

    kernel = functools.partial(_kmeans_kernel, n_clusters=K, num_classes=L,
                               n_valid=N, steps=steps, tile_n=tile_n, op=op)

    if op == 'l2':
        yp_shape = jax.ShapeDtypeStruct((num_tiles, 1, tile_n), jnp.int32)
        yp_spec = pl.BlockSpec((None, 1, tile_n), lambda c, j: (c * steps + j, 0, 0))
        hist_shape = jax.ShapeDtypeStruct((core_splits, K, L), jnp.float32)
        hist_spec = pl.BlockSpec((None, K, L), lambda c, j: (c, 0, 0))
        hist_scratch = pltpu.VMEM((K, L), jnp.float32)
    elif op == 'l1':
        yp_shape = jax.ShapeDtypeStruct((num_tiles, tile_n, 1), jnp.int32)
        yp_spec = pl.BlockSpec((None, tile_n, 1), lambda c, j: (c * steps + j, 0, 0))
        hist_shape = jax.ShapeDtypeStruct((core_splits, L, K), jnp.float32)
        hist_spec = pl.BlockSpec((None, L, K), lambda c, j: (c, 0, 0))
        hist_scratch = pltpu.VMEM((L, K), jnp.float32)
    else:
        raise ValueError(f"unsupported op: {op}")

    loss_p, hist_p, yp = pl.pallas_call(
        kernel,
        out_shape=(
            jax.ShapeDtypeStruct((core_splits, 1, 1), jnp.float32),   # per-core loss
            hist_shape,                                               # per-core hist
            yp_shape,                                                 # y_p
        ),
        grid_spec=pltpu.PrefetchScalarGridSpec(
            num_scalar_prefetch=0,
            grid=(core_splits, steps),
            in_specs=[
                pl.BlockSpec((tile_n, D), lambda c, j: (c * steps + j, 0)),      # x tile
                pl.BlockSpec((K, D), lambda c, j: (0, 0)),                       # centers
                pl.BlockSpec((None, 1, tile_n), lambda c, j: (c * steps + j, 0, 0)),  # labels
            ],
            out_specs=[
                pl.BlockSpec((None, 1, 1), lambda c, j: (c, 0, 0)),              # loss
                hist_spec,                                                       # hist
                yp_spec,                                                         # y_p
            ],
            scratch_shapes=[
                pltpu.VMEM((K, 1), jnp.float32),   # |c|^2
                pltpu.VMEM((1, 1), jnp.float32),   # loss accumulator
                hist_scratch,                      # hist accumulator
            ],
        ),
        compiler_params=pltpu.CompilerParams(
            dimension_semantics=("parallel", "arbitrary"),
            vmem_limit_bytes=48 * 1024 * 1024),
    )(x_pad, centers, y3d)

    # Tiny cross-core reductions / calacc tail (glue, negligible work).
    loss = jnp.sum(loss_p)
    hist = jnp.sum(hist_p, axis=0)
    if op == 'l1':
        hist = hist.T                                  # (L, K) -> (K, L)
    acc = jnp.sum(jnp.max(hist, axis=1)) / jnp.float32(N)
    yp_flat = yp.reshape(n_pad)[:N]
    return loss, acc, yp_flat, hist


def _reference_forward(x, centers, y, num_classes, op='l2'):
    """Pure-JAX mirror of the PyTorch forward for verification."""
    diff = x[:, None, :] - centers[None, :, :]
    if op == 'l2':
        dist = jnp.sum(diff * diff, axis=-1)
    else:
        dist = jnp.sum(jnp.abs(diff), axis=-1)
    yp = jnp.argmin(dist, axis=-1)
    loss = jnp.sum(jnp.min(dist, axis=-1))
    hist = jnp.zeros((centers.shape[0], num_classes), jnp.float32)
    hist = hist.at[yp, y].add(1.0)
    acc = jnp.sum(jnp.max(hist, axis=1)) / x.shape[0]
    return loss, acc, yp, loss.dtype.type(0), hist, dist


def _check(op, loss, acc, yp, hist, X, centers, y, num_classes):
    N = X.shape[0]
    rloss, racc, ryp, _, rhist, rdist = _reference_forward(X, centers, y, num_classes, op=op)
    dist_ref = np.asarray(rdist)
    yp_np = np.asarray(yp)
    ryp_np = np.asarray(ryp)
    min_ref = dist_ref.min(axis=1)
    chosen = dist_ref[np.arange(N), yp_np]
    # The kernel's chosen cluster must be (near-)optimal under the reference metric.
    np.testing.assert_array_less(chosen - min_ref, 1e-3)
    sorted_d = np.sort(dist_ref, axis=1)
    gap = sorted_d[:, 1] - sorted_d[:, 0]
    unambiguous = gap > 1e-3
    np.testing.assert_array_equal(yp_np[unambiguous], ryp_np[unambiguous])
    n_amb = int((~unambiguous).sum())

    np.testing.assert_allclose(np.asarray(loss), np.asarray(rloss), rtol=2e-4)
    assert abs(float(acc) - float(racc)) <= (2.0 * n_amb / N) + 1e-5, (op, acc, racc)
    assert np.abs(np.asarray(hist) - np.asarray(rhist)).sum() <= 2 * n_amb + 1e-3, op


if __name__ == "__main__":
    key = jax.random.PRNGKey(0)
    N, D = 10000, 32          # points (matches the module's batch_size), feature dim
    K = 10                    # n_clusters
    NUM_CLASSES = 10

    kx, kc, ky = jax.random.split(key, 3)
    X = jax.random.normal(kx, (N, D), dtype=jnp.float32)
    # KMEANS.__init__: centers initialized from random rows of the input matrix.
    init_rows = jax.random.randint(kc, (K,), 0, N)
    centers = X[init_rows]
    y = jax.random.randint(ky, (N,), 0, NUM_CLASSES, dtype=jnp.int32)

    # L2 (default forward path) -- N is NOT a multiple of tile_n, exercising the
    # masked tail tile.
    loss, acc, yp, hist = kmeans_forward(X, centers, y, NUM_CLASSES, op='l2')
    jax.block_until_ready((loss, acc, yp, hist))
    _check('l2', loss, acc, yp, hist, X, centers, y, NUM_CLASSES)

    # L1 path (restructured branch, no (K, TN, D) broadcast).
    loss1, acc1, yp1, hist1 = kmeans_forward(X, centers, y, NUM_CLASSES, op='l1')
    jax.block_until_ready((loss1, acc1, yp1, hist1))
    _check('l1', loss1, acc1, yp1, hist1, X, centers, y, NUM_CLASSES)

    print("KERNEL_OK")
</pallas_src>

<mosaic_0001>
module attributes {stable_mosaic.version = 11 : i64} {
  func.func @_kmeans_kernel(%arg0: i32, %arg1: i32, %arg2: memref<4096x32xf32, #tpu.memory_space<vmem>>, %arg3: memref<10x32xf32, #tpu.memory_space<vmem>>, %arg4: memref<1x1x4096xi32, #tpu.memory_space<vmem>>, %arg5: memref<1x1x1xf32, #tpu.memory_space<vmem>>, %arg6: memref<1x10x10xf32, #tpu.memory_space<vmem>>, %arg7: memref<1x1x4096xi32, #tpu.memory_space<vmem>>, %arg8: memref<10x1xf32, #tpu.memory_space<vmem>>, %arg9: memref<1x1xf32, #tpu.memory_space<vmem>>, %arg10: memref<10x10xf32, #tpu.memory_space<vmem>>) attributes {dimension_semantics = [#tpu.dimension_semantics<parallel>, #tpu.dimension_semantics<arbitrary>], iteration_bounds = array<i64: 1, 3>, scalar_prefetch = 0 : i64, scratch_operands = 3 : i64, tpu.core_type = #tpu.core_type<tc>, window_params = [{transform_indices = @transform_0, window_bounds = array<i64: 4096, 32>}, {pipeline_mode = #tpu.pipeline_mode<synchronous>, transform_indices = @transform_1, window_bounds = array<i64: 10, 32>}, {transform_indices = @transform_2, window_bounds = array<i64: 1, 1, 4096>}, {transform_indices = @transform_3, window_bounds = array<i64: 1, 1, 1>}, {transform_indices = @transform_4, window_bounds = array<i64: 1, 10, 10>}, {transform_indices = @transform_5, window_bounds = array<i64: 1, 1, 4096>}]} {
    %c0_i32 = arith.constant 0 : i32
    %0 = arith.cmpi eq, %arg1, %c0_i32 : i32
    %1 = arith.extui %0 : i1 to i32
    %c0_i32_0 = arith.constant 0 : i32
    %2 = arith.cmpi ne, %1, %c0_i32_0 : i32
    scf.if %2 {
      %c0_28 = arith.constant 0 : index
      %c0_29 = arith.constant 0 : index
      %68 = vector.load %arg3[%c0_28, %c0_29] : memref<10x32xf32, #tpu.memory_space<vmem>>, vector<10x32xf32>
      %69 = arith.mulf %68, %68 : vector<10x32xf32>
      %cst_30 = arith.constant dense<0.000000e+00> : vector<10xf32>
      %70 = vector.multi_reduction <add>, %69, %cst_30 [1] : vector<10x32xf32> to vector<10xf32>
      %71 = vector.shape_cast %70 : vector<10xf32> to vector<10x1xf32>
      %c0_31 = arith.constant 0 : index
      %c0_32 = arith.constant 0 : index
      %72 = vector.load %arg8[%c0_31, %c0_32] : memref<10x1xf32, #tpu.memory_space<vmem>>, vector<10x1xf32>
      tpu.vector_store %arg8[%c0_31, %c0_32], %71 {strides = array<i32>} : memref<10x1xf32, #tpu.memory_space<vmem>>, vector<10x1xf32>,
      %cst_33 = arith.constant 0.000000e+00 : f32
      %73 = vector.broadcast %cst_33 : f32 to vector<1x1xf32>
      %c0_34 = arith.constant 0 : index
      %c0_35 = arith.constant 0 : index
      %74 = vector.load %arg9[%c0_34, %c0_35] : memref<1x1xf32, #tpu.memory_space<vmem>>, vector<1x1xf32>
      tpu.vector_store %arg9[%c0_34, %c0_35], %73 {strides = array<i32>} : memref<1x1xf32, #tpu.memory_space<vmem>>, vector<1x1xf32>,
      %cst_36 = arith.constant 0.000000e+00 : f32
      %75 = vector.broadcast %cst_36 : f32 to vector<10x10xf32>
      %c0_37 = arith.constant 0 : index
      %c0_38 = arith.constant 0 : index
      %76 = vector.load %arg10[%c0_37, %c0_38] : memref<10x10xf32, #tpu.memory_space<vmem>>, vector<10x10xf32>
      tpu.vector_store %arg10[%c0_37, %c0_38], %75 {strides = array<i32>} : memref<10x10xf32, #tpu.memory_space<vmem>>, vector<10x10xf32>,
    } else {
    }
    %c3_i32 = arith.constant 3 : i32
    %3 = arith.muli %arg0, %c3_i32 : i32
    %4 = arith.addi %3, %arg1 : i32
    %c4096_i32 = arith.constant 4096 : i32
    %5 = arith.muli %4, %c4096_i32 : i32
    %c0 = arith.constant 0 : index
    %c0_1 = arith.constant 0 : index
    %6 = vector.load %arg2[%c0, %c0_1] : memref<4096x32xf32, #tpu.memory_space<vmem>>, vector<4096x32xf32>
    %c0_2 = arith.constant 0 : index
    %c0_3 = arith.constant 0 : index
    %c0_4 = arith.constant 0 : index
    %7 = vector.load %arg4[%c0_2, %c0_3, %c0_4] : memref<1x1x4096xi32, #tpu.memory_space<vmem>>, vector<1x1x4096xi32>
    %8 = vector.shape_cast %7 : vector<1x1x4096xi32> to vector<1x4096xi32>
    %9 = tpu.iota {dimensions = array<i32: 0>} : vector<10x4096xi32>
    %10 = vector.broadcast %8 : vector<1x4096xi32> to vector<10x4096xi32>
    %11 = arith.cmpi eq, %9, %10 : vector<10x4096xi32>
    %12 = arith.extui %11 : vector<10x4096xi1> to vector<10x4096xi32>
    %13 = arith.sitofp %12 : vector<10x4096xi32> to vector<10x4096xf32>
    %c0_5 = arith.constant 0 : index
    %c0_6 = arith.constant 0 : index
    %14 = vector.load %arg3[%c0_5, %c0_6] : memref<10x32xf32, #tpu.memory_space<vmem>>, vector<10x32xf32>
    %cst = arith.constant dense<0.000000e+00> : vector<10x4096xf32>
    %15 = tpu.matmul %14, %6, %cst {dimension_numbers = #tpu.dot_dimension_numbers<[1], [1], [0], [0], [0, 0, 1, 0], [], []>} : vector<10x32xf32>, vector<4096x32xf32>, vector<10x4096xf32> -> vector<10x4096xf32>
    %c0_7 = arith.constant 0 : index
    %c0_8 = arith.constant 0 : index
    %16 = vector.load %arg8[%c0_7, %c0_8] : memref<10x1xf32, #tpu.memory_space<vmem>>, vector<10x1xf32>
    %cst_9 = arith.constant 2.000000e+00 : f32
    %17 = vector.broadcast %cst_9 : f32 to vector<10x4096xf32>
    %18 = arith.mulf %17, %15 : vector<10x4096xf32>
    %19 = vector.broadcast %16 : vector<10x1xf32> to vector<10x4096xf32>
    %20 = arith.subf %19, %18 : vector<10x4096xf32>
    %cst_10 = arith.constant dense<0x7F800000> : vector<4096xf32>
    %21 = vector.multi_reduction <minimumf>, %20, %cst_10 [0] : vector<10x4096xf32> to vector<4096xf32>
    %22 = vector.shape_cast %21 : vector<4096xf32> to vector<1x4096xf32>
    %23 = tpu.iota {dimensions = array<i32: 0>} : vector<10x4096xi32>
    %24 = vector.broadcast %22 : vector<1x4096xf32> to vector<10x4096xf32>
    %25 = arith.cmpf oeq, %20, %24 : vector<10x4096xf32>
    %c10_i32 = arith.constant 10 : i32
    %26 = vector.broadcast %c10_i32 : i32 to vector<10x4096xi32>
    %27 = arith.select %25, %23, %26 : vector<10x4096xi1>, vector<10x4096xi32>
    %cst_11 = arith.constant dense<2147483647> : vector<4096xi32>
    %28 = vector.multi_reduction <minsi>, %27, %cst_11 [0] : vector<10x4096xi32> to vector<4096xi32>
    %29 = vector.shape_cast %28 : vector<4096xi32> to vector<1x4096xi32>
    %c0_12 = arith.constant 0 : index
    %c0_13 = arith.constant 0 : index
    %c0_14 = arith.constant 0 : index
    %30 = vector.load %arg7[%c0_12, %c0_13, %c0_14] : memref<1x1x4096xi32, #tpu.memory_space<vmem>>, vector<1x1x4096xi32>
    %31 = vector.shape_cast %30 : vector<1x1x4096xi32> to vector<1x4096xi32>
    %32 = vector.shape_cast %29 : vector<1x4096xi32> to vector<1x1x4096xi32>
    tpu.vector_store %arg7[%c0_12, %c0_13, %c0_14], %32 {strides = array<i32>} : memref<1x1x4096xi32, #tpu.memory_space<vmem>>, vector<1x1x4096xi32>,
    %33 = tpu.iota {dimensions = array<i32: 1>} : vector<1x4096xi32>
    %34 = vector.broadcast %5 : i32 to vector<1x4096xi32>
    %35 = arith.addi %34, %33 : vector<1x4096xi32>
    %c10000_i32 = arith.constant 10000 : i32
    %36 = vector.broadcast %c10000_i32 : i32 to vector<1x4096xi32>
    %37 = arith.cmpi slt, %35, %36 : vector<1x4096xi32>
    %38 = arith.mulf %6, %6 : vector<4096x32xf32>
    %39 = vector.shape_cast %38 : vector<4096x32xf32> to vector<1x4096x32xf32>
    %cst_15 = arith.constant dense<0.000000e+00> : vector<1xf32>
    %40 = vector.multi_reduction <add>, %39, %cst_15 [1, 2] : vector<1x4096x32xf32> to vector<1xf32>
    %41 = vector.shape_cast %40 : vector<1xf32> to vector<1x1x1xf32>
    %42 = vector.extract %41[0, 0, 0] : f32 from vector<1x1x1xf32>
    %43 = vector.broadcast %42 : f32 to vector<1x1xf32>
    %c0_16 = arith.constant 0 : index
    %c0_17 = arith.constant 0 : index
    %44 = vector.load %arg9[%c0_16, %c0_17] : memref<1x1xf32, #tpu.memory_space<vmem>>, vector<1x1xf32>
    %cst_18 = arith.constant 0.000000e+00 : f32
    %45 = vector.broadcast %cst_18 : f32 to vector<1x4096xf32>
    %46 = arith.select %37, %22, %45 : vector<1x4096xi1>, vector<1x4096xf32>
    %47 = vector.shape_cast %46 : vector<1x4096xf32> to vector<1x1x4096xf32>
    %cst_19 = arith.constant dense<0.000000e+00> : vector<1xf32>
    %48 = vector.multi_reduction <add>, %47, %cst_19 [1, 2] : vector<1x1x4096xf32> to vector<1xf32>
    %49 = vector.shape_cast %48 : vector<1xf32> to vector<1x1x1xf32>
    %50 = vector.extract %49[0, 0, 0] : f32 from vector<1x1x1xf32>
    %51 = vector.broadcast %50 : f32 to vector<1x1xf32>
    %52 = arith.addf %43, %51 : vector<1x1xf32>
    %53 = arith.addf %44, %52 : vector<1x1xf32>
    %c0_20 = arith.constant 0 : index
    %c0_21 = arith.constant 0 : index
    %54 = vector.load %arg9[%c0_20, %c0_21] : memref<1x1xf32, #tpu.memory_space<vmem>>, vector<1x1xf32>
    tpu.vector_store %arg9[%c0_20, %c0_21], %53 {strides = array<i32>} : memref<1x1xf32, #tpu.memory_space<vmem>>, vector<1x1xf32>,
    %55 = vector.broadcast %29 : vector<1x4096xi32> to vector<10x4096xi32>
    %56 = arith.cmpi eq, %23, %55 : vector<10x4096xi32>
    %57 = vector.broadcast %37 : vector<1x4096xi1> to vector<10x4096xi1>
    %58 = arith.andi %56, %57 : vector<10x4096xi1>
    %59 = arith.extui %58 : vector<10x4096xi1> to vector<10x4096xi32>
    %60 = arith.sitofp %59 : vector<10x4096xi32> to vector<10x4096xf32>
    %c0_22 = arith.constant 0 : index
    %c0_23 = arith.constant 0 : index
    %61 = vector.load %arg10[%c0_22, %c0_23] : memref<10x10xf32, #tpu.memory_space<vmem>>, vector<10x10xf32>
    %cst_24 = arith.constant dense<0.000000e+00> : vector<10x10xf32>
    %62 = tpu.matmul %60, %13, %cst_24 {dimension_numbers = #tpu.dot_dimension_numbers<[1], [1], [0], [0], [0, 0, 1, 0], [], []>} : vector<10x4096xf32>, vector<10x4096xf32>, vector<10x10xf32> -> vector<10x10xf32>
    %63 = arith.addf %61, %62 : vector<10x10xf32>
    %c0_25 = arith.constant 0 : index
    %c0_26 = arith.constant 0 : index
    %64 = vector.load %arg10[%c0_25, %c0_26] : memref<10x10xf32, #tpu.memory_space<vmem>>, vector<10x10xf32>
    tpu.vector_store %arg10[%c0_25, %c0_26], %63 {strides = array<i32>} : memref<10x10xf32, #tpu.memory_space<vmem>>, vector<10x10xf32>,
    %c2_i32 = arith.constant 2 : i32
    %65 = arith.cmpi eq, %arg1, %c2_i32 : i32
    %66 = arith.extui %65 : i1 to i32
    %c0_i32_27 = arith.constant 0 : i32
    %67 = arith.cmpi ne, %66, %c0_i32_27 : i32
    scf.if %67 {
      %c0_28 = arith.constant 0 : index
      %c0_29 = arith.constant 0 : index
      %68 = vector.load %arg9[%c0_28, %c0_29] : memref<1x1xf32, #tpu.memory_space<vmem>>, vector<1x1xf32>
      %c0_30 = arith.constant 0 : index
      %c0_31 = arith.constant 0 : index
      %c0_32 = arith.constant 0 : index
      %69 = vector.load %arg5[%c0_30, %c0_31, %c0_32] : memref<1x1x1xf32, #tpu.memory_space<vmem>>, vector<1x1x1xf32>
      %70 = vector.shape_cast %69 : vector<1x1x1xf32> to vector<1x1xf32>
      %71 = vector.shape_cast %68 : vector<1x1xf32> to vector<1x1x1xf32>
      tpu.vector_store %arg5[%c0_30, %c0_31, %c0_32], %71 {strides = array<i32>} : memref<1x1x1xf32, #tpu.memory_space<vmem>>, vector<1x1x1xf32>,
      %c0_33 = arith.constant 0 : index
      %c0_34 = arith.constant 0 : index
      %72 = vector.load %arg10[%c0_33, %c0_34] : memref<10x10xf32, #tpu.memory_space<vmem>>, vector<10x10xf32>
      %c0_35 = arith.constant 0 : index
      %c0_36 = arith.constant 0 : index
      %c0_37 = arith.constant 0 : index
      %73 = vector.load %arg6[%c0_35, %c0_36, %c0_37] : memref<1x10x10xf32, #tpu.memory_space<vmem>>, vector<1x10x10xf32>
      %74 = vector.shape_cast %73 : vector<1x10x10xf32> to vector<10x10xf32>
      %75 = vector.shape_cast %72 : vector<10x10xf32> to vector<1x10x10xf32>
      tpu.vector_store %arg6[%c0_35, %c0_36, %c0_37], %75 {strides = array<i32>} : memref<1x10x10xf32, #tpu.memory_space<vmem>>, vector<1x10x10xf32>,
    } else {
    }
    return
  }
  func.func @transform_0(%arg0: i32, %arg1: i32) -> (i32, i32) {
    %c3_i32 = arith.constant 3 : i32
    %0 = arith.muli %arg0, %c3_i32 : i32
    %1 = arith.addi %0, %arg1 : i32
    %c0_i32 = arith.constant 0 : i32
    %c0_i32_0 = arith.constant 0 : i32
    return %1, %c0_i32 : i32, i32
  }
  func.func @transform_1(%arg0: i32, %arg1: i32) -> (i32, i32) {
    %c0_i32 = arith.constant 0 : i32
    %c0_i32_0 = arith.constant 0 : i32
    %c0_i32_1 = arith.constant 0 : i32
    return %c0_i32, %c0_i32_0 : i32, i32
  }
  func.func @transform_2(%arg0: i32, %arg1: i32) -> (i32, i32, i32) {
    %c3_i32 = arith.constant 3 : i32
    %0 = arith.muli %arg0, %c3_i32 : i32
    %1 = arith.addi %0, %arg1 : i32
    %c0_i32 = arith.constant 0 : i32
    %c0_i32_0 = arith.constant 0 : i32
    %c0_i32_1 = arith.constant 0 : i32
    return %1, %c0_i32, %c0_i32_0 : i32, i32, i32
  }
  func.func @transform_3(%arg0: i32, %arg1: i32) -> (i32, i32, i32) {
    %c0_i32 = arith.constant 0 : i32
    %c0_i32_0 = arith.constant 0 : i32
    %c0_i32_1 = arith.constant 0 : i32
    return %arg0, %c0_i32, %c0_i32_0 : i32, i32, i32
  }
  func.func @transform_4(%arg0: i32, %arg1: i32) -> (i32, i32, i32) {
    %c0_i32 = arith.constant 0 : i32
    %c0_i32_0 = arith.constant 0 : i32
    %c0_i32_1 = arith.constant 0 : i32
    return %arg0, %c0_i32, %c0_i32_0 : i32, i32, i32
  }
  func.func @transform_5(%arg0: i32, %arg1: i32) -> (i32, i32, i32) {
    %c3_i32 = arith.constant 3 : i32
    %0 = arith.muli %arg0, %c3_i32 : i32
    %1 = arith.addi %0, %arg1 : i32
    %c0_i32 = arith.constant 0 : i32
    %c0_i32_0 = arith.constant 0 : i32
    %c0_i32_1 = arith.constant 0 : i32
    return %1, %c0_i32, %c0_i32_0 : i32, i32, i32
  }
}

</mosaic_0001>

<bundles_post_ra>
// kernel: tpu_custom_call.1
= control target key start
LH: loop header
LB: loop body
LE: loop exit
PB: predicated region body
PF: predicated region fallthrough
CT: control target
= control target key end

     0   :  { %11 = vsyncpa [#allocation6], 0  ;;  %s16164_s0 = inlined_call_operand.vmem [shape: f32[12288,32], index: 0, kind: input, shape index: {}]   ;;  %s16165_s1 = inlined_call_operand.vmem [shape: f32[10,32], index: 1, kind: input, shape index: {}]   ;;  %s16166_s2 = inlined_call_operand.vmem [shape: s32[3,1,4096], index: 2, kind: input, shape index: {}]   ;;  %s16167_s3 = inlined_call_operand.hbm [shape: f32[1,1,1], index: 3, kind: output, shape index: {0}]   ;;  %s16168_s4 = inlined_call_operand.vmem [shape: f32[1,10,10], index: 4, kind: output, shape index: {1}]   ;;  %s16169_s5 = inlined_call_operand.hbm [shape: s32[3,1,4096], index: 5, kind: output, shape index: {2}]  }
   0x1   :  { %12 = vsyncpa [#allocation8], 0 }
   0x2   :  { %14 = vsyncpa [#allocation8 + $0x1], 0  ;;  %s10518_s18 = smov 0   ;;  %s10520_s19 = smov 0  }
   0x3   :  { %s10522_s20 = smov 0   ;;  %s10524_s21 = smov 0  }
   0x4   :  { %s10526_s22 = smov 0   ;;  %s10528_s23 = smov 0  }
   0x5 LB: > { %s8506_s24 = sadd.s32 4294967295, %s10480_s23   ;;  %s8507_s25 = sadd.s32 4294967294, %s10480_s23   ;;  %s10480_s23 = sphi %s10528_s23, %s20_s23   ;;  %s10476_s22 = sphi %s10526_s22, %s16887_s22   ;;  %s10472_s21 = sphi %s10524_s21, %s16886_s21   ;;  %s10468_s20 = sphi %s10522_s20, %s16885_s20   ;;  %s10464_s19 = sphi %s10520_s19, %s16884_s19   ;;  %s10460_s18 = sphi %s10518_s18, %s16883_s18  }
   0x6   : > { %s29_s26 = sadd.s32 1, %s10476_s22  ;;  %s176_s27 = sadd.s32 1, %s10468_s20 }
   0x7   : > { %p30_p0 = scmp.ge.s32.totalorder %s29_s26, 3  ;;  %p186_p1 = scmp.ne.s32.totalorder %s10468_s20, %s10464_s19 }
   0x8   : > { %p10554_p2 = scmp.eq.s32.totalorder %s8506_s24, 2  ;;  %p192_p3 = scmp.ne.s32.totalorder %s10464_s19, %s10460_s18 }
   0x9   : > { %s16889_s26 = smov (%p30_p0, %s29_s26), 0  ;;  %p193_p5 = scmp.eq.s32.totalorder %s8507_s25, 2 }
   0xa   : > { %16239 = sst [smem:[#allocation11_spill]] %s16889_s26  ;;  %p10564_p4 = por %p10554_p2, %p186_p1 }
   0xb   : > { %s173_s30 = ssub.s32 %s10476_s22, %s16889_s26  ;;  %p8510_p6 = scmp.ge.s32.totalorder %s10480_s23, 1 }
   0xc   : > { %p174_p7 = scmp.eq.s32.totalorder %s173_s30, 0  ;;  %p10571_p8 = por %p193_p5, %p192_p3 }
   0xd   : > { %p238_p9 = scmp.lt.s32.totalorder %s10480_s23, 4 }
   0xe   : > { %s10577_s7 = scalar_select %p174_p7, %s10468_s20, %s176_s27  }
   0xf   : > { %p239_p10 = pnand %p8510_p6, %p238_p9 }
  0x11   : > { %242 = sbr.rel (%p239_p10) target bundleno = 1516 (0x5ec), region = 32 }
  0x16   : > { %s16170_s8 = sand.u32 1, %s10464_s19   ;;  %s10581_s9 = sshll.u32 %s10472_s21, 9 }
  0x17   : > { %s8511_s10 = sshll.u32 %s16170_s8, 5  ;;  %p282_p11 = scmp.lt.s32.totalorder %s10581_s9, 1535 }
  0x18   : > { %p291_p12 = scmp.lt.s32.totalorder %s10472_s21, 2  ;;  %s10599_s30 = scalar_lea.vmem [#allocation7], %s8511_s10 }
  0x19   : > { %s283_s11 = scalar_select %p282_p11, %s10581_s9, 1535 }
  0x1a   : > { %s292_s12 = scalar_select %p291_p12, %s10472_s21, 2 }
  0x1b   : > { %s8513_s13 = sshll.u32 %s283_s11, 3  ;;  %p8515_p13 = scmp.ne.s32.totalorder %s10472_s21, 0 }
  0x1c   : > { %s10592_s16 = scalar_lea.vmem %s16164_s0, %s8513_s13  ;;  %s8514_s17 = sshll.u32 %s292_s12, 5 }
  0x1d   : > { %s10597_s27 = scalar_lea.vmem %s16166_s2, %s8514_s17  ;;  %307 = sbr.rel (%p8515_p13) target bundleno = 181 (0xb5), region = 36 }
  0x22   : > { %v308_v0 = vld [vmem:[%s16165_s1] sm:$0xff]  ;;  %vm312_vm0 = vcmask 261120   ;;  %v309_v1 = vld [vmem:[%s16165_s1 + $0x8] sm:$0x3]  ;;  %vm316_vm1 = vcmask 254976   ;;  %vm324_vm2 = vcmask 0  }
  0x23   : > { %v310_v2 = vmul.f32 %v308_v0, %v308_v0  ;;  %v311_v3 = vmul.f32 %v309_v1, %v309_v1  ;;  %vm326_vm3 = vcmask 80896   ;;  %vm328_vm4 = vcmask 74752  }
  0x24   : > { %v10482_v6 = vmov 0.0   ;;  %vm320_vm5 = vcmask 7168   ;;  %vm322_vm6 = vcmask 1024  }
  0x25   : > { %v313_v4 = vsel %vm312_vm0, %v310_v2, 0.0  ;;  %v317_v5 = vsel %vm316_vm1, %v311_v3, 0.0  ;;  %325 = vst.msk [vmem:[#allocation3] sm:$0x1] %vm324_vm2, %v10482_v6 }
  0x26   : > { %314 = vadd.xlane.f32.xlu0 %v313_v4  ;;  %327 = vst.msk [vmem:[#allocation4] sm:$0xff] %vm326_vm3, %v10482_v6 }
  0x27   : > { %329 = vst.msk [vmem:[#allocation4 + $0x8] sm:$0x3] %vm328_vm4, %v10482_v6 }
  0x2a   : > { %318 = vadd.xlane.f32.xlu0 %v317_v5 }
  0xaf   : > { %v315_v7 = vpop.xlane.xlu0 %314 }
  0xb0   : > { %321 = vst.msk [vmem:[#allocation2] sm:$0xff] %vm320_vm5, %v315_v7 }
  0xb3   : > { %v319_v8 = vpop.xlane.xlu0 %318 }
  0xb4   : > { %323 = vst.msk [vmem:[#allocation2 + $0x8] sm:$0x3] %vm322_vm6, %v319_v8 }
  0xb5 PF: > { %v10609_v9 = vld [vmem:[%s10592_s16 + $0xf8] sm:$0xff]  ;;  %vm16223_vm7 = vcmask 261120   ;;  %v10625_v13 = vld [vmem:[%s10592_s16 + $0xf0] sm:$0xff]  ;;  %v10645_v17 = vld [vmem:[%s10592_s16 + $0xe8] sm:$0xff]  ;;  %vm16222_vm8 = vcmask 1041408   ;;  %s8516_s12 = sshll.u32 %s10472_s21, 12 }
  0xb6   : > { %v10612_v10 = vld [vmem:[%s10592_s16 + $0x78] sm:$0xff]  ;;  %9327 = vmatprep.subr.msk.mxu0 %vm16223_vm7, %v10609_v9  ;;  %v10632_v14 = vld [vmem:[%s10592_s16 + $0x1f0] sm:$0xff]  ;;  %v10648_v18 = vld [vmem:[%s10592_s16 + $0x1e8] sm:$0xff]  ;;  %p9317_p0 = scmp.ne.s32.totalorder %s10472_s21, 2 }
  0xb7   : > { %v10615_v11 = vld [vmem:[%s10592_s16 + $0x1f8] sm:$0xff]  ;;  %9328 = vmatpush3.xpose.msk.msra.mxu0 %vm16223_vm7, %v10612_v10  ;;  %v10637_v15 = vld [vmem:[%s10592_s16 + $0x70] sm:$0xff]  ;;  %v10657_v19 = vld [vmem:[%s10592_s16 + $0x68] sm:$0xff] }
  0xb8   : > { %9363 = vmatprep.subr.msk.mxu1 %vm16223_vm7, %v10615_v11  ;;  %v10622_v12 = vld [vmem:[%s10592_s16 + $0x178] sm:$0xff]  ;;  %9329 = vmatprep.subr.msk.mxu0 %vm16223_vm7, %v10625_v13  ;;  %v10642_v16 = vld [vmem:[%s10592_s16 + $0x170] sm:$0xff]  ;;  %v10662_v20 = vld [vmem:[%s10592_s16 + $0x168] sm:$0xff] }
  0xb9   : > { %9364 = vmatpush3.xpose.msk.msra.mxu1 %vm16223_vm7, %v10622_v12  ;;  %v10665_v21 = vld [vmem:[%s10592_s16 + $0xe0] sm:$0xff]  ;;  %v10685_v25 = vld [vmem:[%s10592_s16 + $0xd8] sm:$0xff]  ;;  %v10705_v29 = vld [vmem:[%s10592_s16 + $0xd0] sm:$0xff] }
  0xba   : > { %9365 = vmatprep.subr.msk.mxu1 %vm16223_vm7, %v10632_v14  ;;  %v10668_v22 = vld [vmem:[%s10592_s16 + $0x1e0] sm:$0xff]  ;;  %v10688_v26 = vld [vmem:[%s10592_s16 + $0x1d8] sm:$0xff]  ;;  %v10708_v30 = vld [vmem:[%s10592_s16 + $0x1d0] sm:$0xff] }
  0xbb   : > { %9330 = vmatpush3.xpose.msk.msra.mxu0 %vm16223_vm7, %v10637_v15  ;;  %v10677_v23 = vld [vmem:[%s10592_s16 + $0x60] sm:$0xff]  ;;  %v10697_v27 = vld [vmem:[%s10592_s16 + $0x58] sm:$0xff]  ;;  %v10719_v31 = vld [vmem:[%s10592_s16 + $0x150] sm:$0xff] }
  0xbc   : > { %9331 = vmatprep.subr.msk.mxu0 %vm16223_vm7, %v10645_v17  ;;  %v10682_v24 = vld [vmem:[%s10592_s16 + $0x160] sm:$0xff]  ;;  %v10702_v28 = vld [vmem:[%s10592_s16 + $0x158] sm:$0xff]  ;;  %v10722_v32 = vld [vmem:[%s10592_s16 + $0xc8] sm:$0xff] }
  0xbd   : > { %9366 = vmatpush3.xpose.msk.msra.mxu1 %vm16223_vm7, %v10642_v16  ;;  %v10725_v33 = vld [vmem:[%s10592_s16 + $0x1c8] sm:$0xff]  ;;  %v10728_v34 = vld [vmem:[%s10592_s16 + $0x50] sm:$0xff]  ;;  %v10733_v35 = vld [vmem:[%s16165_s1] sm:$0xff] }
  0xbe   : > { %9367 = vmatprep.subr.msk.mxu1 %vm16223_vm7, %v10648_v18  ;;  %v10744_v36 = vld [vmem:[%s10592_s16 + $0x148] sm:$0xff]  ;;  %v10747_v37 = vld [vmem:[%s10592_s16 + $0xc0] sm:$0xff]  ;;  %9359 = vmatprep.mubr.msk.f32.mxu0 %vm16223_vm7, %v10733_v35  ;;  %v10758_v40 = vld [vmem:[%s10592_s16 + $0x10] sm:$0xff] }
  0xbf   : > { %9332 = vmatpush3.xpose.msk.msra.mxu0 %vm16223_vm7, %v10657_v19  ;;  %v10750_v38 = vld [vmem:[%s10592_s16 + $0x1c0] sm:$0xff]  ;;  %9395 = vmatprep.mubr.msk.f32.mxu1 %vm16223_vm7, %v10733_v35  ;;  %v342_v39 = vld [vmem:[%s10592_s16 + $0x48] sm:$0xff]  ;;  %v10774_v43 = vld [vmem:[%s10592_s16 + $0x18] sm:$0xff]  ;;  %v5158_v47 = vmul.f32 %v10758_v40, %v10758_v40 }
  0xc0   : > { %9333 = vmatprep.subr.msk.mxu0 %vm16223_vm7, %v10665_v21  ;;  %v10764_v41 = vld [vmem:[%s10592_s16 + $0x8] sm:$0xff]  ;;  %v10771_v42 = vld [vmem:[%s10592_s16 + $0x140] sm:$0xff]  ;;  %v10780_v45 = vld [vmem:[%s10592_s16 + $0xb8] sm:$0xff]  ;;  %v5159_v51 = vmul.f32 %v10774_v43, %v10774_v43 }
  0xc1   : > { %9368 = vmatpush3.xpose.msk.msra.mxu1 %vm16223_vm7, %v10662_v20  ;;  %v10777_v44 = vld [vmem:[%s10592_s16] sm:$0xff]  ;;  %v10783_v46 = vld [vmem:[%s10592_s16 + $0x1b8] sm:$0xff]  ;;  %v5157_v50 = vmul.f32 %v10764_v41, %v10764_v41  ;;  %v338_v54 = vld [vmem:[%s10592_s16 + $0x28] sm:$0xff]  ;;  %v5671_v59 = vsel %vm16223_vm7, %v5158_v47, 0.0 }
  0xc2   : > { %9369 = vmatprep.subr.msk.mxu1 %vm16223_vm7, %v10668_v22  ;;  %v341_v48 = vld [vmem:[%s10592_s16 + $0x40] sm:$0xff]  ;;  %v5156_v52 = vmul.f32 %v10777_v44, %v10777_v44  ;;  %v10803_v53 = vld [vmem:[%s10592_s16 + $0x138] sm:$0xff]  ;;  %v10808_v56 = vld [vmem:[%s10592_s16 + $0xb0] sm:$0xff]  ;;  %v5161_v0 = vmul.f32 %v338_v54, %v338_v54  ;;  %v5673_v1 = vsel %vm16223_vm7, %v5159_v51, 0.0 }
  0xc3   : > { %9334 = vmatpush3.xpose.msk.msra.mxu0 %vm16223_vm7, %v10677_v23  ;;  %v337_v49 = vld [vmem:[%s10592_s16 + $0x20] sm:$0xff]  ;;  %v5669_v55 = vsel %vm16223_vm7, %v5157_v50, 0.0  ;;  %v10811_v57 = vld [vmem:[%s10592_s16 + $0x1b0] sm:$0xff]  ;;  %v340_v61 = vld [vmem:[%s10592_s16 + $0x38] sm:$0xff] }
  0xc4   : > { %9335 = vmatprep.subr.msk.mxu0 %vm16223_vm7, %v10685_v25  ;;  %v5160_v58 = vmul.f32 %v337_v49, %v337_v49  ;;  %v5668_v60 = vsel %vm16223_vm7, %v5156_v52, 0.0  ;;  %v339_v62 = vld [vmem:[%s10592_s16 + $0x30] sm:$0xff]  ;;  %v10829_v5 = vld [vmem:[%s10592_s16 + $0xa8] sm:$0xff]  ;;  %v5163_v47 = vmul.f32 %v340_v61, %v340_v61  ;;  %v5677_v50 = vsel %vm16223_vm7, %v5161_v0, 0.0 }
  0xc5   : > { %9370 = vmatpush3.xpose.msk.msra.mxu1 %vm16223_vm7, %v10682_v24  ;;  %v5670_v63 = vadd.f32 %v5669_v55, %v5668_v60  ;;  %v10826_v2 = vld [vmem:[%s10592_s16 + $0x130] sm:$0xff]  ;;  %v5162_v4 = vmul.f32 %v339_v62, %v339_v62  ;;  %v10832_v6 = vld [vmem:[%s10592_s16 + $0x1a8] sm:$0xff]  ;;  %v5164_v55 = vmul.f32 %v341_v48, %v341_v48  ;;  %v5166_v0 = vmul.f32 %v10728_v34, %v10728_v34 }
  0xc6   : > { %9371 = vmatprep.subr.msk.mxu1 %vm16223_vm7, %v10688_v26  ;;  %v5675_v7 = vsel %vm16223_vm7, %v5160_v58, 0.0  ;;  %v10844_v51 = vld [vmem:[%s10592_s16 + $0x128] sm:$0xff] }
  0xc7   : > { %9336 = vmatpush3.xpose.msk.msra.mxu0 %vm16223_vm7, %v10697_v27  ;;  %v5672_v3 = vadd.f32 %v5671_v59, %v5670_v63  ;;  %v5679_v58 = vsel %vm16223_vm7, %v5162_v4, 0.0  ;;  %v10848_v59 = vld [vmem:[%s10592_s16 + $0x1a0] sm:$0xff]  ;;  %v5167_v4 = vmul.f32 %v10697_v27, %v10697_v27  ;;  %v5168_v27 = vmul.f32 %v10677_v23, %v10677_v23  ;;  %v10901_v23 = vld [vmem:[%s10592_s16 + $0x110] sm:$0xff] }
  0xc8   : > { %9337 = vmatprep.subr.msk.mxu0 %vm16223_vm7, %v10705_v29  ;;  %v10855_v63 = vld [vmem:[%s10592_s16 + $0xa0] sm:$0xff] }
  0xc9   : > { %9372 = vmatpush3.xpose.msk.msra.mxu1 %vm16223_vm7, %v10702_v28  ;;  %v5674_v8 = vadd.f32 %v5673_v1, %v5672_v3  ;;  %v10868_v1 = vld [vmem:[%s10592_s16 + $0x198] sm:$0xff] }
  0xca   : > { %9373 = vmatprep.subr.msk.mxu1 %vm16223_vm7, %v10708_v30 }
  0xcb   : > { %9338 = vmatpush3.xpose.msk.msra.mxu0 %vm16223_vm7, %v10728_v34  ;;  %v5676_v52 = vadd.f32 %v5675_v7, %v5674_v8  ;;  %v352_v8 = vld [vmem:[%s10592_s16 + $0x98] sm:$0xff] }
  0xcc   : > { %9339 = vmatprep.subr.msk.mxu0 %vm16223_vm7, %v10722_v32  ;;  %v10881_v34 = vld [vmem:[%s10592_s16 + $0x118] sm:$0xff] }
  0xcd   : > { %9374 = vmatpush3.xpose.msk.msra.mxu1 %vm16223_vm7, %v10719_v31  ;;  %v5678_v60 = vadd.f32 %v5677_v50, %v5676_v52  ;;  %v10887_v50 = vld [vmem:[%s10592_s16 + $0x190] sm:$0xff] }
  0xce   : > { %9375 = vmatprep.subr.msk.mxu1 %vm16223_vm7, %v10725_v33 }
  0xcf   : > { %9340 = vmatpush3.xpose.msk.msra.mxu0 %vm16223_vm7, %v342_v39 }
  0xd0   : > { %9341 = vmatprep.subr.msk.mxu0 %vm16223_vm7, %v10747_v37 }
  0xd1   : > { %9376 = vmatpush3.xpose.msk.msra.mxu1 %vm16223_vm7, %v10744_v36 }
  0xd2   : > { %9377 = vmatprep.subr.msk.mxu1 %vm16223_vm7, %v10750_v38 }
  0xd3   : > { %9342 = vmatpush3.xpose.msk.msra.mxu0 %vm16223_vm7, %v341_v48  ;;  %v10862_v48 = vld [vmem:[%s10592_s16 + $0x120] sm:$0xff] }
  0xd4   : > { %9343 = vmatprep.subr.msk.mxu0 %vm16223_vm7, %v10780_v45 }
  0xd5   : > { %9378 = vmatpush3.xpose.msk.msra.mxu1 %vm16223_vm7, %v10771_v42 }
  0xd6   : > { %9379 = vmatprep.subr.msk.mxu1 %vm16223_vm7, %v10783_v46 }
  0xd7   : > { %9344 = vmatpush3.xpose.msk.msra.mxu0 %vm16223_vm7, %v340_v61  ;;  %v5165_v61 = vmul.f32 %v342_v39, %v342_v39  ;;  %v5680_v39 = vadd.f32 %v5679_v58, %v5678_v60  ;;  %v5689_v58 = vsel %vm16223_vm7, %v5167_v4, 0.0  ;;  %v351_v60 = vld [vmem:[%s10592_s16 + $0x90] sm:$0xff]  ;;  %v350_v4 = vld [vmem:[%s10592_s16 + $0x88] sm:$0xff] }
  0xd8   : > { %9345 = vmatprep.subr.msk.mxu0 %vm16223_vm7, %v10808_v56 }
  0xd9   : > { %9380 = vmatpush3.xpose.msk.msra.mxu1 %vm16223_vm7, %v10803_v53  ;;  %v5685_v7 = vsel %vm16223_vm7, %v5165_v61, 0.0 }
  0xda   : > { %9381 = vmatprep.subr.msk.mxu1 %vm16223_vm7, %v10811_v57 }
  0xdb   : > { %9346 = vmatpush3.xpose.msk.msra.mxu0 %vm16223_vm7, %v339_v62  ;;  %v5681_v62 = vsel %vm16223_vm7, %v5163_v47, 0.0 }
  0xdc   : > { %9347 = vmatprep.subr.msk.mxu0 %vm16223_vm7, %v10829_v5  ;;  %v5682_v3 = vadd.f32 %v5681_v62, %v5680_v39  ;;  %v10907_v62 = vld [vmem:[%s10592_s16 + $0x188] sm:$0xff]  ;;  %v349_v39 = vld [vmem:[%s10592_s16 + $0x80] sm:$0xff] }
  0xdd   : > { %9382 = vmatpush3.xpose.msk.msra.mxu1 %vm16223_vm7, %v10826_v2 }
  0xde   : > { %9383 = vmatprep.subr.msk.mxu1 %vm16223_vm7, %v10832_v6 }
  0xdf   : > { %9348 = vmatpush3.xpose.msk.msra.mxu0 %vm16223_vm7, %v338_v54  ;;  %v5683_v54 = vsel %vm16223_vm7, %v5164_v55, 0.0  ;;  %v5169_v55 = vmul.f32 %v10657_v19, %v10657_v19  ;;  %v5170_v19 = vmul.f32 %v10637_v15, %v10637_v15  ;;  %v10922_v15 = vld [vmem:[%s10592_s16 + $0x108] sm:$0xff] }
  0xe0   : > { %9349 = vmatprep.subr.msk.mxu0 %vm16223_vm7, %v10855_v63  ;;  %v5684_v47 = vadd.f32 %v5683_v54, %v5682_v3  ;;  %v5171_v54 = vmul.f32 %v10612_v10, %v10612_v10 }
  0xe1   : > { %9384 = vmatpush3.xpose.msk.msra.mxu1 %vm16223_vm7, %v10844_v51  ;;  %v5693_v3 = vsel %vm16223_vm7, %v5169_v55, 0.0  ;;  %v5695_v10 = vsel %vm16223_vm7, %v5170_v19, 0.0 }
  0xe2   : > { %9385 = vmatprep.subr.msk.mxu1 %vm16223_vm7, %v10848_v59  ;;  %v5686_v52 = vadd.f32 %v5685_v7, %v5684_v47  ;;  %v5172_v47 = vmul.f32 %v349_v39, %v349_v39 }
  0xe3   : > { %9350 = vmatpush3.xpose.msk.msra.mxu0 %vm16223_vm7, %v337_v49  ;;  %v5687_v49 = vsel %vm16223_vm7, %v5166_v0, 0.0 }
  0xe4   : > { %9351 = vmatprep.subr.msk.mxu0 %vm16223_vm7, %v352_v8  ;;  %v5688_v61 = vadd.f32 %v5687_v49, %v5686_v52  ;;  %v5697_v49 = vsel %vm16223_vm7, %v5171_v54, 0.0  ;;  %v5173_v52 = vmul.f32 %v350_v4, %v350_v4  ;;  %v5699_v19 = vsel %vm16223_vm7, %v5172_v47, 0.0 }
  0xe5   : > { %9386 = vmatpush3.xpose.msk.msra.mxu1 %vm16223_vm7, %v10862_v48  ;;  %v5175_v54 = vmul.f32 %v352_v8, %v352_v8  ;;  %v5176_v8 = vmul.f32 %v10855_v63, %v10855_v63  ;;  %v5177_v63 = vmul.f32 %v10829_v5, %v10829_v5 }
  0xe6   : > { %9387 = vmatprep.subr.msk.mxu1 %vm16223_vm7, %v10868_v1  ;;  %v5690_v0 = vadd.f32 %v5689_v58, %v5688_v61  ;;  %v10937_v58 = vld [vmem:[%s10592_s16 + $0x100] sm:$0xff]  ;;  %v5174_v61 = vmul.f32 %v351_v60, %v351_v60 }
  0xe7   : > { %9352 = vmatpush3.xpose.msk.msra.mxu0 %vm16223_vm7, %v10774_v43  ;;  %v5691_v43 = vsel %vm16223_vm7, %v5168_v27, 0.0  ;;  %v10926_v27 = vld [vmem:[%s10592_s16 + $0x180] sm:$0xff]  ;;  %v5707_v5 = vsel %vm16223_vm7, %v5176_v8, 0.0 }
  0xe8   : > { %9353 = vmatprep.subr.msk.mxu0 %vm16223_vm7, %v351_v60  ;;  %v5692_v7 = vadd.f32 %v5691_v43, %v5690_v0  ;;  %v428_v43 = vld [vmem:[%s10592_s16 + $0x2f8] sm:$0xff] }
  0xe9   : > { %9388 = vmatpush3.xpose.msk.msra.mxu1 %vm16223_vm7, %v10881_v34  ;;  %v10949_v60 = vld [vmem:[%s10592_s16 + $0x278] sm:$0xff] }
  0xea   : > { %9389 = vmatprep.subr.msk.mxu1 %vm16223_vm7, %v10887_v50 }
  0xeb   : > { %9354 = vmatpush3.xpose.msk.msra.mxu0 %vm16223_vm7, %v10758_v40  ;;  %v5694_v40 = vadd.f32 %v5693_v3, %v5692_v7  ;;  %v5701_v3 = vsel %vm16223_vm7, %v5173_v52, 0.0  ;;  %v5703_v7 = vsel %vm16223_vm7, %v5174_v61, 0.0  ;;  %v443_v61 = vld [vmem:[%s10592_s16 + $0x370] sm:$0xff] }
  0xec   : > { %9355 = vmatprep.subr.msk.mxu0 %vm16223_vm7, %v350_v4  ;;  %v444_v4 = vld [vmem:[%s10592_s16 + $0x378] sm:$0xff] }
  0xed   : > { %9390 = vmatpush3.xpose.msk.msra.mxu1 %vm16223_vm7, %v10901_v23  ;;  %v5696_v55 = vadd.f32 %v5695_v10, %v5694_v40  ;;  %v427_v10 = vld [vmem:[%s10592_s16 + $0x2f0] sm:$0xff]  ;;  %v10965_v40 = vld [vmem:[%s16165_s1 + $0x8] sm:$0x3] }
  0xee   : > { %9391 = vmatprep.subr.msk.mxu1 %vm16223_vm7, %v10907_v62 }
  0xef   : > { %9356 = vmatpush3.xpose.msk.msra.mxu0 %vm16223_vm7, %v10764_v41  ;;  %v460_v41 = vld [vmem:[%s10592_s16 + $0x3f8] sm:$0xff]  ;;  %v5698_v0 = vadd.f32 %v5697_v49, %v5696_v55  ;;  %v5705_v49 = vsel %vm16223_vm7, %v5175_v54, 0.0  ;;  %v10975_v55 = vld [vmem:[%s10592_s16 + $0x270] sm:$0xff]  ;;  %v5709_v54 = vsel %vm16223_vm7, %v5177_v63, 0.0 }
  0xf0   : > { %9357 = vmatprep.subr.msk.mxu0 %vm16223_vm7, %v349_v39 }
  0xf1   : > { %9392 = vmatpush3.xpose.msk.msra.mxu1 %vm16223_vm7, %v10922_v15  ;;  %v5700_v39 = vadd.f32 %v5699_v19, %v5698_v0  ;;  %v5178_v19 = vmul.f32 %v10808_v56, %v10808_v56  ;;  %v5179_v56 = vmul.f32 %v10780_v45, %v10780_v45  ;;  %v5180_v45 = vmul.f32 %v10747_v37, %v10747_v37 }
  0xf2   : > { %9393 = vmatprep.subr.msk.mxu1 %vm16223_vm7, %v10926_v27 }
  0xf3   : > { %9358 = vmatpush3.xpose.msk.msra.mxu0 %vm16223_vm7, %v10777_v44  ;;  %v459_v44 = vld [vmem:[%s10592_s16 + $0x3f0] sm:$0xff]  ;;  %v5702_v47 = vadd.f32 %v5701_v3, %v5700_v39  ;;  %v11000_v39 = vld [vmem:[%s10592_s16 + $0x268] sm:$0xff]  ;;  %v5711_v8 = vsel %vm16223_vm7, %v5178_v19, 0.0  ;;  %v5713_v63 = vsel %vm16223_vm7, %v5179_v56, 0.0  ;;  %v11032_v19 = vld [vmem:[%s10592_s16 + $0x2d8] sm:$0xff] }
  0xf4   : > { %9399 = vmatprep.subr.msk.mxu0 %vm16223_vm7, %v428_v43  ;;  %v426_v43 = vld [vmem:[%s10592_s16 + $0x2e8] sm:$0xff] }
  0xf5   : > { %9394 = vmatpush3.xpose.msk.msra.mxu1 %vm16223_vm7, %v10937_v58  ;;  %v5704_v52 = vadd.f32 %v5703_v7, %v5702_v47  ;;  %v11008_v7 = vld [vmem:[%s10592_s16 + $0x2e0] sm:$0xff]  ;;  %v5181_v47 = vmul.f32 %v10722_v32, %v10722_v32  ;;  %v5182_v32 = vmul.f32 %v10705_v29, %v10705_v29  ;;  %v11044_v29 = vld [vmem:[%s10592_s16 + $0x258] sm:$0xff] }
  0xf6   : > { %9435 = vmatprep.subr.msk.mxu1 %vm16223_vm7, %v460_v41  ;;  %9360 = vmatmul.mubr.msk.f32.vlgmr.msra.gmra.mxu0 %vm16223_vm7, %v10733_v35  ;;  %v458_v41 = vld [vmem:[%s10592_s16 + $0x3e8] sm:$0xff] }
  0xf7   : > { %9400 = vmatpush3.xpose.msk.msra.mxu0 %vm16223_vm7, %v10949_v60  ;;  %9361 = vmatprep.mubr.msk.f32.mxu0 %vm16223_vm7, %v10965_v40  ;;  %v5706_v0 = vadd.f32 %v5705_v49, %v5704_v52  ;;  %v11024_v49 = vld [vmem:[%s10592_s16 + $0x260] sm:$0xff] }
  0xf8   : > { %9396 = vmatmul.mubr.msk.f32.vlgmr.msra.gmra.mxu1 %vm16223_vm7, %v10733_v35  ;;  %9401 = vmatprep.subr.msk.mxu0 %vm16223_vm7, %v427_v10  ;;  %v457_v10 = vld [vmem:[%s10592_s16 + $0x3e0] sm:$0xff] }
  0xf9   : > { %9436 = vmatpush3.xpose.msk.msra.mxu1 %vm16223_vm7, %v444_v4  ;;  %9397 = vmatprep.mubr.msk.f32.mxu1 %vm16223_vm7, %v10965_v40  ;;  %v5708_v3 = vadd.f32 %v5707_v5, %v5706_v0  ;;  %v442_v4 = vld [vmem:[%s10592_s16 + $0x368] sm:$0xff]  ;;  %v441_v52 = vld [vmem:[%s10592_s16 + $0x360] sm:$0xff]  ;;  %v456_v5 = vld [vmem:[%s10592_s16 + $0x3d8] sm:$0xff]  ;;  %v5717_v0 = vsel %vm16223_vm7, %v5181_v47, 0.0 }
  0xfa   : > { %9437 = vmatprep.subr.msk.mxu1 %vm16223_vm7, %v459_v44  ;;  %9362 = vmatmul.mubr.msk.f32.gmra.mxu0 %vm16223_vm7, %v10965_v40 }
  0xfb   : > { %9402 = vmatpush3.xpose.msk.msra.mxu0 %vm16223_vm7, %v10975_v55  ;;  %9431 = vmatprep.mubr.msk.f32.mxu0 %vm16223_vm7, %v10733_v35  ;;  %v5710_v44 = vadd.f32 %v5709_v54, %v5708_v3  ;;  %v440_v54 = vld [vmem:[%s10592_s16 + $0x358] sm:$0xff]  ;;  %v5719_v3 = vsel %vm16223_vm7, %v5182_v32, 0.0  ;;  %v454_v32 = vld [vmem:[%s10592_s16 + $0x3c8] sm:$0xff] }
  0xfc   : > { %9398 = vmatmul.mubr.msk.f32.gmra.mxu1 %vm16223_vm7, %v10965_v40  ;;  %9403 = vmatprep.subr.msk.mxu0 %vm16223_vm7, %v426_v43 }
  0xfd   : > { %9438 = vmatpush3.xpose.msk.msra.mxu1 %vm16223_vm7, %v443_v61  ;;  %9467 = vmatprep.mubr.msk.f32.mxu1 %vm16223_vm7, %v10733_v35  ;;  %v5712_v37 = vadd.f32 %v5711_v8, %v5710_v44  ;;  %v5715_v61 = vsel %vm16223_vm7, %v5180_v45, 0.0  ;;  %v455_v45 = vld [vmem:[%s10592_s16 + $0x3d0] sm:$0xff] }
  0xfe   : > { %9439 = vmatprep.subr.msk.mxu1 %vm16223_vm7, %v458_v41  ;;  %v5183_v41 = vmul.f32 %v10685_v25, %v10685_v25  ;;  %v5184_v25 = vmul.f32 %v10665_v21, %v10665_v21  ;;  %v11064_v21 = vld [vmem:[%s10592_s16 + $0x250] sm:$0xff] }
  0xff   : > { %9404 = vmatpush3.xpose.msk.msra.mxu0 %vm16223_vm7, %v11000_v39  ;;  %v5714_v43 = vadd.f32 %v5713_v63, %v5712_v37  ;;  %v439_v63 = vld [vmem:[%s10592_s16 + $0x350] sm:$0xff] }
 0x100   : > { %9405 = vmatprep.subr.msk.mxu0 %vm16223_vm7, %v11008_v7  ;;  %v5721_v44 = vsel %vm16223_vm7, %v5183_v41, 0.0  ;;  %v5723_v37 = vsel %vm16223_vm7, %v5184_v25, 0.0  ;;  %v453_v25 = vld [vmem:[%s10592_s16 + $0x3c0] sm:$0xff] }
 0x101   : > { %9440 = vmatpush3.xpose.msk.msra.mxu1 %vm16223_vm7, %v442_v4  ;;  %v5716_v56 = vadd.f32 %v5715_v61, %v5714_v43  ;;  %v11052_v4 = vld [vmem:[%s10592_s16 + $0x2d0] sm:$0xff] }
 0x102   : > { %9441 = vmatprep.subr.msk.mxu1 %vm16223_vm7, %v457_v10  ;;  %v5185_v10 = vmul.f32 %v10645_v17, %v10645_v17  ;;  %v5186_v17 = vmul.f32 %v10625_v13, %v10625_v13  ;;  %v11084_v13 = vld [vmem:[%s10592_s16 + $0x248] sm:$0xff] }
 0x103   : > { %9406 = vmatpush3.xpose.msk.msra.mxu0 %vm16223_vm7, %v11024_v49  ;;  %v5718_v8 = vadd.f32 %v5717_v0, %v5716_v56  ;;  %v438_v0 = vld [vmem:[%s10592_s16 + $0x348] sm:$0xff]  ;;  %v5188_v56 = vmul.f32 %v10937_v58, %v10937_v58  ;;  %v11104_v58 = vld [vmem:[%s10592_s16 + $0x240] sm:$0xff] }
 0x104   : > { %9407 = vmatprep.subr.msk.mxu0 %vm16223_vm7, %v11032_v19  ;;  %v5725_v43 = vsel %vm16223_vm7, %v5185_v10, 0.0 }
 0x105   : > { %9442 = vmatpush3.xpose.msk.msra.mxu1 %vm16223_vm7, %v441_v52  ;;  %v5720_v47 = vadd.f32 %v5719_v3, %v5718_v8  ;;  %v11072_v52 = vld [vmem:[%s10592_s16 + $0x2c8] sm:$0xff]  ;;  %v5189_v8 = vmul.f32 %v10922_v15, %v10922_v15  ;;  %v5190_v15 = vmul.f32 %v10901_v23, %v10901_v23 }
 0x106   : > { %9443 = vmatprep.subr.msk.mxu1 %vm16223_vm7, %v456_v5  ;;  %v5187_v5 = vmul.f32 %v10609_v9, %v10609_v9  ;;  %v5727_v9 = vsel %vm16223_vm7, %v5186_v17, 0.0  ;;  %v452_v17 = vld [vmem:[%s10592_s16 + $0x3b8] sm:$0xff] }
 0x107   : > { %9408 = vmatpush3.xpose.msk.msra.mxu0 %vm16223_vm7, %v11044_v29  ;;  %v5722_v61 = vadd.f32 %v5721_v44, %v5720_v47  ;;  %v11108_v44 = vld [vmem:[%s10592_s16 + $0x340] sm:$0xff]  ;;  %v5731_v47 = vsel %vm16223_vm7, %v5188_v56, 0.0 }
 0x108   : > { %9409 = vmatprep.subr.msk.mxu0 %vm16223_vm7, %v11052_v4  ;;  %16242 = vst [vmem:[#allocation12_spill] sm:$0xff] %v11108_v44 }
 0x109   : > { %9444 = vmatpush3.xpose.msk.msra.mxu1 %vm16223_vm7, %v440_v54  ;;  %v5724_v41 = vadd.f32 %v5723_v37, %v5722_v61  ;;  %v11092_v54 = vld [vmem:[%s10592_s16 + $0x2c0] sm:$0xff]  ;;  %v5733_v61 = vsel %vm16223_vm7, %v5189_v8, 0.0  ;;  %v11154_v8 = vld [vmem:[%s10592_s16 + $0x330] sm:$0xff] }
 0x10a   : > { %9445 = vmatprep.subr.msk.mxu1 %vm16223_vm7, %v455_v45  ;;  %v5729_v45 = vsel %vm16223_vm7, %v5187_v5, 0.0  ;;  %v11127_v5 = vld [vmem:[%s10592_s16 + $0x238] sm:$0xff]  ;;  %16244 = vst [vmem:[#allocation14_spill] sm:$0xff] %v11154_v8 }
 0x10b   : > { %9410 = vmatpush3.xpose.msk.msra.mxu0 %vm16223_vm7, %v11064_v21  ;;  %v5726_v3 = vadd.f32 %v5725_v43, %v5724_v41  ;;  %v11131_v43 = vld [vmem:[%s10592_s16 + $0x338] sm:$0xff]  ;;  %v5735_v41 = vsel %vm16223_vm7, %v5190_v15, 0.0  ;;  %v11160_v15 = vld [vmem:[%s10592_s16 + $0x2a8] sm:$0xff] }
 0x10c   : > { %9411 = vmatprep.subr.msk.mxu0 %vm16223_vm7, %v11072_v52  ;;  %16243 = vst [vmem:[#allocation13_spill] sm:$0xff] %v11131_v43 }
 0x10d   : > { %9446 = vmatpush3.xpose.msk.msra.mxu1 %vm16223_vm7, %v439_v63  ;;  %v5728_v10 = vadd.f32 %v5727_v9, %v5726_v3  ;;  %v11114_v63 = vld [vmem:[%s10592_s16 + $0x2b8] sm:$0xff]  ;;  %v451_v9 = vld [vmem:[%s10592_s16 + $0x3b0] sm:$0xff] }
 0x10e   : > { %9447 = vmatprep.subr.msk.mxu1 %vm16223_vm7, %v454_v32  ;;  %v5191_v32 = vmul.f32 %v10881_v34, %v10881_v34  ;;  %v5192_v34 = vmul.f32 %v10862_v48, %v10862_v48 }
 0x10f   : > { %9412 = vmatpush3.xpose.msk.msra.mxu0 %vm16223_vm7, %v11084_v13  ;;  %v5730_v37 = vadd.f32 %v5729_v45, %v5728_v10  ;;  %v11150_v45 = vld [vmem:[%s10592_s16 + $0x230] sm:$0xff] }
 0x110   : > { %9413 = vmatprep.subr.msk.mxu0 %vm16223_vm7, %v11092_v54  ;;  %v5737_v3 = vsel %vm16223_vm7, %v5191_v32, 0.0  ;;  %v5739_v10 = vsel %vm16223_vm7, %v5192_v34, 0.0 }
 0x111   : > { %9448 = vmatpush3.xpose.msk.msra.mxu1 %vm16223_vm7, %v438_v0  ;;  %v5732_v23 = vadd.f32 %v5731_v47, %v5730_v37  ;;  %v11137_v0 = vld [vmem:[%s10592_s16 + $0x2b0] sm:$0xff]  ;;  %v450_v47 = vld [vmem:[%s10592_s16 + $0x3a8] sm:$0xff]  ;;  %v5195_v37 = vmul.f32 %v10803_v53, %v10803_v53  ;;  %v5196_v53 = vmul.f32 %v10771_v42, %v10771_v42 }
 0x112   : > { %9449 = vmatprep.subr.msk.mxu1 %vm16223_vm7, %v453_v25  ;;  %v5193_v25 = vmul.f32 %v10844_v51, %v10844_v51  ;;  %v5194_v51 = vmul.f32 %v10826_v2, %v10826_v2 }
 0x113   : > { %9414 = vmatpush3.xpose.msk.msra.mxu0 %vm16223_vm7, %v11104_v58  ;;  %v5734_v56 = vadd.f32 %v5733_v61, %v5732_v23  ;;  %v11173_v61 = vld [vmem:[%s10592_s16 + $0x228] sm:$0xff] }
 0x114   : > { %9415 = vmatprep.subr.msk.mxu0 %vm16223_vm7, %v11114_v63  ;;  %v5741_v32 = vsel %vm16223_vm7, %v5193_v25, 0.0  ;;  %v11177_v23 = vld [vmem:[%s10592_s16 + $0x328] sm:$0xff]  ;;  %v5743_v34 = vsel %vm16223_vm7, %v5194_v51, 0.0  ;;  %v5197_v25 = vmul.f32 %v10744_v36, %v10744_v36  ;;  %v11200_v51 = vld [vmem:[%s10592_s16 + $0x320] sm:$0xff]  ;;  %v5198_v36 = vmul.f32 %v10719_v31, %v10719_v31 }
 0x115   : > { %9450 = vmatpush3.xpose.msk.msra.mxu1 %vm16223_vm7, %v11108_v44  ;;  %v5736_v48 = vadd.f32 %v5735_v41, %v5734_v56  ;;  %v11183_v41 = vld [vmem:[%s10592_s16 + $0x2a0] sm:$0xff]  ;;  %v5205_v44 = vmul.f32 %v10907_v62, %v10907_v62  ;;  %v5206_v62 = vmul.f32 %v10887_v50, %v10887_v50  ;;  %v476_v50 = vld [vmem:[%s10592_s16 + $0x478] sm:$0xff] }
 0x116   : > { %9451 = vmatprep.subr.msk.mxu1 %vm16223_vm7, %v452_v17 }
 0x117   : > { %9416 = vmatpush3.xpose.msk.msra.mxu0 %vm16223_vm7, %v11127_v5  ;;  %v5738_v17 = vadd.f32 %v5737_v3, %v5736_v48  ;;  %v5745_v3 = vsel %vm16223_vm7, %v5195_v37, 0.0  ;;  %v11196_v48 = vld [vmem:[%s10592_s16 + $0x220] sm:$0xff] }
 0x118   : > { %9417 = vmatprep.subr.msk.mxu0 %vm16223_vm7, %v11137_v0 }
 0x119   : > { %9452 = vmatpush3.xpose.msk.msra.mxu1 %vm16223_vm7, %v11131_v43  ;;  %v5740_v2 = vadd.f32 %v5739_v10, %v5738_v17  ;;  %v5747_v10 = vsel %vm16223_vm7, %v5196_v53, 0.0  ;;  %v448_v17 = vld [vmem:[%s10592_s16 + $0x398] sm:$0xff]  ;;  %v5765_v43 = vsel %vm16223_vm7, %v5205_v44, 0.0  ;;  %v5767_v44 = vsel %vm16223_vm7, %v5206_v62, 0.0  ;;  %v475_v62 = vld [vmem:[%s10592_s16 + $0x470] sm:$0xff] }
 0x11a   : > { %9453 = vmatprep.subr.msk.mxu1 %vm16223_vm7, %v451_v9  ;;  %v449_v9 = vld [vmem:[%s10592_s16 + $0x3a0] sm:$0xff]  ;;  %v11219_v53 = vld [vmem:[%s10592_s16 + $0x218] sm:$0xff] }
 0x11b   : > { %9418 = vmatpush3.xpose.msk.msra.mxu0 %vm16223_vm7, %v11150_v45  ;;  %v5742_v56 = vadd.f32 %v5741_v32, %v5740_v2  ;;  %v5199_v32 = vmul.f32 %v10702_v28, %v10702_v28  ;;  %v5749_v2 = vsel %vm16223_vm7, %v5197_v25, 0.0  ;;  %v5200_v28 = vmul.f32 %v10682_v24, %v10682_v24  ;;  %v11232_v25 = vld [vmem:[%s10592_s16 + $0x390] sm:$0xff] }
 0x11c   : > { %9419 = vmatprep.subr.msk.mxu0 %vm16223_vm7, %v11160_v15  ;;  %16245 = vst [vmem:[#allocation15_spill] sm:$0xff] %v11232_v25 }
 0x11d   : > { %9454 = vmatpush3.xpose.msk.msra.mxu1 %vm16223_vm7, %v11154_v8  ;;  %v5744_v42 = vadd.f32 %v5743_v34, %v5742_v56  ;;  %v11223_v34 = vld [vmem:[%s10592_s16 + $0x318] sm:$0xff]  ;;  %v11229_v56 = vld [vmem:[%s10592_s16 + $0x290] sm:$0xff] }
 0x11e   : > { %9455 = vmatprep.subr.msk.mxu1 %vm16223_vm7, %v450_v47  ;;  %v11206_v47 = vld [vmem:[%s10592_s16 + $0x298] sm:$0xff] }
 0x11f   : > { %9420 = vmatpush3.xpose.msk.msra.mxu0 %vm16223_vm7, %v11173_v61  ;;  %v5746_v37 = vadd.f32 %v5745_v3, %v5744_v42  ;;  %v5201_v42 = vmul.f32 %v10662_v20, %v10662_v20  ;;  %v11249_v20 = vld [vmem:[%s10592_s16 + $0x310] sm:$0xff] }
 0x120   : > { %9421 = vmatprep.subr.msk.mxu0 %vm16223_vm7, %v11183_v41 }
 0x121   : > { %9456 = vmatpush3.xpose.msk.msra.mxu1 %vm16223_vm7, %v11177_v23  ;;  %v5748_v31 = vadd.f32 %v5747_v10, %v5746_v37  ;;  %v5753_v10 = vsel %vm16223_vm7, %v5199_v32, 0.0  ;;  %v5755_v37 = vsel %vm16223_vm7, %v5200_v28, 0.0  ;;  %v11255_v32 = vld [vmem:[%s10592_s16 + $0x288] sm:$0xff] }
 0x122   : > { %9457 = vmatprep.subr.msk.mxu1 %vm16223_vm7, %v449_v9  ;;  %v5751_v9 = vsel %vm16223_vm7, %v5198_v36, 0.0  ;;  %v11244_v36 = vld [vmem:[%s10592_s16 + $0x210] sm:$0xff]  ;;  %v11268_v28 = vld [vmem:[%s10592_s16 + $0x208] sm:$0xff] }
 0x123   : > { %9422 = vmatpush3.xpose.msk.msra.mxu0 %vm16223_vm7, %v11196_v48  ;;  %v5750_v3 = vadd.f32 %v5749_v2, %v5748_v31  ;;  %v11258_v2 = vld [vmem:[%s10592_s16 + $0x388] sm:$0xff] }
 0x124   : > { %9423 = vmatprep.subr.msk.mxu0 %vm16223_vm7, %v11206_v47  ;;  %16246 = vst [vmem:[#allocation16_spill] sm:$0xff] %v11258_v2 }
 0x125   : > { %9458 = vmatpush3.xpose.msk.msra.mxu1 %vm16223_vm7, %v11200_v51  ;;  %v5752_v24 = vadd.f32 %v5751_v9, %v5750_v3  ;;  %v5203_v9 = vmul.f32 %v10622_v12, %v10622_v12  ;;  %v5757_v3 = vsel %vm16223_vm7, %v5201_v42, 0.0  ;;  %v11275_v12 = vld [vmem:[%s10592_s16 + $0x308] sm:$0xff] }
 0x126   : > { %9459 = vmatprep.subr.msk.mxu1 %vm16223_vm7, %v448_v17  ;;  %v5202_v17 = vmul.f32 %v10642_v16, %v10642_v16 }
 0x127   : > { %9424 = vmatpush3.xpose.msk.msra.mxu0 %vm16223_vm7, %v11219_v53  ;;  %v5754_v31 = vadd.f32 %v5753_v10, %v5752_v24  ;;  %v5204_v10 = vmul.f32 %v10926_v27, %v10926_v27  ;;  %v11281_v24 = vld [vmem:[%s10592_s16 + $0x280] sm:$0xff] }
 0x128   : > { %9425 = vmatprep.subr.msk.mxu0 %vm16223_vm7, %v11229_v56  ;;  %v5759_v42 = vsel %vm16223_vm7, %v5202_v17, 0.0  ;;  %v11294_v27 = vld [vmem:[%s10592_s16 + $0x200] sm:$0xff] }
 0x129   : > { %9460 = vmatpush3.xpose.msk.msra.mxu1 %vm16223_vm7, %v11223_v34  ;;  %v5756_v16 = vadd.f32 %v5755_v37, %v5754_v31  ;;  %v11284_v37 = vld [vmem:[%s10592_s16 + $0x380] sm:$0xff] }
 0x12a   : > { %9461 = vmatprep.subr.msk.mxu1 %vm16223_vm7, %v11232_v25  ;;  %16247 = vst [vmem:[#allocation17_spill] sm:$0xff] %v11284_v37  ;;  %v5761_v25 = vsel %vm16223_vm7, %v5203_v9, 0.0  ;;  %v11301_v9 = vld [vmem:[%s10592_s16 + $0x300] sm:$0xff] }
 0x12b   : > { %9426 = vmatpush3.xpose.msk.msra.mxu0 %vm16223_vm7, %v11244_v36  ;;  %v5758_v31 = vadd.f32 %v5757_v3, %v5756_v16  ;;  %v5763_v3 = vsel %vm16223_vm7, %v5204_v10, 0.0  ;;  %v492_v16 = vld [vmem:[%s10592_s16 + $0x4f8] sm:$0xff] }
 0x12c   : > { %9427 = vmatprep.subr.msk.mxu0 %vm16223_vm7, %v11255_v32  ;;  %v508_v10 = vld [vmem:[%s10592_s16 + $0x578] sm:$0xff] }
 0x12d   : > { %9462 = vmatpush3.xpose.msk.msra.mxu1 %vm16223_vm7, %v11249_v20  ;;  %v5760_v17 = vadd.f32 %v5759_v42, %v5758_v31  ;;  %v524_v42 = vld [vmem:[%s10592_s16 + $0x5f8] sm:$0xff] }
 0x12e   : > { %9463 = vmatprep.subr.msk.mxu1 %vm16223_vm7, %v11258_v2  ;;  %v5207_v2 = vmul.f32 %v10868_v1, %v10868_v1  ;;  %v5208_v1 = vmul.f32 %v10848_v59, %v10848_v59 }
 0x12f   : > { %9428 = vmatpush3.xpose.msk.msra.mxu0 %vm16223_vm7, %v11268_v28  ;;  %v5762_v31 = vadd.f32 %v5761_v25, %v5760_v17  ;;  %v491_v25 = vld [vmem:[%s10592_s16 + $0x4f0] sm:$0xff] }
 0x130   : > { %9429 = vmatprep.subr.msk.mxu0 %vm16223_vm7, %v11281_v24  ;;  %v523_v17 = vld [vmem:[%s10592_s16 + $0x5f0] sm:$0xff] }
 0x131   : > { %9464 = vmatpush3.xpose.msk.msra.mxu1 %vm16223_vm7, %v11275_v12 }
 0x132   : > { %9465 = vmatprep.subr.msk.mxu1 %vm16223_vm7, %v11284_v37  ;;  %v5764_v37 = vadd.f32 %v5763_v3, %v5762_v31  ;;  %v5209_v3 = vmul.f32 %v10832_v6, %v10832_v6  ;;  %v490_v6 = vld [vmem:[%s10592_s16 + $0x4e8] sm:$0xff] }
 0x133   : > { %9430 = vmatpush3.xpose.msk.msra.mxu0 %vm16223_vm7, %v11294_v27 }
 0x134   : > { %9471 = vmatprep.subr.msk.mxu0 %vm16223_vm7, %v492_v16  ;;  %v5766_v8 = vadd.f32 %v5765_v43, %v5764_v37  ;;  %v5769_v16 = vsel %vm16223_vm7, %v5207_v2, 0.0  ;;  %v507_v43 = vld [vmem:[%s10592_s16 + $0x570] sm:$0xff]  ;;  %v5210_v37 = vmul.f32 %v10811_v57, %v10811_v57  ;;  %v522_v2 = vld [vmem:[%s10592_s16 + $0x5e8] sm:$0xff]  ;;  %v5211_v57 = vmul.f32 %v10783_v46, %v10783_v46 }
 0x135   : > { %9466 = vmatpush3.xpose.msk.msra.mxu1 %vm16223_vm7, %v11301_v9  ;;  %v5773_v31 = vsel %vm16223_vm7, %v5209_v3, 0.0 }
 0x136   : > { %9507 = vmatprep.subr.msk.mxu1 %vm16223_vm7, %v524_v42  ;;  %9432 = vmatmul.mubr.msk.f32.vlgmr.msra.gmra.mxu0 %vm16223_vm7, %v10733_v35  ;;  %v5768_v59 = vadd.f32 %v5767_v44, %v5766_v8  ;;  %v5771_v42 = vsel %vm16223_vm7, %v5208_v1, 0.0  ;;  %v506_v1 = vld [vmem:[%s10592_s16 + $0x568] sm:$0xff]  ;;  %v5212_v44 = vmul.f32 %v10750_v38, %v10750_v38  ;;  %v5775_v46 = vsel %vm16223_vm7, %v5210_v37, 0.0  ;;  %v488_v37 = vld [vmem:[%s10592_s16 + $0x4d8] sm:$0xff] }
 0x137   : > { %9472 = vmatpush3.xpose.msk.msra.mxu0 %vm16223_vm7, %v476_v50  ;;  %9433 = vmatprep.mubr.msk.f32.mxu0 %vm16223_vm7, %v10965_v40 }
 0x138   : > { %9468 = vmatmul.mubr.msk.f32.vlgmr.msra.gmra.mxu1 %vm16223_vm7, %v10733_v35  ;;  %9473 = vmatprep.subr.msk.mxu0 %vm16223_vm7, %v491_v25  ;;  %v5770_v8 = vadd.f32 %v5769_v16, %v5768_v59  ;;  %v489_v25 = vld [vmem:[%s10592_s16 + $0x4e0] sm:$0xff]  ;;  %v5213_v16 = vmul.f32 %v10725_v33, %v10725_v33  ;;  %v5777_v59 = vsel %vm16223_vm7, %v5211_v57, 0.0  ;;  %v5779_v33 = vsel %vm16223_vm7, %v5212_v44, 0.0 }
 0x139   : > { %9508 = vmatpush3.xpose.msk.msra.mxu1 %vm16223_vm7, %v508_v10  ;;  %9469 = vmatprep.mubr.msk.f32.mxu1 %vm16223_vm7, %v10965_v40  ;;  %v474_v10 = vld [vmem:[%s10592_s16 + $0x468] sm:$0xff] }
 0x13a   : > { %9509 = vmatprep.subr.msk.mxu1 %vm16223_vm7, %v523_v17  ;;  %9434 = vmatmul.mubr.msk.f32.gmra.mxu0 %vm16223_vm7, %v10965_v40  ;;  %v5772_v50 = vadd.f32 %v5771_v42, %v5770_v8  ;;  %v521_v17 = vld [vmem:[%s10592_s16 + $0x5e0] sm:$0xff]  ;;  %v520_v42 = vld [vmem:[%s10592_s16 + $0x5d8] sm:$0xff]  ;;  %v5781_v8 = vsel %vm16223_vm7, %v5213_v16, 0.0  ;;  %v5218_v16 = vmul.f32 %v10632_v14, %v10632_v14  ;;  %v470_v14 = vld [vmem:[%s10592_s16 + $0x448] sm:$0xff] }
 0x13b   : > { %9474 = vmatpush3.xpose.msk.msra.mxu0 %vm16223_vm7, %v475_v62  ;;  %9503 = vmatprep.mubr.msk.f32.mxu0 %vm16223_vm7, %v10733_v35  ;;  %v473_v62 = vld [vmem:[%s10592_s16 + $0x460] sm:$0xff] }
 0x13c   : > { %9470 = vmatmul.mubr.msk.f32.gmra.mxu1 %vm16223_vm7, %v10965_v40  ;;  %9475 = vmatprep.subr.msk.mxu0 %vm16223_vm7, %v490_v6  ;;  %v5774_v3 = vadd.f32 %v5773_v31, %v5772_v50  ;;  %v504_v31 = vld [vmem:[%s10592_s16 + $0x558] sm:$0xff]  ;;  %v5216_v50 = vmul.f32 %v10668_v22, %v10668_v22  ;;  %v471_v22 = vld [vmem:[%s10592_s16 + $0x450] sm:$0xff] }
 0x13d   : > { %9510 = vmatpush3.xpose.msk.msra.mxu1 %vm16223_vm7, %v507_v43  ;;  %9539 = vmatprep.mubr.msk.f32.mxu1 %vm16223_vm7, %v10733_v35  ;;  %v505_v43 = vld [vmem:[%s10592_s16 + $0x560] sm:$0xff]  ;;  %v5214_v35 = vmul.f32 %v10708_v30, %v10708_v30  ;;  %v472_v30 = vld [vmem:[%s10592_s16 + $0x458] sm:$0xff] }
 0x13e   : > { %9511 = vmatprep.subr.msk.mxu1 %vm16223_vm7, %v522_v2  ;;  %v5776_v38 = vadd.f32 %v5775_v46, %v5774_v3  ;;  %v5215_v2 = vmul.f32 %v10688_v26, %v10688_v26  ;;  %v5217_v46 = vmul.f32 %v10648_v18, %v10648_v18  ;;  %v503_v3 = vld [vmem:[%s10592_s16 + $0x550] sm:$0xff]  ;;  %v5787_v18 = vsel %vm16223_vm7, %v5216_v50, 0.0  ;;  %v469_v50 = vld [vmem:[%s10592_s16 + $0x440] sm:$0xff] }
 0x13f   : > { %9476 = vmatpush3.xpose.msk.msra.mxu0 %vm16223_vm7, %v474_v10  ;;  %v5783_v26 = vsel %vm16223_vm7, %v5214_v35, 0.0  ;;  %v487_v10 = vld [vmem:[%s10592_s16 + $0x4d0] sm:$0xff] }
 0x140   : > { %9477 = vmatprep.subr.msk.mxu0 %vm16223_vm7, %v489_v25  ;;  %v5778_v6 = vadd.f32 %v5777_v59, %v5776_v38  ;;  %v5785_v25 = vsel %vm16223_vm7, %v5215_v2, 0.0  ;;  %v486_v59 = vld [vmem:[%s10592_s16 + $0x4c8] sm:$0xff]  ;;  %v5789_v35 = vsel %vm16223_vm7, %v5217_v46, 0.0  ;;  %v517_v2 = vld [vmem:[%s10592_s16 + $0x5c0] sm:$0xff]  ;;  %v5223_v46 = vmul.f32 %v11219_v53, %v11219_v53  ;;  %v500_v53 = vld [vmem:[%s10592_s16 + $0x538] sm:$0xff] }
 0x141   : > { %9512 = vmatpush3.xpose.msk.msra.mxu1 %vm16223_vm7, %v506_v1  ;;  %v519_v1 = vld [vmem:[%s10592_s16 + $0x5d0] sm:$0xff]  ;;  %v518_v38 = vld [vmem:[%s10592_s16 + $0x5c8] sm:$0xff] }
 0x142   : > { %9513 = vmatprep.subr.msk.mxu1 %vm16223_vm7, %v521_v17  ;;  %v5780_v57 = vadd.f32 %v5779_v33, %v5778_v6  ;;  %v485_v6 = vld [vmem:[%s10592_s16 + $0x4c0] sm:$0xff] }
 0x143   : > { %9478 = vmatpush3.xpose.msk.msra.mxu0 %vm16223_vm7, %v473_v62 }
 0x144   : > { %9479 = vmatprep.subr.msk.mxu0 %vm16223_vm7, %v488_v37  ;;  %v5782_v44 = vadd.f32 %v5781_v8, %v5780_v57  ;;  %v502_v37 = vld [vmem:[%s10592_s16 + $0x548] sm:$0xff] }
 0x145   : > { %9514 = vmatpush3.xpose.msk.msra.mxu1 %vm16223_vm7, %v505_v43  ;;  %v5219_v43 = vmul.f32 %v10615_v11, %v10615_v11  ;;  %v5220_v11 = vmul.f32 %v11294_v27, %v11294_v27  ;;  %v5222_v27 = vmul.f32 %v11244_v36, %v11244_v36  ;;  %v11445_v36 = vld [vmem:[%s10592_s16 + $0x438] sm:$0xff] }
 0x146   : > { %9515 = vmatprep.subr.msk.mxu1 %vm16223_vm7, %v520_v42  ;;  %v5784_v17 = vadd.f32 %v5783_v26, %v5782_v44  ;;  %v5791_v42 = vsel %vm16223_vm7, %v5218_v16, 0.0  ;;  %v516_v44 = vld [vmem:[%s10592_s16 + $0x5b8] sm:$0xff]  ;;  %v483_v16 = vld [vmem:[%s10592_s16 + $0x4b0] sm:$0xff] }
 0x147   : > { %9480 = vmatpush3.xpose.msk.msra.mxu0 %vm16223_vm7, %v472_v30  ;;  %v5793_v57 = vsel %vm16223_vm7, %v5219_v43, 0.0  ;;  %v5221_v30 = vmul.f32 %v11268_v28, %v11268_v28  ;;  %v5795_v26 = vsel %vm16223_vm7, %v5220_v11, 0.0  ;;  %v484_v28 = vld [vmem:[%s10592_s16 + $0x4b8] sm:$0xff]  ;;  %v11462_v43 = vld [vmem:[%s10592_s16 + $0x430] sm:$0xff]  ;;  %v5227_v11 = vmul.f32 %v11127_v5, %v11127_v5  ;;  %v498_v5 = vld [vmem:[%s10592_s16 + $0x528] sm:$0xff] }
 0x148   : > { %9481 = vmatprep.subr.msk.mxu0 %vm16223_vm7, %v487_v10  ;;  %v5786_v62 = vadd.f32 %v5785_v25, %v5784_v17  ;;  %v501_v10 = vld [vmem:[%s10592_s16 + $0x540] sm:$0xff] }
 0x149   : > { %9516 = vmatpush3.xpose.msk.msra.mxu1 %vm16223_vm7, %v504_v31  ;;  %v5797_v25 = vsel %vm16223_vm7, %v5221_v30, 0.0  ;;  %v481_v30 = vld [vmem:[%s10592_s16 + $0x4a0] sm:$0xff] }
 0x14a   : > { %9517 = vmatprep.subr.msk.mxu1 %vm16223_vm7, %v519_v1  ;;  %v5788_v33 = vadd.f32 %v5787_v18, %v5786_v62  ;;  %v5801_v62 = vsel %vm16223_vm7, %v5223_v46, 0.0 }
 0x14b   : > { %9482 = vmatpush3.xpose.msk.msra.mxu0 %vm16223_vm7, %v471_v22  ;;  %v5224_v22 = vmul.f32 %v11196_v48, %v11196_v48 }
 0x14c   : > { %9483 = vmatprep.subr.msk.mxu0 %vm16223_vm7, %v486_v59  ;;  %v5790_v8 = vadd.f32 %v5789_v35, %v5788_v33  ;;  %v515_v59 = vld [vmem:[%s10592_s16 + $0x5b0] sm:$0xff]  ;;  %v5226_v35 = vmul.f32 %v11150_v45, %v11150_v45 }
 0x14d   : > { %9518 = vmatpush3.xpose.msk.msra.mxu1 %vm16223_vm7, %v503_v3  ;;  %v5799_v3 = vsel %vm16223_vm7, %v5222_v27, 0.0  ;;  %v5803_v33 = vsel %vm16223_vm7, %v5224_v22, 0.0  ;;  %v5229_v27 = vmul.f32 %v11084_v13, %v11084_v13  ;;  %v497_v13 = vld [vmem:[%s10592_s16 + $0x520] sm:$0xff] }
 0x14e   : > { %9519 = vmatprep.subr.msk.mxu1 %vm16223_vm7, %v518_v38  ;;  %v5792_v31 = vadd.f32 %v5791_v42, %v5790_v8  ;;  %v5225_v38 = vmul.f32 %v11173_v61, %v11173_v61  ;;  %v499_v61 = vld [vmem:[%s10592_s16 + $0x530] sm:$0xff]  ;;  %v514_v42 = vld [vmem:[%s10592_s16 + $0x5a8] sm:$0xff]  ;;  %v5228_v8 = vmul.f32 %v11104_v58, %v11104_v58 }
 0x14f   : > { %9484 = vmatpush3.xpose.msk.msra.mxu0 %vm16223_vm7, %v470_v14  ;;  %v482_v14 = vld [vmem:[%s10592_s16 + $0x4a8] sm:$0xff]  ;;  %v5813_v22 = vsel %vm16223_vm7, %v5229_v27, 0.0  ;;  %v5237_v27 = vmul.f32 %v11255_v32, %v11255_v32  ;;  %v493_v32 = vld [vmem:[%s10592_s16 + $0x500] sm:$0xff] }
 0x150   : > { %9485 = vmatprep.subr.msk.mxu0 %vm16223_vm7, %v485_v6  ;;  %v5794_v1 = vadd.f32 %v5793_v57, %v5792_v31  ;;  %v5805_v6 = vsel %vm16223_vm7, %v5225_v38, 0.0  ;;  %v5807_v57 = vsel %vm16223_vm7, %v5226_v35, 0.0  ;;  %v511_v38 = vld [vmem:[%s10592_s16 + $0x590] sm:$0xff] }
 0x151   : > { %9520 = vmatpush3.xpose.msk.msra.mxu1 %vm16223_vm7, %v502_v37  ;;  %v11533_v35 = vld [vmem:[%s10592_s16 + $0x410] sm:$0xff] }
 0x152   : > { %9521 = vmatprep.subr.msk.mxu1 %vm16223_vm7, %v517_v2  ;;  %v5796_v17 = vadd.f32 %v5795_v26, %v5794_v1  ;;  %v11479_v2 = vld [vmem:[%s10592_s16 + $0x428] sm:$0xff]  ;;  %v5809_v26 = vsel %vm16223_vm7, %v5227_v11, 0.0  ;;  %v5811_v1 = vsel %vm16223_vm7, %v5228_v8, 0.0  ;;  %v5235_v11 = vmul.f32 %v10949_v60, %v10949_v60 }
 0x153   : > { %9486 = vmatpush3.xpose.msk.msra.mxu0 %vm16223_vm7, %v469_v50  ;;  %v513_v50 = vld [vmem:[%s10592_s16 + $0x5a0] sm:$0xff]  ;;  %v494_v60 = vld [vmem:[%s10592_s16 + $0x508] sm:$0xff] }
 0x154   : > { %9487 = vmatprep.subr.msk.mxu0 %vm16223_vm7, %v484_v28  ;;  %v5798_v18 = vadd.f32 %v5797_v25, %v5796_v17  ;;  %v5230_v28 = vmul.f32 %v11064_v21, %v11064_v21  ;;  %v512_v25 = vld [vmem:[%s10592_s16 + $0x598] sm:$0xff]  ;;  %v5231_v17 = vmul.f32 %v11044_v29, %v11044_v29 }
 0x155   : > { %9522 = vmatpush3.xpose.msk.msra.mxu1 %vm16223_vm7, %v501_v10  ;;  %v11496_v10 = vld [vmem:[%s10592_s16 + $0x420] sm:$0xff]  ;;  %v496_v29 = vld [vmem:[%s10592_s16 + $0x518] sm:$0xff] }
 0x156   : > { %9523 = vmatprep.subr.msk.mxu1 %vm16223_vm7, %v516_v44  ;;  %v5800_v48 = vadd.f32 %v5799_v3, %v5798_v18  ;;  %v480_v44 = vld [vmem:[%s10592_s16 + $0x498] sm:$0xff]  ;;  %v11521_v18 = vld [vmem:[%s10592_s16 + $0x490] sm:$0xff] }
 0x157   : > { %9488 = vmatpush3.xpose.msk.msra.mxu0 %vm16223_vm7, %v11445_v36  ;;  %v11513_v3 = vld [vmem:[%s10592_s16 + $0x418] sm:$0xff] }
 0x158   : > { %9489 = vmatprep.subr.msk.mxu0 %vm16223_vm7, %v483_v16  ;;  %v5802_v37 = vadd.f32 %v5801_v62, %v5800_v48  ;;  %v5815_v16 = vsel %vm16223_vm7, %v5230_v28, 0.0  ;;  %v5233_v62 = vmul.f32 %v11000_v39, %v11000_v39  ;;  %v5817_v48 = vsel %vm16223_vm7, %v5231_v17, 0.0  ;;  %v495_v39 = vld [vmem:[%s10592_s16 + $0x510] sm:$0xff]  ;;  %v540_v17 = vld [vmem:[%s10592_s16 + $0x678] sm:$0xff] }
 0x159   : > { %9524 = vmatpush3.xpose.msk.msra.mxu1 %vm16223_vm7, %v500_v53  ;;  %v5232_v53 = vmul.f32 %v11024_v49, %v11024_v49 }
 0x15a   : > { %9525 = vmatprep.subr.msk.mxu1 %vm16223_vm7, %v515_v59  ;;  %v5804_v45 = vadd.f32 %v5803_v33, %v5802_v37  ;;  %v5234_v33 = vmul.f32 %v10975_v55, %v10975_v55 }
 0x15b   : > { %9490 = vmatpush3.xpose.msk.msra.mxu0 %vm16223_vm7, %v11462_v43 }
 0x15c   : > { %9491 = vmatprep.subr.msk.mxu0 %vm16223_vm7, %v482_v14  ;;  %v5806_v31 = vadd.f32 %v5805_v6, %v5804_v45  ;;  %v11541_v14 = vld [vmem:[%s10592_s16 + $0x488] sm:$0xff]  ;;  %v5821_v6 = vsel %vm16223_vm7, %v5233_v62, 0.0  ;;  %v5823_v8 = vsel %vm16223_vm7, %v5234_v33, 0.0 }
 0x15d   : > { %9526 = vmatpush3.xpose.msk.msra.mxu1 %vm16223_vm7, %v499_v61  ;;  %v5819_v61 = vsel %vm16223_vm7, %v5232_v53, 0.0  ;;  %v11550_v45 = vld [vmem:[%s10592_s16 + $0x408] sm:$0xff]  ;;  %v555_v53 = vld [vmem:[%s10592_s16 + $0x6f0] sm:$0xff] }
 0x15e   : > { %9527 = vmatprep.subr.msk.mxu1 %vm16223_vm7, %v514_v42  ;;  %v5808_v58 = vadd.f32 %v5807_v57, %v5806_v31  ;;  %v510_v42 = vld [vmem:[%s10592_s16 + $0x588] sm:$0xff]  ;;  %v5236_v57 = vmul.f32 %v11281_v24, %v11281_v24  ;;  %v509_v31 = vld [vmem:[%s10592_s16 + $0x580] sm:$0xff] }
 0x15f   : > { %9492 = vmatpush3.xpose.msk.msra.mxu0 %vm16223_vm7, %v11479_v2  ;;  %v11570_v24 = vld [vmem:[%s10592_s16 + $0x400] sm:$0xff] }
 0x160   : > { %9493 = vmatprep.subr.msk.mxu0 %vm16223_vm7, %v481_v30  ;;  %v5810_v46 = vadd.f32 %v5809_v26, %v5808_v58  ;;  %v5238_v58 = vmul.f32 %v11229_v56, %v11229_v56  ;;  %v5827_v28 = vsel %vm16223_vm7, %v5236_v57, 0.0  ;;  %v553_v57 = vld [vmem:[%s10592_s16 + $0x6e0] sm:$0xff] }
 0x161   : > { %9528 = vmatpush3.xpose.msk.msra.mxu1 %vm16223_vm7, %v498_v5  ;;  %v11561_v5 = vld [vmem:[%s10592_s16 + $0x480] sm:$0xff] }
 0x162   : > { %9529 = vmatprep.subr.msk.mxu1 %vm16223_vm7, %v513_v50  ;;  %v5812_v21 = vadd.f32 %v5811_v1, %v5810_v46  ;;  %v5825_v50 = vsel %vm16223_vm7, %v5235_v11, 0.0  ;;  %v556_v1 = vld [vmem:[%s10592_s16 + $0x6f8] sm:$0xff]  ;;  %v5239_v46 = vmul.f32 %v11206_v47, %v11206_v47 }
 0x163   : > { %9494 = vmatpush3.xpose.msk.msra.mxu0 %vm16223_vm7, %v11496_v10  ;;  %v572_v47 = vld [vmem:[%s10592_s16 + $0x778] sm:$0xff] }
 0x164   : > { %9495 = vmatprep.subr.msk.mxu0 %vm16223_vm7, %v480_v44  ;;  %v5814_v59 = vadd.f32 %v5813_v22, %v5812_v21  ;;  %v588_v44 = vld [vmem:[%s10592_s16 + $0x7f8] sm:$0xff]  ;;  %v5240_v22 = vmul.f32 %v11183_v41, %v11183_v41  ;;  %v5831_v21 = vsel %vm16223_vm7, %v5238_v58, 0.0  ;;  %v5241_v41 = vmul.f32 %v11160_v15, %v11160_v15  ;;  %v571_v15 = vld [vmem:[%s10592_s16 + $0x770] sm:$0xff] }
 0x165   : > { %9530 = vmatpush3.xpose.msk.msra.mxu1 %vm16223_vm7, %v497_v13  ;;  %v552_v58 = vld [vmem:[%s10592_s16 + $0x6d8] sm:$0xff] }
 0x166   : > { %9531 = vmatprep.subr.msk.mxu1 %vm16223_vm7, %v512_v25  ;;  %v5816_v49 = vadd.f32 %v5815_v16, %v5814_v59  ;;  %v5829_v25 = vsel %vm16223_vm7, %v5237_v27, 0.0  ;;  %v587_v59 = vld [vmem:[%s10592_s16 + $0x7f0] sm:$0xff]  ;;  %v5835_v33 = vsel %vm16223_vm7, %v5240_v22, 0.0  ;;  %v5246_v27 = vmul.f32 %v11052_v4, %v11052_v4 }
 0x167   : > { %9496 = vmatpush3.xpose.msk.msra.mxu0 %vm16223_vm7, %v11513_v3  ;;  %v583_v22 = vld [vmem:[%s10592_s16 + $0x7d0] sm:$0xff] }
 0x168   : > { %9497 = vmatprep.subr.msk.mxu0 %vm16223_vm7, %v11521_v18  ;;  %v5818_v37 = vadd.f32 %v5817_v48, %v5816_v49  ;;  %v539_v48 = vld [vmem:[%s10592_s16 + $0x670] sm:$0xff]  ;;  %v5242_v49 = vmul.f32 %v11137_v0, %v11137_v0  ;;  %v5243_v0 = vmul.f32 %v11114_v63, %v11114_v63  ;;  %v570_v63 = vld [vmem:[%s10592_s16 + $0x768] sm:$0xff] }
 0x169   : > { %9532 = vmatpush3.xpose.msk.msra.mxu1 %vm16223_vm7, %v496_v29  ;;  %v11599_v29 = vld [vmem:[%s16165_s1] sm:$0xff] }
 0x16a   : > { %9533 = vmatprep.subr.msk.mxu1 %vm16223_vm7, %v511_v38  ;;  %v5820_v55 = vadd.f32 %v5819_v61, %v5818_v37  ;;  %v5833_v38 = vsel %vm16223_vm7, %v5239_v46, 0.0  ;;  %v554_v61 = vld [vmem:[%s10592_s16 + $0x6e8] sm:$0xff]  ;;  %v5248_v46 = vmul.f32 %v11008_v7, %v11008_v7  ;;  %v535_v7 = vld [vmem:[%s10592_s16 + $0x650] sm:$0xff] }
 0x16b   : > { %9498 = vmatpush3.xpose.msk.msra.mxu0 %vm16223_vm7, %v11533_v35  ;;  %v586_v37 = vld [vmem:[%s10592_s16 + $0x7e8] sm:$0xff] }
 0x16c   : > { %9499 = vmatprep.subr.msk.mxu0 %vm16223_vm7, %v11541_v14  ;;  %v5822_v30 = vadd.f32 %v5821_v6, %v5820_v55  ;;  %v538_v6 = vld [vmem:[%s10592_s16 + $0x668] sm:$0xff]  ;;  %v5244_v55 = vmul.f32 %v11092_v54, %v11092_v54  ;;  %v5245_v54 = vmul.f32 %v11072_v52, %v11072_v52  ;;  %v569_v52 = vld [vmem:[%s10592_s16 + $0x760] sm:$0xff] }
 0x16d   : > { %9534 = vmatpush3.xpose.msk.msra.mxu1 %vm16223_vm7, %v495_v39 }
 0x16e   : > { %9535 = vmatprep.subr.msk.mxu1 %vm16223_vm7, %v510_v42  ;;  %v5824_v26 = vadd.f32 %v5823_v8, %v5822_v30  ;;  %v5837_v42 = vsel %vm16223_vm7, %v5241_v41, 0.0  ;;  %v5839_v8 = vsel %vm16223_vm7, %v5242_v49, 0.0  ;;  %v5841_v30 = vsel %vm16223_vm7, %v5243_v0, 0.0  ;;  %v534_v0 = vld [vmem:[%s10592_s16 + $0x648] sm:$0xff] }
 0x16f   : > { %9500 = vmatpush3.xpose.msk.msra.mxu0 %vm16223_vm7, %v11550_v45 }
 0x170   : > { %9501 = vmatprep.subr.msk.mxu0 %vm16223_vm7, %v11561_v5  ;;  %v5826_v13 = vadd.f32 %v5825_v50, %v5824_v26  ;;  %v537_v50 = vld [vmem:[%s10592_s16 + $0x660] sm:$0xff]  ;;  %v5843_v26 = vsel %vm16223_vm7, %v5244_v55, 0.0 }
 0x171   : > { %9536 = vmatpush3.xpose.msk.msra.mxu1 %vm16223_vm7, %v494_v60  ;;  %v585_v60 = vld [vmem:[%s10592_s16 + $0x7e0] sm:$0xff] }
 0x172   : > { %9537 = vmatprep.subr.msk.mxu1 %vm16223_vm7, %v509_v31  ;;  %v5828_v56 = vadd.f32 %v5827_v28, %v5826_v13  ;;  %v5845_v13 = vsel %vm16223_vm7, %v5245_v54, 0.0  ;;  %v549_v55 = vld [vmem:[%s10592_s16 + $0x6c0] sm:$0xff]  ;;  %v5254_v54 = vmul.f32 %v11249_v20, %v11249_v20  ;;  %v532_v20 = vld [vmem:[%s10592_s16 + $0x638] sm:$0xff] }
 0x173   : > { %9502 = vmatpush3.xpose.msk.msra.mxu0 %vm16223_vm7, %v11570_v24 }
 0x174   : > { %9543 = vmatprep.subr.msk.mxu0 %vm16223_vm7, %v556_v1  ;;  %v5830_v16 = vadd.f32 %v5829_v25, %v5828_v56  ;;  %v5247_v1 = vmul.f32 %v11032_v19, %v11032_v19  ;;  %v5847_v25 = vsel %vm16223_vm7, %v5246_v27, 0.0  ;;  %v568_v19 = vld [vmem:[%s10592_s16 + $0x758] sm:$0xff]  ;;  %v551_v56 = vld [vmem:[%s10592_s16 + $0x6d0] sm:$0xff] }
 0x175   : > { %9538 = vmatpush3.xpose.msk.msra.mxu1 %vm16223_vm7, %v493_v32  ;;  %v584_v32 = vld [vmem:[%s10592_s16 + $0x7d8] sm:$0xff] }
 0x176   : > { %9579 = vmatprep.subr.msk.mxu1 %vm16223_vm7, %v588_v44  ;;  %9504 = vmatmul.mubr.msk.f32.vlgmr.msra.gmra.mxu0 %vm16223_vm7, %v11599_v29  ;;  %v5832_v62 = vadd.f32 %v5831_v21, %v5830_v16  ;;  %v536_v44 = vld [vmem:[%s10592_s16 + $0x658] sm:$0xff]  ;;  %v9975_v21 = vld [vmem:[%s10592_s16 + $0x2e8] sm:$0xff] }
 0x177   : > { %9544 = vmatpush3.xpose.msk.msra.mxu0 %vm16223_vm7, %v540_v17  ;;  %9505 = vmatprep.mubr.msk.f32.mxu0 %vm16223_vm7, %v10965_v40  ;;  %v580_v27 = vld [vmem:[%s10592_s16 + $0x7b8] sm:$0xff] }
 0x178   : > { %9540 = vmatmul.mubr.msk.f32.vlgmr.msra.gmra.mxu1 %vm16223_vm7, %v11599_v29  ;;  %9545 = vmatprep.subr.msk.mxu0 %vm16223_vm7, %v555_v53  ;;  %v5834_v39 = vadd.f32 %v5833_v38, %v5832_v62  ;;  %v5849_v53 = vsel %vm16223_vm7, %v5247_v1, 0.0  ;;  %v5851_v38 = vsel %vm16223_vm7, %v5248_v46, 0.0  ;;  %v567_v62 = vld [vmem:[%s10592_s16 + $0x750] sm:$0xff] }
 0x179   : > { %9580 = vmatpush3.xpose.msk.msra.mxu1 %vm16223_vm7, %v572_v47  ;;  %9541 = vmatprep.mubr.msk.f32.mxu1 %vm16223_vm7, %v10965_v40  ;;  %v5249_v47 = vmul.f32 %v9975_v21, %v9975_v21  ;;  %v547_v1 = vld [vmem:[%s10592_s16 + $0x6b0] sm:$0xff] }
 0x17a   : > { %9581 = vmatprep.subr.msk.mxu1 %vm16223_vm7, %v587_v59  ;;  %9506 = vmatmul.mubr.msk.f32.gmra.mxu0 %vm16223_vm7, %v10965_v40  ;;  %v5836_v11 = vadd.f32 %v5835_v33, %v5834_v39  ;;  %v9976_v59 = vld [vmem:[%s10592_s16 + $0x2f0] sm:$0xff]  ;;  %v582_v33 = vld [vmem:[%s10592_s16 + $0x7c8] sm:$0xff] }
 0x17b   : > { %9546 = vmatpush3.xpose.msk.msra.mxu0 %vm16223_vm7, %v539_v48  ;;  %9575 = vmatprep.mubr.msk.f32.mxu0 %vm16223_vm7, %v11599_v29  ;;  %v5250_v41 = vmul.f32 %v9976_v59, %v9976_v59  ;;  %v550_v48 = vld [vmem:[%s10592_s16 + $0x6c8] sm:$0xff]  ;;  %v5853_v39 = vsel %vm16223_vm7, %v5249_v47, 0.0 }
 0x17c   : > { %9542 = vmatmul.mubr.msk.f32.gmra.mxu1 %vm16223_vm7, %v10965_v40  ;;  %9547 = vmatprep.subr.msk.mxu0 %vm16223_vm7, %v554_v61  ;;  %v5838_v40 = vadd.f32 %v5837_v42, %v5836_v11  ;;  %v5252_v11 = vmul.f32 %v11301_v9, %v11301_v9  ;;  %v533_v9 = vld [vmem:[%s10592_s16 + $0x640] sm:$0xff]  ;;  %v578_v47 = vld [vmem:[%s10592_s16 + $0x7a8] sm:$0xff] }
 0x17d   : > { %9582 = vmatpush3.xpose.msk.msra.mxu1 %vm16223_vm7, %v571_v15  ;;  %9611 = vmatprep.mubr.msk.f32.mxu1 %vm16223_vm7, %v11599_v29  ;;  %v9977_v15 = vld [vmem:[%s10592_s16 + $0x2f8] sm:$0xff]  ;;  %v5855_v42 = vsel %vm16223_vm7, %v5250_v41, 0.0  ;;  %v530_v41 = vld [vmem:[%s10592_s16 + $0x628] sm:$0xff] }
 0x17e   : > { %9583 = vmatprep.subr.msk.mxu1 %vm16223_vm7, %v586_v37  ;;  %v5840_v31 = vadd.f32 %v5839_v8, %v5838_v40  ;;  %v5251_v61 = vmul.f32 %v9977_v15, %v9977_v15  ;;  %v5253_v40 = vmul.f32 %v11275_v12, %v11275_v12  ;;  %v548_v12 = vld [vmem:[%s10592_s16 + $0x6b8] sm:$0xff] }
 0x17f   : > { %9548 = vmatpush3.xpose.msk.msra.mxu0 %vm16223_vm7, %v538_v6  ;;  %v566_v6 = vld [vmem:[%s10592_s16 + $0x748] sm:$0xff] }
 0x180   : > { %9549 = vmatprep.subr.msk.mxu0 %vm16223_vm7, %v553_v57  ;;  %v5842_v28 = vadd.f32 %v5841_v30, %v5840_v31  ;;  %v5857_v57 = vsel %vm16223_vm7, %v5251_v61, 0.0  ;;  %v5859_v30 = vsel %vm16223_vm7, %v5252_v11, 0.0  ;;  %v565_v31 = vld [vmem:[%s10592_s16 + $0x740] sm:$0xff] }
 0x181   : > { %9584 = vmatpush3.xpose.msk.msra.mxu1 %vm16223_vm7, %v570_v63  ;;  %v581_v63 = vld [vmem:[%s10592_s16 + $0x7c0] sm:$0xff] }
 0x182   : > { %9585 = vmatprep.subr.msk.mxu1 %vm16223_vm7, %v585_v60  ;;  %v5844_v4 = vadd.f32 %v5843_v26, %v5842_v28  ;;  %v5255_v26 = vmul.f32 %v11223_v34, %v11223_v34  ;;  %v5256_v28 = vmul.f32 %v11200_v51, %v11200_v51  ;;  %v564_v34 = vld [vmem:[%s10592_s16 + $0x738] sm:$0xff]  ;;  %v531_v51 = vld [vmem:[%s10592_s16 + $0x630] sm:$0xff]  ;;  %v577_v61 = vld [vmem:[%s10592_s16 + $0x7a0] sm:$0xff] }
 0x183   : > { %9550 = vmatpush3.xpose.msk.msra.mxu0 %vm16223_vm7, %v537_v50  ;;  %v529_v11 = vld [vmem:[%s10592_s16 + $0x620] sm:$0xff] }
 0x184   : > { %9551 = vmatprep.subr.msk.mxu0 %vm16223_vm7, %v552_v58  ;;  %v5846_v17 = vadd.f32 %v5845_v13, %v5844_v4  ;;  %v579_v4 = vld [vmem:[%s10592_s16 + $0x7b0] sm:$0xff]  ;;  %v5865_v46 = vsel %vm16223_vm7, %v5255_v26, 0.0 }
 0x185   : > { %9586 = vmatpush3.xpose.msk.msra.mxu1 %vm16223_vm7, %v569_v52  ;;  %v5861_v52 = vsel %vm16223_vm7, %v5253_v40, 0.0 }
 0x186   : > { %9587 = vmatprep.subr.msk.mxu1 %vm16223_vm7, %v584_v32  ;;  %v5848_v16 = vadd.f32 %v5847_v25, %v5846_v17  ;;  %v5863_v32 = vsel %vm16223_vm7, %v5254_v54, 0.0  ;;  %v5867_v17 = vsel %vm16223_vm7, %v5256_v28, 0.0  ;;  %v575_v28 = vld [vmem:[%s10592_s16 + $0x790] sm:$0xff] }
 0x187   : > { %9552 = vmatpush3.xpose.msk.msra.mxu0 %vm16223_vm7, %v536_v44  ;;  %v5257_v44 = vmul.f32 %v11177_v23, %v11177_v23  ;;  %v563_v23 = vld [vmem:[%s10592_s16 + $0x730] sm:$0xff] }
 0x188   : > { %9553 = vmatprep.subr.msk.mxu0 %vm16223_vm7, %v551_v56  ;;  %v5850_v49 = vadd.f32 %v5849_v53, %v5848_v16  ;;  %v16249_v53 = vld [vmem:[#allocation13_spill] sm:$0xff] }
 0x189   : > { %9588 = vmatpush3.xpose.msk.msra.mxu1 %vm16223_vm7, %v568_v19  ;;  %v16248_v19 = vld [vmem:[#allocation14_spill] sm:$0xff]  ;;  %v5259_v16 = vmul.f32 %v16249_v53, %v16249_v53  ;;  %v526_v53 = vld [vmem:[%s10592_s16 + $0x608] sm:$0xff] }
 0x18a   : > { %9589 = vmatprep.subr.msk.mxu1 %vm16223_vm7, %v583_v22  ;;  %v5852_v37 = vadd.f32 %v5851_v38, %v5850_v49  ;;  %v5258_v56 = vmul.f32 %v16248_v19, %v16248_v19  ;;  %v546_v22 = vld [vmem:[%s10592_s16 + $0x6a8] sm:$0xff] }
 0x18b   : > { %9554 = vmatpush3.xpose.msk.msra.mxu0 %vm16223_vm7, %v535_v7  ;;  %v5869_v7 = vsel %vm16223_vm7, %v5257_v44, 0.0  ;;  %v16250_v38 = vld [vmem:[#allocation12_spill] sm:$0xff]  ;;  %v9983_v44 = vld [vmem:[%s10592_s16 + $0x370] sm:$0xff] }
 0x18c   : > { %9555 = vmatprep.subr.msk.mxu0 %vm16223_vm7, %v550_v48  ;;  %v5854_v8 = vadd.f32 %v5853_v39, %v5852_v37  ;;  %v5871_v48 = vsel %vm16223_vm7, %v5258_v56, 0.0  ;;  %v562_v49 = vld [vmem:[%s10592_s16 + $0x728] sm:$0xff] }
 0x18d   : > { %9590 = vmatpush3.xpose.msk.msra.mxu1 %vm16223_vm7, %v567_v62  ;;  %v5260_v62 = vmul.f32 %v16250_v38, %v16250_v38  ;;  %v9978_v39 = vld [vmem:[%s10592_s16 + $0x348] sm:$0xff]  ;;  %v541_v38 = vld [vmem:[%s10592_s16 + $0x680] sm:$0xff] }
 0x18e   : > { %9591 = vmatprep.subr.msk.mxu1 %vm16223_vm7, %v582_v33  ;;  %v5856_v60 = vadd.f32 %v5855_v42, %v5854_v8  ;;  %v545_v33 = vld [vmem:[%s10592_s16 + $0x6a0] sm:$0xff]  ;;  %v5261_v37 = vmul.f32 %v9978_v39, %v9978_v39  ;;  %v542_v19 = vld [vmem:[%s10592_s16 + $0x688] sm:$0xff] }
 0x18f   : > { %9556 = vmatpush3.xpose.msk.msra.mxu0 %vm16223_vm7, %v534_v0  ;;  %v5873_v0 = vsel %vm16223_vm7, %v5259_v16, 0.0  ;;  %v5875_v8 = vsel %vm16223_vm7, %v5260_v62, 0.0  ;;  %v525_v39 = vld [vmem:[%s10592_s16 + $0x600] sm:$0xff] }
 0x190   : > { %9557 = vmatprep.subr.msk.mxu0 %vm16223_vm7, %v549_v55  ;;  %v5858_v50 = vadd.f32 %v5857_v57, %v5856_v60  ;;  %v544_v57 = vld [vmem:[%s10592_s16 + $0x698] sm:$0xff] }
 0x191   : > { %9592 = vmatpush3.xpose.msk.msra.mxu1 %vm16223_vm7, %v566_v6  ;;  %v9979_v6 = vld [vmem:[%s10592_s16 + $0x350] sm:$0xff]  ;;  %v576_v60 = vld [vmem:[%s10592_s16 + $0x798] sm:$0xff] }
 0x192   : > { %9593 = vmatprep.subr.msk.mxu1 %vm16223_vm7, %v581_v63  ;;  %v5860_v58 = vadd.f32 %v5859_v30, %v5858_v50  ;;  %v5262_v55 = vmul.f32 %v9979_v6, %v9979_v6  ;;  %v561_v63 = vld [vmem:[%s10592_s16 + $0x720] sm:$0xff]  ;;  %v5877_v30 = vsel %vm16223_vm7, %v5261_v37, 0.0  ;;  %v620_v6 = vld [vmem:[%s10592_s16 + $0x8f8] sm:$0xff] }
 0x193   : > { %9558 = vmatpush3.xpose.msk.msra.mxu0 %vm16223_vm7, %v533_v9  ;;  %v9980_v9 = vld [vmem:[%s10592_s16 + $0x358] sm:$0xff]  ;;  %v9981_v50 = vld [vmem:[%s10592_s16 + $0x360] sm:$0xff] }
 0x194   : > { %9559 = vmatprep.subr.msk.mxu0 %vm16223_vm7, %v548_v12  ;;  %v5862_v13 = vadd.f32 %v5861_v52, %v5860_v58  ;;  %v5263_v54 = vmul.f32 %v9980_v9, %v9980_v9  ;;  %v528_v12 = vld [vmem:[%s10592_s16 + $0x618] sm:$0xff]  ;;  %v5879_v26 = vsel %vm16223_vm7, %v5262_v55, 0.0  ;;  %v543_v58 = vld [vmem:[%s10592_s16 + $0x690] sm:$0xff] }
 0x195   : > { %9594 = vmatpush3.xpose.msk.msra.mxu1 %vm16223_vm7, %v565_v31  ;;  %v560_v52 = vld [vmem:[%s10592_s16 + $0x718] sm:$0xff] }
 0x196   : > { %9595 = vmatprep.subr.msk.mxu1 %vm16223_vm7, %v580_v27  ;;  %v5864_v25 = vadd.f32 %v5863_v32, %v5862_v13  ;;  %v5264_v27 = vmul.f32 %v9981_v50, %v9981_v50  ;;  %v9982_v32 = vld [vmem:[%s10592_s16 + $0x368] sm:$0xff]  ;;  %v16253_v37 = vld [vmem:[#allocation15_spill] sm:$0xff]  ;;  %v619_v50 = vld [vmem:[%s10592_s16 + $0x8f0] sm:$0xff] }
 0x197   : > { %9560 = vmatpush3.xpose.msk.msra.mxu0 %vm16223_vm7, %v532_v20  ;;  %v604_v9 = vld [vmem:[%s10592_s16 + $0x878] sm:$0xff] }
 0x198   : > { %9561 = vmatprep.subr.msk.mxu0 %vm16223_vm7, %v547_v1  ;;  %v5866_v21 = vadd.f32 %v5865_v46, %v5864_v25  ;;  %v5881_v1 = vsel %vm16223_vm7, %v5263_v54, 0.0  ;;  %v5266_v46 = vmul.f32 %v9983_v44, %v9983_v44  ;;  %v5883_v25 = vsel %vm16223_vm7, %v5264_v27, 0.0  ;;  %v9986_v54 = vld [vmem:[%s10592_s16 + $0x3a0] sm:$0xff]  ;;  %v618_v44 = vld [vmem:[%s10592_s16 + $0x8e8] sm:$0xff] }
 0x199   : > { %9596 = vmatpush3.xpose.msk.msra.mxu1 %vm16223_vm7, %v564_v34  ;;  %v5265_v34 = vmul.f32 %v9982_v32, %v9982_v32  ;;  %v603_v32 = vld [vmem:[%s10592_s16 + $0x870] sm:$0xff] }
 0x19a   : > { %9597 = vmatprep.subr.msk.mxu1 %vm16223_vm7, %v579_v4  ;;  %v5868_v59 = vadd.f32 %v5867_v17, %v5866_v21  ;;  %v527_v4 = vld [vmem:[%s10592_s16 + $0x610] sm:$0xff]  ;;  %v574_v17 = vld [vmem:[%s10592_s16 + $0x788] sm:$0xff]  ;;  %v5887_v16 = vsel %vm16223_vm7, %v5266_v46, 0.0 }
 0x19b   : > { %9562 = vmatpush3.xpose.msk.msra.mxu0 %vm16223_vm7, %v531_v51  ;;  %v559_v51 = vld [vmem:[%s10592_s16 + $0x710] sm:$0xff]  ;;  %v5885_v21 = vsel %vm16223_vm7, %v5265_v34, 0.0  ;;  %v11848_v46 = vld [vmem:[%s16165_s1 + $0x8] sm:$0x3] }
 0x19c   : > { %9563 = vmatprep.subr.msk.mxu0 %vm16223_vm7, %v546_v22  ;;  %v5870_v15 = vadd.f32 %v5869_v7, %v5868_v59  ;;  %v16251_v7 = vld [vmem:[#allocation17_spill] sm:$0xff] }
 0x19d   : > { %9598 = vmatpush3.xpose.msk.msra.mxu1 %vm16223_vm7, %v563_v23  ;;  %v9984_v23 = vld [vmem:[%s10592_s16 + $0x378] sm:$0xff]  ;;  %v5268_v59 = vmul.f32 %v16251_v7, %v16251_v7  ;;  %v9988_v34 = vld [vmem:[%s10592_s16 + $0x3b0] sm:$0xff]  ;;  %v617_v7 = vld [vmem:[%s10592_s16 + $0x8e0] sm:$0xff] }
 0x19e   : > { %9599 = vmatprep.subr.msk.mxu1 %vm16223_vm7, %v578_v47  ;;  %v5872_v42 = vadd.f32 %v5871_v48, %v5870_v15  ;;  %v5267_v22 = vmul.f32 %v9984_v23, %v9984_v23  ;;  %v573_v48 = vld [vmem:[%s10592_s16 + $0x780] sm:$0xff] }
 0x19f   : > { %9564 = vmatpush3.xpose.msk.msra.mxu0 %vm16223_vm7, %v530_v41  ;;  %v558_v41 = vld [vmem:[%s10592_s16 + $0x708] sm:$0xff] }
 0x1a0   : > { %9565 = vmatprep.subr.msk.mxu0 %vm16223_vm7, %v545_v33  ;;  %v5874_v40 = vadd.f32 %v5873_v0, %v5872_v42  ;;  %v16252_v33 = vld [vmem:[#allocation16_spill] sm:$0xff]  ;;  %v5270_v0 = vmul.f32 %v16253_v37, %v16253_v37  ;;  %v5891_v42 = vsel %vm16223_vm7, %v5268_v59, 0.0 }
 0x1a1   : > { %9600 = vmatpush3.xpose.msk.msra.mxu1 %vm16223_vm7, %v562_v49  ;;  %v5889_v49 = vsel %vm16223_vm7, %v5267_v22, 0.0  ;;  %v5269_v15 = vmul.f32 %v16252_v33, %v16252_v33  ;;  %v602_v22 = vld [vmem:[%s10592_s16 + $0x868] sm:$0xff] }
 0x1a2   : > { %9601 = vmatprep.subr.msk.mxu1 %vm16223_vm7, %v577_v61  ;;  %v5876_v31 = vadd.f32 %v5875_v8, %v5874_v40  ;;  %v652_v8 = vld [vmem:[%s10592_s16 + $0x9f8] sm:$0xff]  ;;  %v3950_v33 = vld [vmem:[#allocation2 + $0x8] sm:$0x3] }
 0x1a3   : > { %9566 = vmatpush3.xpose.msk.msra.mxu0 %vm16223_vm7, %v529_v11  ;;  %v557_v11 = vld [vmem:[%s10592_s16 + $0x700] sm:$0xff]  ;;  %v5893_v40 = vsel %vm16223_vm7, %v5269_v15, 0.0 }
 0x1a4   : > { %9567 = vmatprep.subr.msk.mxu0 %vm16223_vm7, %v544_v57  ;;  %v5878_v20 = vadd.f32 %v5877_v30, %v5876_v31  ;;  %v5272_v30 = vmul.f32 %v9986_v54, %v9986_v54  ;;  %v5895_v31 = vsel %vm16223_vm7, %v5270_v0, 0.0  ;;  %v9995_v54 = vld [vmem:[%s10592_s16 + $0x3e0] sm:$0xff] }
 0x1a5   : > { %9602 = vmatpush3.xpose.msk.msra.mxu1 %vm16223_vm7, %v561_v63  ;;  %v9985_v63 = vld [vmem:[%s10592_s16 + $0x398] sm:$0xff] }
 0x1a6   : > { %9603 = vmatprep.subr.msk.mxu1 %vm16223_vm7, %v576_v60  ;;  %v5880_v13 = vadd.f32 %v5879_v26, %v5878_v20  ;;  %v5271_v57 = vmul.f32 %v9985_v63, %v9985_v63  ;;  %v651_v26 = vld [vmem:[%s10592_s16 + $0x9f0] sm:$0xff] }
 0x1a7   : > { %9568 = vmatpush3.xpose.msk.msra.mxu0 %vm16223_vm7, %v528_v12  ;;  %v636_v12 = vld [vmem:[%s10592_s16 + $0x978] sm:$0xff] }
 0x1a8   : > { %9569 = vmatprep.subr.msk.mxu0 %vm16223_vm7, %v543_v58  ;;  %v5882_v56 = vadd.f32 %v5881_v1, %v5880_v13  ;;  %v5897_v20 = vsel %vm16223_vm7, %v5271_v57, 0.0  ;;  %v5274_v1 = vmul.f32 %v9988_v34, %v9988_v34  ;;  %v5899_v13 = vsel %vm16223_vm7, %v5272_v30, 0.0  ;;  %v9997_v34 = vld [vmem:[%s10592_s16 + $0x3f0] sm:$0xff] }
 0x1a9   : > { %9604 = vmatpush3.xpose.msk.msra.mxu1 %vm16223_vm7, %v560_v52  ;;  %v9987_v52 = vld [vmem:[%s10592_s16 + $0x3a8] sm:$0xff]  ;;  %v5280_v30 = vmul.f32 %v9995_v54, %v9995_v54 }
 0x1aa   : > { %9605 = vmatprep.subr.msk.mxu1 %vm16223_vm7, %v575_v28  ;;  %v5884_v47 = vadd.f32 %v5883_v25, %v5882_v56  ;;  %v5273_v58 = vmul.f32 %v9987_v52, %v9987_v52  ;;  %v9996_v52 = vld [vmem:[%s10592_s16 + $0x3e8] sm:$0xff] }
 0x1ab   : > { %9570 = vmatpush3.xpose.msk.msra.mxu0 %vm16223_vm7, %v527_v4  ;;  %v635_v4 = vld [vmem:[%s10592_s16 + $0x970] sm:$0xff]  ;;  %v610_v54 = vld [vmem:[%s10592_s16 + $0x8a8] sm:$0xff] }
 0x1ac   : > { %9571 = vmatprep.subr.msk.mxu0 %vm16223_vm7, %v542_v19  ;;  %v5886_v62 = vadd.f32 %v5885_v21, %v5884_v47  ;;  %v9990_v19 = vld [vmem:[%s10592_s16 + $0x3b8] sm:$0xff]  ;;  %v9991_v21 = vld [vmem:[%s10592_s16 + $0x3c0] sm:$0xff] }
 0x1ad   : > { %9606 = vmatpush3.xpose.msk.msra.mxu1 %vm16223_vm7, %v559_v51  ;;  %v650_v51 = vld [vmem:[%s10592_s16 + $0x9e8] sm:$0xff]  ;;  %v5275_v56 = vmul.f32 %v9990_v19, %v9990_v19  ;;  %v5276_v47 = vmul.f32 %v9991_v21, %v9991_v21  ;;  %v9998_v19 = vld [vmem:[%s10592_s16 + $0x3f8] sm:$0xff] }
 0x1ae   : > { %9607 = vmatprep.subr.msk.mxu1 %vm16223_vm7, %v574_v17  ;;  %v5888_v61 = vadd.f32 %v5887_v16, %v5886_v62  ;;  %v5901_v17 = vsel %vm16223_vm7, %v5273_v58, 0.0  ;;  %v634_v16 = vld [vmem:[%s10592_s16 + $0x968] sm:$0xff]  ;;  %v5281_v58 = vmul.f32 %v9996_v52, %v9996_v52 }
 0x1af   : > { %9572 = vmatpush3.xpose.msk.msra.mxu0 %vm16223_vm7, %v526_v53  ;;  %v5903_v53 = vsel %vm16223_vm7, %v5274_v1, 0.0  ;;  %v5907_v0 = vsel %vm16223_vm7, %v5276_v47, 0.0  ;;  %v5282_v1 = vmul.f32 %v9997_v34, %v9997_v34  ;;  %v5284_v47 = vmul.f32 %v11570_v24, %v11570_v24  ;;  %v597_v24 = vld [vmem:[%s10592_s16 + $0x840] sm:$0xff]  ;;  %v10000_v34 = vld [vmem:[%s10592_s16 + $0x448] sm:$0xff] }
 0x1b0   : > { %9573 = vmatprep.subr.msk.mxu0 %vm16223_vm7, %v541_v38  ;;  %v5890_v55 = vadd.f32 %v5889_v49, %v5888_v61  ;;  %v9992_v38 = vld [vmem:[%s10592_s16 + $0x3c8] sm:$0xff]  ;;  %v10483_v49 = vmov 0   ;;  %v601_v61 = vld [vmem:[%s10592_s16 + $0x860] sm:$0xff] }
 0x1b1   : > { %9608 = vmatpush3.xpose.msk.msra.mxu1 %vm16223_vm7, %v558_v41  ;;  %v649_v41 = vld [vmem:[%s10592_s16 + $0x9e0] sm:$0xff]  ;;  %v5277_v62 = vmul.f32 %v9992_v38, %v9992_v38  ;;  %9973 = vset.pattern.permute.xlu0 %v10483_v49  ;;  %v5919_v21 = vsel %vm16223_vm7, %v5282_v1, 0.0  ;;  %v5285_v38 = vmul.f32 %v11550_v45, %v11550_v45  ;;  %v5923_v49 = vsel %vm16223_vm7, %v5284_v47, 0.0  ;;  %v612_v45 = vld [vmem:[%s10592_s16 + $0x8b8] sm:$0xff] }
 0x1b2   : > { %9609 = vmatprep.subr.msk.mxu1 %vm16223_vm7, %v573_v48  ;;  %v5892_v60 = vadd.f32 %v5891_v42, %v5890_v55  ;;  %v5905_v48 = vsel %vm16223_vm7, %v5275_v56, 0.0  ;;  %v633_v42 = vld [vmem:[%s10592_s16 + $0x960] sm:$0xff]  ;;  %4022 = vperm.xlu0 %9973, %v3950_v33   ;;  %v648_v55 = vld [vmem:[%s10592_s16 + $0x9d8] sm:$0xff]  ;;  %v5283_v56 = vmul.f32 %v9998_v19, %v9998_v19  ;;  %v5293_v1 = vmul.f32 %v10000_v34, %v10000_v34 }
 0x1b3   : > { %9574 = vmatpush3.xpose.msk.msra.mxu0 %vm16223_vm7, %v525_v39  ;;  %v9993_v39 = vld [vmem:[%s10592_s16 + $0x3d0] sm:$0xff]  ;;  %v5909_v57 = vsel %vm16223_vm7, %v5277_v62, 0.0  ;;  %v629_v33 = vld [vmem:[%s10592_s16 + $0x940] sm:$0xff] }
 0x1b4   : > { %9615 = vmatprep.subr.msk.mxu0 %vm16223_vm7, %v620_v6  ;;  %v5894_v27 = vadd.f32 %v5893_v40, %v5892_v60  ;;  %v5278_v37 = vmul.f32 %v9993_v39, %v9993_v39  ;;  %v3949_v40 = vld [vmem:[#allocation2] sm:$0xff]  ;;  %v5287_v39 = vmul.f32 %v11513_v3, %v11513_v3  ;;  %v628_v3 = vld [vmem:[%s10592_s16 + $0x938] sm:$0xff] }
 0x1b5   : > { %9610 = vmatpush3.xpose.msk.msra.mxu1 %vm16223_vm7, %v557_v11  ;;  %v616_v11 = vld [vmem:[%s10592_s16 + $0x8d8] sm:$0xff]  ;;  %v10008_v34 = vld [vmem:[%s10592_s16 + $0x4a0] sm:$0xff] }
 0x1b6   : > { %9651 = vmatprep.subr.msk.mxu1 %vm16223_vm7, %v652_v8  ;;  %9576 = vmatmul.mubr.msk.f32.vlgmr.msra.gmra.mxu0 %vm16223_vm7, %v11599_v29  ;;  %v5896_v28 = vadd.f32 %v5895_v31, %v5894_v27  ;;  %v9994_v8 = vld [vmem:[%s10592_s16 + $0x3d8] sm:$0xff]  ;;  %v5911_v31 = vsel %vm16223_vm7, %v5278_v37, 0.0  ;;  %v5925_v37 = vsel %vm16223_vm7, %v5285_v38, 0.0 }
 0x1b7   : > { %9616 = vmatpush3.xpose.msk.msra.mxu0 %vm16223_vm7, %v604_v9  ;;  %9577 = vmatprep.mubr.msk.f32.mxu0 %vm16223_vm7, %v11848_v46  ;;  %v5279_v63 = vmul.f32 %v9994_v8, %v9994_v8  ;;  %v600_v9 = vld [vmem:[%s10592_s16 + $0x858] sm:$0xff]  ;;  %v643_v8 = vld [vmem:[%s10592_s16 + $0x9b0] sm:$0xff] }
 0x1b8   : > { %9612 = vmatmul.mubr.msk.f32.vlgmr.msra.gmra.mxu1 %vm16223_vm7, %v11599_v29  ;;  %9617 = vmatprep.subr.msk.mxu0 %vm16223_vm7, %v619_v50  ;;  %v5898_v25 = vadd.f32 %v5897_v20, %v5896_v28  ;;  %v615_v50 = vld [vmem:[%s10592_s16 + $0x8d0] sm:$0xff] }
 0x1b9   : > { %9652 = vmatpush3.xpose.msk.msra.mxu1 %vm16223_vm7, %v636_v12  ;;  %9613 = vmatprep.mubr.msk.f32.mxu1 %vm16223_vm7, %v11848_v46  ;;  %v632_v12 = vld [vmem:[%s10592_s16 + $0x958] sm:$0xff]  ;;  %v5913_v20 = vsel %vm16223_vm7, %v5279_v63, 0.0  ;;  %v5289_v63 = vmul.f32 %v11479_v2, %v11479_v2  ;;  %v627_v2 = vld [vmem:[%s10592_s16 + $0x930] sm:$0xff] }
 0x1ba   : > { %9653 = vmatprep.subr.msk.mxu1 %vm16223_vm7, %v651_v26  ;;  %9578 = vmatmul.mubr.msk.f32.gmra.mxu0 %vm16223_vm7, %v11848_v46  ;;  %v5900_v23 = vadd.f32 %v5899_v13, %v5898_v25  ;;  %v647_v26 = vld [vmem:[%s10592_s16 + $0x9d0] sm:$0xff]  ;;  %v5915_v13 = vsel %vm16223_vm7, %v5280_v30, 0.0 }
 0x1bb   : > { %9618 = vmatpush3.xpose.msk.msra.mxu0 %vm16223_vm7, %v603_v32  ;;  %9647 = vmatprep.mubr.msk.f32.mxu0 %vm16223_vm7, %v11599_v29  ;;  %v599_v32 = vld [vmem:[%s10592_s16 + $0x850] sm:$0xff] }
 0x1bc   : > { %9614 = vmatmul.mubr.msk.f32.gmra.mxu1 %vm16223_vm7, %v11848_v46  ;;  %9619 = vmatprep.subr.msk.mxu0 %vm16223_vm7, %v618_v44  ;;  %v5902_v59 = vadd.f32 %v5901_v17, %v5900_v23  ;;  %v614_v44 = vld [vmem:[%s10592_s16 + $0x8c8] sm:$0xff]  ;;  %v5917_v17 = vsel %vm16223_vm7, %v5281_v58, 0.0 }
 0x1bd   : > { %9654 = vmatpush3.xpose.msk.msra.mxu1 %vm16223_vm7, %v635_v4  ;;  %9683 = vmatprep.mubr.msk.f32.mxu1 %vm16223_vm7, %v11599_v29  ;;  %v631_v4 = vld [vmem:[%s10592_s16 + $0x950] sm:$0xff] }
 0x1be   : > { %9655 = vmatprep.subr.msk.mxu1 %vm16223_vm7, %v650_v51  ;;  %v5904_v15 = vadd.f32 %v5903_v53, %v5902_v59  ;;  %4017 = vperm.xlu0 %9973, %v3949_v40   ;;  %v646_v51 = vld [vmem:[%s10592_s16 + $0x9c8] sm:$0xff]  ;;  %v645_v59 = vld [vmem:[%s10592_s16 + $0x9c0] sm:$0xff] }
 0x1bf   : > { %9620 = vmatpush3.xpose.msk.msra.mxu0 %vm16223_vm7, %v602_v22  ;;  %v598_v22 = vld [vmem:[%s10592_s16 + $0x848] sm:$0xff] }
 0x1c0   : > { %9621 = vmatprep.subr.msk.mxu0 %vm16223_vm7, %v617_v7  ;;  %v5906_v6 = vadd.f32 %v5905_v48, %v5904_v15  ;;  %v630_v53 = vld [vmem:[%s10592_s16 + $0x948] sm:$0xff]  ;;  %v5286_v48 = vmul.f32 %v11533_v35, %v11533_v35  ;;  %v596_v35 = vld [vmem:[%s10592_s16 + $0x838] sm:$0xff] }
 0x1c1   : > { %9656 = vmatpush3.xpose.msk.msra.mxu1 %vm16223_vm7, %v634_v16  ;;  %v613_v16 = vld [vmem:[%s10592_s16 + $0x8c0] sm:$0xff] }
 0x1c2   : > { %9657 = vmatprep.subr.msk.mxu1 %vm16223_vm7, %v649_v41  ;;  %v5908_v60 = vadd.f32 %v5907_v0, %v5906_v6  ;;  %v5921_v41 = vsel %vm16223_vm7, %v5283_v56, 0.0  ;;  %v611_v6 = vld [vmem:[%s10592_s16 + $0x8b0] sm:$0xff]  ;;  %v625_v56 = vld [vmem:[%s10592_s16 + $0x920] sm:$0xff] }
 0x1c3   : > { %9622 = vmatpush3.xpose.msk.msra.mxu0 %vm16223_vm7, %v601_v61  ;;  %v644_v61 = vld [vmem:[%s10592_s16 + $0x9b8] sm:$0xff] }
 0x1c4   : > { %9623 = vmatprep.subr.msk.mxu0 %vm16223_vm7, %v616_v11  ;;  %v5910_v27 = vadd.f32 %v5909_v57, %v5908_v60  ;;  %v5927_v11 = vsel %vm16223_vm7, %v5286_v48, 0.0  ;;  %v5929_v57 = vsel %vm16223_vm7, %v5287_v39, 0.0  ;;  %v5290_v60 = vmul.f32 %v11462_v43, %v11462_v43  ;;  %v591_v39 = vld [vmem:[%s10592_s16 + $0x810] sm:$0xff] }
 0x1c5   : > { %9658 = vmatpush3.xpose.msk.msra.mxu1 %vm16223_vm7, %v633_v42  ;;  %v5288_v42 = vmul.f32 %v11496_v10, %v11496_v10  ;;  %v595_v10 = vld [vmem:[%s10592_s16 + $0x830] sm:$0xff] }
 0x1c6   : > { %9659 = vmatprep.subr.msk.mxu1 %vm16223_vm7, %v648_v55  ;;  %v5912_v28 = vadd.f32 %v5911_v31, %v5910_v27  ;;  %v642_v31 = vld [vmem:[%s10592_s16 + $0x9a8] sm:$0xff]  ;;  %v5935_v58 = vsel %vm16223_vm7, %v5290_v60, 0.0  ;;  %v5300_v60 = vmul.f32 %v11561_v5, %v11561_v5  ;;  %v5302_v5 = vmul.f32 %v11521_v18, %v11521_v18  ;;  %v668_v18 = vld [vmem:[%s10592_s16 + $0xa78] sm:$0xff] }
 0x1c7   : > { %9624 = vmatpush3.xpose.msk.msra.mxu0 %vm16223_vm7, %v600_v9  ;;  %v5931_v9 = vsel %vm16223_vm7, %v5288_v42, 0.0  ;;  %v594_v27 = vld [vmem:[%s10592_s16 + $0x828] sm:$0xff]  ;;  %v623_v42 = vld [vmem:[%s10592_s16 + $0x910] sm:$0xff] }
 0x1c8   : > { %9625 = vmatprep.subr.msk.mxu0 %vm16223_vm7, %v615_v50  ;;  %v5914_v25 = vadd.f32 %v5913_v20, %v5912_v28  ;;  %v5933_v50 = vsel %vm16223_vm7, %v5289_v63, 0.0  ;;  %v626_v20 = vld [vmem:[%s10592_s16 + $0x928] sm:$0xff] }
 0x1c9   : > { %9660 = vmatpush3.xpose.msk.msra.mxu1 %vm16223_vm7, %v632_v12  ;;  %v5291_v12 = vmul.f32 %v11445_v36, %v11445_v36  ;;  %v609_v36 = vld [vmem:[%s10592_s16 + $0x8a0] sm:$0xff] }
 0x1ca   : > { %9661 = vmatprep.subr.msk.mxu1 %vm16223_vm7, %v647_v26  ;;  %v5916_v23 = vadd.f32 %v5915_v13, %v5914_v25  ;;  %v9999_v26 = vld [vmem:[%s10592_s16 + $0x440] sm:$0xff]  ;;  %v10001_v25 = vld [vmem:[%s10592_s16 + $0x450] sm:$0xff] }
 0x1cb   : > { %9626 = vmatpush3.xpose.msk.msra.mxu0 %vm16223_vm7, %v599_v32  ;;  %v5292_v52 = vmul.f32 %v9999_v26, %v9999_v26  ;;  %v641_v32 = vld [vmem:[%s10592_s16 + $0x9a0] sm:$0xff]  ;;  %v5937_v13 = vsel %vm16223_vm7, %v5291_v12, 0.0  ;;  %v5301_v12 = vmul.f32 %v11541_v14, %v11541_v14  ;;  %v684_v14 = vld [vmem:[%s10592_s16 + $0xaf8] sm:$0xff] }
 0x1cc   : > { %9627 = vmatprep.subr.msk.mxu0 %vm16223_vm7, %v614_v44  ;;  %v5918_v7 = vadd.f32 %v5917_v17, %v5916_v23  ;;  %v593_v44 = vld [vmem:[%s10592_s16 + $0x820] sm:$0xff]  ;;  %v608_v17 = vld [vmem:[%s10592_s16 + $0x898] sm:$0xff] }
 0x1cd   : > { %9662 = vmatpush3.xpose.msk.msra.mxu1 %vm16223_vm7, %v631_v4  ;;  %v5939_v19 = vsel %vm16223_vm7, %v5292_v52, 0.0  ;;  %v621_v26 = vld [vmem:[%s10592_s16 + $0x900] sm:$0xff] }
 0x1ce   : > { %9663 = vmatprep.subr.msk.mxu1 %vm16223_vm7, %v646_v51  ;;  %v5920_v62 = vadd.f32 %v5919_v21, %v5918_v7  ;;  %v5294_v51 = vmul.f32 %v10001_v25, %v10001_v25  ;;  %v10002_v21 = vld [vmem:[%s10592_s16 + $0x458] sm:$0xff] }
 0x1cf   : > { %9628 = vmatpush3.xpose.msk.msra.mxu0 %vm16223_vm7, %v598_v22  ;;  %v640_v22 = vld [vmem:[%s10592_s16 + $0x998] sm:$0xff]  ;;  %v5295_v47 = vmul.f32 %v10002_v21, %v10002_v21  ;;  %v10010_v21 = vld [vmem:[%s10592_s16 + $0x4b0] sm:$0xff] }
 0x1d0   : > { %9629 = vmatprep.subr.msk.mxu0 %vm16223_vm7, %v613_v16  ;;  %v5922_v15 = vadd.f32 %v5921_v41, %v5920_v62  ;;  %v592_v7 = vld [vmem:[%s10592_s16 + $0x818] sm:$0xff]  ;;  %v5943_v38 = vsel %vm16223_vm7, %v5294_v51, 0.0  ;;  %v715_v51 = vld [vmem:[%s10592_s16 + $0xbf0] sm:$0xff] }
 0x1d1   : > { %9664 = vmatpush3.xpose.msk.msra.mxu1 %vm16223_vm7, %v630_v53  ;;  %v5941_v53 = vsel %vm16223_vm7, %v5293_v1, 0.0  ;;  %v624_v62 = vld [vmem:[%s10592_s16 + $0x918] sm:$0xff]  ;;  %v5304_v1 = vmul.f32 %v10008_v34, %v10008_v34  ;;  %v695_v34 = vld [vmem:[%s10592_s16 + $0xb50] sm:$0xff] }
 0x1d2   : > { %9665 = vmatprep.subr.msk.mxu1 %vm16223_vm7, %v645_v59  ;;  %v5924_v0 = vadd.f32 %v5923_v49, %v5922_v15  ;;  %v10003_v59 = vld [vmem:[%s10592_s16 + $0x460] sm:$0xff]  ;;  %v639_v49 = vld [vmem:[%s10592_s16 + $0x990] sm:$0xff]  ;;  %v5945_v15 = vsel %vm16223_vm7, %v5295_v47, 0.0  ;;  %v5306_v47 = vmul.f32 %v10010_v21, %v10010_v21  ;;  %v694_v21 = vld [vmem:[%s10592_s16 + $0xb48] sm:$0xff] }
 0x1d3   : > { %9630 = vmatpush3.xpose.msk.msra.mxu0 %vm16223_vm7, %v597_v24  ;;  %v5296_v41 = vmul.f32 %v10003_v59, %v10003_v59  ;;  %v607_v24 = vld [vmem:[%s10592_s16 + $0x890] sm:$0xff] }
 0x1d4   : > { %9631 = vmatprep.subr.msk.mxu0 %vm16223_vm7, %v612_v45  ;;  %v5926_v55 = vadd.f32 %v5925_v37, %v5924_v0  ;;  %v10005_v37 = vld [vmem:[%s10592_s16 + $0x470] sm:$0xff] }
 0x1d5   : > { %9666 = vmatpush3.xpose.msk.msra.mxu1 %vm16223_vm7, %v629_v33  ;;  %v10004_v33 = vld [vmem:[%s10592_s16 + $0x468] sm:$0xff]  ;;  %v5298_v0 = vmul.f32 %v10005_v37, %v10005_v37 }
 0x1d6   : > { %9667 = vmatprep.subr.msk.mxu1 %vm16223_vm7, %v644_v61  ;;  %v5928_v40 = vadd.f32 %v5927_v11, %v5926_v55  ;;  %v5297_v45 = vmul.f32 %v10004_v33, %v10004_v33  ;;  %v606_v11 = vld [vmem:[%s10592_s16 + $0x888] sm:$0xff]  ;;  %v10006_v55 = vld [vmem:[%s10592_s16 + $0x478] sm:$0xff]  ;;  %v10012_v33 = vld [vmem:[%s10592_s16 + $0x4c0] sm:$0xff] }
 0x1d7   : > { %9632 = vmatpush3.xpose.msk.msra.mxu0 %vm16223_vm7, %v596_v35  ;;  %v5947_v35 = vsel %vm16223_vm7, %v5296_v41, 0.0  ;;  %v714_v41 = vld [vmem:[%s10592_s16 + $0xbe8] sm:$0xff] }
 0x1d8   : > { %9633 = vmatprep.subr.msk.mxu0 %vm16223_vm7, %v611_v6  ;;  %v5930_v30 = vadd.f32 %v5929_v57, %v5928_v40  ;;  %v638_v6 = vld [vmem:[%s10592_s16 + $0x988] sm:$0xff]  ;;  %v5949_v63 = vsel %vm16223_vm7, %v5297_v45, 0.0  ;;  %v5308_v45 = vmul.f32 %v10012_v33, %v10012_v33  ;;  %v693_v33 = vld [vmem:[%s10592_s16 + $0xb40] sm:$0xff] }
 0x1d9   : > { %9668 = vmatpush3.xpose.msk.msra.mxu1 %vm16223_vm7, %v628_v3  ;;  %v590_v40 = vld [vmem:[%s10592_s16 + $0x808] sm:$0xff] }
 0x1da   : > { %9669 = vmatprep.subr.msk.mxu1 %vm16223_vm7, %v643_v8  ;;  %v5932_v43 = vadd.f32 %v5931_v9, %v5930_v30  ;;  %v5299_v8 = vmul.f32 %v10006_v55, %v10006_v55  ;;  %v622_v9 = vld [vmem:[%s10592_s16 + $0x908] sm:$0xff]  ;;  %v637_v30 = vld [vmem:[%s10592_s16 + $0x980] sm:$0xff]  ;;  %v10014_v55 = vld [vmem:[%s10592_s16 + $0x4d0] sm:$0xff] }
 0x1db   : > { %9634 = vmatpush3.xpose.msk.msra.mxu0 %vm16223_vm7, %v595_v10  ;;  %v5951_v10 = vsel %vm16223_vm7, %v5298_v0, 0.0  ;;  %v713_v0 = vld [vmem:[%s10592_s16 + $0xbe0] sm:$0xff] }
 0x1dc   : > { %9635 = vmatprep.subr.msk.mxu0 %vm16223_vm7, %v610_v54  ;;  %v5934_v28 = vadd.f32 %v5933_v50, %v5932_v43  ;;  %v589_v43 = vld [vmem:[%s10592_s16 + $0x800] sm:$0xff] }
 0x1dd   : > { %9670 = vmatpush3.xpose.msk.msra.mxu1 %vm16223_vm7, %v627_v2  ;;  %v605_v2 = vld [vmem:[%s10592_s16 + $0x880] sm:$0xff] }
 0x1de   : > { %9671 = vmatprep.subr.msk.mxu1 %vm16223_vm7, %v642_v31  ;;  %v5936_v4 = vadd.f32 %v5935_v58, %v5934_v28  ;;  %v5953_v31 = vsel %vm16223_vm7, %v5299_v8, 0.0  ;;  %v716_v58 = vld [vmem:[%s10592_s16 + $0xbf8] sm:$0xff]  ;;  %v5957_v28 = vsel %vm16223_vm7, %v5301_v12, 0.0  ;;  %v5310_v8 = vmul.f32 %v10014_v55, %v10014_v55 }
 0x1df   : > { %9636 = vmatpush3.xpose.msk.msra.mxu0 %vm16223_vm7, %v594_v27  ;;  %v5955_v27 = vsel %vm16223_vm7, %v5300_v60, 0.0  ;;  %v10015_v60 = vld [vmem:[%s10592_s16 + $0x4d8] sm:$0xff] }
 0x1e0   : > { %9637 = vmatprep.subr.msk.mxu0 %vm16223_vm7, %v609_v36  ;;  %v5938_v23 = vadd.f32 %v5937_v13, %v5936_v4  ;;  %v5959_v13 = vsel %vm16223_vm7, %v5302_v5, 0.0  ;;  %v700_v4 = vld [vmem:[%s10592_s16 + $0xb78] sm:$0xff]  ;;  %v679_v5 = vld [vmem:[%s10592_s16 + $0xad0] sm:$0xff] }
 0x1e1   : > { %9672 = vmatpush3.xpose.msk.msra.mxu1 %vm16223_vm7, %v626_v20  ;;  %v10007_v20 = vld [vmem:[%s10592_s16 + $0x498] sm:$0xff] }
 0x1e2   : > { %9673 = vmatprep.subr.msk.mxu1 %vm16223_vm7, %v641_v32  ;;  %v5940_v16 = vadd.f32 %v5939_v19, %v5938_v23  ;;  %v5303_v36 = vmul.f32 %v10007_v20, %v10007_v20  ;;  %v10009_v19 = vld [vmem:[%s10592_s16 + $0x4a8] sm:$0xff]  ;;  %v692_v55 = vld [vmem:[%s10592_s16 + $0xb38] sm:$0xff] }
 0x1e3   : > { %9638 = vmatpush3.xpose.msk.msra.mxu0 %vm16223_vm7, %v593_v44  ;;  %v683_v44 = vld [vmem:[%s10592_s16 + $0xaf0] sm:$0xff] }
 0x1e4   : > { %9639 = vmatprep.subr.msk.mxu0 %vm16223_vm7, %v608_v17  ;;  %v5942_v48 = vadd.f32 %v5941_v53, %v5940_v16  ;;  %v5961_v17 = vsel %vm16223_vm7, %v5303_v36, 0.0  ;;  %v5963_v53 = vsel %vm16223_vm7, %v5304_v1, 0.0  ;;  %v699_v16 = vld [vmem:[%s10592_s16 + $0xb70] sm:$0xff]  ;;  %v678_v1 = vld [vmem:[%s10592_s16 + $0xac8] sm:$0xff] }
 0x1e5   : > { %9674 = vmatpush3.xpose.msk.msra.mxu1 %vm16223_vm7, %v625_v56  ;;  %v5305_v56 = vmul.f32 %v10009_v19, %v10009_v19  ;;  %v663_v36 = vld [vmem:[%s10592_s16 + $0xa50] sm:$0xff] }
 0x1e6   : > { %9675 = vmatprep.subr.msk.mxu1 %vm16223_vm7, %v640_v22  ;;  %v5944_v61 = vadd.f32 %v5943_v38, %v5942_v48  ;;  %v667_v22 = vld [vmem:[%s10592_s16 + $0xa70] sm:$0xff]  ;;  %v10011_v38 = vld [vmem:[%s10592_s16 + $0x4b8] sm:$0xff] }
 0x1e7   : > { %9640 = vmatpush3.xpose.msk.msra.mxu0 %vm16223_vm7, %v592_v7  ;;  %v682_v7 = vld [vmem:[%s10592_s16 + $0xae8] sm:$0xff] }
 0x1e8   : > { %9641 = vmatprep.subr.msk.mxu0 %vm16223_vm7, %v607_v24  ;;  %v5946_v3 = vadd.f32 %v5945_v15, %v5944_v61  ;;  %v5965_v24 = vsel %vm16223_vm7, %v5305_v56, 0.0  ;;  %v5967_v15 = vsel %vm16223_vm7, %v5306_v47, 0.0  ;;  %v698_v61 = vld [vmem:[%s10592_s16 + $0xb68] sm:$0xff]  ;;  %v677_v47 = vld [vmem:[%s10592_s16 + $0xac0] sm:$0xff] }
 0x1e9   : > { %9676 = vmatpush3.xpose.msk.msra.mxu1 %vm16223_vm7, %v624_v62  ;;  %v5307_v62 = vmul.f32 %v10011_v38, %v10011_v38  ;;  %v662_v56 = vld [vmem:[%s10592_s16 + $0xa48] sm:$0xff] }
 0x1ea   : > { %9677 = vmatprep.subr.msk.mxu1 %vm16223_vm7, %v639_v49  ;;  %v5948_v57 = vadd.f32 %v5947_v35, %v5946_v3  ;;  %v666_v49 = vld [vmem:[%s10592_s16 + $0xa68] sm:$0xff] }
 0x1eb   : > { %9642 = vmatpush3.xpose.msk.msra.mxu0 %vm16223_vm7, %v591_v39  ;;  %v681_v39 = vld [vmem:[%s10592_s16 + $0xae0] sm:$0xff]  ;;  %v10013_v35 = vld [vmem:[%s10592_s16 + $0x4c8] sm:$0xff] }
 0x1ec   : > { %9643 = vmatprep.subr.msk.mxu0 %vm16223_vm7, %v606_v11  ;;  %v5950_v54 = vadd.f32 %v5949_v63, %v5948_v57  ;;  %v5969_v11 = vsel %vm16223_vm7, %v5307_v62, 0.0  ;;  %v697_v63 = vld [vmem:[%s10592_s16 + $0xb60] sm:$0xff]  ;;  %v680_v57 = vld [vmem:[%s10592_s16 + $0xad8] sm:$0xff] }
 0x1ed   : > { %9678 = vmatpush3.xpose.msk.msra.mxu1 %vm16223_vm7, %v623_v42  ;;  %v5309_v42 = vmul.f32 %v10013_v35, %v10013_v35  ;;  %v661_v62 = vld [vmem:[%s10592_s16 + $0xa40] sm:$0xff] }
 0x1ee   : > { %9679 = vmatprep.subr.msk.mxu1 %vm16223_vm7, %v638_v6  ;;  %v5952_v50 = vadd.f32 %v5951_v10, %v5950_v54  ;;  %v665_v6 = vld [vmem:[%s10592_s16 + $0xa60] sm:$0xff]  ;;  %v712_v10 = vld [vmem:[%s10592_s16 + $0xbd8] sm:$0xff] }
 0x1ef   : > { %9644 = vmatpush3.xpose.msk.msra.mxu0 %vm16223_vm7, %v590_v40 }
 0x1f0   : > { %9645 = vmatprep.subr.msk.mxu0 %vm16223_vm7, %v605_v2  ;;  %v5954_v52 = vadd.f32 %v5953_v31, %v5952_v50  ;;  %v5973_v2 = vsel %vm16223_vm7, %v5309_v42, 0.0  ;;  %v10016_v31 = vld [vmem:[%s10592_s16 + $0x4e0] sm:$0xff]  ;;  %v5975_v50 = vsel %vm16223_vm7, %v5310_v8, 0.0  ;;  %v660_v42 = vld [vmem:[%s10592_s16 + $0xa38] sm:$0xff]  ;;  %v675_v8 = vld [vmem:[%s10592_s16 + $0xab0] sm:$0xff] }
 0x1f1   : > { %9680 = vmatpush3.xpose.msk.msra.mxu1 %vm16223_vm7, %v622_v9  ;;  %v5311_v9 = vmul.f32 %v10015_v60, %v10015_v60  ;;  %v5312_v12 = vmul.f32 %v10016_v31, %v10016_v31  ;;  %v691_v31 = vld [vmem:[%s10592_s16 + $0xb30] sm:$0xff] }
 0x1f2   : > { %9681 = vmatprep.subr.msk.mxu1 %vm16223_vm7, %v637_v30  ;;  %v5956_v32 = vadd.f32 %v5955_v27, %v5954_v52  ;;  %v664_v30 = vld [vmem:[%s10592_s16 + $0xa58] sm:$0xff] }
 0x1f3   : > { %9646 = vmatpush3.xpose.msk.msra.mxu0 %vm16223_vm7, %v589_v43  ;;  %v696_v43 = vld [vmem:[%s10592_s16 + $0xb58] sm:$0xff] }
 0x1f4   : > { %9687 = vmatprep.subr.msk.mxu0 %vm16223_vm7, %v684_v14  ;;  %v5958_v25 = vadd.f32 %v5957_v28, %v5956_v32  ;;  %v10017_v14 = vld [vmem:[%s10592_s16 + $0x4e8] sm:$0xff]  ;;  %v10018_v28 = vld [vmem:[%s10592_s16 + $0x4f0] sm:$0xff] }
 0x1f5   : > { %9682 = vmatpush3.xpose.msk.msra.mxu1 %vm16223_vm7, %v621_v26  ;;  %v711_v26 = vld [vmem:[%s10592_s16 + $0xbd0] sm:$0xff]  ;;  %v5313_v52 = vmul.f32 %v10017_v14, %v10017_v14  ;;  %v5314_v32 = vmul.f32 %v10018_v28, %v10018_v28  ;;  %v690_v28 = vld [vmem:[%s10592_s16 + $0xb28] sm:$0xff] }
 0x1f6   : > { %9723 = vmatprep.subr.msk.mxu1 %vm16223_vm7, %v716_v58  ;;  %9648 = vmatmul.mubr.msk.f32.vlgmr.msra.gmra.mxu0 %vm16223_vm7, %v11599_v29  ;;  %v5960_v23 = vadd.f32 %v5959_v13, %v5958_v25  ;;  %v5977_v58 = vsel %vm16223_vm7, %v5311_v9, 0.0  ;;  %v659_v9 = vld [vmem:[%s10592_s16 + $0xa30] sm:$0xff] }
 0x1f7   : > { %9688 = vmatpush3.xpose.msk.msra.mxu0 %vm16223_vm7, %v668_v18  ;;  %9649 = vmatprep.mubr.msk.f32.mxu0 %vm16223_vm7, %v11848_v46  ;;  %v5979_v18 = vsel %vm16223_vm7, %v5312_v12, 0.0  ;;  %v674_v12 = vld [vmem:[%s10592_s16 + $0xaa8] sm:$0xff] }
 0x1f8   : > { %9684 = vmatmul.mubr.msk.f32.vlgmr.msra.gmra.mxu1 %vm16223_vm7, %v11599_v29  ;;  %9689 = vmatprep.subr.msk.mxu0 %vm16223_vm7, %v683_v44  ;;  %v5962_v59 = vadd.f32 %v5961_v17, %v5960_v23  ;;  %v10019_v44 = vld [vmem:[%s10592_s16 + $0x4f8] sm:$0xff]  ;;  %v5983_v17 = vsel %vm16223_vm7, %v5314_v32, 0.0  ;;  %v10020_v23 = vld [vmem:[%s10592_s16 + $0x500] sm:$0xff] }
 0x1f9   : > { %9724 = vmatpush3.xpose.msk.msra.mxu1 %vm16223_vm7, %v700_v4  ;;  %9685 = vmatprep.mubr.msk.f32.mxu1 %vm16223_vm7, %v11848_v46  ;;  %v710_v4 = vld [vmem:[%s10592_s16 + $0xbc8] sm:$0xff]  ;;  %v5315_v25 = vmul.f32 %v10019_v44, %v10019_v44  ;;  %v673_v32 = vld [vmem:[%s10592_s16 + $0xaa0] sm:$0xff] }
 0x1fa   : > { %9725 = vmatprep.subr.msk.mxu1 %vm16223_vm7, %v715_v51  ;;  %9650 = vmatmul.mubr.msk.f32.gmra.mxu0 %vm16223_vm7, %v11848_v46  ;;  %v5964_v48 = vadd.f32 %v5963_v53, %v5962_v59  ;;  %v5981_v51 = vsel %vm16223_vm7, %v5313_v52, 0.0  ;;  %v10021_v59 = vld [vmem:[%s10592_s16 + $0x508] sm:$0xff] }
 0x1fb   : > { %9690 = vmatpush3.xpose.msk.msra.mxu0 %vm16223_vm7, %v667_v22  ;;  %9719 = vmatprep.mubr.msk.f32.mxu0 %vm16223_vm7, %v11599_v29  ;;  %v5316_v22 = vmul.f32 %v10020_v23, %v10020_v23  ;;  %v658_v52 = vld [vmem:[%s10592_s16 + $0xa28] sm:$0xff]  ;;  %v672_v23 = vld [vmem:[%s10592_s16 + $0xa98] sm:$0xff] }
 0x1fc   : > { %9686 = vmatmul.mubr.msk.f32.gmra.mxu1 %vm16223_vm7, %v11848_v46  ;;  %9691 = vmatprep.subr.msk.mxu0 %vm16223_vm7, %v682_v7  ;;  %v5966_v37 = vadd.f32 %v5965_v24, %v5964_v48  ;;  %v5985_v7 = vsel %vm16223_vm7, %v5315_v25, 0.0  ;;  %v10022_v24 = vld [vmem:[%s10592_s16 + $0x510] sm:$0xff]  ;;  %v657_v25 = vld [vmem:[%s10592_s16 + $0xa20] sm:$0xff] }
 0x1fd   : > { %9726 = vmatpush3.xpose.msk.msra.mxu1 %vm16223_vm7, %v699_v16  ;;  %9755 = vmatprep.mubr.msk.f32.mxu1 %vm16223_vm7, %v11599_v29  ;;  %v5971_v29 = vsel %vm16223_vm7, %v5308_v45, 0.0  ;;  %v709_v16 = vld [vmem:[%s10592_s16 + $0xbc0] sm:$0xff]  ;;  %v5318_v48 = vmul.f32 %v10022_v24, %v10022_v24  ;;  %v676_v45 = vld [vmem:[%s10592_s16 + $0xab8] sm:$0xff] }
 0x1fe   : > { %9727 = vmatprep.subr.msk.mxu1 %vm16223_vm7, %v714_v41  ;;  %v5968_v3 = vadd.f32 %v5967_v15, %v5966_v37  ;;  %v5317_v41 = vmul.f32 %v10021_v59, %v10021_v59  ;;  %v656_v59 = vld [vmem:[%s10592_s16 + $0xa18] sm:$0xff] }
 0x1ff   : > { %9692 = vmatpush3.xpose.msk.msra.mxu0 %vm16223_vm7, %v666_v49  ;;  %v5987_v49 = vsel %vm16223_vm7, %v5316_v22, 0.0  ;;  %v688_v24 = vld [vmem:[%s10592_s16 + $0xb18] sm:$0xff] }
 0x200   : > { %9693 = vmatprep.subr.msk.mxu0 %vm16223_vm7, %v681_v39  ;;  %v5970_v40 = vadd.f32 %v5969_v11, %v5968_v3  ;;  %v10023_v39 = vld [vmem:[%s10592_s16 + $0x518] sm:$0xff]  ;;  %v10024_v11 = vld [vmem:[%s10592_s16 + $0x520] sm:$0xff] }
 0x201   : > { %9728 = vmatpush3.xpose.msk.msra.mxu1 %vm16223_vm7, %v698_v61  ;;  %v708_v61 = vld [vmem:[%s10592_s16 + $0xbb8] sm:$0xff]  ;;  %v5319_v37 = vmul.f32 %v10023_v39, %v10023_v39  ;;  %v5320_v3 = vmul.f32 %v10024_v11, %v10024_v11  ;;  %v687_v11 = vld [vmem:[%s10592_s16 + $0xb10] sm:$0xff] }
 0x202   : > { %9729 = vmatprep.subr.msk.mxu1 %vm16223_vm7, %v713_v0  ;;  %v5972_v54 = vadd.f32 %v5971_v29, %v5970_v40  ;;  %v5989_v0 = vsel %vm16223_vm7, %v5317_v41, 0.0  ;;  %v10032_v41 = vld [vmem:[%s10592_s16 + $0x560] sm:$0xff] }
 0x203   : > { %9694 = vmatpush3.xpose.msk.msra.mxu0 %vm16223_vm7, %v665_v6  ;;  %v5991_v6 = vsel %vm16223_vm7, %v5318_v48, 0.0  ;;  %v671_v48 = vld [vmem:[%s10592_s16 + $0xa90] sm:$0xff] }
 0x204   : > { %9695 = vmatprep.subr.msk.mxu0 %vm16223_vm7, %v680_v57  ;;  %v5974_v27 = vadd.f32 %v5973_v2, %v5972_v54  ;;  %v10025_v57 = vld [vmem:[%s10592_s16 + $0x528] sm:$0xff]  ;;  %v10026_v2 = vld [vmem:[%s10592_s16 + $0x530] sm:$0xff] }
 0x205   : > { %9730 = vmatpush3.xpose.msk.msra.mxu1 %vm16223_vm7, %v697_v63  ;;  %v707_v63 = vld [vmem:[%s10592_s16 + $0xbb0] sm:$0xff]  ;;  %v5321_v40 = vmul.f32 %v10025_v57, %v10025_v57  ;;  %v5322_v54 = vmul.f32 %v10026_v2, %v10026_v2  ;;  %v686_v2 = vld [vmem:[%s10592_s16 + $0xb08] sm:$0xff] }
 0x206   : > { %9731 = vmatprep.subr.msk.mxu1 %vm16223_vm7, %v712_v10  ;;  %v5976_v20 = vadd.f32 %v5975_v50, %v5974_v27  ;;  %v5993_v10 = vsel %vm16223_vm7, %v5319_v37, 0.0  ;;  %v655_v37 = vld [vmem:[%s10592_s16 + $0xa10] sm:$0xff] }
 0x207   : > { %9696 = vmatpush3.xpose.msk.msra.mxu0 %vm16223_vm7, %v664_v30  ;;  %v5995_v30 = vsel %vm16223_vm7, %v5320_v3, 0.0  ;;  %v670_v3 = vld [vmem:[%s10592_s16 + $0xa88] sm:$0xff] }
 0x208   : > { %9697 = vmatprep.subr.msk.mxu0 %vm16223_vm7, %v679_v5  ;;  %v5978_v13 = vadd.f32 %v5977_v58, %v5976_v20  ;;  %v10027_v5 = vld [vmem:[%s10592_s16 + $0x538] sm:$0xff]  ;;  %v10028_v58 = vld [vmem:[%s10592_s16 + $0x540] sm:$0xff] }
 0x209   : > { %9732 = vmatpush3.xpose.msk.msra.mxu1 %vm16223_vm7, %v696_v43  ;;  %v706_v43 = vld [vmem:[%s10592_s16 + $0xba8] sm:$0xff]  ;;  %v5323_v27 = vmul.f32 %v10027_v5, %v10027_v5  ;;  %v5324_v20 = vmul.f32 %v10028_v58, %v10028_v58  ;;  %v685_v58 = vld [vmem:[%s10592_s16 + $0xb00] sm:$0xff] }
 0x20a   : > { %9733 = vmatprep.subr.msk.mxu1 %vm16223_vm7, %v711_v26  ;;  %v5980_v19 = vadd.f32 %v5979_v18, %v5978_v13  ;;  %v5997_v26 = vsel %vm16223_vm7, %v5321_v40, 0.0  ;;  %v654_v40 = vld [vmem:[%s10592_s16 + $0xa08] sm:$0xff] }
 0x20b   : > { %9698 = vmatpush3.xpose.msk.msra.mxu0 %vm16223_vm7, %v663_v36  ;;  %v5999_v36 = vsel %vm16223_vm7, %v5322_v54, 0.0  ;;  %v669_v54 = vld [vmem:[%s10592_s16 + $0xa80] sm:$0xff] }
 0x20c   : > { %9699 = vmatprep.subr.msk.mxu0 %vm16223_vm7, %v678_v1  ;;  %v5982_v53 = vadd.f32 %v5981_v51, %v5980_v19  ;;  %v10029_v1 = vld [vmem:[%s10592_s16 + $0x548] sm:$0xff]  ;;  %v10030_v51 = vld [vmem:[%s10592_s16 + $0x550] sm:$0xff] }
 0x20d   : > { %9734 = vmatpush3.xpose.msk.msra.mxu1 %vm16223_vm7, %v695_v34  ;;  %v705_v34 = vld [vmem:[%s10592_s16 + $0xba0] sm:$0xff]  ;;  %v5325_v13 = vmul.f32 %v10029_v1, %v10029_v1  ;;  %v5326_v19 = vmul.f32 %v10030_v51, %v10030_v51  ;;  %v764_v51 = vld [vmem:[%s10592_s16 + $0xd78] sm:$0xff] }
 0x20e   : > { %9735 = vmatprep.subr.msk.mxu1 %vm16223_vm7, %v710_v4  ;;  %v5984_v38 = vadd.f32 %v5983_v17, %v5982_v53  ;;  %v6001_v4 = vsel %vm16223_vm7, %v5323_v27, 0.0  ;;  %v689_v17 = vld [vmem:[%s10592_s16 + $0xb20] sm:$0xff] }
 0x20f   : > { %9700 = vmatpush3.xpose.msk.msra.mxu0 %vm16223_vm7, %v662_v56  ;;  %v6003_v56 = vsel %vm16223_vm7, %v5324_v20, 0.0  ;;  %v653_v27 = vld [vmem:[%s10592_s16 + $0xa00] sm:$0xff]  ;;  %v748_v20 = vld [vmem:[%s10592_s16 + $0xcf8] sm:$0xff] }
 0x210   : > { %9701 = vmatprep.subr.msk.mxu0 %vm16223_vm7, %v677_v47  ;;  %v5986_v15 = vadd.f32 %v5985_v7, %v5984_v38  ;;  %v10031_v47 = vld [vmem:[%s10592_s16 + $0x558] sm:$0xff]  ;;  %v5328_v38 = vmul.f32 %v10032_v41, %v10032_v41 }
 0x211   : > { %9736 = vmatpush3.xpose.msk.msra.mxu1 %vm16223_vm7, %v694_v21  ;;  %v704_v21 = vld [vmem:[%s10592_s16 + $0xb98] sm:$0xff]  ;;  %v5327_v53 = vmul.f32 %v10031_v47, %v10031_v47  ;;  %v779_v47 = vld [vmem:[%s10592_s16 + $0xdf0] sm:$0xff] }
 0x212   : > { %9737 = vmatprep.subr.msk.mxu1 %vm16223_vm7, %v709_v16  ;;  %v5988_v35 = vadd.f32 %v5987_v49, %v5986_v15  ;;  %v6005_v16 = vsel %vm16223_vm7, %v5325_v13, 0.0  ;;  %v732_v13 = vld [vmem:[%s10592_s16 + $0xc78] sm:$0xff] }
 0x213   : > { %9702 = vmatpush3.xpose.msk.msra.mxu0 %vm16223_vm7, %v661_v62  ;;  %v6007_v62 = vsel %vm16223_vm7, %v5326_v19, 0.0 }
 0x214   : > { %9703 = vmatprep.subr.msk.mxu0 %vm16223_vm7, %v676_v45  ;;  %v5990_v29 = vadd.f32 %v5989_v0, %v5988_v35  ;;  %v10033_v45 = vld [vmem:[%s10592_s16 + $0x568] sm:$0xff]  ;;  %v10034_v0 = vld [vmem:[%s10592_s16 + $0x570] sm:$0xff] }
 0x215   : > { %9738 = vmatpush3.xpose.msk.msra.mxu1 %vm16223_vm7, %v693_v33  ;;  %v703_v33 = vld [vmem:[%s10592_s16 + $0xb90] sm:$0xff]  ;;  %v5329_v15 = vmul.f32 %v10033_v45, %v10033_v45  ;;  %v5330_v35 = vmul.f32 %v10034_v0, %v10034_v0  ;;  %v10046_v0 = vld [vmem:[%s10592_s16 + $0x5c0] sm:$0xff] }
 0x216   : > { %9739 = vmatprep.subr.msk.mxu1 %vm16223_vm7, %v708_v61  ;;  %v5992_v60 = vadd.f32 %v5991_v6, %v5990_v29  ;;  %v6009_v61 = vsel %vm16223_vm7, %v5327_v53, 0.0 }
 0x217   : > { %9704 = vmatpush3.xpose.msk.msra.mxu0 %vm16223_vm7, %v660_v42  ;;  %v6011_v42 = vsel %vm16223_vm7, %v5328_v38, 0.0  ;;  %v763_v38 = vld [vmem:[%s10592_s16 + $0xd70] sm:$0xff] }
 0x218   : > { %9705 = vmatprep.subr.msk.mxu0 %vm16223_vm7, %v675_v8  ;;  %v5994_v50 = vadd.f32 %v5993_v10, %v5992_v60  ;;  %v10035_v8 = vld [vmem:[%s10592_s16 + $0x578] sm:$0xff]  ;;  %v6015_v10 = vsel %vm16223_vm7, %v5330_v35, 0.0  ;;  %v10036_v60 = vld [vmem:[%s10592_s16 + $0x580] sm:$0xff]  ;;  %v5340_v35 = vmul.f32 %v10046_v0, %v10046_v0 }
 0x219   : > { %9740 = vmatpush3.xpose.msk.msra.mxu1 %vm16223_vm7, %v692_v55  ;;  %v702_v55 = vld [vmem:[%s10592_s16 + $0xb88] sm:$0xff]  ;;  %v5331_v29 = vmul.f32 %v10035_v8, %v10035_v8  ;;  %v777_v8 = vld [vmem:[%s10592_s16 + $0xde0] sm:$0xff] }
 0x21a   : > { %9741 = vmatprep.subr.msk.mxu1 %vm16223_vm7, %v707_v63  ;;  %v5996_v14 = vadd.f32 %v5995_v30, %v5994_v50  ;;  %v6013_v63 = vsel %vm16223_vm7, %v5329_v15, 0.0  ;;  %v10037_v50 = vld [vmem:[%s10592_s16 + $0x588] sm:$0xff] }
 0x21b   : > { %9706 = vmatpush3.xpose.msk.msra.mxu0 %vm16223_vm7, %v659_v9  ;;  %v5332_v9 = vmul.f32 %v10036_v60, %v10036_v60 }
 0x21c   : > { %9707 = vmatprep.subr.msk.mxu0 %vm16223_vm7, %v674_v12  ;;  %v5998_v18 = vadd.f32 %v5997_v26, %v5996_v14  ;;  %v6017_v12 = vsel %vm16223_vm7, %v5331_v29, 0.0  ;;  %v10038_v26 = vld [vmem:[%s10592_s16 + $0x590] sm:$0xff]  ;;  %v10048_v29 = vld [vmem:[%s10592_s16 + $0x5e8] sm:$0xff] }
 0x21d   : > { %9742 = vmatpush3.xpose.msk.msra.mxu1 %vm16223_vm7, %v691_v31  ;;  %v701_v31 = vld [vmem:[%s10592_s16 + $0xb80] sm:$0xff]  ;;  %v5334_v14 = vmul.f32 %v10038_v26, %v10038_v26  ;;  %v10053_v26 = vld [vmem:[%s10592_s16 + $0x6f8] sm:$0xff] }
 0x21e   : > { %9743 = vmatprep.subr.msk.mxu1 %vm16223_vm7, %v706_v43  ;;  %v6000_v44 = vadd.f32 %v5999_v36, %v5998_v18  ;;  %v5333_v43 = vmul.f32 %v10037_v50, %v10037_v50 }
 0x21f   : > { %9708 = vmatpush3.xpose.msk.msra.mxu0 %vm16223_vm7, %v658_v52  ;;  %v6019_v52 = vsel %vm16223_vm7, %v5332_v9, 0.0 }
 0x220   : > { %9709 = vmatprep.subr.msk.mxu0 %vm16223_vm7, %v673_v32  ;;  %v6002_v22 = vadd.f32 %v6001_v4, %v6000_v44  ;;  %v10039_v32 = vld [vmem:[%s10592_s16 + $0x598] sm:$0xff]  ;;  %v10040_v4 = vld [vmem:[%s10592_s16 + $0x5a0] sm:$0xff] }
 0x221   : > { %9744 = vmatpush3.xpose.msk.msra.mxu1 %vm16223_vm7, %v690_v28  ;;  %v780_v28 = vld [vmem:[%s10592_s16 + $0xdf8] sm:$0xff]  ;;  %v5335_v18 = vmul.f32 %v10039_v32, %v10039_v32  ;;  %v5336_v44 = vmul.f32 %v10040_v4, %v10040_v4 }
 0x222   : > { %9745 = vmatprep.subr.msk.mxu1 %vm16223_vm7, %v705_v34  ;;  %v6004_v7 = vadd.f32 %v6003_v56, %v6002_v22  ;;  %v6021_v34 = vsel %vm16223_vm7, %v5333_v43, 0.0  ;;  %v12263_v56 = vld [vmem:[%s16165_s1] sm:$0xff]  ;;  %v10052_v43 = vld [vmem:[%s10592_s16 + $0x5d0] sm:$0xff] }
 0x223   : > { %9710 = vmatpush3.xpose.msk.msra.mxu0 %vm16223_vm7, %v657_v25  ;;  %v6023_v25 = vsel %vm16223_vm7, %v5334_v14, 0.0  ;;  %v6027_v41 = vsel %vm16223_vm7, %v5336_v44, 0.0  ;;  %v5379_v14 = vmul.f32 %v10053_v26, %v10053_v26 }
 0x224   : > { %9711 = vmatprep.subr.msk.mxu0 %vm16223_vm7, %v672_v23  ;;  %v6006_v49 = vadd.f32 %v6005_v16, %v6004_v7  ;;  %v10042_v23 = vld [vmem:[%s10592_s16 + $0x5a8] sm:$0xff]  ;;  %v731_v16 = vld [vmem:[%s10592_s16 + $0xc70] sm:$0xff] }
 0x225   : > { %9746 = vmatpush3.xpose.msk.msra.mxu1 %vm16223_vm7, %v689_v17  ;;  %v747_v17 = vld [vmem:[%s10592_s16 + $0xcf0] sm:$0xff]  ;;  %v5337_v22 = vmul.f32 %v10042_v23, %v10042_v23 }
 0x226   : > { %9747 = vmatprep.subr.msk.mxu1 %vm16223_vm7, %v704_v21  ;;  %v6008_v39 = vadd.f32 %v6007_v62, %v6006_v49  ;;  %v6025_v21 = vsel %vm16223_vm7, %v5335_v18, 0.0  ;;  %v10043_v7 = vld [vmem:[%s10592_s16 + $0x5b0] sm:$0xff]  ;;  %v746_v62 = vld [vmem:[%s10592_s16 + $0xce8] sm:$0xff]  ;;  %v10044_v49 = vld [vmem:[%s10592_s16 + $0x5b8] sm:$0xff] }
 0x227   : > { %9712 = vmatpush3.xpose.msk.msra.mxu0 %vm16223_vm7, %v656_v59  ;;  %v5338_v59 = vmul.f32 %v10043_v7, %v10043_v7  ;;  %v6029_v45 = vsel %vm16223_vm7, %v5337_v22, 0.0  ;;  %v10055_v18 = vld [vmem:[%s10592_s16 + $0x7f8] sm:$0xff]  ;;  %v10057_v23 = vld [vmem:[%s10592_s16 + $0x6f0] sm:$0xff] }
 0x228   : > { %9713 = vmatprep.subr.msk.mxu0 %vm16223_vm7, %v671_v48  ;;  %v6010_v6 = vadd.f32 %v6009_v61, %v6008_v39  ;;  %v778_v48 = vld [vmem:[%s10592_s16 + $0xde8] sm:$0xff]  ;;  %v10045_v39 = vld [vmem:[%s10592_s16 + $0x5f8] sm:$0xff]  ;;  %v5378_v22 = vmul.f32 %v10057_v23, %v10057_v23 }
 0x229   : > { %9748 = vmatpush3.xpose.msk.msra.mxu1 %vm16223_vm7, %v688_v24  ;;  %v730_v61 = vld [vmem:[%s10592_s16 + $0xc68] sm:$0xff] }
 0x22a   : > { %9749 = vmatprep.subr.msk.mxu1 %vm16223_vm7, %v703_v33  ;;  %v6012_v57 = vadd.f32 %v6011_v42, %v6010_v6  ;;  %v5339_v33 = vmul.f32 %v10044_v49, %v10044_v49  ;;  %v6031_v42 = vsel %vm16223_vm7, %v5338_v59, 0.0  ;;  %v12354_v59 = vsel %vm16223_vm7, %v5379_v14, 0.0  ;;  %v743_v49 = vld [vmem:[%s10592_s16 + $0xcd0] sm:$0xff] }
 0x22b   : > { %9714 = vmatpush3.xpose.msk.msra.mxu0 %vm16223_vm7, %v655_v37  ;;  %v5347_v37 = vmul.f32 %v10045_v39, %v10045_v39 }
 0x22c   : > { %9715 = vmatprep.subr.msk.mxu0 %vm16223_vm7, %v670_v3  ;;  %v6014_v30 = vadd.f32 %v6013_v63, %v6012_v57  ;;  %v10047_v3 = vld [vmem:[%s10592_s16 + $0x5f0] sm:$0xff]  ;;  %v5345_v63 = vmul.f32 %v10048_v29, %v10048_v29  ;;  %v10049_v57 = vld [vmem:[%s10592_s16 + $0x5e0] sm:$0xff]  ;;  %v6033_v9 = vsel %vm16223_vm7, %v5339_v33, 0.0 }
 0x22d   : > { %9750 = vmatpush3.xpose.msk.msra.mxu1 %vm16223_vm7, %v687_v11  ;;  %v762_v11 = vld [vmem:[%s10592_s16 + $0xd68] sm:$0xff]  ;;  %v5346_v6 = vmul.f32 %v10047_v3, %v10047_v3  ;;  %v12321_v50 = vsel %vm16223_vm7, %v5347_v37, 0.0  ;;  %v775_v37 = vld [vmem:[%s10592_s16 + $0xdd0] sm:$0xff] }
 0x22e   : > { %9751 = vmatprep.subr.msk.mxu1 %vm16223_vm7, %v702_v55  ;;  %v6016_v5 = vadd.f32 %v6015_v10, %v6014_v30  ;;  %v10050_v10 = vld [vmem:[%s10592_s16 + $0x5c8] sm:$0xff] }
 0x22f   : > { %9716 = vmatpush3.xpose.msk.msra.mxu0 %vm16223_vm7, %v654_v40  ;;  %v5344_v40 = vmul.f32 %v10049_v57, %v10049_v57  ;;  %v5341_v60 = vmul.f32 %v10050_v10, %v10050_v10  ;;  %v10064_v3 = vld [vmem:[%s10592_s16 + $0x7e8] sm:$0xff] }
 0x230   : > { %9717 = vmatprep.subr.msk.mxu0 %vm16223_vm7, %v669_v54  ;;  %v6018_v36 = vadd.f32 %v6017_v12, %v6016_v5  ;;  %v12318_v12 = vpop.f32.mrf.mxu0  ;;  %v5342_v5 = vmul.f32 %v10052_v43, %v10052_v43 }
 0x231   : > { %9752 = vmatpush3.xpose.msk.msra.mxu1 %vm16223_vm7, %v686_v2  ;;  %v10051_v2 = vld [vmem:[%s10592_s16 + $0x5d8] sm:$0xff]  ;;  %v12339_v4 = vsel %vm16223_vm7, %v5344_v40, 0.0  ;;  %v6037_v44 = vsel %vm16223_vm7, %v5341_v60, 0.0  ;;  %v727_v40 = vld [vmem:[%s10592_s16 + $0xc50] sm:$0xff] }
 0x232   : > { %9753 = vmatprep.subr.msk.mxu1 %vm16223_vm7, %v701_v31  ;;  %v6020_v1 = vadd.f32 %v6019_v52, %v6018_v36  ;;  %v5343_v54 = vmul.f32 %v10051_v2, %v10051_v2  ;;  %v729_v31 = vld [vmem:[%s10592_s16 + $0xc60] sm:$0xff]  ;;  %v6039_v7 = vsel %vm16223_vm7, %v5342_v5, 0.0  ;;  %v759_v5 = vld [vmem:[%s10592_s16 + $0xd50] sm:$0xff] }
 0x233   : > { %9718 = vmatpush3.xpose.msk.msra.mxu0 %vm16223_vm7, %v653_v27  ;;  %v6035_v27 = vsel %vm16223_vm7, %v5340_v35, 0.0  ;;  %v761_v52 = vld [vmem:[%s10592_s16 + $0xd60] sm:$0xff]  ;;  %v10062_v35 = vld [vmem:[%s10592_s16 + $0x6e8] sm:$0xff] }
 0x234   : > { %9759 = vmatprep.subr.msk.mxu0 %vm16223_vm7, %v748_v20  ;;  %v6022_v19 = vadd.f32 %v6021_v34, %v6020_v1  ;;  %v12330_v20 = vsel %vm16223_vm7, %v5346_v6, 0.0  ;;  %v5411_v34 = vmul.f32 %v10055_v18, %v10055_v18  ;;  %v776_v1 = vld [vmem:[%s10592_s16 + $0xdd8] sm:$0xff]  ;;  %v5409_v6 = vmul.f32 %v10064_v3, %v10064_v3  ;;  %v10076_v3 = vld [vmem:[%s10592_s16 + $0x7d0] sm:$0xff] }
 0x235   : > { %9754 = vmatpush3.xpose.msk.msra.mxu1 %vm16223_vm7, %v685_v58  ;;  %v744_v58 = vld [vmem:[%s10592_s16 + $0xcd8] sm:$0xff] }
 0x236   : > { %9795 = vmatprep.subr.msk.mxu1 %vm16223_vm7, %v780_v28  ;;  %9720 = vmatmul.mubr.msk.f32.vlgmr.msra.gmra.mxu0 %vm16223_vm7, %v12263_v56  ;;  %v6024_v53 = vadd.f32 %v6023_v25, %v6022_v19  ;;  %v10054_v28 = vld [vmem:[%s10592_s16 + $0x678] sm:$0xff]  ;;  %v6041_v19 = vsel %vm16223_vm7, %v5343_v54, 0.0  ;;  %v10067_v54 = vld [vmem:[%s10592_s16 + $0x660] sm:$0xff] }
 0x237   : > { %9760 = vmatpush3.xpose.msk.msra.mxu0 %vm16223_vm7, %v732_v13  ;;  %9721 = vmatprep.mubr.msk.f32.mxu0 %vm16223_vm7, %v11848_v46  ;;  %v5363_v32 = vmul.f32 %v10054_v28, %v10054_v28  ;;  %v12336_v13 = vsel %vm16223_vm7, %v5345_v63, 0.0  ;;  %v10056_v25 = vld [vmem:[%s10592_s16 + $0x778] sm:$0xff]  ;;  %v10065_v63 = vld [vmem:[%s10592_s16 + $0x768] sm:$0xff] }
 0x238   : > { %9756 = vmatmul.mubr.msk.f32.vlgmr.msra.gmra.mxu1 %vm16223_vm7, %v12263_v56  ;;  %9761 = vmatprep.subr.msk.mxu0 %vm16223_vm7, %v747_v17  ;;  %v6026_v24 = vadd.f32 %v6025_v21, %v6024_v53  ;;  %v10058_v21 = vld [vmem:[%s10592_s16 + $0x670] sm:$0xff]  ;;  %v728_v53 = vld [vmem:[%s10592_s16 + $0xc58] sm:$0xff]  ;;  %v5393_v57 = vmul.f32 %v10065_v63, %v10065_v63  ;;  %v10078_v63 = vld [vmem:[%s10592_s16 + $0x608] sm:$0xff] }
 0x239   : > { %9796 = vmatpush3.xpose.msk.msra.mxu1 %vm16223_vm7, %v764_v51  ;;  %9757 = vmatprep.mubr.msk.f32.mxu1 %vm16223_vm7, %v11848_v46  ;;  %v5395_v51 = vmul.f32 %v10056_v25, %v10056_v25 }
 0x23a   : > { %9722 = vmatmul.mubr.msk.f32.gmra.mxu0 %vm16223_vm7, %v11848_v46  ;;  %9797 = vmatprep.subr.msk.mxu1 %vm16223_vm7, %v779_v47  ;;  %v6028_v15 = vadd.f32 %v6027_v41, %v6026_v24  ;;  %v5362_v47 = vmul.f32 %v10058_v21, %v10058_v21  ;;  %v10059_v41 = vld [vmem:[%s10592_s16 + $0x7f0] sm:$0xff] }
 0x23b   : > { %9762 = vmatpush3.xpose.msk.msra.mxu0 %vm16223_vm7, %v731_v16  ;;  %9791 = vmatprep.mubr.msk.f32.mxu0 %vm16223_vm7, %v12263_v56  ;;  %v12350_v16 = vpop.f32.mrf.mxu0  ;;  %v12372_v0 = vsel %vm16223_vm7, %v5395_v51, 0.0 }
 0x23c   : > { %9758 = vmatmul.mubr.msk.f32.gmra.mxu1 %vm16223_vm7, %v11848_v46  ;;  %9763 = vmatprep.subr.msk.mxu0 %vm16223_vm7, %v746_v62  ;;  %v745_v46 = vld [vmem:[%s10592_s16 + $0xce0] sm:$0xff]  ;;  %v6030_v55 = vadd.f32 %v6029_v45, %v6028_v15  ;;  %v12364_v45 = vsel %vm16223_vm7, %v5363_v32, 0.0  ;;  %v12367_v15 = vsel %vm16223_vm7, %v5411_v34, 0.0  ;;  %16255 = vst [vmem:[#allocation13_spill] sm:$0xff] %v12372_v0  ;;  %v12382_v29 = vsel %vm16223_vm7, %v5362_v47, 0.0  ;;  %v774_v32 = vld [vmem:[%s10592_s16 + $0xdc8] sm:$0xff] }
 0x23d   : > { %9798 = vmatpush3.xpose.msk.msra.mxu1 %vm16223_vm7, %v763_v38  ;;  %9827 = vmatprep.mubr.msk.f32.mxu1 %vm16223_vm7, %v12263_v56  ;;  %v5410_v38 = vmul.f32 %v10059_v41, %v10059_v41  ;;  %v10060_v62 = vld [vmem:[%s10592_s16 + $0x600] sm:$0xff]  ;;  %16254 = vst [vmem:[#allocation14_spill] sm:$0xff] %v12367_v15  ;;  %v12388_v10 = vpop.f32.mrf.mxu0  ;;  %v726_v47 = vld [vmem:[%s10592_s16 + $0xc48] sm:$0xff] }
 0x23e   : > { %9799 = vmatprep.subr.msk.mxu1 %vm16223_vm7, %v778_v48  ;;  %v6032_v30 = vadd.f32 %v6031_v42, %v6030_v55  ;;  %v12358_v24 = vmul.f32 %v10060_v62, %v10060_v62  ;;  %v760_v48 = vld [vmem:[%s10592_s16 + $0xd58] sm:$0xff]  ;;  %v5377_v42 = vmul.f32 %v10062_v35, %v10062_v35  ;;  %v10075_v35 = vld [vmem:[%s10592_s16 + $0x650] sm:$0xff] }
 0x23f   : > { %9764 = vmatpush3.xpose.msk.msra.mxu0 %vm16223_vm7, %v730_v61  ;;  %v10061_v61 = vld [vmem:[%s10592_s16 + $0x770] sm:$0xff]  ;;  %v12391_v60 = vsel %vm16223_vm7, %v5410_v38, 0.0 }
 0x240   : > { %9765 = vmatprep.subr.msk.mxu0 %vm16223_vm7, %v745_v46  ;;  %v6034_v36 = vadd.f32 %v6033_v9, %v6032_v30  ;;  %v5394_v39 = vmul.f32 %v10061_v61, %v10061_v61  ;;  %16256 = vst [vmem:[#allocation12_spill] sm:$0xff] %v12391_v60  ;;  %v10066_v9 = vld [vmem:[%s10592_s16 + $0x6e0] sm:$0xff]  ;;  %v5360_v30 = vmul.f32 %v10067_v54, %v10067_v54  ;;  %v12406_v18 = vsel %vm16223_vm7, %v5377_v42, 0.0  ;;  %v10074_v38 = vld [vmem:[%s10592_s16 + $0x6d0] sm:$0xff]  ;;  %v10079_v54 = vld [vmem:[%s10592_s16 + $0x6c8] sm:$0xff] }
 0x241   : > { %9800 = vmatpush3.xpose.msk.msra.mxu1 %vm16223_vm7, %v762_v11  ;;  %v10063_v11 = vld [vmem:[%s10592_s16 + $0x668] sm:$0xff]  ;;  %v5376_v2 = vmul.f32 %v10066_v9, %v10066_v9  ;;  %v5374_v62 = vmul.f32 %v10074_v38, %v10074_v38  ;;  %v5358_v42 = vmul.f32 %v10075_v35, %v10075_v35  ;;  %v10084_v38 = vld [vmem:[%s10592_s16 + $0x618] sm:$0xff]  ;;  %v10086_v35 = vld [vmem:[%s10592_s16 + $0x640] sm:$0xff] }
 0x242   : > { %9801 = vmatprep.subr.msk.mxu1 %vm16223_vm7, %v777_v8  ;;  %v6036_v17 = vadd.f32 %v6035_v27, %v6034_v36  ;;  %v5361_v46 = vmul.f32 %v10063_v11, %v10063_v11  ;;  %v12379_v8 = vsel %vm16223_vm7, %v5378_v22, 0.0  ;;  %v742_v27 = vld [vmem:[%s10592_s16 + $0xcc8] sm:$0xff]  ;;  %v12400_v14 = vsel %vm16223_vm7, %v5394_v39, 0.0  ;;  %v10070_v36 = vld [vmem:[%s10592_s16 + $0x6d8] sm:$0xff]  ;;  %v773_v11 = vld [vmem:[%s10592_s16 + $0xdc0] sm:$0xff] }
 0x243   : > { %9766 = vmatpush3.xpose.msk.msra.mxu0 %vm16223_vm7, %v729_v31  ;;  %v10068_v31 = vld [vmem:[%s10592_s16 + $0x7e0] sm:$0xff]  ;;  %16257 = vst [vmem:[#allocation17_spill] sm:$0xff] %v12400_v14  ;;  %v5375_v28 = vmul.f32 %v10070_v36, %v10070_v36  ;;  %v10073_v22 = vld [vmem:[%s10592_s16 + $0x758] sm:$0xff]  ;;  %v6051_v36 = vsel %vm16223_vm7, %v12358_v24, 0.0  ;;  %v10098_v60 = vld [vmem:[%s10592_s16 + $0x730] sm:$0xff] }
 0x244   : > { %9767 = vmatprep.subr.msk.mxu0 %vm16223_vm7, %v744_v58  ;;  %v6038_v33 = vadd.f32 %v6037_v44, %v6036_v17  ;;  %v5408_v43 = vmul.f32 %v10068_v31, %v10068_v31  ;;  %v12409_v34 = vsel %vm16223_vm7, %v5361_v46, 0.0  ;;  %v10071_v44 = vld [vmem:[%s10592_s16 + $0x658] sm:$0xff]  ;;  %v5391_v21 = vmul.f32 %v10073_v22, %v10073_v22  ;;  %v725_v31 = vld [vmem:[%s10592_s16 + $0xc40] sm:$0xff] }
 0x245   : > { %9802 = vmatpush3.xpose.msk.msra.mxu1 %vm16223_vm7, %v761_v52  ;;  %v10069_v52 = vld [vmem:[%s10592_s16 + $0x760] sm:$0xff]  ;;  %v5359_v25 = vmul.f32 %v10071_v44, %v10071_v44  ;;  %v10072_v17 = vld [vmem:[%s10592_s16 + $0x7d8] sm:$0xff] }
 0x246   : > { %9803 = vmatprep.subr.msk.mxu1 %vm16223_vm7, %v776_v1  ;;  %v6040_v55 = vadd.f32 %v6039_v7, %v6038_v33  ;;  %v5392_v58 = vmul.f32 %v10069_v52, %v10069_v52  ;;  %v12412_v1 = vsel %vm16223_vm7, %v5409_v6, 0.0  ;;  %v5407_v23 = vmul.f32 %v10072_v17, %v10072_v17  ;;  %v12440_v33 = vpop.f32.mrf.mxu1  ;;  %v10082_v52 = vld [vmem:[%s10592_s16 + $0x610] sm:$0xff]  ;;  %v772_v24 = vld [vmem:[%s10592_s16 + $0xdb8] sm:$0xff] }
 0x247   : > { %9768 = vmatpush3.xpose.msk.msra.mxu0 %vm16223_vm7, %v728_v53  ;;  %16258 = vst [vmem:[#allocation16_spill] sm:$0xff] %v12412_v1  ;;  %v12425_v53 = vpop.f32.mrf.mxu0  ;;  %v12431_v7 = vsel %vm16223_vm7, %v5360_v30, 0.0  ;;  %v12434_v41 = vsel %vm16223_vm7, %v5408_v43, 0.0  ;;  %v12452_v46 = vsel %vm16223_vm7, %v5359_v25, 0.0  ;;  %v5406_v6 = vmul.f32 %v10076_v3, %v10076_v3  ;;  %v724_v3 = vld [vmem:[%s10592_s16 + $0xc38] sm:$0xff] }
 0x248   : > { %9769 = vmatprep.subr.msk.mxu0 %vm16223_vm7, %v743_v49  ;;  %v6042_v26 = vadd.f32 %v6041_v19, %v6040_v55  ;;  %v12418_v19 = vsel %vm16223_vm7, %v5393_v57, 0.0  ;;  %16260 = vst [vmem:[#allocation18_spill] sm:$0xff] %v12434_v41  ;;  %v741_v49 = vld [vmem:[%s10592_s16 + $0xcc0] sm:$0xff]  ;;  %v12444_v39 = vsel %vm16223_vm7, %v5392_v58, 0.0  ;;  %v10077_v55 = vld [vmem:[%s10592_s16 + $0x750] sm:$0xff]  ;;  %v5349_v57 = vmul.f32 %v10078_v63, %v10078_v63  ;;  %v12479_v44 = vpop.f32.mrf.mxu1 }
 0x249   : > { %9804 = vmatpush3.xpose.msk.msra.mxu1 %vm16223_vm7, %v760_v48  ;;  %16259 = vst [vmem:[#allocation15_spill] sm:$0xff] %v12418_v19  ;;  %v758_v48 = vld [vmem:[%s10592_s16 + $0xd48] sm:$0xff]  ;;  %16261 = vst [vmem:[#allocation19_spill] sm:$0xff] %v12444_v39  ;;  %v12460_v9 = vsel %vm16223_vm7, %v5407_v23, 0.0  ;;  %v5373_v30 = vmul.f32 %v10079_v54, %v10079_v54  ;;  %v12469_v43 = vpop.f32.mrf.mxu0  ;;  %v5350_v58 = vmul.f32 %v10082_v52, %v10082_v52  ;;  %v12486_v17 = vsel %vm16223_vm7, %v5358_v42, 0.0  ;;  %v10087_v63 = vld [vmem:[%s10592_s16 + $0x620] sm:$0xff] }
 0x24a   : > { %9805 = vmatprep.subr.msk.mxu1 %vm16223_vm7, %v775_v37  ;;  %v6044_v51 = vadd.f32 %v12339_v4, %v6042_v26  ;;  %v12428_v4 = vsel %vm16223_vm7, %v5376_v2, 0.0  ;;  %v12447_v37 = vsel %vm16223_vm7, %v5375_v28, 0.0  ;;  %16262 = vst [vmem:[#allocation20_spill] sm:$0xff] %v12460_v9  ;;  %v12463_v2 = vsel %vm16223_vm7, %v5391_v21, 0.0  ;;  %v757_v28 = vld [vmem:[%s10592_s16 + $0xd40] sm:$0xff]  ;;  %v10083_v23 = vld [vmem:[%s10592_s16 + $0x748] sm:$0xff] }
 0x24b   : > { %9770 = vmatpush3.xpose.msk.msra.mxu0 %vm16223_vm7, %v727_v40  ;;  %16263 = vst [vmem:[#allocation21_spill] sm:$0xff] %v12463_v2  ;;  %v5389_v22 = vmul.f32 %v10083_v23, %v10083_v23  ;;  %v12491_v21 = vsel %vm16223_vm7, %v5406_v6, 0.0  ;;  %v5356_v42 = vmul.f32 %v10086_v35, %v10086_v35  ;;  %v12507_v6 = vpop.f32.mrf.mxu0  ;;  %v756_v54 = vld [vmem:[%s10592_s16 + $0xd38] sm:$0xff]  ;;  %v5386_v1 = vmul.f32 %v10098_v60, %v10098_v60  ;;  %v722_v60 = vld [vmem:[%s10592_s16 + $0xc28] sm:$0xff] }
 0x24c   : > { %9771 = vmatprep.subr.msk.mxu0 %vm16223_vm7, %v742_v27  ;;  %v6046_v61 = vadd.f32 %v12336_v13, %v6044_v51  ;;  %v5390_v13 = vmul.f32 %v10077_v55, %v10077_v55  ;;  %v10081_v27 = vld [vmem:[%s10592_s16 + $0x7c8] sm:$0xff]  ;;  %v12483_v51 = vsel %vm16223_vm7, %v5374_v62, 0.0  ;;  %16264 = vst [vmem:[#allocation22_spill] sm:$0xff] %v12491_v21  ;;  %v12500_v62 = vsel %vm16223_vm7, %v5373_v30, 0.0  ;;  %v739_v30 = vld [vmem:[%s10592_s16 + $0xcb0] sm:$0xff]  ;;  %v10093_v35 = vld [vmem:[%s10592_s16 + $0x7b8] sm:$0xff] }
 0x24d   : > { %9806 = vmatpush3.xpose.msk.msra.mxu1 %vm16223_vm7, %v759_v5  ;;  %v10080_v5 = vld [vmem:[%s10592_s16 + $0x648] sm:$0xff]  ;;  %v5405_v26 = vmul.f32 %v10081_v27, %v10081_v27 }
 0x24e   : > { %9807 = vmatprep.subr.msk.mxu1 %vm16223_vm7, %v774_v32  ;;  %v6048_v40 = vadd.f32 %v12330_v20, %v6046_v61  ;;  %v5357_v20 = vmul.f32 %v10080_v5, %v10080_v5  ;;  %v740_v32 = vld [vmem:[%s10592_s16 + $0xcb8] sm:$0xff]  ;;  %v12523_v5 = vsel %vm16223_vm7, %v5389_v22, 0.0  ;;  %v10114_v2 = vld [vmem:[%s10592_s16 + $0x708] sm:$0xff] }
 0x24f   : > { %9772 = vmatpush3.xpose.msk.msra.mxu0 %vm16223_vm7, %v726_v47  ;;  %v12494_v47 = vsel %vm16223_vm7, %v5390_v13, 0.0  ;;  %v12513_v13 = vsel %vm16223_vm7, %v5405_v26, 0.0  ;;  %16267 = vst [vmem:[#allocation25_spill] sm:$0xff] %v12523_v5  ;;  %v10089_v26 = vld [vmem:[%s10592_s16 + $0x740] sm:$0xff] }
 0x250   : > { %9773 = vmatprep.subr.msk.mxu0 %vm16223_vm7, %v741_v49  ;;  %v6050_v25 = vadd.f32 %v12321_v50, %v6048_v40  ;;  %16265 = vst [vmem:[#allocation23_spill] sm:$0xff] %v12494_v47  ;;  %v6053_v50 = vsel %vm16223_vm7, %v5349_v57, 0.0  ;;  %v10085_v49 = vld [vmem:[%s10592_s16 + $0x6c0] sm:$0xff]  ;;  %v12510_v55 = vsel %vm16223_vm7, %v5357_v20, 0.0  ;;  %16266 = vst [vmem:[#allocation24_spill] sm:$0xff] %v12513_v13  ;;  %v5352_v57 = vmul.f32 %v10087_v63, %v10087_v63 }
 0x251   : > { %9808 = vmatpush3.xpose.msk.msra.mxu1 %vm16223_vm7, %v758_v48  ;;  %v5351_v48 = vmul.f32 %v10084_v38, %v10084_v38  ;;  %v5372_v61 = vmul.f32 %v10085_v49, %v10085_v49  ;;  %v6055_v40 = vsel %vm16223_vm7, %v5350_v58, 0.0  ;;  %v10088_v20 = vld [vmem:[%s10592_s16 + $0x7c0] sm:$0xff]  ;;  %v5388_v52 = vmul.f32 %v10089_v26, %v10089_v26  ;;  %v10095_v26 = vld [vmem:[%s10592_s16 + $0x6b0] sm:$0xff] }
 0x252   : > { %9809 = vmatprep.subr.msk.mxu1 %vm16223_vm7, %v773_v11  ;;  %v6052_v11 = vadd.f32 %v6051_v36, %v6050_v25  ;;  %v5404_v27 = vmul.f32 %v10088_v20, %v10088_v20  ;;  %v10091_v25 = vld [vmem:[%s10592_s16 + $0x638] sm:$0xff]  ;;  %v723_v20 = vld [vmem:[%s10592_s16 + $0xc30] sm:$0xff] }
 0x253   : > { %9774 = vmatpush3.xpose.msk.msra.mxu0 %vm16223_vm7, %v725_v31  ;;  %v12520_v31 = vpop.f32.mrf.mxu1  ;;  %v5355_v23 = vmul.f32 %v10091_v25, %v10091_v25  ;;  %v6057_v22 = vsel %vm16223_vm7, %v5351_v48, 0.0  ;;  %v12534_v49 = vsel %vm16223_vm7, %v5372_v61, 0.0  ;;  %v12543_v48 = vpop.f32.mrf.mxu0 }
 0x254   : > { %9775 = vmatprep.subr.msk.mxu0 %vm16223_vm7, %v740_v32  ;;  %v6054_v36 = vadd.f32 %v6053_v50, %v6052_v11  ;;  %v10090_v32 = vld [vmem:[%s10592_s16 + $0x6b8] sm:$0xff]  ;;  %v12537_v50 = vsel %vm16223_vm7, %v5356_v42, 0.0  ;;  %v5403_v11 = vmul.f32 %v10093_v35, %v10093_v35  ;;  %v10096_v42 = vld [vmem:[%s10592_s16 + $0x630] sm:$0xff]  ;;  %v12558_v35 = vsel %vm16223_vm7, %v5388_v52, 0.0  ;;  %v10099_v52 = vld [vmem:[%s10592_s16 + $0x6a8] sm:$0xff] }
 0x255   : > { %9810 = vmatpush3.xpose.msk.msra.mxu1 %vm16223_vm7, %v757_v28  ;;  %v771_v28 = vld [vmem:[%s10592_s16 + $0xdb0] sm:$0xff]  ;;  %v5371_v58 = vmul.f32 %v10090_v32, %v10090_v32  ;;  %v5370_v32 = vmul.f32 %v10095_v26, %v10095_v26  ;;  %v5354_v25 = vmul.f32 %v10096_v42, %v10096_v42  ;;  %16269 = vst [vmem:[#allocation27_spill] sm:$0xff] %v12558_v35  ;;  %v770_v42 = vld [vmem:[%s10592_s16 + $0xda8] sm:$0xff]  ;;  %v10116_v35 = vld [vmem:[%s10592_s16 + $0x700] sm:$0xff] }
 0x256   : > { %9811 = vmatprep.subr.msk.mxu1 %vm16223_vm7, %v772_v24  ;;  %v10092_v24 = vld [vmem:[%s10592_s16 + $0x628] sm:$0xff]  ;;  %v6056_v63 = vadd.f32 %v6055_v40, %v6054_v36  ;;  %v755_v40 = vld [vmem:[%s10592_s16 + $0xd30] sm:$0xff]  ;;  %v12555_v36 = vsel %vm16223_vm7, %v5404_v27, 0.0  ;;  %v12570_v27 = vsel %vm16223_vm7, %v5403_v11, 0.0 }
 0x257   : > { %v5353_v38 = vmul.f32 %v10092_v24, %v10092_v24  ;;  %9776 = vmatpush3.xpose.msk.msra.mxu0 %vm16223_vm7, %v724_v3  ;;  %v10094_v3 = vld [vmem:[%s10592_s16 + $0x738] sm:$0xff]  ;;  %v6059_v24 = vsel %vm16223_vm7, %v5352_v57, 0.0  ;;  %16268 = vst [vmem:[#allocation26_spill] sm:$0xff] %v12555_v36  ;;  %v12563_v57 = vsel %vm16223_vm7, %v5371_v58, 0.0  ;;  %16270 = vst [vmem:[#allocation28_spill] sm:$0xff] %v12570_v27  ;;  %v12581_v11 = vsel %vm16223_vm7, %v5370_v32, 0.0 }
 0x258   : > { %9777 = vmatprep.subr.msk.mxu0 %vm16223_vm7, %v739_v30  ;;  %v5387_v61 = vmul.f32 %v10094_v3, %v10094_v3  ;;  %v12552_v30 = vpop.f32.mrf.mxu1  ;;  %v10097_v3 = vld [vmem:[%s10592_s16 + $0x7b0] sm:$0xff]  ;;  %v6058_v15 = vadd.f32 %v6057_v22, %v6056_v63  ;;  %v5369_v22 = vmul.f32 %v10099_v52, %v10099_v52  ;;  %v10100_v63 = vld [vmem:[%s10592_s16 + $0x7a8] sm:$0xff]  ;;  %v10103_v32 = vld [vmem:[%s10592_s16 + $0x7a0] sm:$0xff] }
 0x259   : > { %9812 = vmatpush3.xpose.msk.msra.mxu1 %vm16223_vm7, %v756_v54  ;;  %v738_v54 = vld [vmem:[%s10592_s16 + $0xca8] sm:$0xff]  ;;  %v5402_v26 = vmul.f32 %v10097_v3, %v10097_v3  ;;  %v6061_v41 = vsel %vm16223_vm7, %v5353_v38, 0.0  ;;  %v5401_v3 = vmul.f32 %v10100_v63, %v10100_v63  ;;  %v5400_v21 = vmul.f32 %v10103_v32, %v10103_v32  ;;  %v769_v36 = vld [vmem:[%s10592_s16 + $0xda0] sm:$0xff]  ;;  %v10105_v27 = vld [vmem:[%s10592_s16 + $0x698] sm:$0xff] }
 0x25a   : > { %9813 = vmatprep.subr.msk.mxu1 %vm16223_vm7, %v771_v28  ;;  %v6065_v28 = vsel %vm16223_vm7, %v5355_v23, 0.0  ;;  %v6060_v58 = vadd.f32 %v6059_v24, %v6058_v15  ;;  %v2945_v23 = vpop.f32.mrf.mxu0  ;;  %v12578_v38 = vsel %vm16223_vm7, %v5387_v61, 0.0  ;;  %v10101_v52 = vld [vmem:[%s10592_s16 + $0x728] sm:$0xff]  ;;  %v10102_v61 = vld [vmem:[%s10592_s16 + $0x6a0] sm:$0xff]  ;;  %v5367_v0 = vmul.f32 %v10105_v27, %v10105_v27 }
 0x25b   : > { %9778 = vmatpush3.xpose.msk.msra.mxu0 %vm16223_vm7, %v723_v20  ;;  %16271 = vst [vmem:[#allocation29_spill] sm:$0xff] %v12578_v38  ;;  %v6063_v20 = vsel %vm16223_vm7, %v5354_v25, 0.0  ;;  %v5385_v15 = vmul.f32 %v10101_v52, %v10101_v52  ;;  %v754_v24 = vld [vmem:[%s10592_s16 + $0xd28] sm:$0xff]  ;;  %v12591_v63 = vsel %vm16223_vm7, %v5402_v26, 0.0  ;;  %v5368_v9 = vmul.f32 %v10102_v61, %v10102_v61  ;;  %v10104_v52 = vld [vmem:[%s10592_s16 + $0x720] sm:$0xff]  ;;  %v12602_v26 = vpop.permute.xlu0 %4022 }
 0x25c   : > { %9779 = vmatprep.subr.msk.mxu0 %vm16223_vm7, %v738_v54  ;;  %v12588_v54 = vpop.f32.mrf.mxu1  ;;  %16272 = vst [vmem:[#allocation30_spill] sm:$0xff] %v12591_v63  ;;  %v6062_v13 = vadd.f32 %v6061_v41, %v6060_v58  ;;  %v12597_v25 = vsel %vm16223_vm7, %v5386_v1, 0.0  ;;  %16273 = vst [vmem:[#allocation31_spill] sm:$0xff] %v12602_v26  ;;  %v3988_v61 = vmul.f32 2.0, %v2945_v23  ;;  %v12605_v41 = vsel %vm16223_vm7, %v5369_v22, 0.0  ;;  %v10106_v1 = vld [vmem:[%s10592_s16 + $0x798] sm:$0xff] }
 0x25d   : > { %9814 = vmatpush3.xpose.msk.msra.mxu1 %vm16223_vm7, %v755_v40  ;;  %v737_v40 = vld [vmem:[%s10592_s16 + $0xca0] sm:$0xff]  ;;  %v12608_v58 = vsel %vm16223_vm7, %v5401_v3, 0.0  ;;  %v5399_v32 = vmul.f32 %v10106_v1, %v10106_v1  ;;  %v10107_v23 = vld [vmem:[%s10592_s16 + $0x718] sm:$0xff]  ;;  %v10108_v22 = vld [vmem:[%s10592_s16 + $0x690] sm:$0xff]  ;;  %v3985_v38 = vmul.f32 2.0, %v12520_v31 }
 0x25e   : > { %9815 = vmatprep.subr.msk.mxu1 %vm16223_vm7, %v770_v42  ;;  %v5384_v42 = vmul.f32 %v10104_v52, %v10104_v52  ;;  %16274 = vst [vmem:[#allocation32_spill] sm:$0xff] %v12608_v58  ;;  %v6064_v63 = vadd.f32 %v6063_v20, %v6062_v13  ;;  %v721_v27 = vld [vmem:[%s10592_s16 + $0xc20] sm:$0xff]  ;;  %v5383_v52 = vmul.f32 %v10107_v23, %v10107_v23  ;;  %v736_v58 = vld [vmem:[%s10592_s16 + $0xc98] sm:$0xff]  ;;  %v3987_v13 = vmul.f32 2.0, %v12543_v48  ;;  %v12623_v20 = vpop.f32.mrf.mxu1 }
 0x25f   : > { %9780 = vmatpush3.xpose.msk.msra.mxu0 %vm16223_vm7, %v722_v60  ;;  %v12615_v60 = vsel %vm16223_vm7, %v5385_v15, 0.0  ;;  %v5366_v14 = vmul.f32 %v10108_v22, %v10108_v22  ;;  %v753_v3 = vld [vmem:[%s10592_s16 + $0xd20] sm:$0xff]  ;;  %v12629_v15 = vsel %vm16223_vm7, %v5400_v21, 0.0  ;;  %v768_v1 = vld [vmem:[%s10592_s16 + $0xd98] sm:$0xff]  ;;  %v3956_v23 = vmul.f32 2.0, %v12507_v6 }
 0x260   : > { %9781 = vmatprep.subr.msk.mxu0 %vm16223_vm7, %v737_v40  ;;  %16275 = vst [vmem:[#allocation33_spill] sm:$0xff] %v12629_v15  ;;  %v6066_v40 = vadd.f32 %v6065_v28, %v6064_v63  ;;  %v12637_v22 = vsel %vm16223_vm7, %v5367_v0, 0.0  ;;  %v10109_v48 = vld [vmem:[%s10592_s16 + $0x680] sm:$0xff]  ;;  %v12645_v21 = vsel %vm16223_vm7, %v5399_v32, 0.0  ;;  %v10110_v28 = vld [vmem:[%s10592_s16 + $0x790] sm:$0xff]  ;;  %v720_v0 = vld [vmem:[%s10592_s16 + $0xc18] sm:$0xff] }
 0x261   : > { %9816 = vmatpush3.xpose.msk.msra.mxu1 %vm16223_vm7, %v754_v24  ;;  %v12626_v24 = vsel %vm16223_vm7, %v5368_v9, 0.0  ;;  %v5364_v19 = vmul.f32 %v10109_v48, %v10109_v48  ;;  %v12642_v9 = vsub.f32 %v12602_v26, %v3988_v61  ;;  %16276 = vst [vmem:[#allocation34_spill] sm:$0xff] %v12645_v21  ;;  %v5398_v63 = vmul.f32 %v10110_v28, %v10110_v28  ;;  %v10111_v32 = vld [vmem:[%s10592_s16 + $0x710] sm:$0xff]  ;;  %v12663_v48 = vpop.permute.xlu0 %4017  ;;  %v10112_v28 = vld [vmem:[%s10592_s16 + $0x688] sm:$0xff]  ;;  %v12674_v21 = vpop.f32.mrf.mxu0 }
 0x262   : > { %9817 = vmatprep.subr.msk.mxu1 %vm16223_vm7, %v769_v36  ;;  %v12634_v36 = vsel %vm16223_vm7, %v5384_v42, 0.0  ;;  %v6068_v6 = vadd.f32 %v12537_v50, %v6066_v40  ;;  %v3955_v42 = vmul.f32 2.0, %v12469_v43  ;;  %v12657_v61 = vsel %vm16223_vm7, %v5366_v14, 0.0  ;;  %v752_v40 = vld [vmem:[%s10592_s16 + $0xd18] sm:$0xff]  ;;  %16277 = vst [vmem:[#allocation35_spill] sm:$0xff] %v12663_v48  ;;  %v3020_v43 = vpop.f32.mrf.mxu1  ;;  %v767_v14 = vld [vmem:[%s10592_s16 + $0xd90] sm:$0xff] }
 0x263   : > { %9782 = vmatpush3.xpose.msk.msra.mxu0 %vm16223_vm7, %v721_v27  ;;  %v12654_v27 = vsel %vm16223_vm7, %v5383_v52, 0.0  ;;  %v5382_v50 = vmul.f32 %v10111_v32, %v10111_v32  ;;  %v5365_v15 = vmul.f32 %v10112_v28, %v10112_v28  ;;  %v12672_v32 = vsub.f32 %v12663_v48, %v3956_v23 }
 0x264   : > { %9783 = vmatprep.subr.msk.mxu0 %vm16223_vm7, %v736_v58  ;;  %v12666_v58 = vsub.f32 %v12602_v26, %v3987_v13  ;;  %v6070_v52 = vadd.f32 %v12510_v55, %v6068_v6  ;;  %v5381_v13 = vmul.f32 %v10114_v2, %v10114_v2  ;;  %v12679_v47 = vsel %vm16223_vm7, %v5364_v19, 0.0  ;;  %v719_v2 = vld [vmem:[%s10592_s16 + $0xc10] sm:$0xff] }
 0x265   : > { %9818 = vmatpush3.xpose.msk.msra.mxu1 %vm16223_vm7, %v753_v3  ;;  %v735_v3 = vld [vmem:[%s10592_s16 + $0xc90] sm:$0xff]  ;;  %v4130_v55 = vsel %vm16222_vm8, %v12642_v9, inf  ;;  %v12686_v6 = vsel %vm16223_vm7, %v5398_v63, 0.0  ;;  %v12692_v19 = vsub.f32 %v12663_v48, %v3955_v42  ;;  %v3989_v28 = vmul.f32 2.0, %v3020_v43 }
 0x266   : > { %9819 = vmatprep.subr.msk.mxu1 %vm16223_vm7, %v768_v1  ;;  %v10113_v1 = vld [vmem:[%s10592_s16 + $0x788] sm:$0xff]  ;;  %v6072_v23 = vadd.f32 %v12486_v17, %v6070_v52  ;;  %16278 = vst [vmem:[#allocation36_spill] sm:$0xff] %v12686_v6  ;;  %v5380_v17 = vmul.f32 %v10116_v35, %v10116_v35  ;;  %v751_v63 = vld [vmem:[%s10592_s16 + $0xd10] sm:$0xff]  ;;  %v3022_v52 = vpop.f32.mrf.mxu1  ;;  %v12706_v43 = vsel %vm16223_vm7, %v5365_v15, 0.0  ;;  %v3984_v6 = vmul.f32 2.0, %v12425_v53  ;;  %v12711_v35 = vpop.f32.mrf.mxu0 }
 0x267   : > { %v5397_v39 = vmul.f32 %v10113_v1, %v10113_v1  ;;  %9784 = vmatpush3.xpose.msk.msra.mxu0 %vm16223_vm7, %v720_v0  ;;  %v12695_v0 = vsel %vm16223_vm7, %v5382_v50, 0.0  ;;  %v10115_v1 = vld [vmem:[%s10592_s16 + $0x780] sm:$0xff]  ;;  %v766_v50 = vld [vmem:[%s10592_s16 + $0xd88] sm:$0xff]  ;;  %v3957_v15 = vmul.f32 2.0, %v12588_v54  ;;  %v12729_v31 = vsel %vm16223_vm7, %v5381_v13, 0.0 }
 0x268   : > { %9785 = vmatprep.subr.msk.mxu0 %vm16223_vm7, %v735_v3  ;;  %v5396_v5 = vmul.f32 %v10115_v1, %v10115_v1  ;;  %v4122_v3 = vsel %vm16222_vm8, %v12666_v58, inf  ;;  %v6074_v42 = vadd.f32 %v12452_v46, %v6072_v23  ;;  %v4131_v1 = vmin.f32 %v12672_v32, %v4130_v55  ;;  %v718_v23 = vld [vmem:[%s10592_s16 + $0xc08] sm:$0xff] }
 0x269   : > { %9820 = vmatpush3.xpose.msk.msra.mxu1 %vm16223_vm7, %v752_v40  ;;  %v734_v40 = vld [vmem:[%s10592_s16 + $0xc88] sm:$0xff]  ;;  %v3986_v46 = vmul.f32 2.0, %v12552_v30  ;;  %v12726_v55 = vsub.f32 %v12602_v26, %v3989_v28  ;;  %v12735_v54 = vsel %vm16223_vm7, %v5380_v17, 0.0  ;;  %v765_v28 = vld [vmem:[%s10592_s16 + $0xd80] sm:$0xff]  ;;  %v12746_v13 = vsub.f32 %v12602_v26, %v3984_v6  ;;  %v12748_v17 = vpop.f32.mrf.mxu0 }
 0x26a   : > { %9821 = vmatprep.subr.msk.mxu1 %vm16223_vm7, %v767_v14  ;;  %v12714_v14 = vsel %vm16223_vm7, %v5397_v39, 0.0  ;;  %v6076_v53 = vadd.f32 %v12431_v7, %v6074_v42  ;;  %v4123_v39 = vmin.f32 %v12692_v19, %v4122_v3  ;;  %v12732_v30 = vsel %vm16223_vm7, %v5396_v5, 0.0  ;;  %v750_v7 = vld [vmem:[%s10592_s16 + $0xd08] sm:$0xff] }
 0x26b   : > { %16279 = vst [vmem:[#allocation37_spill] sm:$0xff] %v12714_v14  ;;  %9786 = vmatpush3.xpose.msk.msra.mxu0 %vm16223_vm7, %v719_v2  ;;  %v3990_v2 = vmul.f32 2.0, %v3022_v52  ;;  %16280 = vst [vmem:[#allocation38_spill] sm:$0xff] %v12732_v30  ;;  %v12743_v52 = vmul.f32 2.0, %v12350_v16  ;;  %v4132_v5 = vrot.slane %v4131_v1, 4  ;;  %v12752_v42 = vsub.f32 %v12602_v26, %v3985_v38  ;;  %v10129_v30 = vld [vmem:[%s10592_s16 + $0x9e8] sm:$0xff] }
 0x26c   : > { %9787 = vmatprep.subr.msk.mxu0 %vm16223_vm7, %v734_v40  ;;  %v6078_v3 = vadd.f32 %v12409_v34, %v6076_v53  ;;  %16282 = vst [vmem:[#allocation40_spill] sm:$0xff] %v12746_v13  ;;  %v12758_v34 = vsub.f32 %v12663_v48, %v3957_v15  ;;  %v3958_v16 = vmul.f32 2.0, %v12623_v20  ;;  %v717_v53 = vld [vmem:[%s10592_s16 + $0xc00] sm:$0xff]  ;;  %v4138_v38 = vsel %vm16222_vm8, %v12726_v55, inf  ;;  %v812_v40 = vld [vmem:[%s10592_s16 + $0xef8] sm:$0xff] }
 0x26d   : > { %9822 = vmatpush3.xpose.msk.msra.mxu1 %vm16223_vm7, %v751_v63  ;;  %v733_v63 = vld [vmem:[%s10592_s16 + $0xc80] sm:$0xff]  ;;  %16281 = vst [vmem:[#allocation39_spill] sm:$0xff] %v12743_v52  ;;  %16283 = vst [vmem:[#allocation41_spill] sm:$0xff] %v12752_v42  ;;  %v12774_v20 = vmul.f32 2.0, %v12318_v12  ;;  %v844_v52 = vld [vmem:[%s10592_s16 + $0xff8] sm:$0xff]  ;;  %v12792_v12 = vsel %vm16222_vm8, %v12746_v13, inf }
 0x26e   : > { %9823 = vmatprep.subr.msk.mxu1 %vm16223_vm7, %v766_v50  ;;  %v12755_v50 = vsub.f32 %v12602_v26, %v3986_v46  ;;  %v6080_v6 = vadd.f32 %v12382_v29, %v6078_v3  ;;  %v12768_v46 = vsub.f32 %v12602_v26, %v3990_v2  ;;  %v749_v15 = vld [vmem:[%s10592_s16 + $0xd00] sm:$0xff]  ;;  %v12777_v29 = vmul.f32 2.0, %v12388_v10  ;;  %16290 = vst [vmem:[#allocation47_spill] sm:$0xff] %v12792_v12  ;;  %v10126_v13 = vld [vmem:[%s10592_s16 + $0x970] sm:$0xff] }
 0x26f   : > { %9788 = vmatpush3.xpose.msk.msra.mxu0 %vm16223_vm7, %v718_v23  ;;  %v4124_v23 = vrot.slane %v4123_v39, 4  ;;  %16285 = vst [vmem:[#allocation43_spill] sm:$0xff] %v12774_v20  ;;  %v12794_v10 = vmin.f32 %v4131_v1, %v4132_v5  ;;  %v3099_v20 = vpop.f32.mrf.mxu0  ;;  %v796_v5 = vld [vmem:[%s10592_s16 + $0xe78] sm:$0xff]  ;;  %v5458_v12 = vmul.f32 %v10126_v13, %v10126_v13  ;;  %v842_v13 = vld [vmem:[%s10592_s16 + $0xfe8] sm:$0xff] }
 0x270   : > { %16284 = vst [vmem:[#allocation42_spill] sm:$0xff] %v12755_v50  ;;  %9789 = vmatprep.subr.msk.mxu0 %vm16223_vm7, %v733_v63  ;;  %16286 = vst [vmem:[#allocation44_spill] sm:$0xff] %v12777_v29  ;;  %v16288_v63 = vlaneseq  ;;  %v6082_v2 = vadd.f32 %v12364_v45, %v6080_v6  ;;  %v12802_v45 = vsub.f32 %v12663_v48, %v3958_v16  ;;  %v3959_v6 = vmul.f32 2.0, %v12674_v21  ;;  %v10117_v21 = vld [vmem:[%s10592_s16 + $0x8f8] sm:$0xff] }
 0x271   : > { %9824 = vmatpush3.xpose.msk.msra.mxu1 %vm16223_vm7, %v750_v7  ;;  %v12780_v7 = vmul.f32 2.0, %v12479_v44  ;;  %v12799_v44 = vsel %vm16222_vm8, %v12752_v42, inf  ;;  %v12816_v16 = vmin.f32 %v4123_v39, %v4124_v23  ;;  %v5443_v42 = vmul.f32 %v10117_v21, %v10117_v21  ;;  %v10118_v23 = vld [vmem:[%s10592_s16 + $0x878] sm:$0xff] }
 0x272   : > { %9825 = vmatprep.subr.msk.mxu1 %vm16223_vm7, %v765_v28  ;;  %v12783_v3 = vshrl.u32 %v16288_v63, 7  ;;  %v12788_v28 = vmul.f32 2.0, %v12440_v33  ;;  %16291 = vst [vmem:[#allocation48_spill] sm:$0xff] %v12799_v44  ;;  %v12805_v33 = vmin.f32 %v12758_v34, %v4138_v38  ;;  %v6084_v1 = vadd.f32 %v12679_v47, %v6082_v2  ;;  %v828_v47 = vld [vmem:[%s10592_s16 + $0xf78] sm:$0xff] }
 0x273   : > { %16287 = vst [vmem:[#allocation45_spill] sm:$0xff] %v12780_v7  ;;  %9790 = vmatpush3.xpose.msk.msra.mxu0 %vm16223_vm7, %v717_v53  ;;  %v12814_v53 = vsel %vm16222_vm8, %v12755_v50, inf  ;;  %v4146_v38 = vsel %vm16222_vm8, %v12768_v46, inf  ;;  %v12829_v2 = vmul.f32 2.0, %v3099_v20  ;;  %v5427_v50 = vmul.f32 %v10118_v23, %v10118_v23  ;;  %v10120_v7 = vld [vmem:[%s10592_s16 + $0x9f8] sm:$0xff] }
 0x274   : > { %16289 = vst [vmem:[#allocation46_spill] sm:$0xff] %v12788_v28  ;;  %9831 = vmatprep.subr.msk.mxu0 %vm16223_vm7, %v812_v40  ;;  %16292 = vst [vmem:[#allocation49_spill] sm:$0xff] %v12814_v53  ;;  %v12824_v40 = vadd.s32 8, %v12783_v3  ;;  %v6086_v39 = vadd.f32 %v12706_v43, %v6084_v1  ;;  %v10119_v53 = vld [vmem:[%s10592_s16 + $0x800] sm:$0xff]  ;;  %v843_v43 = vld [vmem:[%s10592_s16 + $0xff0] sm:$0xff]  ;;  %v12847_v1 = vmin.f32 %v12802_v45, %v4146_v38  ;;  %v12866_v38 = vsel %vm16223_vm7, %v5443_v42, 0.0 }
 0x275   : > { %9826 = vmatpush3.xpose.msk.msra.mxu1 %vm16223_vm7, %v749_v15  ;;  %v12827_v15 = vmul.f32 2.0, %v12711_v35  ;;  %v12834_v21 = vmul.f32 %v10119_v53, %v10119_v53  ;;  %v5475_v35 = vmul.f32 %v10120_v7, %v10120_v7  ;;  %v12850_v53 = vsub.f32 %v12663_v48, %v3959_v6  ;;  %v10121_v7 = vld [vmem:[%s10592_s16 + $0x978] sm:$0xff]  ;;  %v12858_v20 = vld [vmem:[%s16165_s1 + $0x8] sm:$0x3]  ;;  %v795_v6 = vld [vmem:[%s10592_s16 + $0xe70] sm:$0xff]  ;;  %16293 = vst [vmem:[#allocation50_spill] sm:$0xff] %v12866_v38 }
 0x276   : > { %9867 = vmatprep.subr.msk.mxu1 %vm16223_vm7, %v844_v52  ;;  %9792 = vmatmul.mubr.msk.f32.vlgmr.msra.gmra.mxu0 %vm16223_vm7, %v12263_v56  ;;  %v811_v52 = vld [vmem:[%s10592_s16 + $0xef0] sm:$0xff]  ;;  %v6088_v23 = vadd.f32 %v12657_v61, %v6086_v39  ;;  %v5459_v44 = vmul.f32 %v10121_v7, %v10121_v7  ;;  %v810_v61 = vld [vmem:[%s10592_s16 + $0xee8] sm:$0xff]  ;;  %v12878_v38 = vsel %vm16223_vm7, %v5427_v50, 0.0 }
 0x277   : > { %9832 = vmatpush3.xpose.msk.msra.mxu0 %vm16223_vm7, %v796_v5  ;;  %v10122_v5 = vld [vmem:[%s10592_s16 + $0x8f0] sm:$0xff]  ;;  %9793 = vmatprep.mubr.msk.f32.mxu0 %vm16223_vm7, %v12858_v20  ;;  %16294 = vst [vmem:[#allocation51_spill] sm:$0xff] %v12878_v38  ;;  %v10131_v38 = vld [vmem:[%s10592_s16 + $0x8e0] sm:$0xff] }
 0x278   : > { %9828 = vmatmul.mubr.msk.f32.vlgmr.msra.gmra.mxu1 %vm16223_vm7, %v12263_v56  ;;  %v5442_v28 = vmul.f32 %v10122_v5, %v10122_v5  ;;  %v10124_v39 = vld [vmem:[%s10592_s16 + $0x870] sm:$0xff]  ;;  %9833 = vmatprep.subr.msk.mxu0 %vm16223_vm7, %v811_v52  ;;  %v6090_v42 = vadd.f32 %v12637_v22, %v6088_v23  ;;  %v12887_v52 = vsel %vm16223_vm7, %v5475_v35, 0.0  ;;  %v5473_v22 = vmul.f32 %v10129_v30, %v10129_v30  ;;  %v10130_v23 = vld [vmem:[%s10592_s16 + $0x968] sm:$0xff]  ;;  %v10132_v30 = vld [vmem:[%s10592_s16 + $0x860] sm:$0xff] }
 0x279   : > { %9868 = vmatpush3.xpose.msk.msra.mxu1 %vm16223_vm7, %v828_v47  ;;  %v5426_v7 = vmul.f32 %v10124_v39, %v10124_v39  ;;  %v10125_v5 = vld [vmem:[%s10592_s16 + $0x9f0] sm:$0xff]  ;;  %9829 = vmatprep.mubr.msk.f32.mxu1 %vm16223_vm7, %v12858_v20  ;;  %v10127_v39 = vld [vmem:[%s10592_s16 + $0x8e8] sm:$0xff]  ;;  %16295 = vst [vmem:[#allocation52_spill] sm:$0xff] %v12887_v52  ;;  %v5457_v50 = vmul.f32 %v10130_v23, %v10130_v23  ;;  %v12897_v35 = vsel %vm16223_vm7, %v5459_v44, 0.0  ;;  %v12913_v44 = vsel %vm16223_vm7, %v5458_v12, 0.0  ;;  %v10134_v12 = vld [vmem:[%s10592_s16 + $0x960] sm:$0xff] }
 0x27a   : > { %v5474_v63 = vmul.f32 %v10125_v5, %v10125_v5  ;;  %v827_v47 = vld [vmem:[%s10592_s16 + $0xf70] sm:$0xff]  ;;  %v5441_v29 = vmul.f32 %v10127_v39, %v10127_v39  ;;  %v10128_v5 = vld [vmem:[%s10592_s16 + $0x868] sm:$0xff]  ;;  %9794 = vmatmul.mubr.msk.f32.gmra.mxu0 %vm16223_vm7, %v12858_v20  ;;  %9869 = vmatprep.subr.msk.mxu1 %vm16223_vm7, %v843_v43  ;;  %v5440_v39 = vmul.f32 %v10131_v38, %v10131_v38 }
 0x27b   : > { %v5425_v14 = vmul.f32 %v10128_v5, %v10128_v5  ;;  %9834 = vmatpush3.xpose.msk.msra.mxu0 %vm16223_vm7, %v795_v6  ;;  %v6092_v43 = vadd.f32 %v12626_v24, %v6090_v42  ;;  %16296 = vst [vmem:[#allocation53_spill] sm:$0xff] %v12897_v35  ;;  %v12900_v5 = vsel %vm16223_vm7, %v5442_v28, 0.0  ;;  %v5424_v23 = vmul.f32 %v10132_v30, %v10132_v30  ;;  %v794_v6 = vld [vmem:[%s10592_s16 + $0xe68] sm:$0xff]  ;;  %v10133_v28 = vld [vmem:[%s10592_s16 + $0x9e0] sm:$0xff] }
 0x27c   : > { %9830 = vmatmul.mubr.msk.f32.gmra.mxu1 %vm16223_vm7, %v12858_v20  ;;  %16297 = vst [vmem:[#allocation54_spill] sm:$0xff] %v12900_v5  ;;  %9835 = vmatprep.subr.msk.mxu0 %vm16223_vm7, %v810_v61  ;;  %v12907_v38 = vsel %vm16223_vm7, %v5426_v7, 0.0  ;;  %v12910_v24 = vsel %vm16223_vm7, %v5474_v63, 0.0  ;;  %16300 = vst [vmem:[#allocation57_spill] sm:$0xff] %v12913_v44  ;;  %v5472_v42 = vmul.f32 %v10133_v28, %v10133_v28  ;;  %v826_v30 = vld [vmem:[%s10592_s16 + $0xf68] sm:$0xff]  ;;  %v12923_v7 = vsel %vm16223_vm7, %v5441_v29, 0.0 }
 0x27d   : > { %9870 = vmatpush3.xpose.msk.msra.mxu1 %vm16223_vm7, %v827_v47  ;;  %16298 = vst [vmem:[#allocation55_spill] sm:$0xff] %v12907_v38  ;;  %16299 = vst [vmem:[#allocation56_spill] sm:$0xff] %v12910_v24  ;;  %v809_v47 = vld [vmem:[%s10592_s16 + $0xee0] sm:$0xff]  ;;  %9863 = vmatprep.mubr.msk.f32.mxu0 %vm16223_vm7, %v12263_v56  ;;  %v6094_v61 = vadd.f32 %v12605_v41, %v6092_v43  ;;  %v12926_v63 = vsel %vm16223_vm7, %v5425_v14, 0.0  ;;  %v5456_v52 = vmul.f32 %v10134_v12, %v10134_v12  ;;  %v10135_v14 = vld [vmem:[%s10592_s16 + $0x8d8] sm:$0xff] }
 0x27e   : > { %9871 = vmatprep.subr.msk.mxu1 %vm16223_vm7, %v842_v13  ;;  %16301 = vst [vmem:[#allocation58_spill] sm:$0xff] %v12923_v7  ;;  %16302 = vst [vmem:[#allocation59_spill] sm:$0xff] %v12926_v63  ;;  %v841_v28 = vld [vmem:[%s10592_s16 + $0xfe0] sm:$0xff]  ;;  %9899 = vmatprep.mubr.msk.f32.mxu1 %vm16223_vm7, %v12263_v56  ;;  %v12933_v13 = vsel %vm16223_vm7, %v5473_v22, 0.0  ;;  %v12936_v41 = vsel %vm16223_vm7, %v5457_v50, 0.0  ;;  %v12939_v29 = vsel %vm16223_vm7, %v5440_v39, 0.0  ;;  %v5439_v43 = vmul.f32 %v10135_v14, %v10135_v14 }
 0x27f   : > { %16303 = vst [vmem:[#allocation60_spill] sm:$0xff] %v12933_v13  ;;  %16304 = vst [vmem:[#allocation61_spill] sm:$0xff] %v12936_v41  ;;  %9836 = vmatpush3.xpose.msk.msra.mxu0 %vm16223_vm7, %v794_v6  ;;  %v6096_v12 = vadd.f32 %v12581_v11, %v6094_v61  ;;  %v12945_v56 = vsel %vm16223_vm7, %v5424_v23, 0.0  ;;  %v10136_v22 = vld [vmem:[%s10592_s16 + $0x858] sm:$0xff]  ;;  %v793_v39 = vld [vmem:[%s10592_s16 + $0xe60] sm:$0xff]  ;;  %v12953_v6 = vsel %vm16223_vm7, %v5472_v42, 0.0 }
 0x280   : > { %16305 = vst [vmem:[#allocation62_spill] sm:$0xff] %v12939_v29  ;;  %16306 = vst [vmem:[#allocation63_spill] sm:$0xff] %v12945_v56  ;;  %v5423_v24 = vmul.f32 %v10136_v22, %v10136_v22  ;;  %v10137_v50 = vld [vmem:[%s10592_s16 + $0x9d8] sm:$0xff]  ;;  %9837 = vmatprep.subr.msk.mxu0 %vm16223_vm7, %v809_v47  ;;  %v10139_v61 = vld [vmem:[%s10592_s16 + $0x8d0] sm:$0xff]  ;;  %v12963_v44 = vsel %vm16223_vm7, %v5456_v52, 0.0 }
 0x281   : > { %v5471_v13 = vmul.f32 %v10137_v50, %v10137_v50  ;;  %9872 = vmatpush3.xpose.msk.msra.mxu1 %vm16223_vm7, %v826_v30  ;;  %16307 = vst [vmem:[#allocation64_spill] sm:$0xff] %v12953_v6  ;;  %v10138_v11 = vld [vmem:[%s10592_s16 + $0x958] sm:$0xff]  ;;  %v5438_v14 = vmul.f32 %v10139_v61, %v10139_v61  ;;  %v10140_v22 = vld [vmem:[%s10592_s16 + $0x850] sm:$0xff]  ;;  %v825_v30 = vld [vmem:[%s10592_s16 + $0xf60] sm:$0xff]  ;;  %v6098_v47 = vadd.f32 %v12563_v57, %v6096_v12  ;;  %v12969_v61 = vsel %vm16223_vm7, %v5439_v43, 0.0 }
 0x282   : > { %v5455_v23 = vmul.f32 %v10138_v11, %v10138_v11  ;;  %v5422_v35 = vmul.f32 %v10140_v22, %v10140_v22  ;;  %9873 = vmatprep.subr.msk.mxu1 %vm16223_vm7, %v841_v28  ;;  %v808_v50 = vld [vmem:[%s10592_s16 + $0xed8] sm:$0xff]  ;;  %16308 = vst [vmem:[#allocation65_spill] sm:$0xff] %v12963_v44  ;;  %v10141_v42 = vld [vmem:[%s10592_s16 + $0x9d0] sm:$0xff]  ;;  %16309 = vst [vmem:[#allocation66_spill] sm:$0xff] %v12969_v61  ;;  %v12977_v12 = vsel %vm16223_vm7, %v5423_v24, 0.0 }
 0x283   : > { %v5470_v6 = vmul.f32 %v10141_v42, %v10141_v42  ;;  %v10142_v11 = vld [vmem:[%s10592_s16 + $0x950] sm:$0xff]  ;;  %v840_v5 = vld [vmem:[%s10592_s16 + $0xfd8] sm:$0xff]  ;;  %v10143_v22 = vld [vmem:[%s10592_s16 + $0x8c8] sm:$0xff]  ;;  %9838 = vmatpush3.xpose.msk.msra.mxu0 %vm16223_vm7, %v793_v39  ;;  %v6100_v52 = vadd.f32 %v12534_v49, %v6098_v47  ;;  %16310 = vst [vmem:[#allocation67_spill] sm:$0xff] %v12977_v12  ;;  %v12980_v42 = vsel %vm16223_vm7, %v5471_v13, 0.0  ;;  %v12990_v49 = vsel %vm16223_vm7, %v5438_v14, 0.0 }
 0x284   : > { %v5454_v41 = vmul.f32 %v10142_v11, %v10142_v11  ;;  %v5437_v7 = vmul.f32 %v10143_v22, %v10143_v22  ;;  %v10144_v28 = vld [vmem:[%s10592_s16 + $0x848] sm:$0xff]  ;;  %16311 = vst [vmem:[#allocation68_spill] sm:$0xff] %v12980_v42  ;;  %9839 = vmatprep.subr.msk.mxu0 %vm16223_vm7, %v808_v50  ;;  %v12987_v39 = vsel %vm16223_vm7, %v5455_v23, 0.0  ;;  %16313 = vst [vmem:[#allocation70_spill] sm:$0xff] %v12990_v49  ;;  %v12993_v24 = vsel %vm16223_vm7, %v5422_v35, 0.0  ;;  %v10147_v13 = vld [vmem:[%s10592_s16 + $0x8c0] sm:$0xff] }
 0x285   : > { %v5421_v29 = vmul.f32 %v10144_v28, %v10144_v28  ;;  %v10145_v38 = vld [vmem:[%s10592_s16 + $0x9c8] sm:$0xff]  ;;  %9874 = vmatpush3.xpose.msk.msra.mxu1 %vm16223_vm7, %v825_v30  ;;  %16312 = vst [vmem:[#allocation69_spill] sm:$0xff] %v12987_v39  ;;  %16314 = vst [vmem:[#allocation71_spill] sm:$0xff] %v12993_v24  ;;  %v5436_v47 = vmul.f32 %v10147_v13, %v10147_v13  ;;  %v824_v22 = vld [vmem:[%s10592_s16 + $0xf58] sm:$0xff]  ;;  %v6102_v50 = vadd.f32 %v12500_v62, %v6100_v52  ;;  %v16195_v24 = vmov 1.0  }
 0x286   : > { %v5469_v57 = vmul.f32 %v10145_v38, %v10145_v38  ;;  %v10146_v43 = vld [vmem:[%s10592_s16 + $0x948] sm:$0xff]  ;;  %v792_v38 = vld [vmem:[%s10592_s16 + $0xe58] sm:$0xff]  ;;  %9875 = vmatprep.subr.msk.mxu1 %vm16223_vm7, %v840_v5  ;;  %v807_v30 = vld [vmem:[%s10592_s16 + $0xed0] sm:$0xff]  ;;  %v13001_v28 = vsel %vm16223_vm7, %v5470_v6, 0.0  ;;  %v13004_v23 = vsel %vm16223_vm7, %v5454_v41, 0.0  ;;  %v13009_v13 = vsel %vm16223_vm7, %v5437_v7, 0.0 }
 0x287   : > { %v5453_v11 = vmul.f32 %v10146_v43, %v10146_v43  ;;  %16315 = vst [vmem:[#allocation72_spill] sm:$0xff] %v13001_v28  ;;  %16316 = vst [vmem:[#allocation73_spill] sm:$0xff] %v13004_v23  ;;  %v10148_v14 = vld [vmem:[%s10592_s16 + $0x840] sm:$0xff]  ;;  %v839_v43 = vld [vmem:[%s10592_s16 + $0xfd0] sm:$0xff]  ;;  %v13012_v5 = vsel %vm16223_vm7, %v5421_v29, 0.0  ;;  %9840 = vmatpush3.xpose.msk.msra.mxu0 %vm16223_vm7, %v792_v38  ;;  %v16320_v41 = vrot.slane %v12816_v16, 2  ;;  %v6104_v52 = vadd.f32 %v12483_v51, %v6102_v50 }
 0x288   : > { %v5420_v35 = vmul.f32 %v10148_v14, %v10148_v14  ;;  %16317 = vst [vmem:[#allocation74_spill] sm:$0xff] %v13009_v13  ;;  %16318 = vst [vmem:[#allocation75_spill] sm:$0xff] %v13012_v5  ;;  %v13015_v62 = vsel %vm16223_vm7, %v5469_v57, 0.0  ;;  %v10149_v7 = vld [vmem:[%s10592_s16 + $0x9c0] sm:$0xff]  ;;  %9841 = vmatprep.subr.msk.mxu0 %vm16223_vm7, %v807_v30  ;;  %v791_v57 = vld [vmem:[%s10592_s16 + $0xe50] sm:$0xff] }
 0x289   : > { %16319 = vst [vmem:[#allocation76_spill] sm:$0xff] %v13015_v62  ;;  %v4127_v6 = vmin.f32 %v12816_v16, %v16320_v41  ;;  %v13023_v14 = vsel %vm16223_vm7, %v5453_v11, 0.0  ;;  %v5468_v29 = vmul.f32 %v10149_v7, %v10149_v7  ;;  %v10150_v42 = vld [vmem:[%s10592_s16 + $0x940] sm:$0xff]  ;;  %9876 = vmatpush3.xpose.msk.msra.mxu1 %vm16223_vm7, %v824_v22  ;;  %v13031_v16 = vsel %vm16223_vm7, %v5436_v47, 0.0  ;;  %v10151_v51 = vld [vmem:[%s10592_s16 + $0x8b8] sm:$0xff]  ;;  %v823_v22 = vld [vmem:[%s10592_s16 + $0xf50] sm:$0xff] }
 0x28a   : > { %16321 = vst [vmem:[#allocation77_spill] sm:$0xff] %v13023_v14  ;;  %v5452_v28 = vmul.f32 %v10150_v42, %v10150_v42  ;;  %16322 = vst [vmem:[#allocation78_spill] sm:$0xff] %v13031_v16  ;;  %v5435_v11 = vmul.f32 %v10151_v51, %v10151_v51  ;;  %v10152_v38 = vld [vmem:[%s10592_s16 + $0x838] sm:$0xff]  ;;  %9877 = vmatprep.subr.msk.mxu1 %vm16223_vm7, %v839_v43  ;;  %v806_v7 = vld [vmem:[%s10592_s16 + $0xec8] sm:$0xff]  ;;  %v6106_v30 = vadd.f32 %v12447_v37, %v6104_v52 }
 0x28b   : > { %v5419_v50 = vmul.f32 %v10152_v38, %v10152_v38  ;;  %v10153_v41 = vld [vmem:[%s10592_s16 + $0x9b8] sm:$0xff]  ;;  %v13041_v62 = vsel %vm16223_vm7, %v5420_v35, 0.0  ;;  %v10155_v39 = vld [vmem:[%s10592_s16 + $0x8b0] sm:$0xff]  ;;  %v838_v23 = vld [vmem:[%s10592_s16 + $0xfc8] sm:$0xff]  ;;  %9842 = vmatpush3.xpose.msk.msra.mxu0 %vm16223_vm7, %v791_v57  ;;  %v4128_v37 = vrot.slane %v4127_v6, 1  ;;  %v13052_v52 = vsel %vm16223_vm7, %v5468_v29, 0.0 }
 0x28c   : > { %v5467_v42 = vmul.f32 %v10153_v41, %v10153_v41  ;;  %16323 = vst [vmem:[#allocation79_spill] sm:$0xff] %v13041_v62  ;;  %v10154_v47 = vld [vmem:[%s10592_s16 + $0x938] sm:$0xff]  ;;  %v5434_v51 = vmul.f32 %v10155_v39, %v10155_v39  ;;  %v10156_v14 = vld [vmem:[%s10592_s16 + $0x830] sm:$0xff]  ;;  %v6108_v35 = vadd.f32 %v12428_v4, %v6106_v30  ;;  %16324 = vst [vmem:[#allocation80_spill] sm:$0xff] %v13052_v52  ;;  %v13055_v39 = vsel %vm16223_vm7, %v5452_v28, 0.0 }
 0x28d   : > { %v5451_v44 = vmul.f32 %v10154_v47, %v10154_v47  ;;  %v5418_v38 = vmul.f32 %v10156_v14, %v10156_v14  ;;  %v10157_v61 = vld [vmem:[%s10592_s16 + $0x9b0] sm:$0xff]  ;;  %16325 = vst [vmem:[#allocation81_spill] sm:$0xff] %v13055_v39  ;;  %9878 = vmatpush3.xpose.msk.msra.mxu1 %vm16223_vm7, %v823_v22  ;;  %9843 = vmatprep.subr.msk.mxu0 %vm16223_vm7, %v806_v7  ;;  %v13064_v57 = vsel %vm16223_vm7, %v5435_v11, 0.0  ;;  %v13067_v4 = vsel %vm16223_vm7, %v5419_v50, 0.0  ;;  %v10159_v29 = vld [vmem:[%s10592_s16 + $0x8a8] sm:$0xff]  ;;  %v805_v7 = vld [vmem:[%s10592_s16 + $0xec0] sm:$0xff] }
 0x28e   : > { %v5466_v41 = vmul.f32 %v10157_v61, %v10157_v61  ;;  %v10158_v49 = vld [vmem:[%s10592_s16 + $0x930] sm:$0xff]  ;;  %v790_v61 = vld [vmem:[%s10592_s16 + $0xe48] sm:$0xff]  ;;  %16327 = vst [vmem:[#allocation82_spill] sm:$0xff] %v13064_v57  ;;  %v13070_v28 = vsel %vm16223_vm7, %v5467_v42, 0.0  ;;  %v5433_v30 = vmul.f32 %v10159_v29, %v10159_v29  ;;  %9879 = vmatprep.subr.msk.mxu1 %vm16223_vm7, %v838_v23  ;;  %v6110_v47 = vadd.f32 %v12406_v18, %v6108_v35  ;;  %v821_v39 = vld [vmem:[%s10592_s16 + $0xf40] sm:$0xff] }
 0x28f   : > { %v5450_v43 = vmul.f32 %v10158_v49, %v10158_v49  ;;  %v16326_v49 = vrot.slane %v12794_v10, 2  ;;  %16328 = vst [vmem:[#allocation83_spill] sm:$0xff] %v13070_v28  ;;  %v822_v22 = vld [vmem:[%s10592_s16 + $0xf48] sm:$0xff]  ;;  %v13081_v11 = vsel %vm16223_vm7, %v5434_v51, 0.0  ;;  %v13086_v29 = vsel %vm16223_vm7, %v5418_v38, 0.0  ;;  %9844 = vmatpush3.xpose.msk.msra.mxu0 %vm16223_vm7, %v790_v61  ;;  %v10163_v28 = vld [vmem:[%s10592_s16 + $0x8a0] sm:$0xff] }
 0x290   : > { %16330 = vst [vmem:[#allocation85_spill] sm:$0xff] %v13081_v11  ;;  %v10160_v50 = vld [vmem:[%s10592_s16 + $0x828] sm:$0xff]  ;;  %v13089_v23 = vsel %vm16223_vm7, %v5466_v41, 0.0  ;;  %v6112_v51 = vadd.f32 %v12379_v8, %v6110_v47  ;;  %9845 = vmatprep.subr.msk.mxu0 %vm16223_vm7, %v805_v7  ;;  %v789_v41 = vld [vmem:[%s10592_s16 + $0xe40] sm:$0xff]  ;;  %v13112_v7 = vsel %vm16223_vm7, %v5433_v30, 0.0  ;;  %v4148_v30 = vrot.slane %v12847_v1, 4 }
 0x291   : > { %v4135_v14 = vmin.f32 %v12794_v10, %v16326_v49  ;;  %v13078_v10 = vsel %vm16223_vm7, %v5451_v44, 0.0  ;;  %v5417_v42 = vmul.f32 %v10160_v50, %v10160_v50  ;;  %v837_v49 = vld [vmem:[%s10592_s16 + $0xfc0] sm:$0xff]  ;;  %16331 = vst [vmem:[#allocation86_spill] sm:$0xff] %v13089_v23  ;;  %v13092_v18 = vsel %vm16223_vm7, %v5450_v43, 0.0  ;;  %v10161_v35 = vld [vmem:[%s10592_s16 + $0x9a8] sm:$0xff]  ;;  %9880 = vmatpush3.xpose.msk.msra.mxu1 %vm16223_vm7, %v822_v22  ;;  %16334 = vst [vmem:[#allocation89_spill] sm:$0xff] %v13112_v7 }
 0x292   : > { %16329 = vst [vmem:[#allocation84_spill] sm:$0xff] %v13078_v10  ;;  %16332 = vst [vmem:[#allocation87_spill] sm:$0xff] %v13092_v18  ;;  %v13095_v44 = vmin.f32 %v4127_v6, %v4128_v37  ;;  %v5465_v50 = vmul.f32 %v10161_v35, %v10161_v35  ;;  %v10162_v38 = vld [vmem:[%s10592_s16 + $0x928] sm:$0xff]  ;;  %v5432_v6 = vmul.f32 %v10163_v28, %v10163_v28  ;;  %v10164_v37 = vld [vmem:[%s10592_s16 + $0x820] sm:$0xff]  ;;  %9881 = vmatprep.subr.msk.mxu1 %vm16223_vm7, %v837_v49 }
 0x293   : > { %v5449_v52 = vmul.f32 %v10162_v38, %v10162_v38  ;;  %v4136_v43 = vrot.slane %v4135_v14, 1  ;;  %v5416_v61 = vmul.f32 %v10164_v37, %v10164_v37  ;;  %v10165_v23 = vld [vmem:[%s10592_s16 + $0x9a0] sm:$0xff]  ;;  %v804_v38 = vld [vmem:[%s10592_s16 + $0xeb8] sm:$0xff]  ;;  %v6114_v22 = vadd.f32 %v12354_v59, %v6112_v51  ;;  %9846 = vmatpush3.xpose.msk.msra.mxu0 %vm16223_vm7, %v789_v41  ;;  %v10179_v16 = vld [vmem:[%s10592_s16 + $0x908] sm:$0xff] }
 0x294   : > { %16333 = vst [vmem:[#allocation88_spill] sm:$0xff] %v13095_v44  ;;  %v5464_v8 = vmul.f32 %v10165_v23, %v10165_v23  ;;  %v10166_v47 = vld [vmem:[%s10592_s16 + $0x920] sm:$0xff]  ;;  %v13115_v10 = vsel %vm16223_vm7, %v5417_v42, 0.0  ;;  %v836_v28 = vld [vmem:[%s10592_s16 + $0xfb8] sm:$0xff]  ;;  %v3991_v37 = vmul.f32 2.0, %v12748_v17  ;;  %vm4382_vm9 = vcmp.eq.f32.partialorder %v12666_v58, %v13095_v44  ;;  %v13127_v42 = vpop.f32.mrf.mxu1  ;;  %9847 = vmatprep.subr.msk.mxu0 %vm16223_vm7, %v804_v38  ;;  %v803_v38 = vld [vmem:[%s10592_s16 + $0xeb0] sm:$0xff] }
 0x295   : > { %v5448_v35 = vmul.f32 %v10166_v47, %v10166_v47  ;;  %v10167_v18 = vld [vmem:[%s10592_s16 + $0x898] sm:$0xff]  ;;  %v16335_v49 = vrot.slane %v12805_v33, 4  ;;  %v6116_v17 = vadd.f32 %v12735_v54, %v6114_v22  ;;  %v13134_v51 = vsel %vm16223_vm7, %v5449_v52, 0.0  ;;  %9882 = vmatpush3.xpose.msk.msra.mxu1 %vm16223_vm7, %v821_v39  ;;  %v813_v56 = vld [vmem:[%s10592_s16 + $0xf00] sm:$0xff] }
 0x296   : > { %v5431_v23 = vmul.f32 %v10167_v18, %v10167_v18  ;;  %v13131_v18 = vsel %vm16223_vm7, %v5465_v50, 0.0  ;;  %16337 = vst [vmem:[#allocation91_spill] sm:$0xff] %v13134_v51  ;;  %v13139_v41 = vmin.f32 %v4135_v14, %v4136_v43  ;;  %v13142_v47 = vsel %vm16223_vm7, %v5432_v6, 0.0  ;;  %9883 = vmatprep.subr.msk.mxu1 %vm16223_vm7, %v836_v28  ;;  %v820_v39 = vld [vmem:[%s10592_s16 + $0xf38] sm:$0xff]  ;;  %v835_v43 = vld [vmem:[%s10592_s16 + $0xfb0] sm:$0xff]  ;;  %v16383_v5 = vld [vmem:[#allocation24_spill] sm:$0xff] }
 0x297   : > { %v4141_v59 = vmin.f32 %v12805_v33, %v16335_v49  ;;  %16336 = vst [vmem:[#allocation90_spill] sm:$0xff] %v13131_v18  ;;  %v788_v33 = vld [vmem:[%s10592_s16 + $0xe38] sm:$0xff]  ;;  %16339 = vst [vmem:[#allocation93_spill] sm:$0xff] %v13142_v47  ;;  %v13145_v54 = vsel %vm16223_vm7, %v5416_v61, 0.0  ;;  %v13148_v50 = vsel %vm16223_vm7, %v5464_v8, 0.0  ;;  %v13151_v52 = vsel %vm16223_vm7, %v5448_v35, 0.0 }
 0x298   : > { %16338 = vst [vmem:[#allocation92_spill] sm:$0xff] %v13139_v41  ;;  %16340 = vst [vmem:[#allocation94_spill] sm:$0xff] %v13148_v50  ;;  %v6118_v14 = vadd.f32 %v12729_v31, %v6116_v17  ;;  %vm4350_vm10 = vcmp.eq.f32.partialorder %v12692_v19, %v13095_v44  ;;  %v4446_v6 = vsel %vm4382_vm9, %v12824_v40, 10  ;;  %v13165_v61 = vsub.f32 %v12602_v26, %v3991_v37  ;;  %v10168_v8 = vld [vmem:[%s10592_s16 + $0x818] sm:$0xff]  ;;  %v13171_v17 = vpop.f32.mrf.mxu1 }
 0x299   : > { %16341 = vst [vmem:[#allocation95_spill] sm:$0xff] %v13151_v52  ;;  %v5415_v35 = vmul.f32 %v10168_v8, %v10168_v8  ;;  %v10169_v22 = vld [vmem:[%s10592_s16 + $0x998] sm:$0xff]  ;;  %9848 = vmatpush3.xpose.msk.msra.mxu0 %vm16223_vm7, %v788_v33  ;;  %v4142_v31 = vrot.slane %v4141_v59, 2  ;;  %v4149_v49 = vmin.f32 %v12847_v1, %v4148_v30  ;;  %v13175_v37 = vsel %vm16223_vm7, %v5431_v23, 0.0  ;;  %9884 = vmatpush3.xpose.msk.msra.mxu1 %vm16223_vm7, %v820_v39  ;;  %v787_v33 = vld [vmem:[%s10592_s16 + $0xe30] sm:$0xff]  ;;  %v802_v23 = vld [vmem:[%s10592_s16 + $0xea8] sm:$0xff] }
 0x29a   : > { %v5463_v28 = vmul.f32 %v10169_v22, %v10169_v22  ;;  %v6120_v58 = vadd.f32 %v12695_v0, %v6118_v14  ;;  %16342 = vst [vmem:[#allocation96_spill] sm:$0xff] %v13175_v37  ;;  %v10170_v18 = vld [vmem:[%s10592_s16 + $0x918] sm:$0xff]  ;;  %9849 = vmatprep.subr.msk.mxu0 %vm16223_vm7, %v803_v38  ;;  %vm4383_vm11 = vcmp.eq.f32.partialorder %v12642_v9, %v13139_v41  ;;  %v10171_v1 = vld [vmem:[%s10592_s16 + $0x890] sm:$0xff]  ;;  %v10172_v22 = vld [vmem:[%s10592_s16 + $0x808] sm:$0xff]  ;;  %v4522_v39 = vsel %vm16222_vm8, %v4446_v6, 2147483647 }
 0x29b   : > { %v5447_v8 = vmul.f32 %v10170_v18, %v10170_v18  ;;  %v5430_v30 = vmul.f32 %v10171_v1, %v10171_v1  ;;  %v5413_v50 = vmul.f32 %v10172_v22, %v10172_v22  ;;  %9885 = vmatprep.subr.msk.mxu1 %vm16223_vm7, %v835_v43  ;;  %v819_v0 = vld [vmem:[%s10592_s16 + $0xf30] sm:$0xff]  ;;  %v4414_v18 = vsel %vm4350_vm10, %v12783_v3, 10  ;;  %v834_v22 = vld [vmem:[%s10592_s16 + $0xfa8] sm:$0xff]  ;;  %v16349_v11 = vld [vmem:[#allocation27_spill] sm:$0xff] }
 0x29c   : > { %v6122_v38 = vadd.f32 %v12654_v27, %v6120_v58  ;;  %v10173_v14 = vld [vmem:[%s10592_s16 + $0x810] sm:$0xff]  ;;  %v13197_v1 = vsel %vm16223_vm7, %v12834_v21, 0.0  ;;  %v4154_v43 = vsel %vm16222_vm8, %v13165_v61, inf  ;;  %vm4351_vm12 = vcmp.eq.f32.partialorder %v12672_v32, %v13139_v41  ;;  %v3174_v21 = vpop.f32.mrf.mxu1  ;;  %v786_v9 = vld [vmem:[%s10592_s16 + $0xe28] sm:$0xff]  ;;  %v13246_v32 = vpop.f32.mrf.mxu0 }
 0x29d   : > { %v5414_v51 = vmul.f32 %v10173_v14, %v10173_v14  ;;  %9850 = vmatpush3.xpose.msk.msra.mxu0 %vm16223_vm7, %v787_v33  ;;  %v4447_v27 = vsel %vm4383_vm11, %v12824_v40, 10  ;;  %v4143_v19 = vmin.f32 %v4141_v59, %v4142_v31  ;;  %v4150_v6 = vrot.slane %v4149_v49, 2  ;;  %9886 = vmatpush3.xpose.msk.msra.mxu1 %vm16223_vm7, %v819_v0 }
 0x29e   : > { %v6124_v58 = vadd.f32 %v12634_v36, %v6122_v38  ;;  %v13211_v14 = vsel %vm16223_vm7, %v5415_v35, 0.0  ;;  %v13214_v33 = vsel %vm16223_vm7, %v5463_v28, 0.0  ;;  %9851 = vmatprep.subr.msk.mxu0 %vm16223_vm7, %v802_v23  ;;  %vm4523_vm13 = vcmp.lt.s32.totalorder %v4414_v18, %v4522_v39  ;;  %9887 = vmatprep.subr.msk.mxu1 %vm16223_vm7, %v834_v22  ;;  %v818_v35 = vld [vmem:[%s10592_s16 + $0xf28] sm:$0xff]  ;;  %v801_v28 = vld [vmem:[%s10592_s16 + $0xea0] sm:$0xff]  ;;  %v13244_v44 = vpop.f32.mrf.mxu1 }
 0x29f   : > { %16343 = vst [vmem:[#allocation97_spill] sm:$0xff] %v13214_v33  ;;  %v13220_v59 = vsel %vm16223_vm7, %v5447_v8, 0.0  ;;  %v13223_v31 = vsel %vm16223_vm7, %v5430_v30, 0.0  ;;  %v13226_v36 = vsel %vm16223_vm7, %v5413_v50, 0.0  ;;  %v4155_v0 = vmin.f32 %v12850_v53, %v4154_v43  ;;  %v833_v38 = vld [vmem:[%s10592_s16 + $0xfa0] sm:$0xff] }
 0x2a0   : > { %16344 = vst [vmem:[#allocation98_spill] sm:$0xff] %v13220_v59  ;;  %16345 = vst [vmem:[#allocation99_spill] sm:$0xff] %v13223_v31  ;;  %v6126_v23 = vadd.f32 %v12615_v60, %v6124_v58  ;;  %v4415_v8 = vsel %vm4351_vm12, %v12783_v3, 10  ;;  %v4534_v30 = vsel %vm16222_vm8, %v4447_v27, 2147483647  ;;  %v3993_v50 = vmul.f32 2.0, %v3174_v21 }
 0x2a1   : > { %v10174_v33 = vld [vmem:[%s10592_s16 + $0x880] sm:$0xff]  ;;  %9852 = vmatpush3.xpose.msk.msra.mxu0 %vm16223_vm7, %v786_v9  ;;  %v13242_v43 = vsel %vm4523_vm13, %v4414_v18, %v4522_v39  ;;  %v4144_v60 = vrot.slane %v4143_v19, 1  ;;  %v4151_v58 = vmin.f32 %v4149_v49, %v4150_v6  ;;  %v13250_v21 = vsel %vm16223_vm7, %v5414_v51, 0.0  ;;  %v10176_v9 = vld [vmem:[%s10592_s16 + $0x910] sm:$0xff]  ;;  %9888 = vmatpush3.xpose.msk.msra.mxu1 %vm16223_vm7, %v818_v35  ;;  %v10177_v18 = vld [vmem:[%s10592_s16 + $0x888] sm:$0xff] }
 0x2a2   : > { %v5428_v22 = vmul.f32 %v10174_v33, %v10174_v33  ;;  %v6128_v27 = vadd.f32 %v12597_v25, %v6126_v23  ;;  %v10175_v33 = vld [vmem:[%s10592_s16 + $0x990] sm:$0xff]  ;;  %v5446_v52 = vmul.f32 %v10176_v9, %v10176_v9  ;;  %9853 = vmatprep.subr.msk.mxu0 %vm16223_vm7, %v801_v28  ;;  %v785_v49 = vld [vmem:[%s10592_s16 + $0xe20] sm:$0xff]  ;;  %v13258_v39 = vmul.f32 %v10177_v18, %v10177_v18  ;;  %v800_v51 = vld [vmem:[%s10592_s16 + $0xe98] sm:$0xff] }
 0x2a3   : > { %v5462_v41 = vmul.f32 %v10175_v33, %v10175_v33  ;;  %9889 = vmatprep.subr.msk.mxu1 %vm16223_vm7, %v833_v38  ;;  %v817_v25 = vld [vmem:[%s10592_s16 + $0xf20] sm:$0xff]  ;;  %vm4535_vm14 = vcmp.lt.s32.totalorder %v4415_v8, %v4534_v30  ;;  %v3961_v6 = vmul.f32 2.0, %v13127_v42  ;;  %v4156_v23 = vrot.slane %v4155_v0, 4  ;;  %v16346_v33 = vld [vmem:[#allocation29_spill] sm:$0xff]  ;;  %v832_v28 = vld [vmem:[%s10592_s16 + $0xf98] sm:$0xff] }
 0x2a4   : > { %v6130_v9 = vadd.f32 %v16346_v33, %v6128_v27  ;;  %v10178_v59 = vld [vmem:[%s10592_s16 + $0x988] sm:$0xff]  ;;  %v4525_v35 = vrot.slane %v13242_v43, 4  ;;  %v13271_v18 = vsub.f32 %v12602_v26, %v3993_v50  ;;  %v13274_v38 = vmul.f32 %v10179_v16, %v10179_v16  ;;  %v13282_v27 = vpop.f32.mrf.mxu0  ;;  %v13284_v33 = vpop.f32.mrf.mxu1  ;;  %v829_v31 = vld [vmem:[%s10592_s16 + $0xf80] sm:$0xff] }
 0x2a5   : > { %v13266_v13 = vmul.f32 %v10178_v59, %v10178_v59  ;;  %v13277_v57 = vsel %vm16223_vm7, %v5428_v22, 0.0  ;;  %9854 = vmatpush3.xpose.msk.msra.mxu0 %vm16223_vm7, %v785_v49  ;;  %v13280_v42 = vmin.f32 %v4143_v19, %v4144_v60  ;;  %v4152_v59 = vrot.slane %v4151_v58, 1  ;;  %9890 = vmatpush3.xpose.msk.msra.mxu1 %vm16223_vm7, %v817_v25  ;;  %v784_v19 = vld [vmem:[%s10592_s16 + $0xe18] sm:$0xff] }
 0x2a6   : > { %16347 = vst [vmem:[#allocation29_spill] sm:$0xff] %v13277_v57  ;;  %v6132_v50 = vadd.f32 %v16349_v11, %v6130_v9  ;;  %v13288_v7 = vsel %vm16223_vm7, %v5462_v41, 0.0  ;;  %9855 = vmatprep.subr.msk.mxu0 %vm16223_vm7, %v800_v51  ;;  %v13293_v16 = vsel %vm4535_vm14, %v4415_v8, %v4534_v30  ;;  %v13298_v22 = vsub.f32 %v12602_v26, %v12829_v2  ;;  %v816_v11 = vld [vmem:[%s10592_s16 + $0xf18] sm:$0xff]  ;;  %v799_v41 = vld [vmem:[%s10592_s16 + $0xe90] sm:$0xff]  ;;  %v781_v57 = vld [vmem:[%s10592_s16 + $0xe00] sm:$0xff] }
 0x2a7   : > { %16348 = vst [vmem:[#allocation100_spill] sm:$0xff] %v13280_v42  ;;  %16350 = vst [vmem:[#allocation27_spill] sm:$0xff] %v13288_v7  ;;  %v13301_v60 = vsel %vm16223_vm7, %v5446_v52, 0.0  ;;  %9891 = vmatprep.subr.msk.mxu1 %vm16223_vm7, %v832_v28  ;;  %v13307_v49 = vsub.f32 %v12663_v48, %v3961_v6  ;;  %v4157_v25 = vmin.f32 %v4155_v0, %v4156_v23  ;;  %v3962_v51 = vmul.f32 2.0, %v13171_v17  ;;  %v16352_v8 = vld [vmem:[#allocation25_spill] sm:$0xff]  ;;  %v13331_v23 = vpop.f32.mrf.mxu1  ;;  %v16356_v28 = vld [vmem:[#allocation23_spill] sm:$0xff] }
 0x2a8   : > { %16351 = vst [vmem:[#allocation101_spill] sm:$0xff] %v13301_v60  ;;  %v6134_v30 = vadd.f32 %v16352_v8, %v6132_v50  ;;  %vm13312_vm15 = vcmp.lt.s32.totalorder %v13242_v43, %v4525_v35  ;;  %v13318_v52 = vsub.f32 %v12663_v48, %v12827_v15  ;;  %v831_v9 = vld [vmem:[%s10592_s16 + $0xf90] sm:$0xff]  ;;  %v4170_v6 = vsel %vm16222_vm8, %v13271_v18, inf  ;;  %v3251_v15 = vpop.f32.mrf.mxu0 }
 0x2a9   : > { %vm4352_vm0 = vcmp.eq.f32.partialorder %v12758_v34, %v13280_v42  ;;  %vm4384_vm1 = vcmp.eq.f32.partialorder %v12726_v55, %v13280_v42  ;;  %9856 = vmatpush3.xpose.msk.msra.mxu0 %vm16223_vm7, %v784_v19  ;;  %v13329_v17 = vmin.f32 %v4151_v58, %v4152_v59  ;;  %9892 = vmatpush3.xpose.msk.msra.mxu1 %vm16223_vm7, %v816_v11  ;;  %v783_v8 = vld [vmem:[%s10592_s16 + $0xe10] sm:$0xff]  ;;  %v4162_v0 = vsel %vm16222_vm8, %v13298_v22, inf  ;;  %v16361_v55 = vld [vmem:[#allocation19_spill] sm:$0xff] }
 0x2aa   : > { %v6136_v50 = vadd.f32 %v16356_v28, %v6134_v30  ;;  %9857 = vmatprep.subr.msk.mxu0 %vm16223_vm7, %v799_v41  ;;  %v3994_v7 = vmul.f32 2.0, %v13244_v44  ;;  %v3995_v19 = vmul.f32 2.0, %v3251_v15  ;;  %9893 = vmatprep.subr.msk.mxu1 %vm16223_vm7, %v831_v9  ;;  %v4158_v58 = vrot.slane %v4157_v25, 2  ;;  %v815_v30 = vld [vmem:[%s10592_s16 + $0xf10] sm:$0xff]  ;;  %v798_v28 = vld [vmem:[%s10592_s16 + $0xe88] sm:$0xff]  ;;  %v13368_v15 = vld [vmem:[%s10597_s27] sm:$0xff] }
 0x2ab   : > { %16355 = vst [vmem:[#allocation25_spill] sm:$0xff] %v13329_v17  ;;  %v13342_v59 = vsub.f32 %v12663_v48, %v3962_v51  ;;  %v4171_v11 = vmin.f32 %v13307_v49, %v4170_v6  ;;  %v13348_v41 = vsub.s32 1, %v12783_v3  ;;  %v16358_v60 = vld [vmem:[#allocation21_spill] sm:$0xff]  ;;  %v13354_v44 = vsel %vm13312_vm15, %v13242_v43, %v4525_v35  ;;  %v3328_v35 = vpop.f32.mrf.mxu1 }
 0x2ac   : > { %v6138_v47 = vadd.f32 %v16358_v60, %v6136_v50  ;;  %v13360_v51 = vsel %vm4352_vm0, %v12783_v3, 10  ;;  %v4448_v9 = vsel %vm4384_vm1, %v12824_v40, 10  ;;  %v830_v6 = vld [vmem:[%s10592_s16 + $0xf88] sm:$0xff]  ;;  %16359 = vst [vmem:[#allocation21_spill] sm:$0xff] %v13368_v15  ;;  %vm4353_vm2 = vcmp.eq.f32.partialorder %v12802_v45, %v13329_v17 }
 0x2ad   : > { %16357 = vst [vmem:[#allocation23_spill] sm:$0xff] %v13348_v41  ;;  %9858 = vmatpush3.xpose.msk.msra.mxu0 %vm16223_vm7, %v783_v8  ;;  %v4163_v43 = vmin.f32 %v13318_v52, %v4162_v0  ;;  %v3963_v34 = vmul.f32 2.0, %v13246_v32  ;;  %v13376_v60 = vsub.s32 3, %v12783_v3  ;;  %v782_v50 = vld [vmem:[%s10592_s16 + $0xe08] sm:$0xff]  ;;  %9894 = vmatpush3.xpose.msk.msra.mxu1 %vm16223_vm7, %v815_v30  ;;  %v13383_v8 = vsub.f32 %v12602_v26, %v3994_v7  ;;  %v16362_v7 = vld [vmem:[#allocation15_spill] sm:$0xff] }
 0x2ae   : > { %v6140_v2 = vadd.f32 %v16361_v55, %v6138_v47  ;;  %9859 = vmatprep.subr.msk.mxu0 %vm16223_vm7, %v798_v28  ;;  %v13386_v0 = vsub.f32 %v12602_v26, %v3995_v19  ;;  %v3997_v42 = vmul.f32 2.0, %v3328_v35  ;;  %vm4385_vm3 = vcmp.eq.f32.partialorder %v12768_v46, %v13329_v17  ;;  %9895 = vmatprep.subr.msk.mxu1 %vm16223_vm7, %v830_v6  ;;  %v814_v47 = vld [vmem:[%s10592_s16 + $0xf08] sm:$0xff]  ;;  %v797_v55 = vld [vmem:[%s10592_s16 + $0xe80] sm:$0xff] }
 0x2af   : > { %16360 = vst [vmem:[#allocation102_spill] sm:$0xff] %v13376_v60  ;;  %v4159_v32 = vmin.f32 %v4157_v25, %v4158_v58  ;;  %v4172_v37 = vrot.slane %v4171_v11, 4  ;;  %v13395_v30 = vrot.slane %v13368_v15, %v13348_v41  ;;  %v4546_v19 = vsel %vm16222_vm8, %v4448_v9, 2147483647  ;;  %v16365_v9 = vld [vmem:[#allocation17_spill] sm:$0xff]  ;;  %v10180_v46 = vld [vmem:[%s16165_s1] sm:$0xff] }
 0x2b0   : > { %v6142_v28 = vadd.f32 %v16362_v7, %v6140_v2  ;;  %v13401_v35 = vsub.s32 0, %v12783_v3  ;;  %v13405_v25 = vrot.slane %v13368_v15, %v13376_v60  ;;  %v4164_v58 = vrot.slane %v4163_v43, 4 }
 0x2b1   : > { %9860 = vmatpush3.xpose.msk.msra.mxu0 %vm16223_vm7, %v782_v50  ;;  %v13409_v6 = vsub.f32 %v12663_v48, %v3963_v34  ;;  %v3965_v41 = vmul.f32 2.0, %v13284_v33  ;;  %v13413_v2 = vsub.s32 2, %v12783_v3  ;;  %v4178_v63 = vsel %vm16222_vm8, %v13383_v8, inf  ;;  %9896 = vmatpush3.xpose.msk.msra.mxu1 %vm16223_vm7, %v814_v47 }
 0x2b2   : > { %16363 = vst [vmem:[#allocation19_spill] sm:$0xff] %v13401_v35  ;;  %v6144_v7 = vadd.f32 %v16365_v9, %v6142_v28  ;;  %9861 = vmatprep.subr.msk.mxu0 %vm16223_vm7, %v797_v55  ;;  %v4186_v50 = vsel %vm16222_vm8, %v13386_v0, inf  ;;  %v13424_v34 = vsub.f32 %v12602_v26, %v3997_v42  ;;  %v4160_v33 = vrot.slane %v4159_v32, 1  ;;  %9897 = vmatprep.subr.msk.mxu1 %vm16223_vm7, %v829_v31  ;;  %v3253_v28 = vpop.f32.mrf.mxu0  ;;  %v16366_v9 = vld [vmem:[#allocation13_spill] sm:$0xff]  ;;  %v3330_v55 = vpop.f32.mrf.mxu1 }
 0x2b3   : > { %16364 = vst [vmem:[#allocation15_spill] sm:$0xff] %v13413_v2  ;;  %v4173_v60 = vmin.f32 %v4171_v11, %v4172_v37  ;;  %vm1013_vm4 = vcmp.eq.s32.totalorder %v12824_v40, %v13395_v30  ;;  %v13433_v47 = vrot.slane %v13368_v15, %v13401_v35  ;;  %vm1015_vm5 = vcmp.eq.s32.totalorder %v12824_v40, %v13405_v25 }
 0x2b4   : > { %v6146_v12 = vadd.f32 %v16366_v9, %v6144_v7  ;;  %v13439_v42 = vrot.slane %v13368_v15, %v13413_v2  ;;  %vm4547_vm6 = vcmp.lt.s32.totalorder %v13360_v51, %v4546_v19  ;;  %v13446_v37 = vsel %vm4353_vm2, %v12783_v3, 10  ;;  %v16368_v7 = vld [vmem:[#allocation38_spill] sm:$0xff] }
 0x2b5   : > { %v13449_v31 = vsub.f32 %v12663_v48, %v3965_v41  ;;  %9862 = vmatpush3.xpose.msk.msra.mxu0 %vm16223_vm7, %v781_v57  ;;  %v4187_v11 = vmin.f32 %v13409_v6, %v4186_v50  ;;  %v4165_v2 = vmin.f32 %v4163_v43, %v4164_v58  ;;  %9898 = vmatpush3.xpose.msk.msra.mxu1 %vm16223_vm7, %v813_v56  ;;  %v3996_v35 = vmul.f32 2.0, %v3253_v28  ;;  %v16370_v56 = vld [vmem:[#allocation37_spill] sm:$0xff] }
 0x2b6   : > { %16367 = vst [vmem:[#allocation17_spill] sm:$0xff] %v13439_v42  ;;  %v6148_v9 = vadd.f32 %v16368_v7, %v6146_v12  ;;  %v4202_v15 = vsel %vm16222_vm8, %v13424_v34, inf  ;;  %v4449_v45 = vsel %vm4385_vm3, %v12824_v40, 10  ;;  %v13461_v41 = vmin.f32 %v4159_v32, %v4160_v33  ;;  %9189 = vmatprep.subr.msk.mxu0 %vm1013_vm4, %v16195_v24  ;;  %9197 = vmatprep.subr.msk.mxu1 %vm1015_vm5, %v16195_v24  ;;  %v16371_v33 = vld [vmem:[#allocation36_spill] sm:$0xff] }
 0x2b7   : > { %v4174_v57 = vrot.slane %v4173_v60, 2  ;;  %v4179_v50 = vmin.f32 %v13342_v59, %v4178_v63  ;;  %v3998_v63 = vmul.f32 2.0, %v3330_v55  ;;  %vm1012_vm9 = vcmp.eq.s32.totalorder %v12824_v40, %v13433_v47 }
 0x2b8   : > { %16369 = vst [vmem:[#allocation13_spill] sm:$0xff] %v13461_v41  ;;  %v6150_v12 = vadd.f32 %v16370_v56, %v6148_v9  ;;  %9864 = vmatmul.mubr.msk.f32.vlgmr.msra.gmra.mxu0 %vm16223_vm7, %v10180_v46  ;;  %vm1014_vm10 = vcmp.eq.s32.totalorder %v12824_v40, %v13439_v42  ;;  %v3964_v43 = vmul.f32 2.0, %v13282_v27  ;;  %v4188_v32 = vrot.slane %v4187_v11, 4  ;;  %9900 = vmatmul.mubr.msk.f32.vlgmr.msra.gmra.mxu1 %vm16223_vm7, %v10180_v46 }
 0x2b9   : > { %v4203_v58 = vmin.f32 %v13449_v31, %v4202_v15  ;;  %9865 = vmatprep.mubr.msk.f32.mxu0 %vm16223_vm7, %v12858_v20  ;;  %vm981_vm11 = vcmp.eq.s32.totalorder %v12783_v3, %v13395_v30  ;;  %v4548_v55 = vsel %vm4547_vm6, %v13360_v51, %v4546_v19  ;;  %v4166_v7 = vrot.slane %v4165_v2, 2  ;;  %9901 = vmatprep.mubr.msk.f32.mxu1 %vm16223_vm7, %v12858_v20  ;;  %v16372_v51 = vld [vmem:[#allocation34_spill] sm:$0xff] }
 0x2ba   : > { %v6152_v28 = vadd.f32 %v16371_v33, %v6150_v12  ;;  %v13493_v27 = vsub.f32 %v12602_v26, %v3996_v35  ;;  %vm4386_vm12 = vcmp.eq.f32.partialorder %v13165_v61, %v13461_v41  ;;  %v4175_v15 = vmin.f32 %v4173_v60, %v4174_v57  ;;  %9190 = vmatpush1.xpose.msk.msra.mxu0 %vm1012_vm9, %v16195_v24  ;;  %v16373_v57 = vld [vmem:[#allocation33_spill] sm:$0xff] }
 0x2bb   : > { %v4180_v9 = vrot.slane %v4179_v50, 4  ;;  %v3966_v56 = vmul.f32 2.0, %v13331_v23  ;;  %9198 = vmatpush1.xpose.msk.msra.mxu1 %vm1014_vm10, %v16195_v24  ;;  %v4558_v35 = vsel %vm16222_vm8, %v4449_v45, 2147483647  ;;  %v13511_v12 = vsub.f32 %v12602_v26, %v3998_v63  ;;  %9191 = vmatprep.subr.msk.mxu0 %vm981_vm11, %v16195_v24 }
 0x2bc   : > { %v6154_v19 = vadd.f32 %v16372_v51, %v6152_v28  ;;  %9866 = vmatmul.mubr.msk.f32.gmra.mxu0 %vm16223_vm7, %v12858_v20  ;;  %vm980_vm13 = vcmp.eq.s32.totalorder %v12783_v3, %v13433_v47  ;;  %vm4354_vm14 = vcmp.eq.f32.partialorder %v12850_v53, %v13461_v41  ;;  %v13524_v23 = vsub.f32 %v12663_v48, %v3964_v43 }
 0x2bd   : > { %v4189_v60 = vmin.f32 %v4187_v11, %v4188_v32  ;;  %v4204_v45 = vrot.slane %v4203_v58, 4  ;;  %9902 = vmatmul.mubr.msk.f32.gmra.mxu1 %vm16223_vm7, %v12858_v20  ;;  %v4450_v30 = vsel %vm4386_vm12, %v12824_v40, 10  ;;  %v4167_v63 = vmin.f32 %v4165_v2, %v4166_v7  ;;  %v16374_v20 = vld [vmem:[#allocation32_spill] sm:$0xff] }
 0x2be   : > { %v6156_v46 = vadd.f32 %v16373_v57, %v6154_v19  ;;  %v4194_v47 = vsel %vm16222_vm8, %v13493_v27, inf  ;;  %v4549_v53 = vrot.slane %v4548_v55, 4  ;;  %vm4559_vm15 = vcmp.lt.s32.totalorder %v13446_v37, %v4558_v35  ;;  %9192 = vmatpush1.xpose.msk.msra.mxu0 %vm980_vm13, %v16195_v24 }
 0x2bf   : > { %v4181_v43 = vmin.f32 %v4179_v50, %v4180_v9  ;;  %v13537_v11 = vsub.f32 %v12663_v48, %v3966_v56  ;;  %v4418_v33 = vsel %vm4354_vm14, %v12783_v3, 10  ;;  %v4176_v28 = vrot.slane %v4175_v15, 1  ;;  %v16375_v50 = vld [vmem:[#allocation30_spill] sm:$0xff] }
 0x2c0   : > { %v6158_v32 = vadd.f32 %v16374_v20, %v6156_v46  ;;  %v4210_v61 = vsel %vm16222_vm8, %v13511_v12, inf  ;;  %v4570_v2 = vsel %vm16222_vm8, %v4450_v30, 2147483647  ;;  %v4190_v7 = vrot.slane %v4189_v60, 2 }
 0x2c1   : > { %v4195_v51 = vmin.f32 %v13524_v23, %v4194_v47  ;;  %v4205_v19 = vmin.f32 %v4203_v58, %v4204_v45  ;;  %v13549_v56 = vsel %vm16223_vm7, %v13258_v39, 0.0  ;;  %v13553_v57 = vsel %vm16223_vm7, %v13266_v13, 0.0  ;;  %v16378_v45 = vld [vmem:[#allocation28_spill] sm:$0xff] }
 0x2c2   : > { %v6160_v9 = vadd.f32 %v16375_v50, %v6158_v32  ;;  %16376 = vst [vmem:[#allocation38_spill] sm:$0xff] %v13549_v56  ;;  %16377 = vst [vmem:[#allocation37_spill] sm:$0xff] %v13553_v57  ;;  %v4168_v46 = vrot.slane %v4167_v63, 1  ;;  %v4528_v20 = vrot.slane %v13354_v44, 2  ;;  %v4560_v30 = vsel %vm4559_vm15, %v13446_v37, %v4558_v35  ;;  %v16382_v37 = vld [vmem:[#allocation26_spill] sm:$0xff] }
 0x2c3   : > { %v4182_v24 = vrot.slane %v4181_v43, 2  ;;  %v4211_v58 = vmin.f32 %v13537_v11, %v4210_v61  ;;  %v16379_v32 = vrot.slane %v13293_v16, 4  ;;  %vm4550_vm1 = vcmp.lt.s32.totalorder %v4548_v55, %v4549_v53 }
 0x2c4   : > { %v6162_v47 = vadd.f32 %v16378_v45, %v6160_v9  ;;  %vm4571_vm2 = vcmp.lt.s32.totalorder %v4418_v33, %v4570_v2  ;;  %v13568_v13 = vmin.f32 %v4175_v15, %v4176_v28  ;;  %v4191_v50 = vmin.f32 %v4189_v60, %v4190_v7 }
 0x2c5   : > { %vm13564_vm0 = vcmp.lt.s32.totalorder %v13293_v16, %v16379_v32  ;;  %v4196_v41 = vrot.slane %v4195_v51, 4  ;;  %v4206_v17 = vrot.slane %v4205_v19, 2  ;;  %v13573_v61 = vsel %vm16223_vm7, %v13274_v38, 0.0 }
 0x2c6   : > { %v6164_v35 = vadd.f32 %v16382_v37, %v6162_v47  ;;  %v4561_v9 = vrot.slane %v4560_v30, 4  ;;  %v13575_v45 = vmin.f32 %v4167_v63, %v4168_v46  ;;  %v4551_v32 = vsel %vm4550_vm1, %v4548_v55, %v4549_v53 }
 0x2c7   : > { %v4572_v57 = vsel %vm4571_vm2, %v4418_v33, %v4570_v2  ;;  %v4183_v42 = vmin.f32 %v4181_v43, %v4182_v24  ;;  %v4212_v56 = vrot.slane %v4211_v58, 4  ;;  %vm4529_vm3 = vcmp.lt.s32.totalorder %v13354_v44, %v4528_v20 }
 0x2c8   : > { %v6166_v62 = vadd.f32 %v16383_v5, %v6164_v35  ;;  %v16384_v15 = vrot.slane %v13293_v16, 4  ;;  %vm983_vm4 = vcmp.eq.s32.totalorder %v12783_v3, %v13405_v25  ;;  %vm4388_vm5 = vcmp.eq.f32.partialorder %v13271_v18, %v13568_v13  ;;  %v16386_v5 = vld [vmem:[#allocation22_spill] sm:$0xff]  ;;  %v16397_v35 = vld [vmem:[#allocation16_spill] sm:$0xff] }
 0x2c9   : > { %v4192_v38 = vrot.slane %v4191_v50, 1  ;;  %v4197_v24 = vmin.f32 %v4195_v51, %v4196_v41  ;;  %v4207_v55 = vmin.f32 %v4205_v19, %v4206_v17  ;;  %v16385_v63 = vmov 1.0   ;;  %v16389_v17 = vld [vmem:[#allocation20_spill] sm:$0xff]  ;;  %v3399_v19 = vpop.f32.mrf.mxu0 }
 0x2ca   : > { %v13584_v60 = vsel %vm13564_vm0, %v13293_v16, %v16384_v15  ;;  %9199 = vmatprep.subr.msk.mxu1 %vm983_vm4, %v16385_v63  ;;  %v6168_v53 = vadd.f32 %v16386_v5, %v6166_v62  ;;  %v4552_v43 = vrot.slane %v4551_v32, 2  ;;  %v4573_v33 = vrot.slane %v4572_v57, 4 }
 0x2cb   : > { %vm4387_vm6 = vcmp.eq.f32.partialorder %v13298_v22, %v13575_v45  ;;  %v13595_v16 = vsel %vm4529_vm3, %v13354_v44, %v4528_v20  ;;  %vm13597_vm9 = vcmp.lt.s32.totalorder %v4560_v30, %v4561_v9  ;;  %v4184_v28 = vrot.slane %v4183_v42, 1  ;;  %v10181_v20 = vld [vmem:[%s10592_s16 + $0x900] sm:$0xff] }
 0x2cc   : > { %v4213_v41 = vmin.f32 %v4211_v58, %v4212_v56  ;;  %v6170_v2 = vadd.f32 %v16389_v17, %v6168_v53  ;;  %vm4355_vm10 = vcmp.eq.f32.partialorder %v13318_v52, %v13575_v45  ;;  %vm4356_vm11 = vcmp.eq.f32.partialorder %v13307_v49, %v13568_v13  ;;  %v16391_v56 = vld [vmem:[#allocation18_spill] sm:$0xff] }
 0x2cd   : > { %v4452_v62 = vsel %vm4388_vm5, %v12824_v40, 10  ;;  %v4451_v22 = vsel %vm4387_vm6, %v12824_v40, 10  ;;  %v13611_v44 = vmin.f32 %v4191_v50, %v4192_v38  ;;  %v4198_v7 = vrot.slane %v4197_v24, 2  ;;  %v10182_v38 = vld [vmem:[%s10592_s16 + $0x980] sm:$0xff] }
 0x2ce   : > { %v4208_v51 = vrot.slane %v4207_v55, 1  ;;  %v6172_v46 = vadd.f32 %v16391_v56, %v6170_v2  ;;  %v5444_v58 = vmul.f32 %v10181_v20, %v10181_v20  ;;  %vm13615_vm12 = vcmp.lt.s32.totalorder %v4551_v32, %v4552_v43  ;;  %v13634_v2 = vpop.f32.mrf.mxu1 }
 0x2cf   : > { %16390 = vst [vmem:[#allocation36_spill] sm:$0xff] %v13611_v44  ;;  %vm13619_vm13 = vcmp.lt.s32.totalorder %v4572_v57, %v4573_v33  ;;  %v4420_v18 = vsel %vm4356_vm11, %v12783_v3, 10  ;;  %v4594_v39 = vsel %vm16222_vm8, %v4452_v62, 2147483647  ;;  %v13625_v50 = vmin.f32 %v4183_v42, %v4184_v28  ;;  %v3401_v62 = vpop.f32.mrf.mxu0 }
 0x2d0   : > { %v4214_v37 = vrot.slane %v4213_v41, 2  ;;  %v6174_v15 = vadd.f32 %v16397_v35, %v6172_v46  ;;  %v5460_v5 = vmul.f32 %v10182_v38, %v10182_v38  ;;  %v4419_v53 = vsel %vm4355_vm10, %v12783_v3, 10  ;;  %v16399_v46 = vld [vmem:[#allocation12_spill] sm:$0xff] }
 0x2d1   : > { %16396 = vst [vmem:[#allocation34_spill] sm:$0xff] %v13625_v50  ;;  %v4582_v17 = vsel %vm16222_vm8, %v4451_v22, 2147483647  ;;  %v13638_v56 = vsel %vm13597_vm9, %v4560_v30, %v4561_v9  ;;  %vm4390_vm14 = vcmp.eq.f32.partialorder %v13386_v0, %v13611_v44  ;;  %v4199_v42 = vmin.f32 %v4197_v24, %v4198_v7  ;;  %v16400_v9 = vld [vmem:[#allocation14_spill] sm:$0xff] }
 0x2d2   : > { %v13642_v28 = vmin.f32 %v4207_v55, %v4208_v51  ;;  %v6176_v20 = vadd.f32 %v16399_v46, %v6174_v15  ;;  %v13647_v52 = vsel %vm13615_vm12, %v4551_v32, %v4552_v43  ;;  %v4575_v22 = vsel %vm13619_vm13, %v4572_v57, %v4573_v33  ;;  %v3478_v57 = vpop.f32.mrf.mxu1 }
 0x2d3   : > { %vm4595_vm15 = vcmp.lt.s32.totalorder %v4420_v18, %v4594_v39  ;;  %v13652_v30 = vsel %vm16223_vm7, %v5444_v58, 0.0  ;;  %vm4583_vm0 = vcmp.lt.s32.totalorder %v4419_v53, %v4582_v17  ;;  %vm4389_vm1 = vcmp.eq.f32.partialorder %v13383_v8, %v13625_v50  ;;  %v3405_v8 = vpop.f32.mrf.mxu0 }
 0x2d4   : > { %16398 = vst [vmem:[#allocation33_spill] sm:$0xff] %v13642_v28  ;;  %v4215_v0 = vmin.f32 %v4213_v41, %v4214_v37  ;;  %v6178_v24 = vadd.f32 %v16400_v9, %v6176_v20  ;;  %v13658_v55 = vsel %vm16223_vm7, %v5460_v5, 0.0  ;;  %vm4358_vm2 = vcmp.eq.f32.partialorder %v13409_v6, %v13611_v44 }
 0x2d5   : > { %v4454_v32 = vsel %vm4390_vm14, %v12824_v40, 10  ;;  %v4576_v43 = vrot.slane %v4575_v22, 2  ;;  %v13663_v33 = vsel %vm4595_vm15, %v4420_v18, %v4594_v39  ;;  %v4200_v25 = vrot.slane %v4199_v42, 1  ;;  %v3482_v39 = vpop.f32.mrf.mxu1  ;;  %v3407_v15 = vpop.f32.mrf.mxu0 }
 0x2d6   : > { %vm4392_vm3 = vcmp.eq.f32.partialorder %v13424_v34, %v13642_v28  ;;  %v6180_v41 = vadd.f32 %v13197_v1, %v6178_v24  ;;  %v13668_v7 = vsel %vm4583_vm0, %v4419_v53, %v4582_v17  ;;  %vm4357_vm4 = vcmp.eq.f32.partialorder %v13342_v59, %v13625_v50 }
 0x2d7   : > { %v4453_v6 = vsel %vm4389_vm1, %v12824_v40, 10  ;;  %v4422_v51 = vsel %vm4358_vm2, %v12783_v3, 10  ;;  %v4618_v58 = vsel %vm16222_vm8, %v4454_v32, 2147483647  ;;  %v4216_v47 = vrot.slane %v4215_v0, 1  ;;  %v3484_v9 = vpop.f32.mrf.mxu1 }
 0x2d8   : > { %v3999_v49 = vmul.f32 2.0, %v3405_v8  ;;  %v6182_v18 = vadd.f32 %v13226_v36, %v6180_v41  ;;  %v4597_v34 = vrot.slane %v13663_v33, 4  ;;  %vm4360_vm5 = vcmp.eq.f32.partialorder %v13449_v31, %v13642_v28 }
 0x2d9   : > { %v4456_v1 = vsel %vm4392_vm3, %v12824_v40, 10  ;;  %vm4577_vm6 = vcmp.lt.s32.totalorder %v4575_v22, %v4576_v43  ;;  %v16200_v59 = vrot.slane %v13668_v7, 4  ;;  %v13682_v37 = vsel %vm4357_vm4, %v12783_v3, 10 }
 0x2da   : > { %v13684_v35 = vmin.f32 %v4199_v42, %v4200_v25  ;;  %v6184_v38 = vadd.f32 %v13250_v21, %v6182_v18  ;;  %v4606_v36 = vsel %vm16222_vm8, %v4453_v6, 2147483647  ;;  %vm4619_vm9 = vcmp.lt.s32.totalorder %v4422_v51, %v4618_v58 }
 0x2db   : > { %v3967_v5 = vmul.f32 2.0, %v3399_v19  ;;  %v4424_v31 = vsel %vm4360_vm5, %v12783_v3, 10  ;;  %v4642_v53 = vsel %vm16222_vm8, %v4456_v1, 2147483647  ;;  %v13690_v17 = vmin.f32 %v4215_v0, %v4216_v47 }
 0x2dc   : > { %16401 = vst [vmem:[#allocation32_spill] sm:$0xff] %v13684_v35  ;;  %v13693_v46 = vsub.f32 %v12602_v26, %v3999_v49  ;;  %v6186_v20 = vadd.f32 %v13211_v14, %v6184_v38  ;;  %v13696_v42 = vsel %vm4577_vm6, %v4575_v22, %v4576_v43  ;;  %vm13701_vm10 = vcmp.lt.s32.totalorder %v13663_v33, %v4597_v34 }
 0x2dd   : > { %16402 = vst [vmem:[#allocation30_spill] sm:$0xff] %v13690_v17  ;;  %v4000_v19 = vmul.f32 2.0, %v3407_v15  ;;  %vm4607_vm11 = vcmp.lt.s32.totalorder %v13682_v37, %v4606_v36  ;;  %vm4359_vm12 = vcmp.eq.f32.partialorder %v13524_v23, %v13684_v35  ;;  %vm4391_vm13 = vcmp.eq.f32.partialorder %v13493_v27, %v13684_v35 }
 0x2de   : > { %v4001_v14 = vmul.f32 2.0, %v3482_v39  ;;  %v6188_v22 = vadd.f32 %v13145_v54, %v6186_v20  ;;  %v4620_v0 = vsel %vm4619_vm9, %v4422_v51, %v4618_v58  ;;  %vm4643_vm14 = vcmp.lt.s32.totalorder %v4424_v31, %v4642_v53 }
 0x2df   : > { %v13713_v24 = vsub.f32 %v12663_v48, %v3967_v5  ;;  %vm4393_vm15 = vcmp.eq.f32.partialorder %v13511_v12, %v13690_v17  ;;  %v3968_v32 = vmul.f32 2.0, %v3401_v62  ;;  %v4218_v43 = vsel %vm16222_vm8, %v13693_v46, inf  ;;  %v16410_v5 = vld [vmem:[#allocation39_spill] sm:$0xff] }
 0x2e0   : > { %v4002_v23 = vmul.f32 2.0, %v3484_v9  ;;  %v6190_v25 = vadd.f32 %v13115_v10, %v6188_v22  ;;  %v4455_v27 = vsel %vm4391_vm13, %v12824_v40, 10  ;;  %v3969_v54 = vmul.f32 2.0, %v13634_v2 }
 0x2e1   : > { %v13723_v8 = vsub.f32 %v12602_v26, %v4000_v19  ;;  %v4423_v41 = vsel %vm4359_vm12, %v12783_v3, 10  ;;  %v4644_v6 = vsel %vm4643_vm14, %v4424_v31, %v4642_v53  ;;  %vm4361_vm0 = vcmp.eq.f32.partialorder %v13537_v11, %v13690_v17  ;;  %v16411_v53 = vld [vmem:[#allocation79_spill] sm:$0xff] }
 0x2e2   : > { %v13729_v12 = vsub.f32 %v12602_v26, %v4001_v14  ;;  %v6192_v62 = vadd.f32 %v13086_v29, %v6190_v25  ;;  %v4457_v10 = vsel %vm4393_vm15, %v12824_v40, 10  ;;  %v4219_v51 = vmin.f32 %v13713_v24, %v4218_v43  ;;  %v16413_v43 = vld [vmem:[#allocation75_spill] sm:$0xff] }
 0x2e3   : > { %16405 = vst [vmem:[#allocation28_spill] sm:$0xff] %v13723_v8  ;;  %v3970_v58 = vmul.f32 2.0, %v3478_v57  ;;  %v4621_v2 = vrot.slane %v4620_v0, 4  ;;  %v4630_v47 = vsel %vm16222_vm8, %v4455_v27, 2147483647  ;;  %v13736_v49 = vsub.f32 %v12663_v48, %v3968_v32 }
 0x2e4   : > { %v13739_v18 = vsub.f32 %v12602_v26, %v4002_v23  ;;  %v6194_v11 = vadd.f32 %v13067_v4, %v6192_v62  ;;  %vm13745_vm1 = vcmp.lt.s32.totalorder %v13668_v7, %v16200_v59  ;;  %v4425_v57 = vsel %vm4361_vm0, %v12783_v3, 10  ;;  %v16414_v62 = vld [vmem:[#allocation44_spill] sm:$0xff]  ;;  %v16418_v59 = vld [vmem:[#allocation43_spill] sm:$0xff] }
 0x2e5   : > { %16406 = vst [vmem:[#allocation26_spill] sm:$0xff] %v13736_v49  ;;  %v13751_v1 = vsub.f32 %v12663_v48, %v3969_v54  ;;  %v4226_v39 = vsel %vm16222_vm8, %v13723_v8, inf  ;;  %v4645_v15 = vrot.slane %v4644_v6, 4  ;;  %v4654_v38 = vsel %vm16222_vm8, %v4457_v10, 2147483647  ;;  %v16416_v10 = vld [vmem:[#allocation71_spill] sm:$0xff] }
 0x2e6   : > { %16407 = vst [vmem:[#allocation24_spill] sm:$0xff] %v13739_v18  ;;  %v4234_v4 = vsel %vm16222_vm8, %v13729_v12, inf  ;;  %v13760_v31 = vsub.f32 %v12663_v48, %v16410_v5  ;;  %v6196_v20 = vadd.f32 %v16411_v53, %v6194_v11  ;;  %vm4631_vm2 = vcmp.lt.s32.totalorder %v4423_v41, %v4630_v47 }
 0x2e7   : > { %v4220_v19 = vrot.slane %v4219_v51, 4  ;;  %v13764_v9 = vsub.f32 %v12663_v48, %v3970_v58  ;;  %v4599_v14 = vsel %vm13701_vm10, %v13663_v33, %v4597_v34  ;;  %vm4622_vm3 = vcmp.lt.s32.totalorder %v4620_v0, %v4621_v2  ;;  %v16415_v34 = vld [vmem:[#allocation47_spill] sm:$0xff] }
 0x2e8   : > { %v4227_v22 = vmin.f32 %v13736_v49, %v4226_v39  ;;  %v4242_v32 = vsel %vm16222_vm8, %v13739_v18, inf  ;;  %v6198_v23 = vadd.f32 %v16413_v43, %v6196_v20  ;;  %v4608_v25 = vsel %vm4607_vm11, %v13682_v37, %v4606_v36 }
 0x2e9   : > { %16412 = vst [vmem:[#allocation22_spill] sm:$0xff] %v13764_v9  ;;  %vm4655_vm4 = vcmp.lt.s32.totalorder %v4425_v57, %v4654_v38  ;;  %v4235_v27 = vmin.f32 %v13751_v1, %v4234_v4  ;;  %v4632_v54 = vsel %vm4631_vm2, %v4423_v41, %v4630_v47  ;;  %vm4646_vm5 = vcmp.lt.s32.totalorder %v4644_v6, %v4645_v15  ;;  %v16417_v4 = vld [vmem:[#allocation67_spill] sm:$0xff] }
 0x2ea   : > { %v13781_v33 = vsub.f32 %v12602_v26, %v16414_v62  ;;  %v4099_v21 = vmin.f32 %v13760_v31, %v16415_v34  ;;  %v6200_v58 = vadd.f32 %v16416_v10, %v6198_v23  ;;  %v4623_v11 = vsel %vm4622_vm3, %v4620_v0, %v4621_v2  ;;  %v16419_v2 = vld [vmem:[#allocation63_spill] sm:$0xff] }
 0x2eb   : > { %v4221_v39 = vmin.f32 %v4219_v51, %v4220_v19  ;;  %v4243_v5 = vmin.f32 %v13764_v9, %v4242_v32  ;;  %v4600_v53 = vrot.slane %v4599_v14, 2  ;;  %v4609_v37 = vrot.slane %v4608_v25, 4  ;;  %v16421_v10 = vld [vmem:[#allocation59_spill] sm:$0xff] }
 0x2ec   : > { %v4656_v36 = vsel %vm4655_vm4, %v4425_v57, %v4654_v38  ;;  %v4228_v20 = vrot.slane %v4227_v22, 4  ;;  %v6202_v41 = vadd.f32 %v16417_v4, %v6200_v58  ;;  %v4647_v47 = vsel %vm4646_vm5, %v4644_v6, %v4645_v15 }
 0x2ed   : > { %v4236_v43 = vrot.slane %v4235_v27, 4  ;;  %v13790_v62 = vsub.f32 %v12663_v48, %v16418_v59  ;;  %v4624_v26 = vrot.slane %v4623_v11, 2  ;;  %v4633_v34 = vrot.slane %v4632_v54, 4 }
 0x2ee   : > { %v4090_v0 = vsel %vm16222_vm8, %v13781_v33, inf  ;;  %v4100_v51 = vrot.slane %v4099_v21, 4  ;;  %v6204_v19 = vadd.f32 %v16419_v2, %v6202_v41  ;;  %v4657_v32 = vrot.slane %v4656_v36, 4 }
 0x2ef   : > { %v4222_v23 = vrot.slane %v4221_v39, 2  ;;  %v4244_v57 = vrot.slane %v4243_v5, 4  ;;  %v16420_v38 = vrot.slane %v13668_v7, 4  ;;  %vm4601_vm6 = vcmp.lt.s32.totalorder %v4599_v14, %v4600_v53 }
 0x2f0   : > { %v4648_v59 = vrot.slane %v4647_v47, 2  ;;  %v4229_v15 = vmin.f32 %v4227_v22, %v4228_v20  ;;  %v6206_v58 = vadd.f32 %v16421_v10, %v6204_v19  ;;  %v4237_v4 = vmin.f32 %v4235_v27, %v4236_v43  ;;  %v16427_v19 = vld [vmem:[#allocation51_spill] sm:$0xff] }
 0x2f1   : > { %v13800_v6 = vsel %vm13745_vm1, %v13668_v7, %v16420_v38  ;;  %v4091_v17 = vmin.f32 %v13790_v62, %v4090_v0  ;;  %vm4610_vm9 = vcmp.lt.s32.totalorder %v4608_v25, %v4609_v37  ;;  %vm13804_vm10 = vcmp.lt.s32.totalorder %v4623_v11, %v4624_v26  ;;  %v16426_v7 = vld [vmem:[#allocation55_spill] sm:$0xff] }
 0x2f2   : > { %vm13808_vm11 = vcmp.lt.s32.totalorder %v4632_v54, %v4633_v34  ;;  %v4101_v29 = vmin.f32 %v4099_v21, %v4100_v51  ;;  %v6208_v38 = vadd.f32 %v16426_v7, %v6206_v58  ;;  %vm4658_vm12 = vcmp.lt.s32.totalorder %v4656_v36, %v4657_v32  ;;  %v16431_v51 = vld [vmem:[#allocation29_spill] sm:$0xff]  ;;  %v10183_v58 = vld [vmem:[%s10592_s16 + $0xaf8] sm:$0xff] }
 0x2f3   : > { %v4223_v28 = vmin.f32 %v4221_v39, %v4222_v23  ;;  %v4245_v22 = vmin.f32 %v4243_v5, %v4244_v57  ;;  %v13813_v20 = vsel %vm4601_vm6, %v4599_v14, %v4600_v53  ;;  %vm4649_vm13 = vcmp.lt.s32.totalorder %v4647_v47, %v4648_v59 }
 0x2f4   : > { %v4230_v27 = vrot.slane %v4229_v15, 2  ;;  %v10485_v43 = vmov 1966171168   ;;  %v6210_v10 = vadd.f32 %v16427_v19, %v6208_v38  ;;  %v13818_v35 = vsel %vm4610_vm9, %v4608_v25, %v4609_v37  ;;  %v10186_v38 = vld [vmem:[%s10592_s16 + $0xb78] sm:$0xff]  ;;  %v10187_v19 = vld [vmem:[%s10592_s16 + $0xaf0] sm:$0xff] }
 0x2f5   : > { %v13815_v0 = vunpack.c.l.s4 %v10485_v43  ;;  %v4238_v44 = vrot.slane %v4237_v4, 2  ;;  %v4092_v21 = vrot.slane %v4091_v17, 4  ;;  %v13822_v39 = vsel %vm13804_vm10, %v4623_v11, %v4624_v26  ;;  %v10184_v26 = vld [vmem:[%s10592_s16 + $0xa78] sm:$0xff] }
 0x2f6   : > { %16428 = vst [vmem:[#allocation20_spill] sm:$0xff] %v13822_v39  ;;  %v13826_v14 = vsel %vm13808_vm11, %v4632_v54, %v4633_v34  ;;  %v13828_v5 = vsel %vm4658_vm12, %v4656_v36, %v4657_v32  ;;  %v4102_v53 = vrot.slane %v4101_v29, 2  ;;  %v6212_v23 = vadd.f32 %v16431_v51, %v6210_v10  ;;  %v16433_v36 = vld [vmem:[#allocation38_spill] sm:$0xff]  ;;  %v10188_v51 = vld [vmem:[%s10592_s16 + $0xa00] sm:$0xff] }
 0x2f7   : > { %16429 = vst [vmem:[#allocation18_spill] sm:$0xff] %v13826_v14  ;;  %16430 = vst [vmem:[#allocation16_spill] sm:$0xff] %v13828_v5  ;;  %v13831_v57 = vsel %vm4649_vm13, %v4647_v47, %v4648_v59  ;;  %v4224_v25 = vrot.slane %v4223_v28, 1  ;;  %v4246_v37 = vrot.slane %v4245_v22, 2  ;;  %v5507_v41 = vmul.f32 %v10183_v58, %v10183_v58  ;;  %v10185_v32 = vld [vmem:[%s10592_s16 + $0xbf8] sm:$0xff]  ;;  %v10189_v54 = vld [vmem:[%s10592_s16 + $0xa70] sm:$0xff] }
 0x2f8   : > { %16432 = vst [vmem:[#allocation12_spill] sm:$0xff] %v13831_v57  ;;  %v5491_v11 = vmul.f32 %v10184_v26, %v10184_v26  ;;  %v13835_v2 = vmin.f32 %v4229_v15, %v4230_v27  ;;  %v6214_v34 = vadd.f32 %v16433_v36, %v6212_v23  ;;  %v5539_v7 = vmul.f32 %v10185_v32, %v10185_v32  ;;  %v16434_v27 = vld [vmem:[#allocation99_spill] sm:$0xff]  ;;  %v10190_v23 = vld [vmem:[%s10592_s16 + $0xbf0] sm:$0xff] }
 0x2f9   : > { %v13840_v47 = vmin.f32 %v4237_v4, %v4238_v44  ;;  %v4093_v59 = vmin.f32 %v4091_v17, %v4092_v21  ;;  %v5523_v43 = vmul.f32 %v10186_v38, %v10186_v38  ;;  %v5506_v10 = vmul.f32 %v10187_v19, %v10187_v19  ;;  %v10191_v21 = vld [vmem:[%s10592_s16 + $0xb70] sm:$0xff]  ;;  %v10193_v19 = vld [vmem:[%s10592_s16 + $0xa68] sm:$0xff] }
 0x2fa   : > { %v13845_v58 = vmul.f32 %v10188_v51, %v10188_v51  ;;  %v4103_v15 = vmin.f32 %v4101_v29, %v4102_v53  ;;  %v6216_v26 = vadd.f32 %v16434_v27, %v6214_v34  ;;  %v5490_v5 = vmul.f32 %v10189_v54, %v10189_v54  ;;  %v16438_v29 = vld [vmem:[#allocation96_spill] sm:$0xff]  ;;  %v16442_v51 = vld [vmem:[#allocation93_spill] sm:$0xff]  ;;  %v16473_v39 = vld [vmem:[#allocation54_spill] sm:$0xff] }
 0x2fb   : > { %v5538_v36 = vmul.f32 %v10190_v23, %v10190_v23  ;;  %v13850_v44 = vmin.f32 %v4223_v28, %v4224_v25  ;;  %v13853_v17 = vsel %vm16223_vm7, %v5507_v41, 0.0  ;;  %v13856_v4 = vsel %vm16223_vm7, %v5491_v11, 0.0  ;;  %v10192_v34 = vld [vmem:[%s10592_s16 + $0xae8] sm:$0xff] }
 0x2fc   : > { %16435 = vst [vmem:[#allocation14_spill] sm:$0xff] %v13853_v17  ;;  %16436 = vst [vmem:[#allocation39_spill] sm:$0xff] %v13856_v4  ;;  %v5522_v32 = vmul.f32 %v10191_v21, %v10191_v21  ;;  %v13859_v38 = vmin.f32 %v4245_v22, %v4246_v37  ;;  %v6218_v53 = vadd.f32 %v16438_v29, %v6216_v26  ;;  %v13863_v54 = vsel %vm16223_vm7, %v5539_v7, 0.0  ;;  %v10194_v23 = vld [vmem:[%s10592_s16 + $0xbe8] sm:$0xff] }
 0x2fd   : > { %16439 = vst [vmem:[#allocation75_spill] sm:$0xff] %v13863_v54  ;;  %v5505_v28 = vmul.f32 %v10192_v34, %v10192_v34  ;;  %v4094_v25 = vrot.slane %v4093_v59, 2  ;;  %v13867_v41 = vsel %vm16223_vm7, %v5523_v43, 0.0  ;;  %v13870_v11 = vsel %vm16223_vm7, %v5506_v10, 0.0  ;;  %v10195_v10 = vld [vmem:[%s10592_s16 + $0xb68] sm:$0xff]  ;;  %v10196_v34 = vld [vmem:[%s10592_s16 + $0xae0] sm:$0xff] }
 0x2fe   : > { %16437 = vst [vmem:[#allocation79_spill] sm:$0xff] %v13859_v38  ;;  %16440 = vst [vmem:[#allocation44_spill] sm:$0xff] %v13867_v41  ;;  %v5489_v22 = vmul.f32 %v10193_v19, %v10193_v19  ;;  %v4104_v37 = vrot.slane %v4103_v15, 1  ;;  %v6220_v27 = vadd.f32 %v16442_v51, %v6218_v53  ;;  %v13875_v7 = vsel %vm16223_vm7, %v5490_v5, 0.0  ;;  %v10197_v54 = vld [vmem:[%s10592_s16 + $0xa60] sm:$0xff]  ;;  %v16446_v51 = vld [vmem:[#allocation89_spill] sm:$0xff] }
 0x2ff   : > { %16441 = vst [vmem:[#allocation47_spill] sm:$0xff] %v13870_v11  ;;  %16443 = vst [vmem:[#allocation71_spill] sm:$0xff] %v13875_v7  ;;  %v13878_v26 = vsel %vm16223_vm7, %v5538_v36, 0.0  ;;  %v5537_v21 = vmul.f32 %v10194_v23, %v10194_v23  ;;  %v13882_v43 = vsel %vm16223_vm7, %v5522_v32, 0.0  ;;  %v5521_v29 = vmul.f32 %v10195_v10, %v10195_v10  ;;  %v10199_v10 = vld [vmem:[%s10592_s16 + $0xb60] sm:$0xff]  ;;  %v16469_v14 = vld [vmem:[#allocation17_spill] sm:$0xff] }
 0x300   : > { %16444 = vst [vmem:[#allocation67_spill] sm:$0xff] %v13878_v26  ;;  %16445 = vst [vmem:[#allocation43_spill] sm:$0xff] %v13882_v43  ;;  %v5504_v19 = vmul.f32 %v10196_v34, %v10196_v34  ;;  %v5488_v53 = vmul.f32 %v10197_v54, %v10197_v54  ;;  %v6222_v5 = vadd.f32 %v16446_v51, %v6220_v27  ;;  %v13889_v36 = vsel %vm16223_vm7, %v5505_v28, 0.0  ;;  %v10198_v26 = vld [vmem:[%s10592_s16 + $0xbe0] sm:$0xff]  ;;  %v10200_v34 = vld [vmem:[%s10592_s16 + $0xad8] sm:$0xff] }
 0x301   : > { %16447 = vst [vmem:[#allocation63_spill] sm:$0xff] %v13889_v36  ;;  %v5536_v41 = vmul.f32 %v10198_v26, %v10198_v26  ;;  %v4095_v23 = vmin.f32 %v4093_v59, %v4094_v25  ;;  %v13893_v32 = vsel %vm16223_vm7, %v5489_v22, 0.0  ;;  %v5520_v43 = vmul.f32 %v10199_v10, %v10199_v10  ;;  %v16449_v54 = vld [vmem:[#allocation85_spill] sm:$0xff]  ;;  %v10201_v28 = vld [vmem:[%s10592_s16 + $0xa58] sm:$0xff] }
 0x302   : > { %16448 = vst [vmem:[#allocation59_spill] sm:$0xff] %v13893_v32  ;;  %v5503_v17 = vmul.f32 %v10200_v34, %v10200_v34  ;;  %v13897_v11 = vmin.f32 %v4103_v15, %v4104_v37  ;;  %v6224_v57 = vadd.f32 %v16449_v54, %v6222_v5  ;;  %v13901_v27 = vsel %vm16223_vm7, %v5537_v21, 0.0  ;;  %v10202_v26 = vld [vmem:[%s10592_s16 + $0xbd8] sm:$0xff]  ;;  %v10204_v34 = vld [vmem:[%s10592_s16 + $0xad0] sm:$0xff] }
 0x303   : > { %16450 = vst [vmem:[#allocation55_spill] sm:$0xff] %v13901_v27  ;;  %v5487_v51 = vmul.f32 %v10201_v28, %v10201_v28  ;;  %v5535_v36 = vmul.f32 %v10202_v26, %v10202_v26  ;;  %v13906_v59 = vsel %vm16223_vm7, %v5521_v29, 0.0  ;;  %v13909_v25 = vsel %vm16223_vm7, %v5504_v19, 0.0  ;;  %v10203_v22 = vld [vmem:[%s10592_s16 + $0xb58] sm:$0xff]  ;;  %v16458_v26 = vld [vmem:[#allocation40_spill] sm:$0xff] }
 0x304   : > { %16451 = vst [vmem:[#allocation51_spill] sm:$0xff] %v13906_v59  ;;  %16452 = vst [vmem:[#allocation29_spill] sm:$0xff] %v13909_v25  ;;  %v5519_v10 = vmul.f32 %v10203_v22, %v10203_v22  ;;  %v5502_v15 = vmul.f32 %v10204_v34, %v10204_v34  ;;  %v16453_v37 = vld [vmem:[#allocation82_spill] sm:$0xff]  ;;  %v13915_v21 = vsel %vm16223_vm7, %v5488_v53, 0.0  ;;  %v13918_v54 = vsel %vm16223_vm7, %v5536_v41, 0.0 }
 0x305   : > { %v6226_v5 = vadd.f32 %v16453_v37, %v6224_v57  ;;  %16454 = vst [vmem:[#allocation38_spill] sm:$0xff] %v13915_v21  ;;  %16455 = vst [vmem:[#allocation99_spill] sm:$0xff] %v13918_v54  ;;  %v4096_v28 = vrot.slane %v4095_v23, 1  ;;  %v13921_v29 = vsel %vm16223_vm7, %v5520_v43, 0.0  ;;  %v13924_v19 = vsel %vm16223_vm7, %v5503_v17, 0.0  ;;  %v16459_v57 = vld [vmem:[#allocation78_spill] sm:$0xff] }
 0x306   : > { %16456 = vst [vmem:[#allocation96_spill] sm:$0xff] %v13921_v29  ;;  %16457 = vst [vmem:[#allocation93_spill] sm:$0xff] %v13924_v19  ;;  %vm4347_vm14 = vcmp.eq.f32.partialorder %v13760_v31, %v13897_v11  ;;  %vm4379_vm15 = vcmp.eq.f32.partialorder %v16458_v26, %v13897_v11  ;;  %v13932_v41 = vsel %vm16223_vm7, %v5487_v51, 0.0  ;;  %v13935_v22 = vsel %vm16223_vm7, %v5535_v36, 0.0  ;;  %v10205_v31 = vld [vmem:[%s10592_s16 + $0xa50] sm:$0xff] }
 0x307   : > { %v6228_v53 = vadd.f32 %v16459_v57, %v6226_v5  ;;  %16460 = vst [vmem:[#allocation89_spill] sm:$0xff] %v13932_v41  ;;  %16461 = vst [vmem:[#allocation85_spill] sm:$0xff] %v13935_v22  ;;  %v4097_v43 = vmin.f32 %v4095_v23, %v4096_v28  ;;  %v13938_v17 = vsel %vm16223_vm7, %v5519_v10, 0.0  ;;  %v13941_v34 = vsel %vm16223_vm7, %v5502_v15, 0.0  ;;  %v16464_v26 = vld [vmem:[#allocation74_spill] sm:$0xff] }
 0x308   : > { %16462 = vst [vmem:[#allocation82_spill] sm:$0xff] %v13938_v17  ;;  %16463 = vst [vmem:[#allocation40_spill] sm:$0xff] %v13941_v34  ;;  %v13944_v37 = vmul.f32 %v10205_v31, %v10205_v31  ;;  %v4443_v5 = vsel %vm4379_vm15, %v12824_v40, 10  ;;  %v4411_v36 = vsel %vm4347_vm14, %v12783_v3, 10  ;;  %v10206_v23 = vld [vmem:[%s10592_s16 + $0xbd0] sm:$0xff]  ;;  %v10209_v17 = vld [vmem:[%s10592_s16 + $0xa48] sm:$0xff]  ;;  %vm982_vm5 = vcmp.eq.s32.totalorder %v12783_v3, %v16469_v14 }
 0x309   : > { %v6230_v57 = vadd.f32 %v16464_v26, %v6228_v53  ;;  %vm4346_vm0 = vcmp.eq.f32.partialorder %v13790_v62, %v4097_v43  ;;  %vm4378_vm1 = vcmp.eq.f32.partialorder %v13781_v33, %v4097_v43  ;;  %v13953_v51 = vmul.f32 %v10206_v23, %v10206_v23  ;;  %v10207_v10 = vld [vmem:[%s10592_s16 + $0xb50] sm:$0xff]  ;;  %v10208_v26 = vld [vmem:[%s10592_s16 + $0xac8] sm:$0xff]  ;;  %9200 = vmatpush1.xpose.msk.msra.mxu1 %vm982_vm5, %v16385_v63 }
 0x30a   : > { %v13956_v15 = vmul.f32 %v10207_v10, %v10207_v10  ;;  %v4410_v28 = vsel %vm4346_vm0, %v12783_v3, 10  ;;  %v4442_v31 = vsel %vm4378_vm1, %v12824_v40, 10  ;;  %v16465_v27 = vld [vmem:[#allocation70_spill] sm:$0xff]  ;;  %v13962_v54 = vmul.f32 %v10208_v26, %v10208_v26 }
 0x30b   : > { %v6232_v53 = vadd.f32 %v16465_v27, %v6230_v57  ;;  %v4474_v33 = vsel %vm16222_vm8, %v4442_v31, 2147483647  ;;  %v4486_v62 = vsel %vm16222_vm8, %v4443_v5, 2147483647  ;;  %v16466_v23 = vlaneseq  ;;  %v16467_v59 = vld [vmem:[#allocation66_spill] sm:$0xff] }
 0x30c   : > { %vm4475_vm2 = vcmp.lt.s32.totalorder %v4410_v28, %v4474_v33  ;;  %vm4487_vm3 = vcmp.lt.s32.totalorder %v4411_v36, %v4486_v62  ;;  %v13969_v10 = vstv %s8516_s12  ;;  %v13973_v25 = vmul.f32 %v10209_v17, %v10209_v17  ;;  %v16468_v34 = vld [vmem:[#allocation62_spill] sm:$0xff] }
 0x30d   : > { %v13967_v22 = vand.u32 127, %v16466_v23  ;;  %v6234_v29 = vadd.f32 %v16467_v59, %v6232_v53  ;;  %v4476_v27 = vsel %vm4475_vm2, %v4410_v28, %v4474_v33  ;;  %v4488_v57 = vsel %vm4487_vm3, %v4411_v36, %v4486_v62  ;;  %v16471_v36 = vld [vmem:[#allocation58_spill] sm:$0xff] }
 0x30e   : > { %v4477_v26 = vrot.slane %v4476_v27, 4  ;;  %v4489_v19 = vrot.slane %v4488_v57, 4  ;;  %vm6734_vm4 = vcmask 1040384   ;;  %v13984_v59 = vsub.s32 5, %v12783_v3  ;;  %v16472_v62 = vld [vmem:[#allocation46_spill] sm:$0xff] }
 0x30f   : > { %v5060_v31 = vadd.s32 128, %v13967_v22  ;;  %v13978_v5 = vadd.s32 %v13969_v10, %v13967_v22  ;;  %v6236_v23 = vadd.f32 %v16468_v34, %v6234_v29 }
 0x310   : > { %16470 = vst [vmem:[#allocation78_spill] sm:$0xff] %v13984_v59  ;;  %vm4478_vm6 = vcmp.lt.s32.totalorder %v4476_v27, %v4477_v26  ;;  %vm4490_vm9 = vcmp.lt.s32.totalorder %v4488_v57, %v4489_v19 }
 0x311   : > { %v13987_v17 = vadd.s32 %v13969_v10, %v5060_v31  ;;  %vm5124_vm10 = vcmp.lt.s32.totalorder %v13978_v5, 10000  ;;  %v6238_v28 = vadd.f32 %v16471_v36, %v6236_v23  ;;  %v4479_v53 = vsel %vm4478_vm6, %v4476_v27, %v4477_v26  ;;  %v16475_v23 = vld [vmem:[#allocation45_spill] sm:$0xff] }
 0x312   : > { %v4491_v29 = vsel %vm4490_vm9, %v4488_v57, %v4489_v19  ;;  %v6702_v14 = vsel %vm5124_vm10, %v4097_v43, 0.0  ;;  %v4480_v34 = vrot.slane %v4479_v53, 2  ;;  %v13997_v31 = vsub.f32 %v12663_v48, %v16472_v62  ;;  %v16474_v57 = vld [vmem:[#allocation21_spill] sm:$0xff]  ;;  %v16476_v62 = vld [vmem:[#allocation50_spill] sm:$0xff] }
 0x313   : > { %v4492_v33 = vrot.slane %v4491_v29, 2  ;;  %vm5125_vm11 = vcmp.lt.s32.totalorder %v13987_v17, 10000  ;;  %v6240_v4 = vadd.f32 %v16473_v39, %v6238_v28  ;;  %v6735_v19 = vsel %vm6734_vm4, %v6702_v14, 0.0  ;;  %v10210_v28 = vld [vmem:[%s10592_s16 + $0xbc8] sm:$0xff] }
 0x314   : > { %v6703_v27 = vsel %vm5125_vm11, %v13897_v11, 0.0  ;;  %v14006_v43 = vrot.slane %v16474_v57, %v13984_v59  ;;  %vm4481_vm12 = vcmp.lt.s32.totalorder %v4479_v53, %v4480_v34  ;;  %v14011_v36 = vsub.f32 %v12663_v48, %v16475_v23  ;;  %v10211_v14 = vld [vmem:[%s10592_s16 + $0xb48] sm:$0xff] }
 0x315   : > { %vm4493_vm13 = vcmp.lt.s32.totalorder %v4491_v29, %v4492_v33  ;;  %v6736_v26 = vsel %vm6734_vm4, %v6703_v27, 0.0  ;;  %v6242_v39 = vadd.f32 %v16476_v62, %v6240_v4  ;;  %v14015_v7 = vmul.f32 %v10210_v28, %v10210_v28  ;;  %v16478_v4 = vld [vmem:[#allocation48_spill] sm:$0xff] }
 0x316   : > { %v4482_v11 = vsel %vm4481_vm12, %v4479_v53, %v4480_v34  ;;  %v4494_v50 = vsel %vm4493_vm13, %v4491_v29, %v4492_v33  ;;  %v14018_v32 = vmul.f32 %v10211_v14, %v10211_v14  ;;  %v14020_v9 = vadd.f32 %v6736_v26, %v6735_v19  ;;  %v16479_v29 = vld [vmem:[#allocation49_spill] sm:$0xff] }
 0x317   : > { %v4483_v21 = vrot.slane %v4482_v11, 1  ;;  %v4495_v41 = vrot.slane %v4494_v50, 1  ;;  %v6244_v27 = vadd.f32 %v13652_v30, %v6242_v39  ;;  %v14025_v23 = vsel %vm16223_vm7, %v13944_v37, 0.0  ;;  %v16481_v14 = vld [vmem:[#allocation101_spill] sm:$0xff] }
 0x318   : > { %16477 = vst [vmem:[#allocation74_spill] sm:$0xff] %v14025_v23  ;;  %vm1017_vm14 = vcmp.eq.s32.totalorder %v12824_v40, %v14006_v43  ;;  %v4107_v53 = vmin.f32 %v13997_v31, %v16478_v4  ;;  %v4115_v34 = vmin.f32 %v14011_v36, %v16479_v29  ;;  %v5061_v33 = vadd.s32 256, %v13967_v22 }
 0x319   : > { %vm4484_vm15 = vcmp.lt.s32.totalorder %v4482_v11, %v4483_v21  ;;  %vm4496_vm0 = vcmp.lt.s32.totalorder %v4494_v50, %v4495_v41  ;;  %9205 = vmatprep.subr.msk.mxu0 %vm1017_vm14, %v16385_v63  ;;  %v6246_v30 = vadd.f32 %v13573_v61, %v6244_v27  ;;  %v16480_v62 = vunpack.c.0.s8 %v13815_v0  ;;  %v16485_v27 = vld [vmem:[#allocation98_spill] sm:$0xff] }
 0x31a   : > { %v4485_v19 = vsel %vm4484_vm15, %v4482_v11, %v4483_v21  ;;  %v4497_v37 = vsel %vm4496_vm0, %v4494_v50, %v4495_v41  ;;  %v4108_v26 = vrot.slane %v4107_v53, 4  ;;  %v4116_v28 = vrot.slane %v4115_v34, 4 }
 0x31b   : > { %v14039_v39 = vsub.s32 %v16480_v62, %v12783_v3  ;;  %vm6813_vm1 = vcmp.eq.s32.totalorder %v12783_v3, %v4497_v37  ;;  %vm6812_vm2 = vcmp.eq.s32.totalorder %v12783_v3, %v4485_v19  ;;  %v6248_v4 = vadd.f32 %v16481_v14, %v6246_v30  ;;  %v16486_v14 = vld [vmem:[#allocation95_spill] sm:$0xff] }
 0x31c   : > { %v4858_v29 = vcombine.low %v4485_v19, %v4497_v37  ;;  %vm6941_vm3 = vmand %vm6813_vm1, %vm5125_vm11  ;;  %v4109_v61 = vmin.f32 %v4107_v53, %v4108_v26  ;;  %v5062_v50 = vadd.s32 384, %v13967_v22  ;;  %v14049_v21 = vsel %vm16223_vm7, %v13953_v51, 0.0 }
 0x31d   : > { %16482 = vst [vmem:[#allocation70_spill] sm:$0xff] %v14049_v21  ;;  %9193 = vmatprep.mubr.msk.f32.mxu0 %vm6941_vm3, %v16385_v63  ;;  %vm6940_vm5 = vmand %vm6812_vm2, %vm5124_vm10  ;;  %v4117_v0 = vmin.f32 %v4115_v34, %v4116_v28  ;;  %v14055_v41 = vsub.s32 4, %v12783_v3  ;;  %v14058_v11 = vsub.s32 7, %v12783_v3  ;;  %v6250_v53 = vadd.f32 %v16485_v27, %v6248_v4 }
 0x31e   : > { %9194 = vmatmul.mubr.msk.f32.vlgmr.msra.gmra.mxu0 %vm6940_vm5, %v16385_v63  ;;  %v4110_v30 = vrot.slane %v4109_v61, 2  ;;  %v14063_v51 = vadd.s32 %v13969_v10, %v5061_v33  ;;  %v14066_v26 = vadd.s32 %v13969_v10, %v5062_v50  ;;  %vm6845_vm6 = vcmp.eq.s32.totalorder %v12824_v40, %v4497_v37 }
 0x31f   : > { %16483 = vst [vmem:[#allocation66_spill] sm:$0xff] %v14055_v41  ;;  %16484 = vst [vmem:[#allocation62_spill] sm:$0xff] %v14058_v11  ;;  %v4118_v62 = vrot.slane %v4117_v0, 2  ;;  %v871_v34 = vrot.slane %v16474_v57, %v14055_v41  ;;  %v14072_v28 = vrot.slane %v16474_v57, %v14058_v11  ;;  %v6252_v4 = vadd.f32 %v16486_v14, %v6250_v53  ;;  %v16488_v57 = vld [vmem:[#allocation91_spill] sm:$0xff] }
 0x320   : > { %v14077_v27 = vrot.slane %v4858_v29, %v14039_v39  ;;  %v4111_v33 = vmin.f32 %v4109_v61, %v4110_v30  ;;  %vm6973_vm9 = vmand %vm6845_vm6, %vm5125_vm11  ;;  %v14082_v50 = vsub.s32 6, %v12783_v3  ;;  %vm6844_vm14 = vcmp.eq.s32.totalorder %v12824_v40, %v4485_v19  ;;  %v16489_v61 = vld [vmem:[#allocation87_spill] sm:$0xff] }
 0x321   : > { %v4119_v21 = vmin.f32 %v4117_v0, %v4118_v62  ;;  %vm1016_vm12 = vcmp.eq.s32.totalorder %v12824_v40, %v871_v34  ;;  %vm1019_vm13 = vcmp.eq.s32.totalorder %v12824_v40, %v14072_v28  ;;  %9195 = vmatprep.mubr.msk.f32.mxu0 %vm6973_vm9, %v16385_v63  ;;  %v6254_v37 = vadd.f32 %v16488_v57, %v6252_v4  ;;  %vm6972_vm11 = vmand %vm6844_vm14, %vm5124_vm10  ;;  %v10212_v30 = vld [vmem:[%s10597_s27] sm:$0xff] }
 0x322   : > { %16487 = vst [vmem:[#allocation17_spill] sm:$0xff] %v14082_v50  ;;  %v4112_v29 = vrot.slane %v4111_v33, 1  ;;  %vm5126_vm15 = vcmp.lt.s32.totalorder %v14063_v51, 10000  ;;  %9206 = vmatpush1.xpose.msk.msra.mxu0 %vm1016_vm12, %v16385_v63  ;;  %9213 = vmatprep.subr.msk.mxu1 %vm1019_vm13, %v16385_v63  ;;  %vm985_vm0 = vcmp.eq.s32.totalorder %v12783_v3, %v14006_v43  ;;  %vm5127_vm1 = vcmp.lt.s32.totalorder %v14066_v26, 10000  ;;  %v16492_v57 = vld [vmem:[#allocation84_spill] sm:$0xff]  ;;  %v16508_v26 = vld [vmem:[#allocation27_spill] sm:$0xff] }
 0x323   : > { %v4120_v17 = vrot.slane %v4119_v21, 1  ;;  %9196 = vmatmul.mubr.msk.f32.gmra.mxu0 %vm6972_vm11, %v16385_v63  ;;  %9207 = vmatprep.subr.msk.mxu0 %vm985_vm0, %v16385_v63  ;;  %vm984_vm2 = vcmp.eq.s32.totalorder %v12783_v3, %v871_v34  ;;  %v4531_v19 = vrot.slane %v13595_v16, 1  ;;  %v6256_v0 = vadd.f32 %v16489_v61, %v6254_v37  ;;  %v16495_v61 = vld [vmem:[#allocation81_spill] sm:$0xff] }
 0x324   : > { %v4113_v53 = vmin.f32 %v4111_v33, %v4112_v29  ;;  %v14105_v5 = vrot.slane %v10212_v30, %v14082_v50  ;;  %v4540_v43 = vrot.slane %v13584_v60, 2  ;;  %v5063_v4 = vadd.s32 512, %v13967_v22  ;;  %v16493_v33 = vld [vmem:[#allocation41_spill] sm:$0xff] }
 0x325   : > { %v4121_v62 = vmin.f32 %v4119_v21, %v4120_v17  ;;  %vm14109_vm10 = vcmp.lt.s32.totalorder %v13595_v16, %v4531_v19  ;;  %v5064_v34 = vadd.s32 640, %v13967_v22  ;;  %v6258_v48 = vadd.f32 %v16492_v57, %v6256_v0  ;;  %v16494_v21 = vld [vmem:[#allocation42_spill] sm:$0xff]  ;;  %v16509_v51 = vld [vmem:[#allocation97_spill] sm:$0xff] }
 0x326   : > { %vm4348_vm3 = vcmp.eq.f32.partialorder %v13997_v31, %v4113_v53  ;;  %vm4380_vm5 = vcmp.eq.f32.partialorder %v16493_v33, %v4113_v53  ;;  %v6704_v37 = vsel %vm5126_vm15, %v4113_v53, 0.0  ;;  %9208 = vmatpush1.xpose.msk.msra.mxu0 %vm984_vm2, %v16385_v63  ;;  %vm4541_vm14 = vcmp.lt.s32.totalorder %v13584_v60, %v4540_v43 }
 0x327   : > { %vm4349_vm6 = vcmp.eq.f32.partialorder %v14011_v36, %v4121_v62  ;;  %vm4381_vm9 = vcmp.eq.f32.partialorder %v16494_v21, %v4121_v62  ;;  %v4412_v29 = vsel %vm4348_vm3, %v12783_v3, 10  ;;  %v4444_v17 = vsel %vm4380_vm5, %v12824_v40, 10  ;;  %v16496_v21 = vld [vmem:[#allocation77_spill] sm:$0xff] }
 0x328   : > { %v6260_v30 = vadd.f32 %v16495_v61, %v6258_v48  ;;  %v4413_v0 = vsel %vm4349_vm6, %v12783_v3, 10  ;;  %v4445_v31 = vsel %vm4381_vm9, %v12824_v40, 10  ;;  %v4498_v57 = vsel %vm16222_vm8, %v4444_v17, 2147483647 }
 0x329   : > { %vm4499_vm12 = vcmp.lt.s32.totalorder %v4412_v29, %v4498_v57  ;;  %v4510_v53 = vsel %vm16222_vm8, %v4445_v31, 2147483647  ;;  %v6705_v36 = vsel %vm5127_vm1, %v4121_v62, 0.0  ;;  %v6738_v33 = vsel %vm6734_vm4, %v6704_v37, 0.0  ;;  %v16497_v31 = vld [vmem:[#allocation73_spill] sm:$0xff] }
 0x32a   : > { %v6262_v50 = vadd.f32 %v16496_v21, %v6260_v30  ;;  %v4500_v23 = vsel %vm4499_vm12, %v4412_v29, %v4498_v57  ;;  %vm4511_vm13 = vcmp.lt.s32.totalorder %v4413_v0, %v4510_v53  ;;  %v6739_v48 = vadd.f32 %v6738_v33, %v14020_v9  ;;  %v16498_v30 = vld [vmem:[#allocation69_spill] sm:$0xff] }
 0x32b   : > { %v4501_v61 = vrot.slane %v4500_v23, 4  ;;  %v4512_v18 = vsel %vm4511_vm13, %v4413_v0, %v4510_v53  ;;  %v6740_v49 = vsel %vm6734_vm4, %v6705_v36, 0.0  ;;  %v14139_v17 = vsel %vm14109_vm10, %v13595_v16, %v4531_v19  ;;  %v16502_v53 = vld [vmem:[#allocation61_spill] sm:$0xff] }
 0x32c   : > { %v6264_v8 = vadd.f32 %v16497_v31, %v6262_v50  ;;  %v4513_v62 = vrot.slane %v4512_v18, 4  ;;  %v6741_v38 = vadd.f32 %v6740_v49, %v6739_v48  ;;  %v4542_v37 = vsel %vm4541_vm14, %v13584_v60, %v4540_v43  ;;  %v16499_v49 = vld [vmem:[#allocation65_spill] sm:$0xff]  ;;  %v16500_v43 = vld [vmem:[#allocation88_spill] sm:$0xff] }
 0x32d   : > { %vm4502_vm11 = vcmp.lt.s32.totalorder %v4500_v23, %v4501_v61  ;;  %v14145_v9 = vadd.s32 %v13969_v10, %v5063_v4  ;;  %v14148_v29 = vadd.s32 %v13969_v10, %v5064_v34  ;;  %v4543_v16 = vrot.slane %v4542_v37, 1 }
 0x32e   : > { %v6266_v0 = vadd.f32 %v16498_v30, %v6264_v8  ;;  %v4503_v14 = vsel %vm4502_vm11, %v4500_v23, %v4501_v61  ;;  %vm4514_vm0 = vcmp.lt.s32.totalorder %v4512_v18, %v4513_v62  ;;  %vm1018_vm6 = vcmp.eq.s32.totalorder %v12824_v40, %v14105_v5  ;;  %v16503_v30 = vld [vmem:[#allocation57_spill] sm:$0xff] }
 0x32f   : > { %v4504_v19 = vrot.slane %v4503_v14, 2  ;;  %v4515_v50 = vsel %vm4514_vm0, %v4512_v18, %v4513_v62  ;;  %vm5128_vm2 = vcmp.lt.s32.totalorder %v14145_v9, 10000  ;;  %vm5129_vm10 = vcmp.lt.s32.totalorder %v14148_v29, 10000  ;;  %v16501_v18 = vld [vmem:[#allocation92_spill] sm:$0xff]  ;;  %v16516_v29 = vld [vmem:[#allocation90_spill] sm:$0xff] }
 0x330   : > { %v6268_v57 = vadd.f32 %v16499_v49, %v6266_v0  ;;  %v4516_v60 = vrot.slane %v4515_v50, 2  ;;  %vm4544_vm3 = vcmp.lt.s32.totalorder %v4542_v37, %v4543_v16  ;;  %v6706_v4 = vsel %vm5128_vm2, %v16500_v43, 0.0 }
 0x331   : > { %vm4505_vm5 = vcmp.lt.s32.totalorder %v4503_v14, %v4504_v19  ;;  %v14159_v8 = vsel %vm4544_vm3, %v4542_v37, %v4543_v16  ;;  %v6707_v23 = vsel %vm5129_vm10, %v16501_v18, 0.0  ;;  %v6742_v34 = vsel %vm6734_vm4, %v6706_v4, 0.0  ;;  %v14172_v37 = vld [vmem:[%s10597_s27 + $0x8] sm:$0xff] }
 0x332   : > { %v6270_v36 = vadd.f32 %v16502_v53, %v6268_v57  ;;  %v4506_v33 = vsel %vm4505_vm5, %v4503_v14, %v4504_v19  ;;  %vm4517_vm9 = vcmp.lt.s32.totalorder %v4515_v50, %v4516_v60  ;;  %vm987_vm12 = vcmp.eq.s32.totalorder %v12783_v3, %v14072_v28  ;;  %v16505_v57 = vld [vmem:[#allocation23_spill] sm:$0xff]  ;;  %v16506_v53 = vld [vmem:[#allocation37_spill] sm:$0xff] }
 0x333   : > { %v4860_v21 = vcombine.low %v14139_v17, %v14159_v8  ;;  %v4507_v48 = vrot.slane %v4506_v33, 1  ;;  %v4518_v61 = vsel %vm4517_vm9, %v4515_v50, %v4516_v60  ;;  %v6743_v31 = vadd.f32 %v6742_v34, %v6741_v38  ;;  %v16504_v38 = vld [vmem:[#allocation53_spill] sm:$0xff] }
 0x334   : > { %v6744_v62 = vsel %vm6734_vm4, %v6707_v23, 0.0  ;;  %v6272_v0 = vadd.f32 %v16503_v30, %v6270_v36  ;;  %v4519_v16 = vrot.slane %v4518_v61, 1  ;;  %vm6817_vm13 = vcmp.eq.s32.totalorder %v12783_v3, %v14159_v8 }
 0x335   : > { %v14176_v49 = vrot.slane %v4860_v21, %v14039_v39  ;;  %vm4508_vm14 = vcmp.lt.s32.totalorder %v4506_v33, %v4507_v48  ;;  %v14180_v14 = vadd.f32 %v6744_v62, %v6743_v31  ;;  %vm6945_vm11 = vmand %vm6817_vm13, %vm5129_vm10  ;;  %vm986_vm0 = vcmp.eq.s32.totalorder %v12783_v3, %v14105_v5  ;;  %v16507_v31 = vld [vmem:[#allocation19_spill] sm:$0xff]  ;;  %v16525_v5 = vld [vmem:[#allocation72_spill] sm:$0xff] }
 0x336   : > { %vm6816_vm3 = vcmp.eq.s32.totalorder %v12783_v3, %v14139_v17  ;;  %v6274_v19 = vadd.f32 %v16504_v38, %v6272_v0  ;;  %v4509_v50 = vsel %vm4508_vm14, %v4506_v33, %v4507_v48  ;;  %vm4520_vm5 = vcmp.lt.s32.totalorder %v4518_v61, %v4519_v16  ;;  %9209 = vmatprep.mubr.msk.f32.mxu0 %vm6945_vm11, %v16385_v63 }
 0x337   : > { %vm6944_vm9 = vmand %vm6816_vm3, %vm5128_vm2  ;;  %v14194_v60 = vrot.slane %v14172_v37, %v16505_v57  ;;  %v4521_v43 = vsel %vm4520_vm5, %v4518_v61, %v4519_v16  ;;  %vm6814_vm13 = vcmp.eq.s32.totalorder %v12783_v3, %v4509_v50  ;;  %vm6846_vm8 = vcmp.eq.s32.totalorder %v12824_v40, %v4509_v50 }
 0x338   : > { %9210 = vmatmul.mubr.msk.f32.vlgmr.msra.gmra.mxu0 %vm6944_vm9, %v16385_v63  ;;  %v4555_v4 = vrot.slane %v13647_v52, 1  ;;  %v6276_v18 = vadd.f32 %v13658_v55, %v6274_v19  ;;  %v4859_v23 = vcombine.low %v4509_v50, %v4521_v43  ;;  %vm6815_vm14 = vcmp.eq.s32.totalorder %v12783_v3, %v4521_v43  ;;  %vm6942_vm11 = vmand %vm6814_vm13, %vm5126_vm15 }
 0x339   : > { %vm6847_vm3 = vcmp.eq.s32.totalorder %v12824_v40, %v4521_v43  ;;  %vm6943_vm5 = vmand %vm6815_vm14, %vm5127_vm1  ;;  %vm1021_vm7 = vcmp.eq.s32.totalorder %v12824_v40, %v14194_v60  ;;  %v4564_v34 = vrot.slane %v13638_v56, 2  ;;  %v5065_v55 = vadd.s32 768, %v13967_v22 }
 0x33a   : > { %vm4556_vm9 = vcmp.lt.s32.totalorder %v13647_v52, %v4555_v4  ;;  %v6278_v36 = vadd.f32 %v16506_v53, %v6276_v18  ;;  %v4875_v33 = vrot.slane %v4859_v23, %v14039_v39  ;;  %9201 = vmatprep.mubr.msk.f32.mxu1 %vm6943_vm5, %v16385_v63  ;;  %vm6975_vm13 = vmand %vm6847_vm3, %vm5127_vm1  ;;  %9221 = vmatprep.subr.msk.mxu0 %vm1021_vm7, %v16385_v63  ;;  %v5066_v48 = vadd.s32 896, %v13967_v22  ;;  %v16512_v23 = vld [vmem:[#allocation94_spill] sm:$0xff]  ;;  %v16513_v53 = vld [vmem:[#allocation25_spill] sm:$0xff] }
 0x33b   : > { %v14219_v21 = vsel %vm4556_vm9, %v13647_v52, %v4555_v4  ;;  %9202 = vmatmul.mubr.msk.f32.vlgmr.msra.gmra.mxu1 %vm6942_vm11, %v16385_v63  ;;  %vm4565_vm14 = vcmp.lt.s32.totalorder %v13638_v56, %v4564_v34  ;;  %v5098_v61 = vadd.s32 %v13969_v10, %v5065_v55  ;;  %v14227_v62 = vrot.slane %v14172_v37, %v16507_v31  ;;  %vm6974_vm7 = vmand %vm6846_vm8, %vm5126_vm15  ;;  %v16511_v4 = vld [vmem:[#allocation102_spill] sm:$0xff] }
 0x33c   : > { %vm6818_vm1 = vcmp.eq.s32.totalorder %v12783_v3, %v14219_v21  ;;  %v6280_v30 = vadd.f32 %v16508_v26, %v6278_v36  ;;  %v4890_v52 = vcombine.low %v14077_v27, %v4875_v33  ;;  %9214 = vmatpush1.xpose.msk.msra.mxu1 %vm1018_vm6, %v16385_v63  ;;  %9203 = vmatprep.mubr.msk.f32.mxu1 %vm6975_vm13, %v16385_v63  ;;  %v4579_v16 = vrot.slane %v13696_v42, 1 }
 0x33d   : > { %v4566_v0 = vsel %vm4565_vm14, %v13638_v56, %v4564_v34  ;;  %9215 = vmatprep.subr.msk.mxu1 %vm987_vm12, %v16385_v63  ;;  %v5099_v38 = vadd.s32 %v13969_v10, %v5066_v48  ;;  %vm5130_vm6 = vcmp.lt.s32.totalorder %v5098_v61, 10000  ;;  %vm1020_vm11 = vcmp.eq.s32.totalorder %v12824_v40, %v14227_v62  ;;  %v16510_v56 = vld [vmem:[#allocation100_spill] sm:$0xff] }
 0x33e   : > { %v4567_v27 = vrot.slane %v4566_v0, 1  ;;  %v6282_v19 = vadd.f32 %v16509_v51, %v6280_v30  ;;  %v14253_v50 = vrot.slane %v4890_v52, %v14039_v39  ;;  %v6708_v43 = vsel %vm5130_vm6, %v16510_v56, 0.0  ;;  %9222 = vmatpush1.xpose.msk.msra.mxu0 %vm1020_vm11, %v16385_v63  ;;  %v16517_v30 = vld [vmem:[#allocation15_spill] sm:$0xff] }
 0x33f   : > { %v899_v28 = vrot.slane %v14172_v37, %v16511_v4  ;;  %9204 = vmatmul.mubr.msk.f32.gmra.mxu1 %vm6974_vm7, %v16385_v63  ;;  %vm5131_vm15 = vcmp.lt.s32.totalorder %v5099_v38, 10000  ;;  %v6746_v18 = vsel %vm6734_vm4, %v6708_v43, 0.0  ;;  %vm6849_vm12 = vcmp.eq.s32.totalorder %v12824_v40, %v14159_v8 }
 0x340   : > { %vm4568_vm8 = vcmp.lt.s32.totalorder %v4566_v0, %v4567_v27  ;;  %v6284_v34 = vadd.f32 %v16512_v23, %v6282_v19  ;;  %9216 = vmatpush1.xpose.msk.msra.mxu1 %vm986_vm0, %v16385_v63  ;;  %v6709_v36 = vsel %vm5131_vm15, %v16513_v53, 0.0  ;;  %v6747_v33 = vadd.f32 %v6746_v18, %v14180_v14  ;;  %vm6977_vm3 = vmand %vm6849_vm12, %vm5129_vm10 }
 0x341   : > { %v4569_v55 = vsel %vm4568_vm8, %v4566_v0, %v4567_v27  ;;  %v6748_v8 = vsel %vm6734_vm4, %v6709_v36, 0.0  ;;  %vm14281_vm0 = vmand %vm6818_vm1, %vm5130_vm6  ;;  %vm1023_vm9 = vcmp.eq.s32.totalorder %v12824_v40, %v899_v28  ;;  %9211 = vmatprep.mubr.msk.f32.mxu0 %vm6977_vm3, %v16385_v63  ;;  %v895_v52 = vrot.slane %v14172_v37, %v16517_v30  ;;  %v16518_v27 = vld [vmem:[#allocation86_spill] sm:$0xff]  ;;  %v16524_v36 = vld [vmem:[#allocation13_spill] sm:$0xff] }
 0x342   : > { %v4861_v48 = vcombine.low %v14219_v21, %v4569_v55  ;;  %vm6819_vm5 = vcmp.eq.s32.totalorder %v12783_v3, %v4569_v55  ;;  %v6286_v14 = vadd.f32 %v16516_v29, %v6284_v34  ;;  %v6749_v26 = vadd.f32 %v6748_v8, %v6747_v33  ;;  %9229 = vmatprep.subr.msk.mxu1 %vm1023_vm9, %v16385_v63 }
 0x343   : > { %vm6947_vm10 = vmand %vm6819_vm5, %vm5131_vm15  ;;  %vm6848_vm13 = vcmp.eq.s32.totalorder %v12824_v40, %v14139_v17  ;;  %vm989_vm1 = vcmp.eq.s32.totalorder %v12783_v3, %v14194_v60  ;;  %vm6851_vm7 = vcmp.eq.s32.totalorder %v12824_v40, %v4569_v55  ;;  %vm988_vm11 = vcmp.eq.s32.totalorder %v12783_v3, %v14227_v62  ;;  %v16522_v62 = vld [vmem:[#allocation80_spill] sm:$0xff] }
 0x344   : > { %v4889_v0 = vrot.slane %v4861_v48, %v14039_v39  ;;  %9217 = vmatprep.mubr.msk.f32.mxu1 %vm6947_vm10, %v16385_v63  ;;  %vm6976_vm14 = vmand %vm6848_vm13, %vm5128_vm2  ;;  %v6288_v51 = vadd.f32 %v16518_v27, %v6286_v14  ;;  %vm1022_vm8 = vcmp.eq.s32.totalorder %v12824_v40, %v895_v52  ;;  %vm6850_vm12 = vcmp.eq.s32.totalorder %v12824_v40, %v14219_v21  ;;  %v16521_v21 = vld [vmem:[#allocation83_spill] sm:$0xff]  ;;  %v16523_v55 = vld [vmem:[#allocation76_spill] sm:$0xff] }
 0x345   : > { %9218 = vmatmul.mubr.msk.f32.vlgmr.msra.gmra.mxu1 %vm14281_vm0, %v16385_v63  ;;  %9212 = vmatmul.mubr.msk.f32.gmra.mxu0 %vm6976_vm14, %v16385_v63  ;;  %vm6979_vm2 = vmand %vm6851_vm7, %vm5131_vm15  ;;  %v4588_v17 = vrot.slane %v13800_v6, 2  ;;  %vm991_vm5 = vcmp.eq.s32.totalorder %v12783_v3, %v899_v28  ;;  %vm4580_vm15 = vcmp.lt.s32.totalorder %v13696_v42, %v4579_v16  ;;  %v5067_v38 = vadd.s32 1024, %v13967_v22  ;;  %v16526_v27 = vld [vmem:[#allocation68_spill] sm:$0xff] }
 0x346   : > { %v4891_v9 = vcombine.low %v14176_v49, %v4889_v0  ;;  %9230 = vmatpush1.xpose.msk.msra.mxu1 %vm1022_vm8, %v16385_v63  ;;  %9223 = vmatprep.subr.msk.mxu0 %vm989_vm1, %v16385_v63  ;;  %vm14317_vm3 = vmand %vm6850_vm12, %vm5130_vm6  ;;  %v6290_v19 = vadd.f32 %v16521_v21, %v6288_v51  ;;  %v14331_v49 = vsel %vm4580_vm15, %v13696_v42, %v4579_v16  ;;  %v5068_v61 = vadd.s32 1152, %v13967_v22 }
 0x347   : > { %9219 = vmatprep.mubr.msk.f32.mxu1 %vm6979_vm2, %v16385_v63  ;;  %9224 = vmatpush1.xpose.msk.msra.mxu0 %vm988_vm11, %v16385_v63  ;;  %vm4589_vm6 = vcmp.lt.s32.totalorder %v13800_v6, %v4588_v17  ;;  %v14339_v28 = vadd.s32 %v13969_v10, %v5067_v38  ;;  %vm990_vm0 = vcmp.eq.s32.totalorder %v12783_v3, %v895_v52  ;;  %v4603_v34 = vrot.slane %v13813_v20, 1 }
 0x348   : > { %v4905_v56 = vrot.slane %v4891_v9, %v14039_v39  ;;  %9231 = vmatprep.subr.msk.mxu1 %vm991_vm5, %v16385_v63  ;;  %v4590_v43 = vsel %vm4589_vm6, %v13800_v6, %v4588_v17  ;;  %v6292_v18 = vadd.f32 %v16522_v62, %v6290_v19  ;;  %v5101_v16 = vadd.s32 %v13969_v10, %v5068_v61  ;;  %v16527_v61 = vld [vmem:[#allocation64_spill] sm:$0xff] }
 0x349   : > { %9220 = vmatmul.mubr.msk.f32.gmra.mxu1 %vm14317_vm3, %v16385_v63  ;;  %v4591_v42 = vrot.slane %v4590_v43, 1  ;;  %vm6820_vm9 = vcmp.eq.s32.totalorder %v12783_v3, %v14331_v49  ;;  %vm5132_vm10 = vcmp.lt.s32.totalorder %v14339_v28, 10000  ;;  %v14354_v23 = vrot.slane %v14172_v37, %v13984_v59 }
 0x34a   : > { %v4906_v6 = vcombine.low %v14253_v50, %v4905_v56  ;;  %9232 = vmatpush1.xpose.msk.msra.mxu1 %vm990_vm0, %v16385_v63  ;;  %v6294_v53 = vadd.f32 %v16523_v55, %v6292_v18  ;;  %vm5133_vm14 = vcmp.lt.s32.totalorder %v5101_v16, 10000  ;;  %v6710_v33 = vsel %vm5132_vm10, %v16524_v36, 0.0  ;;  %vm6948_vm11 = vmand %vm6820_vm9, %vm5132_vm10  ;;  %v16535_v16 = vld [vmem:[#allocation52_spill] sm:$0xff] }
 0x34b   : > { %vm4592_vm13 = vcmp.lt.s32.totalorder %v4590_v43, %v4591_v42  ;;  %v6711_v48 = vsel %vm5133_vm14, %v13575_v45, 0.0  ;;  %v6750_v8 = vsel %vm6734_vm4, %v6710_v33, 0.0  ;;  %vm1025_vm1 = vcmp.eq.s32.totalorder %v12824_v40, %v14354_v23 }
 0x34c   : > { %5054 = vst [vmem:[%s10599_s30] sm:$0xff] %v4906_v6  ;;  %v14362_v50 = vsel %vm4592_vm13, %v4590_v43, %v4591_v42  ;;  %v6296_v29 = vadd.f32 %v16525_v5, %v6294_v53  ;;  %v6751_v14 = vadd.f32 %v6750_v8, %v6749_v26  ;;  %v6752_v52 = vsel %vm6734_vm4, %v6711_v48, 0.0  ;;  %9237 = vmatprep.subr.msk.mxu0 %vm1025_vm1, %v16385_v63  ;;  %v16531_v53 = vld [vmem:[#allocation56_spill] sm:$0xff]  ;;  %v10214_v8 = vld [vmem:[%s10592_s16 + $0xa10] sm:$0xff] }
 0x34d   : > { %vm6821_vm7 = vcmp.eq.s32.totalorder %v12783_v3, %v14362_v50  ;;  %vm4604_vm2 = vcmp.lt.s32.totalorder %v13813_v20, %v4603_v34  ;;  %v4612_v45 = vrot.slane %v13818_v35, 2  ;;  %v5069_v26 = vadd.s32 1280, %v13967_v22 }
 0x34e   : > { %vm6949_vm8 = vmand %vm6821_vm7, %vm5133_vm14  ;;  %v5070_v0 = vadd.s32 1408, %v13967_v22  ;;  %v6298_v51 = vadd.f32 %v16526_v27, %v6296_v29  ;;  %v4240_v17 = vrot.slane %v13840_v47, 1  ;;  %v6753_v9 = vadd.f32 %v6752_v52, %v6751_v14  ;;  %v10216_v27 = vld [vmem:[%s10592_s16 + $0xa18] sm:$0xff] }
 0x34f   : > { %9225 = vmatprep.mubr.msk.f32.mxu0 %vm6949_vm8, %v16385_v63  ;;  %v14389_v60 = vrot.slane %v14172_v37, %v14055_v41  ;;  %v14393_v38 = vsel %vm4604_vm2, %v13813_v20, %v4603_v34  ;;  %vm4613_vm12 = vcmp.lt.s32.totalorder %v13818_v35, %v4612_v45  ;;  %v14397_v21 = vadd.s32 %v13969_v10, %v5069_v26  ;;  %v10215_v26 = vld [vmem:[%s10592_s16 + $0xac0] sm:$0xff] }
 0x350   : > { %9226 = vmatmul.mubr.msk.f32.vlgmr.msra.gmra.mxu0 %vm6948_vm11, %v16385_v63  ;;  %v14400_v19 = vadd.s32 %v13969_v10, %v5070_v0  ;;  %v6300_v56 = vadd.f32 %v16527_v61, %v6298_v51  ;;  %v4614_v43 = vsel %vm4613_vm12, %v13818_v35, %v4612_v45  ;;  %v14408_v20 = vrot.slane %v14172_v37, %v14058_v11  ;;  %v16530_v35 = vld [vmem:[#allocation60_spill] sm:$0xff] }
 0x351   : > { %vm1024_vm3 = vcmp.eq.s32.totalorder %v12824_v40, %v14389_v60  ;;  %vm16528_vm5 = vcmask 261120   ;;  %v4615_v18 = vrot.slane %v4614_v43, 1  ;;  %vm5134_vm15 = vcmp.lt.s32.totalorder %v14397_v21, 10000  ;;  %v10218_v61 = vld [vmem:[%s10592_s16 + $0xbc0] sm:$0xff] }
 0x352   : > { %v14412_v62 = vsel %vm16528_vm5, %v13956_v15, 0.0  ;;  %9238 = vmatpush1.xpose.msk.msra.mxu0 %vm1024_vm3, %v16385_v63  ;;  %vm6853_vm6 = vcmp.eq.s32.totalorder %v12824_v40, %v14362_v50  ;;  %v6302_v42 = vadd.f32 %v16530_v35, %v6300_v56  ;;  %v6712_v6 = vsel %vm5134_vm15, %v13568_v13, 0.0  ;;  %v10213_v15 = vld [vmem:[%s10592_s16 + $0xa08] sm:$0xff]  ;;  %vm16532_vm11 = vmmov %vm16528_vm5  ;;  %v10219_v56 = vld [vmem:[%s10592_s16 + $0xb40] sm:$0xff] }
 0x353   : > { %16529 = vst [vmem:[#allocation58_spill] sm:$0xff] %v14412_v62  ;;  %vm6822_vm0 = vcmp.eq.s32.totalorder %v12783_v3, %v14393_v38  ;;  %vm1027_vm9 = vcmp.eq.s32.totalorder %v12824_v40, %v14408_v20  ;;  %v5477_v34 = vmul.f32 %v10213_v15, %v10213_v15  ;;  %vm4616_vm13 = vcmp.lt.s32.totalorder %v4614_v43, %v4615_v18  ;;  %vm6981_vm7 = vmand %vm6853_vm6, %vm5133_vm14 }
 0x354   : > { %vm5135_vm1 = vcmp.lt.s32.totalorder %v14400_v19, 10000  ;;  %v6754_v55 = vsel %vm6734_vm4, %v6712_v6, 0.0  ;;  %9245 = vmatprep.subr.msk.mxu1 %vm1027_vm9, %v16385_v63  ;;  %v6304_v36 = vadd.f32 %v16531_v53, %v6302_v42  ;;  %v14433_v13 = vmin.f32 %v13840_v47, %v4240_v17  ;;  %9227 = vmatprep.mubr.msk.f32.mxu0 %vm6981_vm7, %v16385_v63  ;;  %vm14450_vm8 = vmand %vm6822_vm0, %vm5134_vm15  ;;  %v16599_v19 = vld [vmem:[#allocation18_spill] sm:$0xff] }
 0x355   : > { %v14435_v33 = vsel %vm4616_vm13, %v4614_v43, %v4615_v18  ;;  %v14437_v48 = vadd.f32 %v6754_v55, %v6753_v9  ;;  %v5478_v5 = vmul.f32 %v10214_v8, %v10214_v8  ;;  %v6307_v29 = vsel %vm16532_vm11, %v13845_v58, 0.0  ;;  %vm16536_vm12 = vmmov %vm16528_vm5  ;;  %v10220_v43 = vld [vmem:[%s10592_s16 + $0xa20] sm:$0xff]  ;;  %v10222_v8 = vld [vmem:[%s10592_s16 + $0xab8] sm:$0xff] }
 0x356   : > { %vm6823_vm14 = vcmp.eq.s32.totalorder %v12783_v3, %v14435_v33  ;;  %vm6852_vm2 = vcmp.eq.s32.totalorder %v12824_v40, %v14331_v49  ;;  %v6306_v14 = vadd.f32 %v16535_v16, %v6304_v36  ;;  %v14459_v58 = vsel %vm16536_vm12, %v13962_v54, 0.0  ;;  %vm16537_vm3 = vmmov %vm16528_vm5 }
 0x357   : > { %v14463_v52 = vsel %vm16537_vm3, %v13973_v25, 0.0  ;;  %vm16538_vm5 = vmmov %vm16537_vm3  ;;  %v5500_v0 = vmul.f32 %v10215_v26, %v10215_v26  ;;  %v5479_v51 = vmul.f32 %v10216_v27, %v10216_v27  ;;  %vm4394_vm9 = vcmp.eq.f32.partialorder %v13693_v46, %v13850_v44  ;;  %v10217_v25 = vld [vmem:[%s10592_s16 + $0xa40] sm:$0xff]  ;;  %v10224_v46 = vld [vmem:[%s10592_s16 + $0xbb8] sm:$0xff] }
 0x358   : > { %v14467_v45 = vsel %vm16538_vm5, %v14015_v7, 0.0  ;;  %vm6951_vm6 = vmand %vm6823_vm14, %vm5135_vm1  ;;  %v5484_v17 = vmul.f32 %v10217_v25, %v10217_v25  ;;  %v6308_v9 = vadd.f32 %v6307_v29, %v6306_v14  ;;  %vm4396_vm11 = vcmp.eq.f32.partialorder %v13729_v12, %v14433_v13  ;;  %v10223_v29 = vld [vmem:[%s10592_s16 + $0xa38] sm:$0xff]  ;;  %v10225_v26 = vld [vmem:[%s10592_s16 + $0xa30] sm:$0xff] }
 0x359   : > { %16539 = vst [vmem:[#allocation46_spill] sm:$0xff] %v14467_v45  ;;  %vm16540_vm0 = vmmov %vm16537_vm3  ;;  %9233 = vmatprep.mubr.msk.f32.mxu1 %vm6951_vm6, %v16385_v63  ;;  %v5532_v28 = vmul.f32 %v10218_v61, %v10218_v61  ;;  %v5480_v18 = vmul.f32 %v10220_v43, %v10220_v43  ;;  %vm4362_vm14 = vcmp.eq.f32.partialorder %v13713_v24, %v13850_v44  ;;  %v4458_v6 = vsel %vm4394_vm9, %v12824_v40, 10 }
 0x35a   : > { %v6309_v54 = vsel %vm16540_vm0, %v5477_v34, 0.0  ;;  %vm6980_vm13 = vmand %vm6852_vm2, %vm5132_vm10  ;;  %9234 = vmatmul.mubr.msk.f32.vlgmr.msra.gmra.mxu1 %vm14450_vm8, %v16385_v63  ;;  %v4232_v15 = vrot.slane %v13835_v2, 1  ;;  %v10221_v34 = vld [vmem:[%s10592_s16 + $0xa28] sm:$0xff]  ;;  %vm4364_vm2 = vcmp.eq.f32.partialorder %v13751_v1, %v14433_v13  ;;  %v4460_v36 = vsel %vm4396_vm11, %v12824_v40, 10 }
 0x35b   : > { %vm16541_vm7 = vmmov %vm16540_vm0  ;;  %9228 = vmatmul.mubr.msk.f32.gmra.mxu0 %vm6980_vm13, %v16385_v63  ;;  %v6310_v42 = vadd.f32 %v6309_v54, %v6308_v9  ;;  %v5481_v55 = vmul.f32 %v10221_v34, %v10221_v34  ;;  %v5483_v47 = vmul.f32 %v10223_v29, %v10223_v29  ;;  %v5531_v16 = vmul.f32 %v10224_v46, %v10224_v46  ;;  %v10228_v29 = vld [vmem:[%s10592_s16 + $0xbb0] sm:$0xff] }
 0x35c   : > { %v14481_v7 = vsel %vm16541_vm7, %v14018_v32, 0.0  ;;  %v5516_v32 = vmul.f32 %v10219_v56, %v10219_v56  ;;  %vm16543_vm10 = vmmov %vm16540_vm0  ;;  %v5482_v27 = vmul.f32 %v10225_v26, %v10225_v26  ;;  %v4426_v54 = vsel %vm4362_vm14, %v12783_v3, 10 }
 0x35d   : > { %16542 = vst [vmem:[#allocation54_spill] sm:$0xff] %v14481_v7  ;;  %v6311_v35 = vsel %vm16543_vm10, %v5478_v5, 0.0  ;;  %vm16544_vm8 = vmmov %vm16540_vm0  ;;  %v5499_v5 = vmul.f32 %v10222_v8, %v10222_v8  ;;  %vm16546_vm3 = vcmask 1041408   ;;  %v14520_v9 = vmin.f32 %v13835_v2, %v4232_v15  ;;  %v10227_v15 = vld [vmem:[%s10592_s16 + $0xab0] sm:$0xff] }
 0x35e   : > { %v6313_v53 = vsel %vm16544_vm8, %v5479_v51, 0.0  ;;  %v6312_v14 = vadd.f32 %v6311_v35, %v6310_v42  ;;  %vm16545_vm12 = vmmov %vm16540_vm0  ;;  %v4666_v12 = vsel %vm16546_vm3, %v4458_v6, 2147483647  ;;  %v4428_v61 = vsel %vm4364_vm2, %v12783_v3, 10  ;;  %v10226_v42 = vld [vmem:[%s10592_s16 + $0xb38] sm:$0xff] }
 0x35f   : > { %v6315_v51 = vsel %vm16545_vm12, %v5480_v18, 0.0  ;;  %vm16547_vm5 = vmmov %vm16546_vm3  ;;  %v6323_v24 = vsel %vm16540_vm0, %v5484_v17, 0.0  ;;  %v5515_v1 = vmul.f32 %v10226_v42, %v10226_v42  ;;  %vm4667_vm11 = vcmp.lt.s32.totalorder %v4426_v54, %v4666_v12  ;;  %v16555_v17 = vld [vmem:[#allocation79_spill] sm:$0xff]  ;;  %v16584_v7 = vld [vmem:[#allocation38_spill] sm:$0xff] }
 0x360   : > { %v6314_v25 = vadd.f32 %v6313_v53, %v6312_v14  ;;  %v4690_v56 = vsel %vm16547_vm5, %v4460_v36, 2147483647  ;;  %vm16548_vm6 = vmmov %vm16540_vm0  ;;  %v16558_v36 = vld [vmem:[#allocation28_spill] sm:$0xff]  ;;  %v5530_v46 = vmul.f32 %v10228_v29, %v10228_v29  ;;  %v10229_v14 = vld [vmem:[%s10592_s16 + $0xb30] sm:$0xff]  ;;  %v5072_v21 = vadd.s32 1664, %v13967_v22 }
 0x361   : > { %v14528_v43 = vsel %vm16548_vm6, %v5500_v0, 0.0  ;;  %vm16549_vm9 = vmmov %vm16540_vm0  ;;  %v5498_v0 = vmul.f32 %v10227_v15, %v10227_v15  ;;  %vm4691_vm14 = vcmp.lt.s32.totalorder %v4428_v61, %v4690_v56  ;;  %vm4395_vm12 = vcmp.eq.f32.partialorder %v16558_v36, %v14520_v9  ;;  %v10232_v15 = vld [vmem:[%s10592_s16 + $0xb28] sm:$0xff] }
 0x362   : > { %v14532_v18 = vsel %vm16549_vm9, %v5532_v28, 0.0  ;;  %vm16551_vm13 = vmmov %vm16540_vm0  ;;  %v6316_v6 = vadd.f32 %v6315_v51, %v6314_v25  ;;  %v4248_v28 = vrot.slane %v16555_v17, 1  ;;  %v5514_v26 = vmul.f32 %v10229_v14, %v10229_v14 }
 0x363   : > { %16550 = vst [vmem:[#allocation21_spill] sm:$0xff] %v14532_v18  ;;  %v6317_v35 = vsel %vm16551_vm13, %v5481_v55, 0.0  ;;  %vm16552_vm7 = vmmov %vm16540_vm0  ;;  %v5513_v36 = vmul.f32 %v10232_v15, %v10232_v15  ;;  %v10236_v15 = vld [vmem:[%s10592_s16 + $0xa98] sm:$0xff] }
 0x364   : > { %v14536_v2 = vsel %vm16552_vm7, %v5516_v32, 0.0  ;;  %vm16554_vm10 = vmmov %vm16540_vm0  ;;  %v6318_v32 = vadd.f32 %v6317_v35, %v6316_v6  ;;  %v4692_v35 = vsel %vm4691_vm14, %v4428_v61, %v4690_v56  ;;  %v4459_v6 = vsel %vm4395_vm12, %v12824_v40, 10 }
 0x365   : > { %16553 = vst [vmem:[#allocation45_spill] sm:$0xff] %v14536_v2  ;;  %v6319_v34 = vsel %vm16554_vm10, %v5482_v27, 0.0  ;;  %vm16556_vm8 = vmmov %vm16540_vm0  ;;  %v4668_v27 = vsel %vm4667_vm11, %v4426_v54, %v4666_v12  ;;  %v14565_v54 = vmin.f32 %v16555_v17, %v4248_v28  ;;  %v10231_v12 = vld [vmem:[%s10592_s16 + $0xba8] sm:$0xff]  ;;  %v4693_v14 = vrot.slane %v4692_v35, 4 }
 0x366   : > { %v14543_v53 = vsel %vm16556_vm8, %v5499_v5, 0.0  ;;  %vm16557_vm2 = vmmov %vm16540_vm0  ;;  %v10230_v5 = vld [vmem:[%s10592_s16 + $0xaa8] sm:$0xff]  ;;  %v6320_v25 = vadd.f32 %v6319_v34, %v6318_v32  ;;  %v4669_v61 = vrot.slane %v4668_v27, 4  ;;  %v10233_v32 = vld [vmem:[%s10592_s16 + $0xaa0] sm:$0xff]  ;;  %vm16568_vm7 = vcmask 1041408  }
 0x367   : > { %v6321_v55 = vsel %vm16557_vm2, %v5483_v47, 0.0  ;;  %vm16559_vm3 = vmmov %vm16540_vm0  ;;  %v5497_v47 = vmul.f32 %v10230_v5, %v10230_v5  ;;  %v5496_v29 = vmul.f32 %v10233_v32, %v10233_v32  ;;  %v10234_v5 = vld [vmem:[%s10592_s16 + $0xba0] sm:$0xff]  ;;  %v5495_v45 = vmul.f32 %v10236_v15, %v10236_v15 }
 0x368   : > { %v14549_v8 = vsel %vm16559_vm3, %v5531_v16, 0.0  ;;  %vm16561_vm5 = vmmov %vm16540_vm0  ;;  %v16564_v16 = vld [vmem:[#allocation26_spill] sm:$0xff]  ;;  %v6322_v34 = vadd.f32 %v6321_v55, %v6320_v25  ;;  %v5528_v17 = vmul.f32 %v10234_v5, %v10234_v5  ;;  %v4678_v55 = vsel %vm16568_vm7, %v4459_v6, 2147483647  ;;  %v10235_v25 = vld [vmem:[%s10592_s16 + $0xb20] sm:$0xff] }
 0x369   : > { %16560 = vst [vmem:[#allocation50_spill] sm:$0xff] %v14549_v8  ;;  %v14554_v51 = vsel %vm16561_vm5, %v5515_v1, 0.0  ;;  %vm16563_vm6 = vmmov %vm16540_vm0  ;;  %vm4363_vm0 = vcmp.eq.f32.partialorder %v16564_v16, %v14520_v9  ;;  %v5529_v1 = vmul.f32 %v10231_v12, %v10231_v12  ;;  %v16570_v32 = vld [vmem:[#allocation24_spill] sm:$0xff]  ;;  %v10237_v6 = vld [vmem:[%s10592_s16 + $0xb98] sm:$0xff]  ;;  %vm4694_vm5 = vcmp.lt.s32.totalorder %v4692_v35, %v4693_v14 }
 0x36a   : > { %16562 = vst [vmem:[#allocation48_spill] sm:$0xff] %v14554_v51  ;;  %v14559_v42 = vsel %vm16563_vm6, %v5498_v0, 0.0  ;;  %vm16565_vm9 = vmmov %vm16557_vm2  ;;  %v6324_v28 = vadd.f32 %v6323_v24, %v6322_v34  ;;  %v4427_v12 = vsel %vm4363_vm0, %v12783_v3, 10  ;;  %vm4397_vm10 = vcmp.eq.f32.partialorder %v16570_v32, %v14565_v54  ;;  %v10238_v32 = vld [vmem:[%s10592_s16 + $0xb18] sm:$0xff] }
 0x36b   : > { %v14570_v56 = vsel %vm16565_vm9, %v5530_v46, 0.0  ;;  %vm16567_vm13 = vmmov %vm16557_vm2  ;;  %v5527_v5 = vmul.f32 %v10237_v6, %v10237_v6  ;;  %v5511_v6 = vmul.f32 %v10238_v32, %v10238_v32  ;;  %v16590_v51 = vld [vmem:[#allocation71_spill] sm:$0xff] }
 0x36c   : > { %16566 = vst [vmem:[#allocation49_spill] sm:$0xff] %v14570_v56  ;;  %v14573_v0 = vsel %vm16567_vm13, %v5514_v26, 0.0  ;;  %vm16569_vm11 = vmmov %vm16557_vm2  ;;  %v5512_v26 = vmul.f32 %v10235_v25, %v10235_v25  ;;  %v6326_v16 = vadd.f32 %v14463_v52, %v6324_v28  ;;  %v14601_v25 = vsel %vm16563_vm6, %v5528_v17, 0.0  ;;  %v10239_v17 = vld [vmem:[%s10592_s16 + $0xa90] sm:$0xff] }
 0x36d   : > { %v14583_v46 = vsel %vm16569_vm11, %v5497_v47, 0.0  ;;  %vm16571_vm14 = vmmov %vm16557_vm2  ;;  %16575 = vst [vmem:[#allocation98_spill] sm:$0xff] %v14601_v25  ;;  %v4461_v52 = vsel %vm4397_vm10, %v12824_v40, 10  ;;  %v5494_v8 = vmul.f32 %v10239_v17, %v10239_v17  ;;  %v16580_v56 = vld [vmem:[#allocation89_spill] sm:$0xff]  ;;  %vm16583_vm11 = vcmask 1041408  }
 0x36e   : > { %v14590_v24 = vsel %vm16571_vm14, %v5529_v1, 0.0  ;;  %vm16573_vm8 = vmmov %vm16557_vm2  ;;  %vm4670_vm2 = vcmp.lt.s32.totalorder %v4668_v27, %v4669_v61  ;;  %v16576_v1 = vld [vmem:[#allocation74_spill] sm:$0xff]  ;;  %v4702_v62 = vsel %vm16583_vm11, %v4461_v52, 2147483647  ;;  %v10244_v52 = vld [vmem:[%s10592_s16 + $0xb88] sm:$0xff] }
 0x36f   : > { %16572 = vst [vmem:[#allocation101_spill] sm:$0xff] %v14590_v24  ;;  %v14593_v34 = vsel %vm16573_vm8, %v5513_v36, 0.0  ;;  %vm16574_vm12 = vmmov %vm16559_vm3  ;;  %vm4679_vm3 = vcmp.lt.s32.totalorder %v4427_v12, %v4678_v55  ;;  %v6328_v15 = vadd.f32 %v16576_v1, %v6326_v16  ;;  %v16577_v36 = vld [vmem:[#allocation22_spill] sm:$0xff]  ;;  %v4671_v18 = vsel %vm4670_vm2, %v4668_v27, %v4669_v61 }
 0x370   : > { %v14597_v47 = vsel %vm16574_vm12, %v5496_v29, 0.0  ;;  %vm4365_vm0 = vcmp.eq.f32.partialorder %v16577_v36, %v14565_v54  ;;  %vm16578_vm9 = vmmov %vm16563_vm6  ;;  %v4680_v1 = vsel %vm4679_vm3, %v4427_v12, %v4678_v55  ;;  %v4695_v36 = vsel %vm4694_vm5, %v4692_v35, %v4693_v14  ;;  %v10241_v27 = vld [vmem:[%s10592_s16 + $0xb90] sm:$0xff]  ;;  %v10243_v14 = vld [vmem:[%s10592_s16 + $0xa88] sm:$0xff] }
 0x371   : > { %v14608_v28 = vsel %vm16578_vm9, %v5512_v26, 0.0  ;;  %vm16579_vm13 = vmmov %vm16563_vm6  ;;  %v6330_v16 = vadd.f32 %v16580_v56, %v6328_v15  ;;  %v10240_v26 = vld [vmem:[%s10592_s16 + $0xa80] sm:$0xff]  ;;  %v5526_v61 = vmul.f32 %v10241_v27, %v10241_v27  ;;  %v10242_v17 = vld [vmem:[%s10592_s16 + $0xb10] sm:$0xff]  ;;  %v4672_v56 = vrot.slane %v4671_v18, 2 }
 0x372   : > { %v14611_v29 = vsel %vm16579_vm13, %v5495_v45, 0.0  ;;  %vm16581_vm7 = vmmov %vm16563_vm6  ;;  %v5492_v25 = vmul.f32 %v10240_v26, %v10240_v26  ;;  %v4429_v45 = vsel %vm4365_vm0, %v12783_v3, 10  ;;  %v5510_v2 = vmul.f32 %v10242_v17, %v10242_v17  ;;  %v16587_v26 = vld [vmem:[#allocation59_spill] sm:$0xff] }
 0x373   : > { %v14617_v24 = vsel %vm16581_vm7, %v5527_v5, 0.0  ;;  %v6332_v32 = vadd.f32 %v16584_v7, %v6330_v16  ;;  %vm16585_vm10 = vmmov %vm16563_vm6  ;;  %v5493_v12 = vmul.f32 %v10243_v14, %v10243_v14  ;;  %v4681_v55 = vrot.slane %v4680_v1, 4  ;;  %v10245_v7 = vld [vmem:[%s10592_s16 + $0xb08] sm:$0xff] }
 0x374   : > { %16582 = vst [vmem:[#allocation95_spill] sm:$0xff] %v14617_v24  ;;  %v14626_v35 = vsel %vm16585_vm10, %v5511_v6, 0.0  ;;  %v4696_v5 = vrot.slane %v4695_v36, 2  ;;  %vm16586_vm14 = vmmov %vm16563_vm6  ;;  %v5525_v11 = vmul.f32 %v10244_v52, %v10244_v52  ;;  %vm4703_vm8 = vcmp.lt.s32.totalorder %v4429_v45, %v4702_v62  ;;  %v16589_v6 = vld [vmem:[#allocation34_spill] sm:$0xff] }
 0x375   : > { %v6343_v15 = vsel %vm16586_vm14, %v5494_v8, 0.0  ;;  %v6334_v24 = vadd.f32 %v16587_v26, %v6332_v32  ;;  %v5509_v16 = vmul.f32 %v10245_v7, %v10245_v7  ;;  %vm16588_vm2 = vmmov %vm16563_vm6  ;;  %v4907_v17 = vcombine.low %v14331_v49, %v14362_v50  ;;  %v16594_v50 = vld [vmem:[#allocation39_spill] sm:$0xff] }
 0x376   : > { %v6339_v27 = vsel %vm16588_vm2, %v5492_v25, 0.0  ;;  %v6713_v14 = vsel %vm5135_vm1, %v16589_v6, 0.0  ;;  %vm16591_vm12 = vmmov %vm16588_vm2  ;;  %vm4673_vm5 = vcmp.lt.s32.totalorder %v4671_v18, %v4672_v56  ;;  %vm4682_vm0 = vcmp.lt.s32.totalorder %v4680_v1, %v4681_v55 }
 0x377   : > { %v6336_v41 = vadd.f32 %v16590_v51, %v6334_v24  ;;  %v14641_v8 = vsel %vm16591_vm12, %v5526_v61, 0.0  ;;  %vm16592_vm3 = vmmov %vm16588_vm2  ;;  %vm4697_vm9 = vcmp.lt.s32.totalorder %v4695_v36, %v4696_v5  ;;  %v14647_v49 = vsel %vm4703_vm8, %v4429_v45, %v4702_v62  ;;  %v16596_v24 = vld [vmem:[#allocation17_spill] sm:$0xff] }
 0x378   : > { %v14644_v32 = vsel %vm16592_vm3, %v5510_v2, 0.0  ;;  %vm16593_vm6 = vmmov %vm16588_vm2  ;;  %v6756_v51 = vsel %vm6734_vm4, %v6713_v14, 0.0  ;;  %v911_v2 = vrot.slane %v14172_v37, %v16596_v24  ;;  %v4917_v7 = vrot.slane %v4907_v17, %v14039_v39  ;;  %v10246_v14 = vld [vmem:[%s10592_s16 + $0xb80] sm:$0xff] }
 0x379   : > { %v6341_v26 = vsel %vm16593_vm6, %v5493_v12, 0.0  ;;  %v6338_v25 = vadd.f32 %v16594_v50, %v6336_v41  ;;  %vm16595_vm13 = vmmov %vm16588_vm2  ;;  %v14659_v12 = vsel %vm4673_vm5, %v4671_v18, %v4672_v56  ;;  %v4908_v62 = vcombine.low %v14393_v38, %v14435_v33  ;;  %v10247_v37 = vld [vmem:[%s10592_s16 + $0xb00] sm:$0xff] }
 0x37a   : > { %v14651_v52 = vsel %vm16595_vm13, %v5525_v11, 0.0  ;;  %vm16597_vm7 = vmmov %vm16588_vm2  ;;  %v14664_v41 = vsel %vm4682_vm0, %v4680_v1, %v4681_v55  ;;  %v14666_v11 = vsel %vm4697_vm9, %v4695_v36, %v4696_v5  ;;  %v4705_v6 = vrot.slane %v14647_v49, 4  ;;  %v14700_v55 = vld [vmem:[%s10597_s27 + $0x10] sm:$0xff] }
 0x37b   : > { %v14657_v61 = vsel %vm16597_vm7, %v5509_v16, 0.0  ;;  %v6340_v45 = vadd.f32 %v6339_v27, %v6338_v25  ;;  %v14670_v50 = vmul.f32 %v10246_v14, %v10246_v14  ;;  %v14673_v16 = vmul.f32 %v10247_v37, %v10247_v37  ;;  %v16602_v14 = vld [vmem:[#allocation16_spill] sm:$0xff] }
 0x37c   : > { %v4924_v18 = vrot.slane %v4908_v62, %v14039_v39  ;;  %v6757_v56 = vadd.f32 %v6756_v51, %v14437_v48  ;;  %vm1026_vm11 = vcmp.eq.s32.totalorder %v12824_v40, %v911_v2  ;;  %vm993_vm10 = vcmp.eq.s32.totalorder %v12783_v3, %v14354_v23  ;;  %v16598_v48 = vld [vmem:[#allocation20_spill] sm:$0xff] }
 0x37d   : > { %v6342_v17 = vadd.f32 %v6341_v26, %v6340_v45  ;;  %vm6855_vm14 = vcmp.eq.s32.totalorder %v12824_v40, %v14435_v33  ;;  %9246 = vmatpush1.xpose.msk.msra.mxu1 %vm1026_vm11, %v16385_v63  ;;  %9239 = vmatprep.subr.msk.mxu0 %vm993_vm10, %v16385_v63  ;;  %vm992_vm2 = vcmp.eq.s32.totalorder %v12783_v3, %v14389_v60  ;;  %v4627_v23 = vrot.slane %v16598_v48, 1  ;;  %v16601_v62 = vld [vmem:[#allocation36_spill] sm:$0xff] }
 0x37e   : > { %v4939_v1 = vcombine.low %v4917_v7, %v4924_v18  ;;  %vm6983_vm8 = vmand %vm6855_vm14, %vm5135_vm1  ;;  %vm6854_vm12 = vcmp.eq.s32.totalorder %v12824_v40, %v14393_v38  ;;  %9240 = vmatpush1.xpose.msk.msra.mxu0 %vm992_vm2, %v16385_v63  ;;  %vm995_vm5 = vcmp.eq.s32.totalorder %v12783_v3, %v14408_v20  ;;  %v4636_v33 = vrot.slane %v16599_v19, 2 }
 0x37f   : > { %v6344_v36 = vadd.f32 %v6343_v15, %v6342_v17  ;;  %9235 = vmatprep.mubr.msk.f32.mxu1 %vm6983_vm8, %v16385_v63  ;;  %vm6982_vm3 = vmand %vm6854_vm12, %vm5134_vm15  ;;  %v5071_v60 = vadd.s32 1536, %v13967_v22  ;;  %9247 = vmatprep.subr.msk.mxu1 %vm995_vm5, %v16385_v63  ;;  %vm4628_vm1 = vcmp.lt.s32.totalorder %v16598_v48, %v4627_v23  ;;  %vm994_vm15 = vcmp.eq.s32.totalorder %v12783_v3, %v911_v2  ;;  %v16600_v2 = vld [vmem:[#allocation12_spill] sm:$0xff] }
 0x380   : > { %v14703_v38 = vrot.slane %v4939_v1, %v14039_v39  ;;  %9236 = vmatmul.mubr.msk.f32.gmra.mxu1 %vm6982_vm3, %v16385_v63  ;;  %v14712_v5 = vsel %vm4628_vm1, %v16598_v48, %v4627_v23  ;;  %vm4637_vm6 = vcmp.lt.s32.totalorder %v16599_v19, %v4636_v33  ;;  %v5105_v26 = vadd.s32 %v13969_v10, %v5072_v21  ;;  %v16603_v17 = vld [vmem:[#allocation32_spill] sm:$0xff] }
 0x381   : > { %v6346_v20 = vadd.f32 %v14611_v29, %v6344_v36  ;;  %v14716_v15 = vadd.s32 %v13969_v10, %v5071_v60  ;;  %v4638_v27 = vsel %vm4637_vm6, %v16599_v19, %v4636_v33  ;;  %9248 = vmatpush1.xpose.msk.msra.mxu1 %vm994_vm15, %v16385_v63  ;;  %vm6824_vm0 = vcmp.eq.s32.totalorder %v12783_v3, %v14712_v5 }
 0x382   : > { %v14725_v29 = vrot.slane %v14700_v55, %v16505_v57  ;;  %v4639_v51 = vrot.slane %v4638_v27, 1  ;;  %v4651_v7 = vrot.slane %v16600_v2, 1  ;;  %vm5137_vm13 = vcmp.lt.s32.totalorder %v5105_v26, 10000 }
 0x383   : > { %v6348_v25 = vadd.f32 %v14597_v47, %v6346_v20  ;;  %vm5136_vm9 = vcmp.lt.s32.totalorder %v14716_v15, 10000  ;;  %v4660_v37 = vrot.slane %v16602_v14, 2  ;;  %v6715_v47 = vsel %vm5137_vm13, %v16603_v17, 0.0  ;;  %v16605_v17 = vld [vmem:[#allocation30_spill] sm:$0xff] }
 0x384   : > { %v6714_v45 = vsel %vm5136_vm9, %v16601_v62, 0.0  ;;  %vm1029_vm7 = vcmp.eq.s32.totalorder %v12824_v40, %v14725_v29  ;;  %vm4640_vm11 = vcmp.lt.s32.totalorder %v4638_v27, %v4639_v51  ;;  %v6760_v36 = vsel %vm6734_vm4, %v6715_v47, 0.0  ;;  %vm6952_vm8 = vmand %vm6824_vm0, %vm5136_vm9 }
 0x385   : > { %v6350_v18 = vadd.f32 %v14583_v46, %v6348_v25  ;;  %v6758_v1 = vsel %vm6734_vm4, %v6714_v45, 0.0  ;;  %9253 = vmatprep.subr.msk.mxu0 %vm1029_vm7, %v16385_v63  ;;  %v4641_v48 = vsel %vm4640_vm11, %v4638_v27, %v4639_v51  ;;  %vm4652_vm10 = vcmp.lt.s32.totalorder %v16600_v2, %v4651_v7 }
 0x386   : > { %v6759_v23 = vadd.f32 %v6758_v1, %v6757_v56  ;;  %v4909_v33 = vcombine.low %v14712_v5, %v4641_v48  ;;  %vm6825_vm14 = vcmp.eq.s32.totalorder %v12783_v3, %v4641_v48  ;;  %v14752_v46 = vsel %vm4652_vm10, %v16600_v2, %v4651_v7 }
 0x387   : > { %v6352_v19 = vadd.f32 %v14559_v42, %v6350_v18  ;;  %vm6953_vm2 = vmand %vm6825_vm14, %vm5137_vm13  ;;  %vm4661_vm12 = vcmp.lt.s32.totalorder %v16602_v14, %v4660_v37  ;;  %v5073_v42 = vadd.s32 1792, %v13967_v22  ;;  %v5074_v60 = vadd.s32 1920, %v13967_v22 }
 0x388   : > { %v6761_v56 = vadd.f32 %v6760_v36, %v6759_v23  ;;  %v14760_v20 = vrot.slane %v4909_v33, %v14039_v39  ;;  %9241 = vmatprep.mubr.msk.f32.mxu0 %vm6953_vm2, %v16385_v63  ;;  %v4662_v27 = vsel %vm4661_vm12, %v16602_v14, %v4660_v37  ;;  %v919_v25 = vrot.slane %v14700_v55, %v16507_v31  ;;  %v16604_v37 = vld [vmem:[#allocation33_spill] sm:$0xff]  ;;  %v16608_v23 = vld [vmem:[#allocation40_spill] sm:$0xff] }
 0x389   : > { %v6354_v21 = vadd.f32 %v14543_v53, %v6352_v19  ;;  %9242 = vmatmul.mubr.msk.f32.vlgmr.msra.gmra.mxu0 %vm6952_vm8, %v16385_v63  ;;  %v4663_v51 = vrot.slane %v4662_v27, 1  ;;  %v5106_v2 = vadd.s32 %v13969_v10, %v5073_v42  ;;  %v5107_v7 = vadd.s32 %v13969_v10, %v5074_v60  ;;  %v16609_v42 = vld [vmem:[#allocation93_spill] sm:$0xff] }
 0x38a   : > { %vm6826_vm3 = vcmp.eq.s32.totalorder %v12783_v3, %v14752_v46  ;;  %vm1028_vm5 = vcmp.eq.s32.totalorder %v12824_v40, %v919_v25  ;;  %v931_v62 = vrot.slane %v14700_v55, %v16511_v4  ;;  %vm6857_vm1 = vcmp.eq.s32.totalorder %v12824_v40, %v4641_v48 }
 0x38b   : > { %v6356_v53 = vadd.f32 %v14528_v43, %v6354_v21  ;;  %vm4664_vm15 = vcmp.lt.s32.totalorder %v4662_v27, %v4663_v51  ;;  %vm5138_vm6 = vcmp.lt.s32.totalorder %v5106_v2, 10000  ;;  %vm5139_vm0 = vcmp.lt.s32.totalorder %v5107_v7, 10000  ;;  %9254 = vmatpush1.xpose.msk.msra.mxu0 %vm1028_vm5, %v16385_v63  ;;  %vm6985_vm7 = vmand %vm6857_vm1, %vm5137_vm13 }
 0x38c   : > { %v927_v45 = vrot.slane %v14700_v55, %v16517_v30  ;;  %v4665_v43 = vsel %vm4664_vm15, %v4662_v27, %v4663_v51  ;;  %v6716_v18 = vsel %vm5138_vm6, %v16604_v37, 0.0  ;;  %v6717_v47 = vsel %vm5139_vm0, %v16605_v17, 0.0  ;;  %9243 = vmatprep.mubr.msk.f32.mxu0 %vm6985_vm7, %v16385_v63  ;;  %vm6954_vm10 = vmand %vm6826_vm3, %vm5138_vm6 }
 0x38d   : > { %v6358_v14 = vadd.f32 %v14459_v58, %v6356_v53  ;;  %vm14789_vm11 = vcmp.lt.s32.totalorder %v14647_v49, %v4705_v6  ;;  %v4910_v1 = vcombine.low %v14752_v46, %v4665_v43  ;;  %v6762_v58 = vsel %vm6734_vm4, %v6716_v18, 0.0  ;;  %v16611_v53 = vld [vmem:[#allocation63_spill] sm:$0xff] }
 0x38e   : > { %v6764_v48 = vsel %vm6734_vm4, %v6717_v47, 0.0  ;;  %vm6827_vm13 = vcmp.eq.s32.totalorder %v12783_v3, %v4665_v43  ;;  %v6763_v19 = vadd.f32 %v6762_v58, %v6761_v56  ;;  %vm1031_vm8 = vcmp.eq.s32.totalorder %v12824_v40, %v931_v62  ;;  %v16612_v18 = vld [vmem:[#allocation47_spill] sm:$0xff] }
 0x38f   : > { %v6360_v36 = vadd.f32 %v16608_v23, %v6358_v14  ;;  %vm6955_vm14 = vmand %vm6827_vm13, %vm5139_vm0  ;;  %vm1030_vm2 = vcmp.eq.s32.totalorder %v12824_v40, %v927_v45  ;;  %v4938_v33 = vrot.slane %v4910_v1, %v14039_v39  ;;  %9261 = vmatprep.subr.msk.mxu1 %vm1031_vm8, %v16385_v63  ;;  %vm6856_vm12 = vcmp.eq.s32.totalorder %v12824_v40, %v14712_v5  ;;  %v3630_v1 = vpop.f32.mrf.mxu1 }
 0x390   : > { %9249 = vmatprep.mubr.msk.f32.mxu1 %vm6955_vm14, %v16385_v63  ;;  %vm997_vm3 = vcmp.eq.s32.totalorder %v12783_v3, %v14725_v29  ;;  %v4675_v56 = vrot.slane %v14659_v12, 1  ;;  %v6765_v21 = vadd.f32 %v6764_v48, %v6763_v19  ;;  %vm6984_vm5 = vmand %vm6856_vm12, %vm5136_vm9  ;;  %vm6859_vm1 = vcmp.eq.s32.totalorder %v12824_v40, %v4665_v43  ;;  %v16610_v29 = vld [vmem:[#allocation29_spill] sm:$0xff]  ;;  %v3553_v43 = vpop.f32.mrf.mxu0  ;;  %v16614_v48 = vld [vmem:[#allocation14_spill] sm:$0xff] }
 0x391   : > { %v6362_v60 = vadd.f32 %v16609_v42, %v6360_v36  ;;  %9250 = vmatmul.mubr.msk.f32.vlgmr.msra.gmra.mxu1 %vm6954_vm10, %v16385_v63  ;;  %9255 = vmatprep.subr.msk.mxu0 %vm997_vm3, %v16385_v63  ;;  %v4684_v27 = vrot.slane %v14664_v41, 2  ;;  %v4940_v5 = vcombine.low %v14760_v20, %v4938_v33  ;;  %vm6987_vm15 = vmand %vm6859_vm1, %vm5139_vm0  ;;  %vm996_vm7 = vcmp.eq.s32.totalorder %v12783_v3, %v919_v25  ;;  %v3632_v42 = vpop.f32.mrf.mxu1 }
 0x392   : > { %9262 = vmatpush1.xpose.msk.msra.mxu1 %vm1030_vm2, %v16385_v63  ;;  %9244 = vmatmul.mubr.msk.f32.gmra.mxu0 %vm6984_vm5, %v16385_v63  ;;  %vm6858_vm13 = vcmp.eq.s32.totalorder %v12824_v40, %v14752_v46  ;;  %v5075_v15 = vadd.s32 2048, %v13967_v22  ;;  %vm999_vm10 = vcmp.eq.s32.totalorder %v12783_v3, %v931_v62  ;;  %vm4676_vm14 = vcmp.lt.s32.totalorder %v14659_v12, %v4675_v56 }
 0x393   : > { %v6364_v51 = vadd.f32 %v16610_v29, %v6362_v60  ;;  %9251 = vmatprep.mubr.msk.f32.mxu1 %vm6987_vm15, %v16385_v63  ;;  %9256 = vmatpush1.xpose.msk.msra.mxu0 %vm996_vm7, %v16385_v63  ;;  %vm6986_vm9 = vmand %vm6858_vm13, %vm5138_vm6  ;;  %v5076_v20 = vadd.s32 2176, %v13967_v22  ;;  %v4954_v25 = vrot.slane %v4940_v5, %v14039_v39  ;;  %v14838_v46 = vsel %vm4676_vm14, %v14659_v12, %v4675_v56 }
 0x394   : > { %9263 = vmatprep.subr.msk.mxu1 %vm999_vm10, %v16385_v63  ;;  %vm4685_vm0 = vcmp.lt.s32.totalorder %v14664_v41, %v4684_v27  ;;  %v5108_v7 = vadd.s32 %v13969_v10, %v5075_v15  ;;  %vm998_vm6 = vcmp.eq.s32.totalorder %v12783_v3, %v927_v45  ;;  %vm6828_vm2 = vcmp.eq.s32.totalorder %v12783_v3, %v14838_v46 }
 0x395   : > { %v6366_v2 = vadd.f32 %v16611_v53, %v6364_v51  ;;  %9252 = vmatmul.mubr.msk.f32.gmra.mxu1 %vm6986_vm9, %v16385_v63  ;;  %v4686_v62 = vsel %vm4685_vm0, %v14664_v41, %v4684_v27  ;;  %v5109_v14 = vadd.s32 %v13969_v10, %v5076_v20  ;;  %v4955_v37 = vcombine.low %v14703_v38, %v4954_v25 }
 0x396   : > { %v4687_v12 = vrot.slane %v4686_v62, 1  ;;  %vm5140_vm8 = vcmp.lt.s32.totalorder %v5108_v7, 10000  ;;  %9264 = vmatpush1.xpose.msk.msra.mxu1 %vm998_vm6, %v16385_v63  ;;  %v4699_v47 = vrot.slane %v14666_v11, 1  ;;  %vm16613_vm3 = vcmask 261120  }
 0x397   : > { %v6368_v17 = vadd.f32 %v16612_v18, %v6366_v2  ;;  %vm5141_vm12 = vcmp.lt.s32.totalorder %v5109_v14, 10000  ;;  %v6718_v41 = vsel %vm5140_vm8, %v13850_v44, 0.0  ;;  %v6371_v45 = vsel %vm16613_vm3, %v14673_v16, 0.0  ;;  %5055 = vst [vmem:[%s10599_s30 + $0x8] sm:$0xff] %v4955_v37  ;;  %v3555_v16 = vpop.f32.mrf.mxu0  ;;  %vm16615_vm1 = vmmov %vm16613_vm3  ;;  %v3636_v2 = vpop.f32.mrf.mxu1  ;;  %v16616_v37 = vld [vmem:[#allocation35_spill] sm:$0xff] }
 0x398   : > { %vm4688_vm5 = vcmp.lt.s32.totalorder %v4686_v62, %v4687_v12  ;;  %v6719_v38 = vsel %vm5141_vm12, %v14520_v9, 0.0  ;;  %v6766_v58 = vsel %vm6734_vm4, %v6718_v41, 0.0  ;;  %v4707_v44 = vsel %vm14789_vm11, %v14647_v49, %v4705_v6  ;;  %vm6956_vm7 = vmand %vm6828_vm2, %vm5140_vm8  ;;  %v10248_v6 = vld [vmem:[%s10592_s16 + $0xcf8] sm:$0xff] }
 0x399   : > { %v6370_v23 = vadd.f32 %v16614_v48, %v6368_v17  ;;  %v14867_v36 = vsel %vm4688_vm5, %v4686_v62, %v4687_v12  ;;  %v6767_v19 = vadd.f32 %v6766_v58, %v6765_v21  ;;  %v14871_v33 = vsel %vm16615_vm1, %v14670_v50, 0.0 }
 0x39a   : > { %v6768_v9 = vsel %vm6734_vm4, %v6719_v38, 0.0  ;;  %vm6829_vm15 = vcmp.eq.s32.totalorder %v12783_v3, %v14867_v36  ;;  %vm4700_vm11 = vcmp.lt.s32.totalorder %v14666_v11, %v4699_v47  ;;  %v14882_v26 = vmul.f32 %v10248_v6, %v10248_v6 }
 0x39b   : > { %v6372_v49 = vadd.f32 %v6371_v45, %v6370_v23  ;;  %v6769_v56 = vadd.f32 %v6768_v9, %v6767_v19  ;;  %vm6957_vm13 = vmand %vm6829_vm15, %vm5141_vm12  ;;  %v14886_v50 = vsel %vm4700_vm11, %v14666_v11, %v4699_v47  ;;  %v4708_v60 = vrot.slane %v4707_v44, 2  ;;  %v3559_v11 = vpop.f32.mrf.mxu0  ;;  %v3638_v45 = vpop.f32.mrf.mxu1 }
 0x39c   : > { %9257 = vmatprep.mubr.msk.f32.mxu0 %vm6957_vm13, %v16385_v63  ;;  %v5077_v21 = vadd.s32 2304, %v13967_v22  ;;  %v5078_v27 = vadd.s32 2432, %v13967_v22  ;;  %vm6830_vm9 = vcmp.eq.s32.totalorder %v12783_v3, %v14886_v50  ;;  %vm6861_vm10 = vcmp.eq.s32.totalorder %v12824_v40, %v14867_v36 }
 0x39d   : > { %v6374_v5 = vadd.f32 %v14657_v61, %v6372_v49  ;;  %9258 = vmatmul.mubr.msk.f32.vlgmr.msra.gmra.mxu0 %vm6956_vm7, %v16385_v63  ;;  %vm6860_vm14 = vcmp.eq.s32.totalorder %v12824_v40, %v14838_v46  ;;  %vm6862_vm0 = vcmp.eq.s32.totalorder %v12824_v40, %v14886_v50  ;;  %vm4709_vm6 = vcmp.lt.s32.totalorder %v4707_v44, %v4708_v60  ;;  %vm6989_vm2 = vmand %vm6861_vm10, %vm5141_vm12  ;;  %v3561_v18 = vpop.f32.mrf.mxu0 }
 0x39e   : > { %v5110_v15 = vadd.s32 %v13969_v10, %v5077_v21  ;;  %v5111_v29 = vadd.s32 %v13969_v10, %v5078_v27  ;;  %v3971_v61 = vmul.f32 2.0, %v3553_v43  ;;  %v4710_v20 = vsel %vm4709_vm6, %v4707_v44, %v4708_v60  ;;  %9259 = vmatprep.mubr.msk.f32.mxu0 %vm6989_vm2, %v16385_v63  ;;  %vm6988_vm3 = vmand %vm6860_vm14, %vm5140_vm8  ;;  %v16619_v44 = vld [vmem:[#allocation31_spill] sm:$0xff]  ;;  %v16621_v21 = vld [vmem:[#allocation66_spill] sm:$0xff] }
 0x39f   : > { %v6376_v51 = vadd.f32 %v14644_v32, %v6374_v5  ;;  %v3972_v25 = vmul.f32 2.0, %v3555_v16  ;;  %v3973_v53 = vmul.f32 2.0, %v3630_v1  ;;  %v4711_v62 = vrot.slane %v4710_v20, 1 }
 0x3a0   : > { %vm5142_vm5 = vcmp.lt.s32.totalorder %v5110_v15, 10000  ;;  %vm5143_vm1 = vcmp.lt.s32.totalorder %v5111_v29, 10000  ;;  %v14908_v12 = vsub.f32 %v16616_v37, %v3971_v61  ;;  %v4004_v58 = vmul.f32 2.0, %v3561_v18  ;;  %v16625_v61 = vld [vmem:[#allocation48_spill] sm:$0xff] }
 0x3a1   : > { %v6378_v14 = vadd.f32 %v14626_v35, %v6376_v51  ;;  %v6720_v43 = vsel %vm5142_vm5, %v14433_v13, 0.0  ;;  %v6721_v32 = vsel %vm5143_vm1, %v14565_v54, 0.0  ;;  %9260 = vmatmul.mubr.msk.f32.gmra.mxu0 %vm6988_vm3, %v16385_v63  ;;  %v14917_v7 = vsub.f32 %v16616_v37, %v3972_v25  ;;  %vm14933_vm15 = vmand %vm6830_vm9, %vm5142_vm5 }
 0x3a2   : > { %vm4712_vm8 = vcmp.lt.s32.totalorder %v4710_v20, %v4711_v62  ;;  %v6770_v17 = vsel %vm6734_vm4, %v6720_v43, 0.0  ;;  %v6772_v41 = vsel %vm6734_vm4, %v6721_v32, 0.0  ;;  %v14922_v47 = vsub.f32 %v16616_v37, %v3973_v53  ;;  %vm14972_vm10 = vmand %vm6862_vm0, %vm5142_vm5  ;;  %v16629_v43 = vld [vmem:[#allocation45_spill] sm:$0xff] }
 0x3a3   : > { %v6380_v35 = vadd.f32 %v14608_v28, %v6378_v14  ;;  %v14925_v13 = vsel %vm4712_vm8, %v4710_v20, %v4711_v62  ;;  %v6771_v1 = vadd.f32 %v6770_v17, %v6769_v56  ;;  %v4003_v54 = vmul.f32 2.0, %v3559_v11  ;;  %v16628_v62 = vld [vmem:[#allocation62_spill] sm:$0xff] }
 0x3a4   : > { %vm6831_vm12 = vcmp.eq.s32.totalorder %v12783_v3, %v14925_v13  ;;  %vm6863_vm7 = vcmp.eq.s32.totalorder %v12824_v40, %v14925_v13  ;;  %v3974_v28 = vmul.f32 2.0, %v3632_v42  ;;  %v4005_v16 = vmul.f32 2.0, %v3636_v2 }
 0x3a5   : > { %v6382_v48 = vadd.f32 %v14593_v34, %v6380_v35  ;;  %v14940_v23 = vadd.f32 %v6772_v41, %v6771_v1  ;;  %vm6959_vm11 = vmand %vm6831_vm12, %vm5143_vm1  ;;  %v14944_v19 = vsub.f32 %v16619_v44, %v4003_v54  ;;  %v14952_v49 = vsub.f32 %v16619_v44, %v4004_v58  ;;  %v16630_v54 = vld [vmem:[#allocation54_spill] sm:$0xff] }
 0x3a6   : > { %9265 = vmatprep.mubr.msk.f32.mxu1 %vm6959_vm11, %v16385_v63  ;;  %vm6991_vm13 = vmand %vm6863_vm7, %vm5143_vm1  ;;  %v14949_v9 = vsub.f32 %v16616_v37, %v3974_v28  ;;  %v4006_v6 = vmul.f32 2.0, %v3638_v45  ;;  %v939_v34 = vrot.slane %v14700_v55, %v13984_v59  ;;  %vm16620_vm9 = vcmask 1041408  }
 0x3a7   : > { %v6384_v56 = vadd.f32 %v14573_v0, %v6382_v48  ;;  %9266 = vmatmul.mubr.msk.f32.vlgmr.msra.gmra.mxu1 %vm14933_vm15, %v16385_v63  ;;  %v4250_v42 = vsel %vm16620_vm9, %v14944_v19, inf  ;;  %v14963_v60 = vsub.f32 %v16619_v44, %v4005_v16  ;;  %v935_v27 = vrot.slane %v14700_v55, %v16621_v21  ;;  %vm16624_vm14 = vmmov %vm16620_vm9 }
 0x3a8   : > { %9267 = vmatprep.mubr.msk.f32.mxu1 %vm6991_vm13, %v16385_v63  ;;  %v4251_v5 = vmin.f32 %v14908_v12, %v4250_v42  ;;  %v4258_v11 = vsel %vm16624_vm14, %v14952_v49, inf  ;;  %v14980_v29 = vsub.f32 %v16619_v44, %v4006_v6  ;;  %vm1033_vm6 = vcmp.eq.s32.totalorder %v12824_v40, %v939_v34  ;;  %vm16626_vm2 = vmmov %vm16620_vm9 }
 0x3a9   : > { %v6386_v51 = vadd.f32 %v16625_v61, %v6384_v56  ;;  %v4259_v15 = vmin.f32 %v14917_v7, %v4258_v11  ;;  %v4266_v20 = vsel %vm16626_vm2, %v14963_v60, inf  ;;  %9269 = vmatprep.subr.msk.mxu0 %vm1033_vm6, %v16385_v63  ;;  %vm1032_vm0 = vcmp.eq.s32.totalorder %v12824_v40, %v935_v27  ;;  %vm16627_vm3 = vmmov %vm16626_vm2  ;;  %v16632_v11 = vld [vmem:[#allocation82_spill] sm:$0xff] }
 0x3aa   : > { %v4252_v25 = vrot.slane %v4251_v5, 4  ;;  %v4267_v53 = vmin.f32 %v14922_v47, %v4266_v20  ;;  %v4274_v2 = vsel %vm16627_vm3, %v14980_v29, inf  ;;  %9270 = vmatpush1.xpose.msk.msra.mxu0 %vm1032_vm0, %v16385_v63  ;;  %v947_v14 = vrot.slane %v14700_v55, %v16628_v62  ;;  %vm16636_vm6 = vmmov %vm16626_vm2 }
 0x3ab   : > { %v6388_v32 = vadd.f32 %v16629_v43, %v6386_v51  ;;  %9268 = vmatmul.mubr.msk.f32.gmra.mxu1 %vm14972_vm10, %v16385_v63  ;;  %v4260_v18 = vrot.slane %v4259_v15, 4  ;;  %v4275_v17 = vmin.f32 %v14949_v9, %v4274_v2  ;;  %v943_v41 = vrot.slane %v14700_v55, %v16596_v24  ;;  %v16631_v55 = vld [vmem:[#allocation58_spill] sm:$0xff] }
 0x3ac   : > { %v4253_v35 = vmin.f32 %v4251_v5, %v4252_v25  ;;  %v4268_v1 = vrot.slane %v4267_v53, 4  ;;  %vm1035_vm5 = vcmp.eq.s32.totalorder %v12824_v40, %v947_v14  ;;  %vm1001_vm1 = vcmp.eq.s32.totalorder %v12783_v3, %v939_v34 }
 0x3ad   : > { %v6390_v45 = vadd.f32 %v16630_v54, %v6388_v32  ;;  %v4261_v38 = vmin.f32 %v4259_v15, %v4260_v18  ;;  %v4276_v28 = vrot.slane %v4275_v17, 4  ;;  %9277 = vmatprep.subr.msk.mxu1 %vm1035_vm5, %v16385_v63  ;;  %vm1034_vm8 = vcmp.eq.s32.totalorder %v12824_v40, %v943_v41  ;;  %9271 = vmatprep.subr.msk.mxu0 %vm1001_vm1, %v16385_v63  ;;  %vm16638_vm1 = vmmov %vm16636_vm6 }
 0x3ae   : > { %v4254_v58 = vrot.slane %v4253_v35, 2  ;;  %v4269_v48 = vmin.f32 %v4267_v53, %v4268_v1  ;;  %9278 = vmatpush1.xpose.msk.msra.mxu1 %vm1034_vm8, %v16385_v63  ;;  %vm1000_vm12 = vcmp.eq.s32.totalorder %v12783_v3, %v935_v27  ;;  %vm1003_vm15 = vcmp.eq.s32.totalorder %v12783_v3, %v947_v14  ;;  %v16633_v14 = vld [vmem:[#allocation96_spill] sm:$0xff]  ;;  %v16634_v1 = vld [vmem:[#allocation51_spill] sm:$0xff] }
 0x3af   : > { %v6392_v16 = vadd.f32 %v16631_v55, %v6390_v45  ;;  %v4262_v6 = vrot.slane %v4261_v38, 2  ;;  %v4277_v34 = vmin.f32 %v4275_v17, %v4276_v28  ;;  %9272 = vmatpush1.xpose.msk.msra.mxu0 %vm1000_vm12, %v16385_v63  ;;  %9279 = vmatprep.subr.msk.mxu1 %vm1003_vm15, %v16385_v63  ;;  %v5079_v56 = vadd.s32 2560, %v13967_v22  ;;  %v16635_v55 = vld [vmem:[#allocation43_spill] sm:$0xff]  ;;  %vm16639_vm12 = vmmov %vm16638_vm1 }
 0x3b0   : > { %v4255_v42 = vmin.f32 %v4253_v35, %v4254_v58  ;;  %v4270_v0 = vrot.slane %v4269_v48, 2  ;;  %v5080_v5 = vadd.s32 2688, %v13967_v22  ;;  %vm1002_vm7 = vcmp.eq.s32.totalorder %v12783_v3, %v943_v41 }
 0x3b1   : > { %v6394_v27 = vadd.f32 %v16632_v11, %v6392_v16  ;;  %v4263_v61 = vmin.f32 %v4261_v38, %v4262_v6  ;;  %v4278_v51 = vrot.slane %v4277_v34, 2  ;;  %v15019_v15 = vadd.s32 %v13969_v10, %v5079_v56 }
 0x3b2   : > { %v4256_v20 = vrot.slane %v4255_v42, 1  ;;  %v4271_v25 = vmin.f32 %v4269_v48, %v4270_v0  ;;  %v15022_v53 = vadd.s32 %v13969_v10, %v5080_v5  ;;  %9280 = vmatpush1.xpose.msk.msra.mxu1 %vm1002_vm7, %v16385_v63  ;;  %v5081_v2 = vadd.s32 2816, %v13967_v22 }
 0x3b3   : > { %v6396_v43 = vadd.f32 %v16633_v14, %v6394_v27  ;;  %v4264_v32 = vrot.slane %v4263_v61, 1  ;;  %v4279_v18 = vmin.f32 %v4277_v34, %v4278_v51  ;;  %vm5144_vm11 = vcmp.lt.s32.totalorder %v15019_v15, 10000 }
 0x3b4   : > { %v4257_v17 = vmin.f32 %v4255_v42, %v4256_v20  ;;  %v4272_v41 = vrot.slane %v4271_v25, 1  ;;  %vm5145_vm13 = vcmp.lt.s32.totalorder %v15022_v53, 10000  ;;  %v15030_v35 = vadd.s32 2944, %v13967_v22  ;;  %v10254_v53 = vld [vmem:[%s10592_s16 + $0xc70] sm:$0xff] }
 0x3b5   : > { %v6398_v54 = vadd.f32 %v16634_v1, %v6396_v43  ;;  %v4265_v45 = vmin.f32 %v4263_v61, %v4264_v32  ;;  %v4280_v38 = vrot.slane %v4279_v18, 1  ;;  %v15034_v28 = vadd.s32 %v13969_v10, %v5081_v2 }
 0x3b6   : > { %vm4366_vm9 = vcmp.eq.f32.partialorder %v14908_v12, %v4257_v17  ;;  %vm4398_vm10 = vcmp.eq.f32.partialorder %v14944_v19, %v4257_v17  ;;  %v15038_v58 = vmin.f32 %v4271_v25, %v4272_v41  ;;  %v6722_v48 = vsel %vm5144_vm11, %v4257_v17, 0.0  ;;  %v16637_v19 = vld [vmem:[#allocation44_spill] sm:$0xff] }
 0x3b7   : > { %v6400_v16 = vadd.f32 %v16635_v55, %v6398_v54  ;;  %v4430_v6 = vsel %vm4366_vm9, %v12783_v3, 10  ;;  %v4462_v34 = vsel %vm4398_vm10, %v12824_v40, 10  ;;  %vm4367_vm14 = vcmp.eq.f32.partialorder %v14917_v7, %v4265_v45  ;;  %v16640_v54 = vld [vmem:[#allocation95_spill] sm:$0xff] }
 0x3b8   : > { %v4714_v56 = vsel %vm16636_vm6, %v4462_v34, 2147483647  ;;  %vm4399_vm2 = vcmp.eq.f32.partialorder %v14952_v49, %v4265_v45  ;;  %v4431_v12 = vsel %vm4367_vm14, %v12783_v3, 10  ;;  %vm4368_vm0 = vcmp.eq.f32.partialorder %v14922_v47, %v15038_v58 }
 0x3b9   : > { %v6402_v42 = vadd.f32 %v16637_v19, %v6400_v16  ;;  %vm4715_vm3 = vcmp.lt.s32.totalorder %v4430_v6, %v4714_v56  ;;  %v4463_v0 = vsel %vm4399_vm2, %v12824_v40, 10  ;;  %vm4400_vm5 = vcmp.eq.f32.partialorder %v14963_v60, %v15038_v58  ;;  %v16642_v16 = vld [vmem:[#allocation98_spill] sm:$0xff] }
 0x3ba   : > { %v4716_v5 = vsel %vm4715_vm3, %v4430_v6, %v4714_v56  ;;  %v4726_v7 = vsel %vm16638_vm1, %v4463_v0, 2147483647  ;;  %v4432_v11 = vsel %vm4368_vm0, %v12783_v3, 10  ;;  %v4464_v49 = vsel %vm4400_vm5, %v12824_v40, 10  ;;  %vm16641_vm0 = vmmov %vm16638_vm1 }
 0x3bb   : > { %v6404_v27 = vadd.f32 %v14871_v33, %v6402_v42  ;;  %v4717_v61 = vrot.slane %v4716_v5, 4  ;;  %vm4727_vm8 = vcmp.lt.s32.totalorder %v4431_v12, %v4726_v7  ;;  %v4738_v47 = vsel %vm16639_vm12, %v4464_v49, 2147483647  ;;  %v16643_v42 = vld [vmem:[#allocation101_spill] sm:$0xff] }
 0x3bc   : > { %v4728_v51 = vsel %vm4727_vm8, %v4431_v12, %v4726_v7  ;;  %vm4739_vm15 = vcmp.lt.s32.totalorder %v4432_v11, %v4738_v47  ;;  %v15060_v20 = vmin.f32 %v4279_v18, %v4280_v38  ;;  %v6723_v60 = vsel %vm5145_vm13, %v4265_v45, 0.0 }
 0x3bd   : > { %v6406_v25 = vadd.f32 %v14651_v52, %v6404_v27  ;;  %vm4718_vm7 = vcmp.lt.s32.totalorder %v4716_v5, %v4717_v61  ;;  %v4729_v2 = vrot.slane %v4728_v51, 4  ;;  %v4740_v14 = vsel %vm4739_vm15, %v4432_v11, %v4738_v47  ;;  %v15079_v11 = vpop.f32.mrf.mxu0  ;;  %v16645_v47 = vld [vmem:[#allocation49_spill] sm:$0xff] }
 0x3be   : > { %v4719_v43 = vsel %vm4718_vm7, %v4716_v5, %v4717_v61  ;;  %v4741_v32 = vrot.slane %v4740_v14, 4  ;;  %vm4369_vm9 = vcmp.eq.f32.partialorder %v14949_v9, %v15060_v20  ;;  %vm4401_vm10 = vcmp.eq.f32.partialorder %v14980_v29, %v15060_v20 }
 0x3bf   : > { %v6408_v33 = vadd.f32 %v14641_v8, %v6406_v25  ;;  %v4720_v18 = vrot.slane %v4719_v43, 2  ;;  %vm4730_vm14 = vcmp.lt.s32.totalorder %v4728_v51, %v4729_v2  ;;  %v4433_v17 = vsel %vm4369_vm9, %v12783_v3, 10 }
 0x3c0   : > { %v4731_v41 = vsel %vm4730_vm14, %v4728_v51, %v4729_v2  ;;  %vm4742_vm6 = vcmp.lt.s32.totalorder %v4740_v14, %v4741_v32  ;;  %v4465_v52 = vsel %vm4401_vm10, %v12824_v40, 10  ;;  %v6774_v1 = vsel %vm6734_vm4, %v6722_v48, 0.0 }
 0x3c1   : > { %v6410_v45 = vadd.f32 %v16640_v54, %v6408_v33  ;;  %vm4721_vm2 = vcmp.lt.s32.totalorder %v4719_v43, %v4720_v18  ;;  %v4743_v38 = vsel %vm4742_vm6, %v4740_v14, %v4741_v32  ;;  %v4750_v9 = vsel %vm16641_vm0, %v4465_v52, 2147483647  ;;  %v16646_v14 = vld [vmem:[#allocation50_spill] sm:$0xff] }
 0x3c2   : > { %v4722_v55 = vsel %vm4721_vm2, %v4719_v43, %v4720_v18  ;;  %v4744_v29 = vrot.slane %v4743_v38, 2  ;;  %vm4751_vm3 = vcmp.lt.s32.totalorder %v4433_v17, %v4750_v9  ;;  %v4732_v8 = vrot.slane %v4731_v41, 2  ;;  %v15097_v18 = vpop.f32.mrf.mxu0 }
 0x3c3   : > { %v6412_v6 = vadd.f32 %v16642_v16, %v6410_v45  ;;  %v4752_v34 = vsel %vm4751_vm3, %v4433_v17, %v4750_v9  ;;  %v4723_v56 = vrot.slane %v4722_v55, 1  ;;  %v6775_v12 = vadd.f32 %v6774_v1, %v14940_v23  ;;  %v10249_v45 = vld [vmem:[%s10592_s16 + $0xc78] sm:$0xff] }
 0x3c4   : > { %vm4745_vm5 = vcmp.lt.s32.totalorder %v4743_v38, %v4744_v29  ;;  %v4753_v19 = vrot.slane %v4752_v34, 4  ;;  %vm4733_vm1 = vcmp.lt.s32.totalorder %v4731_v41, %v4732_v8  ;;  %v6776_v48 = vsel %vm6734_vm4, %v6723_v60, 0.0 }
 0x3c5   : > { %v6414_v0 = vadd.f32 %v16643_v42, %v6412_v6  ;;  %v4746_v5 = vsel %vm4745_vm5, %v4743_v38, %v4744_v29  ;;  %vm4724_vm8 = vcmp.lt.s32.totalorder %v4722_v55, %v4723_v56  ;;  %v4734_v7 = vsel %vm4733_vm1, %v4731_v41, %v4732_v8  ;;  %v16651_v41 = vld [vmem:[#allocation21_spill] sm:$0xff]  ;;  %v16652_v8 = vld [vmem:[#allocation46_spill] sm:$0xff] }
 0x3c6   : > { %vm4754_vm12 = vcmp.lt.s32.totalorder %v4752_v34, %v4753_v19  ;;  %v15081_v49 = vsel %vm4724_vm8, %v4722_v55, %v4723_v56  ;;  %v4735_v27 = vrot.slane %v4734_v7, 1  ;;  %v6777_v61 = vadd.f32 %v6776_v48, %v6775_v12  ;;  %v10250_v6 = vld [vmem:[%s10592_s16 + $0xd78] sm:$0xff]  ;;  %v10251_v56 = vld [vmem:[%s10592_s16 + $0xc00] sm:$0xff] }
 0x3c7   : > { %16644 = vst [vmem:[#allocation91_spill] sm:$0xff] %v15081_v49  ;;  %v6416_v51 = vadd.f32 %v16645_v47, %v6414_v0  ;;  %v4755_v23 = vsel %vm4754_vm12, %v4752_v34, %v4753_v19  ;;  %vm6832_vm15 = vcmp.eq.s32.totalorder %v12783_v3, %v15081_v49  ;;  %v4747_v25 = vrot.slane %v4746_v5, 1  ;;  %v16653_v48 = vld [vmem:[#allocation70_spill] sm:$0xff] }
 0x3c8   : > { %vm4736_vm7 = vcmp.lt.s32.totalorder %v4734_v7, %v4735_v27  ;;  %v4756_v60 = vrot.slane %v4755_v23, 2  ;;  %v15088_v2 = vadd.s32 %v13969_v10, %v15030_v35  ;;  %vm5146_vm9 = vcmp.lt.s32.totalorder %v15034_v28, 10000  ;;  %vm15103_vm6 = vmand %vm6832_vm15, %vm5144_vm11  ;;  %v10252_v0 = vld [vmem:[%s10592_s16 + $0xdf8] sm:$0xff] }
 0x3c9   : > { %v6418_v43 = vadd.f32 %v16646_v14, %v6416_v51  ;;  %v15092_v32 = vsel %vm4736_vm7, %v4734_v7, %v4735_v27  ;;  %vm4748_vm10 = vcmp.lt.s32.totalorder %v4746_v5, %v4747_v25  ;;  %v6724_v33 = vsel %vm5146_vm9, %v15038_v58, 0.0  ;;  %v10253_v7 = vld [vmem:[%s10592_s16 + $0xcf0] sm:$0xff]  ;;  %v15154_v47 = vld [vmem:[%s10597_s27 + $0x18] sm:$0xff] }
 0x3ca   : > { %16647 = vst [vmem:[#allocation87_spill] sm:$0xff] %v15092_v32  ;;  %vm6833_vm14 = vcmp.eq.s32.totalorder %v12783_v3, %v15092_v32  ;;  %v15107_v17 = vsel %vm4748_vm10, %v4746_v5, %v4747_v25  ;;  %vm4757_vm2 = vcmp.lt.s32.totalorder %v4755_v23, %v4756_v60  ;;  %vm5147_vm0 = vcmp.lt.s32.totalorder %v15088_v2, 10000  ;;  %16656 = vst [vmem:[#allocation81_spill] sm:$0xff] %v15154_v47 }
 0x3cb   : > { %16650 = vst [vmem:[#allocation84_spill] sm:$0xff] %v15107_v17  ;;  %v6420_v52 = vadd.f32 %v16651_v41, %v6418_v43  ;;  %vm6961_vm3 = vmand %vm6833_vm14, %vm5145_vm13  ;;  %v4758_v58 = vsel %vm4757_vm2, %v4755_v23, %v4756_v60  ;;  %v6725_v1 = vsel %vm5147_vm0, %v15060_v20, 0.0  ;;  %v6778_v54 = vsel %vm6734_vm4, %v6724_v33, 0.0  ;;  %v15130_v20 = vpop.f32.mrf.mxu0  ;;  %v10255_v23 = vld [vmem:[%s10592_s16 + $0xdf0] sm:$0xff] }
 0x3cc   : > { %v5555_v38 = vmul.f32 %v10249_v45, %v10249_v45  ;;  %9273 = vmatprep.mubr.msk.f32.mxu0 %vm6961_vm3, %v16385_v63  ;;  %v4759_v9 = vrot.slane %v4758_v58, 1  ;;  %v6779_v55 = vadd.f32 %v6778_v54, %v6777_v61  ;;  %v6780_v29 = vsel %vm6734_vm4, %v6725_v1, 0.0  ;;  %v16660_v60 = vld [vmem:[#allocation85_spill] sm:$0xff] }
 0x3cd   : > { %v6422_v16 = vadd.f32 %v16652_v8, %v6420_v52  ;;  %9274 = vmatmul.mubr.msk.f32.vlgmr.msra.gmra.mxu0 %vm15103_vm6, %v16385_v63  ;;  %vm6834_vm5 = vcmp.eq.s32.totalorder %v12783_v3, %v15107_v17  ;;  %vm6865_vm1 = vcmp.eq.s32.totalorder %v12824_v40, %v15092_v32  ;;  %vm6864_vm8 = vcmp.eq.s32.totalorder %v12824_v40, %v15081_v49  ;;  %v15186_v35 = vpop.f32.mrf.mxu0  ;;  %v10256_v52 = vld [vmem:[%s10592_s16 + $0xd70] sm:$0xff]  ;;  %v10259_v8 = vld [vmem:[%s10592_s16 + $0xde8] sm:$0xff] }
 0x3ce   : > { %v5587_v34 = vmul.f32 %v10250_v6, %v10250_v6  ;;  %v15134_v12 = vmul.f32 %v10251_v56, %v10251_v56  ;;  %vm4760_vm12 = vcmp.lt.s32.totalorder %v4758_v58, %v4759_v9  ;;  %v15136_v19 = vadd.f32 %v6780_v29, %v6779_v55  ;;  %vm6993_vm15 = vmand %vm6865_vm1, %vm5145_vm13  ;;  %v10258_v55 = vld [vmem:[%s10592_s16 + $0xc68] sm:$0xff] }
 0x3cf   : > { %v6424_v42 = vadd.f32 %v16653_v48, %v6422_v16  ;;  %v15142_v5 = vmul.f32 %v10252_v0, %v10252_v0  ;;  %v5570_v27 = vmul.f32 %v10253_v7, %v10253_v7  ;;  %v15145_v61 = vsel %vm4760_vm12, %v4758_v58, %v4759_v9  ;;  %9275 = vmatprep.mubr.msk.f32.mxu0 %vm6993_vm15, %v16385_v63  ;;  %vm6992_vm7 = vmand %vm6864_vm8, %vm5144_vm11  ;;  %v10257_v58 = vld [vmem:[%s10592_s16 + $0xce8] sm:$0xff]  ;;  %v15214_v6 = vpop.f32.mrf.mxu0  ;;  %v16673_v7 = vld [vmem:[#allocation55_spill] sm:$0xff] }
 0x3d0   : > { %16655 = vst [vmem:[#allocation42_spill] sm:$0xff] %v15145_v61  ;;  %v5554_v51 = vmul.f32 %v10254_v53, %v10254_v53  ;;  %v15158_v25 = vmul.f32 %v10255_v23, %v10255_v23  ;;  %vm6835_vm13 = vcmp.eq.s32.totalorder %v12783_v3, %v15145_v61  ;;  %vm15167_vm10 = vmand %vm6834_vm5, %vm5146_vm9  ;;  %vm6867_vm11 = vcmp.eq.s32.totalorder %v12824_v40, %v15145_v61  ;;  %v10260_v56 = vld [vmem:[%s10592_s16 + $0xd68] sm:$0xff]  ;;  %v10262_v23 = vld [vmem:[%s10592_s16 + $0xc60] sm:$0xff] }
 0x3d1   : > { %16654 = vst [vmem:[#allocation41_spill] sm:$0xff] %v15142_v5  ;;  %v6426_v14 = vadd.f32 %v16660_v60, %v6424_v42  ;;  %vm16661_vm14 = vcmask 261120   ;;  %vm6963_vm2 = vmand %vm6835_vm13, %vm5147_vm0  ;;  %9276 = vmatmul.mubr.msk.f32.gmra.mxu0 %vm6992_vm7, %v16385_v63  ;;  %vm6866_vm3 = vcmp.eq.s32.totalorder %v12824_v40, %v15107_v17  ;;  %v5569_v1 = vmul.f32 %v10257_v58, %v10257_v58  ;;  %v10261_v42 = vld [vmem:[%s10592_s16 + $0xce0] sm:$0xff]  ;;  %v10263_v60 = vld [vmem:[%s10592_s16 + $0xc08] sm:$0xff] }
 0x3d2   : > { %16657 = vst [vmem:[#allocation77_spill] sm:$0xff] %v15158_v25  ;;  %v15176_v43 = vsel %vm16661_vm14, %v14882_v26, 0.0  ;;  %vm16662_vm6 = vmmov %vm16661_vm14  ;;  %v5586_v26 = vmul.f32 %v10256_v52, %v10256_v52  ;;  %9281 = vmatprep.mubr.msk.f32.mxu1 %vm6963_vm2, %v16385_v63  ;;  %v15202_v45 = vrot.slane %v15154_v47, %v16505_v57  ;;  %v5553_v29 = vmul.f32 %v10258_v55, %v10258_v55  ;;  %v16677_v52 = vld [vmem:[#allocation67_spill] sm:$0xff] }
 0x3d3   : > { %v15179_v33 = vsel %vm16662_vm6, %v5555_v38, 0.0  ;;  %vm16663_vm5 = vmmov %vm16662_vm6  ;;  %v16667_v38 = vld [vmem:[#allocation99_spill] sm:$0xff]  ;;  %v5601_v16 = vmul.f32 %v10259_v8, %v10259_v8  ;;  %9282 = vmatmul.mubr.msk.f32.vlgmr.msra.gmra.mxu1 %vm15167_vm10, %v16385_v63  ;;  %v15212_v2 = vrot.slane %v15154_v47, %v16507_v31  ;;  %16668 = vst [vmem:[#allocation69_spill] sm:$0xff] %v15214_v6  ;;  %v5585_v48 = vmul.f32 %v10260_v56, %v10260_v56  ;;  %v10266_v8 = vld [vmem:[%s10592_s16 + $0xc10] sm:$0xff] }
 0x3d4   : > { %v15189_v41 = vsel %vm16663_vm5, %v5587_v34, 0.0  ;;  %vm15196_vm1 = vmand %vm6867_vm11, %vm5147_vm0  ;;  %v6428_v9 = vadd.f32 %v16667_v38, %v6426_v14  ;;  %v5568_v0 = vmul.f32 %v10261_v42, %v10261_v42  ;;  %vm1037_vm15 = vcmp.eq.s32.totalorder %v12824_v40, %v15202_v45  ;;  %v15265_v38 = vpop.f32.mrf.mxu0  ;;  %v10267_v31 = vld [vmem:[%s10592_s16 + $0xcd8] sm:$0xff] }
 0x3d5   : > { %16664 = vst [vmem:[#allocation73_spill] sm:$0xff] %v15189_v41  ;;  %vm16669_vm0 = vmmov %vm16663_vm5  ;;  %9283 = vmatprep.mubr.msk.f32.mxu1 %vm15196_vm1, %v16385_v63  ;;  %vm1036_vm7 = vcmp.eq.s32.totalorder %v12824_v40, %v15212_v2  ;;  %v15243_v28 = vrot.slane %v15154_v47, %v16511_v4  ;;  %v5552_v15 = vmul.f32 %v10262_v23, %v10262_v23  ;;  %v10276_v41 = vld [vmem:[%s10592_s16 + $0xdd0] sm:$0xff] }
 0x3d6   : > { %v15217_v57 = vsel %vm16669_vm0, %v5570_v27, 0.0  ;;  %vm16670_vm8 = vmmov %vm16669_vm0  ;;  %v6430_v27 = vadd.f32 %v16673_v7, %v6428_v9  ;;  %v5541_v14 = vmul.f32 %v10263_v60, %v10263_v60  ;;  %9285 = vmatprep.subr.msk.mxu0 %vm1037_vm15, %v16385_v63  ;;  %16681 = vst [vmem:[#allocation92_spill] sm:$0xff] %v15265_v38  ;;  %v10265_v9 = vld [vmem:[%s10592_s16 + $0xd60] sm:$0xff]  ;;  %v5567_v7 = vmul.f32 %v10267_v31, %v10267_v31  ;;  %v10269_v60 = vld [vmem:[%s10592_s16 + $0xdd8] sm:$0xff]  ;;  %v15295_v25 = vpop.f32.mrf.mxu0 }
 0x3d7   : > { %v15220_v34 = vsel %vm16670_vm8, %v5554_v51, 0.0  ;;  %vm15232_vm12 = vmand %vm6866_vm3, %vm5146_vm9  ;;  %v5584_v55 = vmul.f32 %v10265_v9, %v10265_v9  ;;  %9286 = vmatpush1.xpose.msk.msra.mxu0 %vm1036_vm7, %v16385_v63  ;;  %vm1039_vm6 = vcmp.eq.s32.totalorder %v12824_v40, %v15243_v28  ;;  %v10272_v31 = vld [vmem:[%s10592_s16 + $0xcd0] sm:$0xff]  ;;  %16689 = vst [vmem:[#allocation57_spill] sm:$0xff] %v15295_v25 }
 0x3d8   : > { %vm16674_vm13 = vmmov %vm16669_vm0  ;;  %v6432_v58 = vadd.f32 %v16677_v52, %v6430_v27  ;;  %9284 = vmatmul.mubr.msk.f32.gmra.mxu1 %vm15232_vm12, %v16385_v63  ;;  %v10268_v27 = vld [vmem:[%s10592_s16 + $0xc58] sm:$0xff]  ;;  %v5599_v52 = vmul.f32 %v10269_v60, %v10269_v60  ;;  %9293 = vmatprep.subr.msk.mxu1 %vm1039_vm6, %v16385_v63  ;;  %v10292_v38 = vld [vmem:[%s10592_s16 + $0xdb0] sm:$0xff] }
 0x3d9   : > { %v15246_v53 = vsel %vm16674_vm13, %v5586_v26, 0.0  ;;  %vm16676_vm9 = vmmov %vm16669_vm0  ;;  %v10264_v26 = vld [vmem:[%s10592_s16 + $0xde0] sm:$0xff]  ;;  %v5551_v23 = vmul.f32 %v10268_v27, %v10268_v27  ;;  %v5566_v27 = vmul.f32 %v10272_v31, %v10272_v31  ;;  %v5594_v6 = vmul.f32 %v10292_v38, %v10292_v38 }
 0x3da   : > { %16675 = vst [vmem:[#allocation65_spill] sm:$0xff] %v15246_v53  ;;  %v15249_v51 = vsel %vm16676_vm9, %v5569_v1, 0.0  ;;  %vm16678_vm10 = vmmov %vm16669_vm0  ;;  %v5600_v1 = vmul.f32 %v10264_v26, %v10264_v26  ;;  %v10270_v26 = vld [vmem:[%s10592_s16 + $0xd58] sm:$0xff]  ;;  %v10277_v53 = vld [vmem:[%s10592_s16 + $0xd50] sm:$0xff] }
 0x3db   : > { %v15256_v54 = vsel %vm16678_vm10, %v5553_v29, 0.0  ;;  %vm16679_vm11 = vmmov %vm16669_vm0  ;;  %v5542_v29 = vmul.f32 %v10266_v8, %v10266_v8  ;;  %v5583_v9 = vmul.f32 %v10270_v26, %v10270_v26  ;;  %v10271_v8 = vld [vmem:[%s10592_s16 + $0xc18] sm:$0xff] }
 0x3dc   : > { %v15259_v4 = vsel %vm16679_vm11, %v5601_v16, 0.0  ;;  %vm16682_vm14 = vmmov %vm16669_vm0  ;;  %v16683_v16 = vld [vmem:[#allocation75_spill] sm:$0xff]  ;;  %v5543_v5 = vmul.f32 %v10271_v8, %v10271_v8 }
 0x3dd   : > { %16680 = vst [vmem:[#allocation88_spill] sm:$0xff] %v15259_v4  ;;  %v6435_v56 = vsel %vm16682_vm14, %v15134_v12, 0.0  ;;  %v6434_v42 = vadd.f32 %v16683_v16, %v6432_v58  ;;  %vm16684_vm2 = vmmov %vm16669_vm0 }
 0x3de   : > { %v15283_v12 = vsel %vm16684_vm2, %v5585_v48, 0.0  ;;  %vm16686_vm3 = vmmov %vm16669_vm0  ;;  %v15298_v48 = vsel %vm16669_vm0, %v5600_v1, 0.0 }
 0x3df   : > { %16685 = vst [vmem:[#allocation61_spill] sm:$0xff] %v15283_v12  ;;  %v6437_v4 = vsel %vm16686_vm3, %v5541_v14, 0.0  ;;  %vm16687_vm5 = vmmov %vm16669_vm0  ;;  %v6436_v60 = vadd.f32 %v6435_v56, %v6434_v42  ;;  %v15322_v12 = vpop.f32.mrf.mxu1 }
 0x3e0   : > { %v15289_v58 = vsel %vm16687_vm5, %v5568_v0, 0.0  ;;  %vm16688_vm1 = vmmov %vm16669_vm0  ;;  %16690 = vst [vmem:[#allocation53_spill] sm:$0xff] %v15298_v48  ;;  %v10273_v0 = vld [vmem:[%s10592_s16 + $0xc20] sm:$0xff] }
 0x3e1   : > { %v15292_v16 = vsel %vm16688_vm1, %v5552_v15, 0.0  ;;  %vm16691_vm8 = vmmov %vm16669_vm0  ;;  %v5544_v14 = vmul.f32 %v10273_v0, %v10273_v0  ;;  %v6438_v1 = vadd.f32 %v6437_v4, %v6436_v60  ;;  %v10275_v0 = vld [vmem:[%s10592_s16 + $0xc28] sm:$0xff]  ;;  %v4007_v4 = vmul.f32 2.0, %v15130_v20 }
 0x3e2   : > { %v15301_v26 = vsel %vm16691_vm8, %v5584_v55, 0.0  ;;  %vm16693_vm12 = vmmov %vm16669_vm0  ;;  %v10274_v55 = vld [vmem:[%s10592_s16 + $0xc50] sm:$0xff]  ;;  %v10278_v60 = vld [vmem:[%s10592_s16 + $0xcc8] sm:$0xff] }
 0x3e3   : > { %16692 = vst [vmem:[#allocation23_spill] sm:$0xff] %v15301_v26  ;;  %v6439_v8 = vsel %vm16693_vm12, %v5542_v29, 0.0  ;;  %vm16694_vm15 = vmmov %vm16669_vm0  ;;  %v5550_v48 = vmul.f32 %v10274_v55, %v10274_v55  ;;  %v5545_v29 = vmul.f32 %v10275_v0, %v10275_v0  ;;  %v5565_v55 = vmul.f32 %v10278_v60, %v10278_v60  ;;  %v10279_v26 = vld [vmem:[%s10592_s16 + $0xc48] sm:$0xff]  ;;  %v10283_v60 = vld [vmem:[%s10592_s16 + $0xc38] sm:$0xff] }
 0x3e4   : > { %v15306_v15 = vsel %vm16694_vm15, %v5567_v7, 0.0  ;;  %vm16695_vm7 = vmmov %vm16669_vm0  ;;  %v5549_v0 = vmul.f32 %v10279_v26, %v10279_v26  ;;  %v5547_v26 = vmul.f32 %v10283_v60, %v10283_v60 }
 0x3e5   : > { %v15309_v31 = vsel %vm16695_vm7, %v5551_v23, 0.0  ;;  %vm16696_vm13 = vmmov %vm16669_vm0  ;;  %v5598_v23 = vmul.f32 %v10276_v41, %v10276_v41 }
 0x3e6   : > { %v15312_v56 = vsel %vm16696_vm13, %v5599_v52, 0.0  ;;  %vm16698_vm9 = vmmov %vm16669_vm0  ;;  %v5582_v52 = vmul.f32 %v10277_v53, %v10277_v53  ;;  %v10281_v53 = vld [vmem:[%s10592_s16 + $0xdc8] sm:$0xff]  ;;  %vm16719_vm13 = vcmask 1041408  }
 0x3e7   : > { %16697 = vst [vmem:[#allocation37_spill] sm:$0xff] %v15312_v56  ;;  %v15315_v42 = vsel %vm16698_vm9, %v5583_v9, 0.0  ;;  %vm16700_vm10 = vmmov %vm16669_vm0  ;;  %v6440_v56 = vadd.f32 %v6439_v8, %v6438_v1  ;;  %v15325_v9 = vpop.f32.mrf.mxu0  ;;  %v5597_v8 = vmul.f32 %v10281_v53, %v10281_v53  ;;  %v10282_v1 = vld [vmem:[%s10592_s16 + $0xd48] sm:$0xff] }
 0x3e8   : > { %16699 = vst [vmem:[#allocation19_spill] sm:$0xff] %v15315_v42  ;;  %v6441_v7 = vsel %vm16700_vm10, %v5543_v5, 0.0  ;;  %16701 = vst [vmem:[#allocation27_spill] sm:$0xff] %v15325_v9  ;;  %v10280_v42 = vld [vmem:[%s10592_s16 + $0xc30] sm:$0xff]  ;;  %v5581_v62 = vmul.f32 %v10282_v1, %v10282_v1  ;;  %v10290_v9 = vld [vmem:[%s10592_s16 + $0xd38] sm:$0xff] }
 0x3e9   : > { %v5546_v5 = vmul.f32 %v10280_v42, %v10280_v42  ;;  %vm16702_vm11 = vmmov %vm16669_vm0  ;;  %v6442_v20 = vadd.f32 %v6441_v7, %v6440_v56  ;;  %v15336_v21 = vpop.f32.mrf.mxu0  ;;  %v15351_v7 = vsub.f32 %v16619_v44, %v4007_v4  ;;  %v5579_v25 = vmul.f32 %v10290_v9, %v10290_v9 }
 0x3ea   : > { %v6443_v24 = vsel %vm16702_vm11, %v5544_v14, 0.0  ;;  %vm16703_vm14 = vmmov %vm16669_vm0  ;;  %16704 = vst [vmem:[#allocation97_spill] sm:$0xff] %v15336_v21  ;;  %v3975_v14 = vmul.f32 2.0, %v15079_v11  ;;  %v6453_v11 = vsel %vm16669_vm0, %v5549_v0, 0.0  ;;  %v10287_v0 = vld [vmem:[%s10592_s16 + $0xd40] sm:$0xff] }
 0x3eb   : > { %v15332_v41 = vsel %vm16703_vm14, %v5566_v27, 0.0  ;;  %vm16705_vm6 = vmmov %vm16669_vm0  ;;  %v6444_v56 = vadd.f32 %v6443_v24, %v6442_v20  ;;  %v7202_v1 = vpop.f32.mrf.mxu0  ;;  %v10285_v20 = vld [vmem:[%s10592_s16 + $0xcc0] sm:$0xff]  ;;  %v5580_v21 = vmul.f32 %v10287_v0, %v10287_v0 }
 0x3ec   : > { %v15339_v59 = vsel %vm16705_vm6, %v5550_v48, 0.0  ;;  %vm16706_vm2 = vmmov %vm16669_vm0  ;;  %v15353_v48 = vpop.f32.mrf.mxu1 }
 0x3ed   : > { %v6445_v42 = vsel %vm16706_vm2, %v5545_v29, 0.0  ;;  %vm16707_vm3 = vmmov %vm16669_vm0  ;;  %v10284_v29 = vld [vmem:[%s10592_s16 + $0xc40] sm:$0xff] }
 0x3ee   : > { %v15345_v27 = vsel %vm16707_vm3, %v5598_v23, 0.0  ;;  %vm16709_vm5 = vmmov %vm16669_vm0  ;;  %v5548_v23 = vmul.f32 %v10284_v29, %v10284_v29  ;;  %v6446_v1 = vadd.f32 %v6445_v42, %v6444_v56  ;;  %v4282_v56 = vsel %vm16719_vm13, %v15351_v7, inf }
 0x3ef   : > { %16708 = vst [vmem:[#allocation100_spill] sm:$0xff] %v15345_v27  ;;  %v15348_v53 = vsel %vm16709_vm5, %v5582_v52, 0.0  ;;  %vm16711_vm1 = vmmov %vm16669_vm0  ;;  %v5564_v27 = vmul.f32 %v10285_v20, %v10285_v20 }
 0x3f0   : > { %16710 = vst [vmem:[#allocation102_spill] sm:$0xff] %v15348_v53  ;;  %v15356_v60 = vsel %vm16711_vm1, %v5565_v55, 0.0  ;;  %vm16712_vm8 = vmmov %vm16669_vm0  ;;  %v10286_v55 = vld [vmem:[%s10592_s16 + $0xdc0] sm:$0xff] }
 0x3f1   : > { %v6447_v52 = vsel %vm16712_vm8, %v5546_v5, 0.0  ;;  %vm16713_vm12 = vmmov %vm16669_vm0  ;;  %v5596_v53 = vmul.f32 %v10286_v55, %v10286_v55  ;;  %v15372_v5 = vsub.f32 %v16616_v37, %v3975_v14  ;;  %v3790_v55 = vpop.f32.mrf.mxu1 }
 0x3f2   : > { %v15362_v24 = vsel %vm16713_vm12, %v5597_v8, 0.0  ;;  %vm16715_vm15 = vmmov %vm16669_vm0  ;;  %v15374_v8 = vpop.f32.mrf.mxu0  ;;  %v6448_v42 = vadd.f32 %v6447_v52, %v6446_v1  ;;  %v4008_v1 = vmul.f32 2.0, %v15186_v35 }
 0x3f3   : > { %16714 = vst [vmem:[#allocation94_spill] sm:$0xff] %v15362_v24  ;;  %v15365_v4 = vsel %vm16715_vm15, %v5581_v62, 0.0  ;;  %vm16717_vm7 = vmmov %vm16669_vm0  ;;  %v10288_v24 = vld [vmem:[%s10592_s16 + $0xcb8] sm:$0xff]  ;;  %v4283_v9 = vmin.f32 %v15372_v5, %v4282_v56 }
 0x3f4   : > { %16716 = vst [vmem:[#allocation25_spill] sm:$0xff] %v15365_v4  ;;  %v6449_v29 = vsel %vm16717_vm7, %v5547_v26, 0.0  ;;  %16718 = vst [vmem:[#allocation90_spill] sm:$0xff] %v15374_v8  ;;  %v5563_v62 = vmul.f32 %v10288_v24, %v10288_v24  ;;  %v10289_v4 = vld [vmem:[%s10592_s16 + $0xdb8] sm:$0xff]  ;;  %v10291_v26 = vld [vmem:[%s10592_s16 + $0xcb0] sm:$0xff]  ;;  %v7207_v8 = vpop.f32.mrf.mxu0 }
 0x3f5   : > { %v5595_v20 = vmul.f32 %v10289_v4, %v10289_v4  ;;  %vm16720_vm9 = vmmov %vm16669_vm0  ;;  %v5562_v14 = vmul.f32 %v10291_v26, %v10291_v26  ;;  %v10293_v24 = vld [vmem:[%s10592_s16 + $0xd30] sm:$0xff]  ;;  %v6450_v52 = vadd.f32 %v6449_v29, %v6448_v42  ;;  %v4009_v26 = vmul.f32 2.0, %v3790_v55  ;;  %v10294_v8 = vld [vmem:[%s10592_s16 + $0xca8] sm:$0xff]  ;;  %v3792_v42 = vpop.f32.mrf.mxu1 }
 0x3f6   : > { %v6451_v0 = vsel %vm16720_vm9, %v5548_v23, 0.0  ;;  %vm16721_vm10 = vmmov %vm16669_vm0  ;;  %v5578_v4 = vmul.f32 %v10293_v24, %v10293_v24  ;;  %v5561_v29 = vmul.f32 %v10294_v8, %v10294_v8  ;;  %v15418_v24 = vsub.f32 %v16619_v44, %v4008_v1  ;;  %v10299_v1 = vld [vmem:[%s10592_s16 + $0xd20] sm:$0xff] }
 0x3f7   : > { %v15385_v17 = vsel %vm16721_vm10, %v5564_v27, 0.0  ;;  %vm16722_vm11 = vmmov %vm16669_vm0  ;;  %v6452_v35 = vadd.f32 %v6451_v0, %v6450_v52  ;;  %v3977_v0 = vmul.f32 2.0, %v15322_v12  ;;  %v4284_v52 = vrot.slane %v4283_v9, 4 }
 0x3f8   : > { %v15390_v61 = vsel %vm16722_vm11, %v5596_v53, 0.0  ;;  %vm16724_vm14 = vmmov %vm16669_vm0  ;;  %v15422_v8 = vsub.f32 %v16619_v44, %v4009_v26  ;;  %v15436_v26 = vpop.f32.mrf.mxu1 }
 0x3f9   : > { %16723 = vst [vmem:[#allocation15_spill] sm:$0xff] %v15390_v61  ;;  %v15393_v23 = vsel %vm16724_vm14, %v5580_v21, 0.0  ;;  %vm16726_vm6 = vmmov %vm16669_vm0  ;;  %v6454_v55 = vadd.f32 %v6453_v11, %v6452_v35  ;;  %v10296_v61 = vld [vmem:[%s10592_s16 + $0xd28] sm:$0xff] }
 0x3fa   : > { %16725 = vst [vmem:[#allocation86_spill] sm:$0xff] %v15393_v23  ;;  %v15397_v38 = vsel %vm16726_vm6, %v5563_v62, 0.0  ;;  %vm16727_vm2 = vmmov %vm16669_vm0  ;;  %v3976_v62 = vmul.f32 2.0, %v15097_v18  ;;  %v5577_v18 = vmul.f32 %v10296_v61, %v10296_v61  ;;  %v5576_v23 = vmul.f32 %v10299_v1, %v10299_v1 }
 0x3fb   : > { %v15400_v27 = vsel %vm16727_vm2, %v5595_v20, 0.0  ;;  %vm16729_vm3 = vmmov %vm16669_vm0  ;;  %v15414_v20 = vsel %vm16669_vm0, %v5578_v4, 0.0  ;;  %v6456_v35 = vadd.f32 %v15339_v59, %v6454_v55  ;;  %16736 = vst [vmem:[#allocation72_spill] sm:$0xff] %v15436_v26  ;;  %v3978_v59 = vmul.f32 2.0, %v15353_v48 }
 0x3fc   : > { %16728 = vst [vmem:[#allocation83_spill] sm:$0xff] %v15400_v27  ;;  %v15404_v53 = vsel %vm16729_vm3, %v5579_v25, 0.0  ;;  %vm16731_vm5 = vmmov %vm16669_vm0  ;;  %v10295_v25 = vld [vmem:[%s10592_s16 + $0xda8] sm:$0xff]  ;;  %v10297_v27 = vld [vmem:[%s10592_s16 + $0xca0] sm:$0xff] }
 0x3fd   : > { %16730 = vst [vmem:[#allocation80_spill] sm:$0xff] %v15404_v53  ;;  %v15407_v21 = vsel %vm16731_vm5, %v5562_v14, 0.0  ;;  %vm16732_vm1 = vmmov %vm16669_vm0  ;;  %v5593_v14 = vmul.f32 %v10295_v25, %v10295_v25  ;;  %v5560_v4 = vmul.f32 %v10297_v27, %v10297_v27  ;;  %v10300_v53 = vld [vmem:[%s10592_s16 + $0xc98] sm:$0xff]  ;;  %v6458_v61 = vadd.f32 %v15309_v31, %v6456_v35 }
 0x3fe   : > { %v15410_v56 = vsel %vm16732_vm1, %v5594_v6, 0.0  ;;  %16734 = vst [vmem:[#allocation13_spill] sm:$0xff] %v15414_v20  ;;  %v4010_v6 = vmul.f32 2.0, %v3792_v42  ;;  %vm16735_vm8 = vmmov %vm16669_vm0  ;;  %v5559_v25 = vmul.f32 %v10300_v53, %v10300_v53  ;;  %v15434_v20 = vsub.f32 %v16616_v37, %v3976_v62  ;;  %v10302_v35 = vld [vmem:[%s10592_s16 + $0xd98] sm:$0xff] }
 0x3ff   : > { %16733 = vst [vmem:[#allocation76_spill] sm:$0xff] %v15410_v56  ;;  %v10298_v56 = vld [vmem:[%s10592_s16 + $0xda0] sm:$0xff]  ;;  %v15429_v12 = vsel %vm16735_vm8, %v5561_v29, 0.0  ;;  %v15440_v27 = vsub.f32 %v16616_v37, %v3977_v0  ;;  %vm16737_vm12 = vmmov %vm16719_vm13  ;;  %v4285_v53 = vmin.f32 %v4283_v9, %v4284_v52  ;;  %v6460_v0 = vadd.f32 %v15292_v16, %v6458_v61 }
 0x400   : > { %v5592_v11 = vmul.f32 %v10298_v56, %v10298_v56  ;;  %v4290_v29 = vsel %vm16737_vm12, %v15418_v24, inf  ;;  %vm16738_vm15 = vmmov %vm16669_vm0  ;;  %v15451_v62 = vsub.f32 %v16619_v44, %v4010_v6  ;;  %v10301_v52 = vld [vmem:[%s10592_s16 + $0xc80] sm:$0xff]  ;;  %v15476_v16 = vsub.f32 %v16616_v37, %v3978_v59  ;;  %v10305_v44 = vld [vmem:[%s10592_s16 + $0xc90] sm:$0xff] }
 0x401   : > { %v15446_v42 = vsel %vm16738_vm15, %v5593_v14, 0.0  ;;  %vm16740_vm7 = vmmov %vm16737_vm12  ;;  %v5556_v6 = vmul.f32 %v10301_v52, %v10301_v52  ;;  %v6462_v1 = vadd.f32 %v15256_v54, %v6460_v0  ;;  %v10307_v0 = vld [vmem:[%s10592_s16 + $0xd10] sm:$0xff]  ;;  %v10308_v59 = vld [vmem:[%s10592_s16 + $0xd88] sm:$0xff] }
 0x402   : > { %16739 = vst [vmem:[#allocation68_spill] sm:$0xff] %v15446_v42  ;;  %v4298_v56 = vsel %vm16740_vm7, %v15422_v8, inf  ;;  %vm16741_vm13 = vmmov %vm16669_vm0  ;;  %v10304_v42 = vld [vmem:[%s10592_s16 + $0xc88] sm:$0xff]  ;;  %v5589_v37 = vmul.f32 %v10308_v59, %v10308_v59 }
 0x403   : > { %v15454_v31 = vsel %vm16741_vm13, %v5577_v18, 0.0  ;;  %vm16743_vm9 = vmmov %vm16669_vm0  ;;  %v4291_v18 = vmin.f32 %v15434_v20, %v4290_v29  ;;  %v5557_v52 = vmul.f32 %v10304_v42, %v10304_v42 }
 0x404   : > { %16742 = vst [vmem:[#allocation64_spill] sm:$0xff] %v15454_v31  ;;  %v15457_v48 = vsel %vm16743_vm9, %v5560_v4, 0.0  ;;  %vm16744_vm10 = vmmov %vm16669_vm0  ;;  %v15471_v4 = vpop.f32.mrf.mxu1  ;;  %v5558_v31 = vmul.f32 %v10305_v44, %v10305_v44 }
 0x405   : > { %v15460_v55 = vsel %vm16744_vm10, %v5592_v11, 0.0  ;;  %vm16746_vm11 = vmmov %vm16669_vm0  ;;  %16749 = vst [vmem:[#allocation52_spill] sm:$0xff] %v15471_v4  ;;  %v5591_v11 = vmul.f32 %v10302_v35, %v10302_v35  ;;  %v6464_v35 = vadd.f32 %v15220_v34, %v6462_v1  ;;  %v10306_v4 = vld [vmem:[%s10592_s16 + $0xd90] sm:$0xff]  ;;  %v4292_v26 = vrot.slane %v4291_v18, 4 }
 0x406   : > { %16745 = vst [vmem:[#allocation60_spill] sm:$0xff] %v15460_v55  ;;  %v15464_v9 = vsel %vm16746_vm11, %v5576_v23, 0.0  ;;  %vm16748_vm14 = vmmov %vm16669_vm0  ;;  %v4299_v23 = vmin.f32 %v15440_v27, %v4298_v56  ;;  %v4286_v55 = vrot.slane %v4285_v53, 2  ;;  %v5590_v54 = vmul.f32 %v10306_v4, %v10306_v4  ;;  %v15489_v42 = vpop.f32.mrf.mxu1 }
 0x407   : > { %16747 = vst [vmem:[#allocation56_spill] sm:$0xff] %v15464_v9  ;;  %v15467_v14 = vsel %vm16748_vm14, %v5559_v25, 0.0  ;;  %v10303_v25 = vld [vmem:[%s10592_s16 + $0xd18] sm:$0xff]  ;;  %vm16750_vm6 = vmmov %vm16740_vm7  ;;  %v5574_v9 = vmul.f32 %v10307_v0, %v10307_v0  ;;  %v6466_v49 = vadd.f32 %v15179_v33, %v6464_v35  ;;  %v959_v34 = vrot.slane %v15154_v47, %v16517_v30 }
 0x408   : > { %v5575_v61 = vmul.f32 %v10303_v25, %v10303_v25  ;;  %v4306_v29 = vsel %vm16750_vm6, %v15451_v62, inf  ;;  %vm16751_vm2 = vmmov %vm16669_vm0  ;;  %v4287_v25 = vmin.f32 %v4285_v53, %v4286_v55  ;;  %v4300_v32 = vrot.slane %v4299_v23, 4  ;;  %v15502_v55 = vpop.f32.mrf.mxu0 }
 0x409   : > { %v6467_v56 = vsel %vm16751_vm2, %v5556_v6, 0.0  ;;  %v4307_v44 = vmin.f32 %v15476_v16, %v4306_v29  ;;  %vm16752_vm3 = vmmov %vm16669_vm0  ;;  %16756 = vst [vmem:[#allocation28_spill] sm:$0xff] %v15502_v55  ;;  %v6471_v0 = vsel %vm16669_vm0, %v5558_v31, 0.0  ;;  %v10309_v29 = vld [vmem:[%s10592_s16 + $0xd08] sm:$0xff]  ;;  %vm1038_vm7 = vcmp.eq.s32.totalorder %v12824_v40, %v959_v34 }
 0x40a   : > { %v15496_v4 = vsel %vm16752_vm3, %v5591_v11, 0.0  ;;  %vm16754_vm5 = vmmov %vm16669_vm0  ;;  %v4288_v53 = vrot.slane %v4287_v25, 1  ;;  %v15509_v35 = vmul.f32 %v10309_v29, %v10309_v29  ;;  %v6468_v30 = vadd.f32 %v6467_v56, %v6466_v49  ;;  %v7352_v55 = vpop.f32.mrf.mxu0  ;;  %9294 = vmatpush1.xpose.msk.msra.mxu1 %vm1038_vm7, %v16385_v63 }
 0x40b   : > { %16753 = vst [vmem:[#allocation79_spill] sm:$0xff] %v15496_v4  ;;  %v15499_v1 = vsel %vm16754_vm5, %v5575_v61, 0.0  ;;  %vm16755_vm1 = vmmov %vm16669_vm0  ;;  %v15519_v4 = vpop.f32.mrf.mxu1  ;;  %v4301_v47 = vmin.f32 %v4299_v23, %v4300_v32  ;;  %vm1005_vm10 = vcmp.eq.s32.totalorder %v12783_v3, %v15202_v45  ;;  %vm1004_vm14 = vcmp.eq.s32.totalorder %v12783_v3, %v15212_v2 }
 0x40c   : > { %v6469_v6 = vsel %vm16755_vm1, %v5557_v52, 0.0  ;;  %vm16757_vm8 = vmmov %vm16669_vm0  ;;  %v15517_v59 = vmin.f32 %v4287_v25, %v4288_v53  ;;  %v4293_v52 = vmin.f32 %v4291_v18, %v4292_v26  ;;  %9287 = vmatprep.subr.msk.mxu0 %vm1005_vm10, %v16385_v63  ;;  %vm1007_vm2 = vcmp.eq.s32.totalorder %v12783_v3, %v15243_v28 }
 0x40d   : > { %v15506_v33 = vsel %vm16757_vm8, %v5590_v54, 0.0  ;;  %vm16758_vm12 = vmmov %vm16669_vm0  ;;  %v6470_v31 = vadd.f32 %v6469_v6, %v6468_v30  ;;  %v4308_v54 = vrot.slane %v4307_v44, 4  ;;  %v4302_v18 = vrot.slane %v4301_v47, 2  ;;  %9288 = vmatpush1.xpose.msk.msra.mxu0 %vm1004_vm14, %v16385_v63  ;;  %9295 = vmatprep.subr.msk.mxu1 %vm1007_vm2, %v16385_v63 }
 0x40e   : > { %v15512_v11 = vsel %vm16758_vm12, %v5574_v9, 0.0  ;;  %vm16759_vm15 = vmmov %vm16669_vm0  ;;  %vm4370_vm13 = vcmp.eq.f32.partialorder %v15372_v5, %v15517_v59  ;;  %vm4402_vm9 = vcmp.eq.f32.partialorder %v15351_v7, %v15517_v59  ;;  %v4294_v49 = vrot.slane %v4293_v52, 2 }
 0x40f   : > { %v15515_v61 = vsel %vm16759_vm15, %v5589_v37, 0.0  ;;  %v15529_v37 = vpop.f32.mrf.mxu1  ;;  %v6472_v26 = vadd.f32 %v6471_v0, %v6470_v31  ;;  %v4434_v32 = vsel %vm4370_vm13, %v12783_v3, 10  ;;  %v4466_v9 = vsel %vm4402_vm9, %v12824_v40, 10  ;;  %vm16760_vm11 = vmmov %vm16750_vm6 }
 0x410   : > { %v4762_v5 = vsel %vm16760_vm11, %v4466_v9, 2147483647  ;;  %v4295_v23 = vmin.f32 %v4293_v52, %v4294_v49  ;;  %v4309_v7 = vmin.f32 %v4307_v44, %v4308_v54  ;;  %v4303_v25 = vmin.f32 %v4301_v47, %v4302_v18  ;;  %vm16761_vm8 = vmmov %vm16760_vm11 }
 0x411   : > { %v7277_v56 = vpop.f32.mrf.mxu1  ;;  %v6474_v45 = vadd.f32 %v15467_v14, %v6472_v26  ;;  %vm4763_vm6 = vcmp.lt.s32.totalorder %v4434_v32, %v4762_v5  ;;  %v5083_v44 = vadd.s32 3072, %v13967_v22  ;;  %v5084_v47 = vadd.s32 3200, %v13967_v22  ;;  %vm16762_vm10 = vmmov %vm16761_vm8 }
 0x412   : > { %v4764_v6 = vsel %vm4763_vm6, %v4434_v32, %v4762_v5  ;;  %v4296_v53 = vrot.slane %v4295_v23, 1  ;;  %v4310_v55 = vrot.slane %v4309_v7, 2  ;;  %v4304_v14 = vrot.slane %v4303_v25, 1  ;;  %vm16763_vm2 = vmmov %vm16761_vm8 }
 0x413   : > { %v15543_v0 = vpop.f32.mrf.mxu1  ;;  %v6476_v2 = vadd.f32 %v15457_v48, %v6474_v45  ;;  %v4765_v29 = vrot.slane %v4764_v6, 4  ;;  %v15550_v28 = vadd.s32 %v13969_v10, %v5083_v44  ;;  %vm1006_vm3 = vcmp.eq.s32.totalorder %v12783_v3, %v959_v34 }
 0x414   : > { %v15547_v30 = vmin.f32 %v4295_v23, %v4296_v53  ;;  %v4311_v52 = vmin.f32 %v4309_v7, %v4310_v55  ;;  %v15554_v49 = vmin.f32 %v4303_v25, %v4304_v14  ;;  %v15557_v48 = vadd.s32 %v13969_v10, %v5084_v47  ;;  %9296 = vmatpush1.xpose.msk.msra.mxu1 %vm1006_vm3, %v16385_v63  ;;  %v15569_v23 = vpop.f32.mrf.mxu0 }
 0x415   : > { %v7282_v31 = vpop.f32.mrf.mxu1  ;;  %v6478_v54 = vadd.f32 %v15429_v12, %v6476_v2  ;;  %vm4766_vm5 = vcmp.lt.s32.totalorder %v4764_v6, %v4765_v29 }
 0x416   : > { %v4767_v26 = vsel %vm4766_vm5, %v4764_v6, %v4765_v29  ;;  %vm4371_vm1 = vcmp.eq.f32.partialorder %v15434_v20, %v15547_v30  ;;  %vm4403_vm0 = vcmp.eq.f32.partialorder %v15418_v24, %v15547_v30  ;;  %v4312_v32 = vrot.slane %v4311_v52, 1  ;;  %v7357_v45 = vpop.f32.mrf.mxu0 }
 0x417   : > { %v6480_v34 = vadd.f32 %v15407_v21, %v6478_v54  ;;  %v4768_v9 = vrot.slane %v4767_v26, 2  ;;  %v4435_v12 = vsel %vm4371_vm1, %v12783_v3, 10  ;;  %v4467_v18 = vsel %vm4403_vm0, %v12824_v40, 10  ;;  %v15567_v5 = vpop.f32.mrf.mxu1  ;;  %v10310_v54 = vld [vmem:[%s10592_s16 + $0xd00] sm:$0xff] }
 0x418   : > { %v4774_v7 = vsel %vm16761_vm8, %v4467_v18, 2147483647  ;;  %vm4372_vm12 = vcmp.eq.f32.partialorder %v15440_v27, %v15554_v49  ;;  %vm4404_vm15 = vcmp.eq.f32.partialorder %v15422_v8, %v15554_v49  ;;  %v15576_v20 = vmin.f32 %v4311_v52, %v4312_v32 }
 0x419   : > { %v6482_v21 = vadd.f32 %v15397_v38, %v6480_v34  ;;  %vm4769_vm7 = vcmp.lt.s32.totalorder %v4767_v26, %v4768_v9  ;;  %vm4775_vm13 = vcmp.lt.s32.totalorder %v4435_v12, %v4774_v7  ;;  %v4436_v24 = vsel %vm4372_vm12, %v12783_v3, 10  ;;  %v7427_v56 = vpop.f32.mrf.mxu1 }
 0x41a   : > { %v4770_v25 = vsel %vm4769_vm7, %v4767_v26, %v4768_v9  ;;  %v4776_v6 = vsel %vm4775_vm13, %v4435_v12, %v4774_v7  ;;  %v4468_v53 = vsel %vm4404_vm15, %v12824_v40, 10  ;;  %vm4373_vm9 = vcmp.eq.f32.partialorder %v15476_v16, %v15576_v20 }
 0x41b   : > { %v6484_v27 = vadd.f32 %v15385_v17, %v6482_v21  ;;  %v4777_v8 = vrot.slane %v4776_v6, 4  ;;  %v4786_v55 = vsel %vm16762_vm10, %v4468_v53, 2147483647  ;;  %vm4405_vm11 = vcmp.eq.f32.partialorder %v15451_v62, %v15576_v20  ;;  %v15587_v38 = vpop.f32.mrf.mxu1 }
 0x41c   : > { %vm4787_vm14 = vcmp.lt.s32.totalorder %v4436_v24, %v4786_v55  ;;  %v4437_v44 = vsel %vm4373_vm9, %v12783_v3, 10  ;;  %v4469_v2 = vsel %vm4405_vm11, %v12824_v40, 10  ;;  %v4771_v29 = vrot.slane %v4770_v25, 1 }
 0x41d   : > { %v6486_v14 = vadd.f32 %v15356_v60, %v6484_v27  ;;  %vm4778_vm6 = vcmp.lt.s32.totalorder %v4776_v6, %v4777_v8  ;;  %v4788_v16 = vsel %vm4787_vm14, %v4436_v24, %v4786_v55  ;;  %v4798_v17 = vsel %vm16763_vm2, %v4469_v2, 2147483647  ;;  %v7432_v47 = vpop.f32.mrf.mxu1  ;;  %v15603_v24 = vpop.f32.mrf.mxu0 }
 0x41e   : > { %v4779_v52 = vsel %vm4778_vm6, %v4776_v6, %v4777_v8  ;;  %v4789_v31 = vrot.slane %v4788_v16, 4  ;;  %vm4799_vm3 = vcmp.lt.s32.totalorder %v4437_v44, %v4798_v17  ;;  %vm4772_vm5 = vcmp.lt.s32.totalorder %v4770_v25, %v4771_v29  ;;  %v16766_v47 = vld [vmem:[#allocation91_spill] sm:$0xff] }
 0x41f   : > { %v6488_v62 = vadd.f32 %v15332_v41, %v6486_v14  ;;  %v5572_v26 = vmul.f32 %v10310_v54, %v10310_v54  ;;  %v4800_v32 = vsel %vm4799_vm3, %v4437_v44, %v4798_v17  ;;  %v4780_v34 = vrot.slane %v4779_v52, 2  ;;  %v16765_v17 = vld [vmem:[#allocation87_spill] sm:$0xff]  ;;  %v16769_v54 = vld [vmem:[#allocation84_spill] sm:$0xff] }
 0x420   : > { %vm4790_vm1 = vcmp.lt.s32.totalorder %v4788_v16, %v4789_v31  ;;  %v4801_v9 = vrot.slane %v4800_v32, 4  ;;  %v15595_v12 = vsel %vm4772_vm5, %v4770_v25, %v4771_v29  ;;  %vm5148_vm0 = vcmp.lt.s32.totalorder %v15550_v28, 10000  ;;  %v16777_v28 = vld [vmem:[#allocation27_spill] sm:$0xff] }
 0x421   : > { %v6490_v60 = vadd.f32 %v15306_v15, %v6488_v62  ;;  %v4791_v18 = vsel %vm4790_vm1, %v4788_v16, %v4789_v31  ;;  %vm4781_vm8 = vcmp.lt.s32.totalorder %v4779_v52, %v4780_v34  ;;  %vm5149_vm12 = vcmp.lt.s32.totalorder %v15557_v48, 10000  ;;  %v16768_v62 = vld [vmem:[#allocation42_spill] sm:$0xff] }
 0x422   : > { %v4792_v7 = vrot.slane %v4791_v18, 2  ;;  %vm4802_vm15 = vcmp.lt.s32.totalorder %v4800_v32, %v4801_v9  ;;  %v4782_v21 = vsel %vm4781_vm8, %v4779_v52, %v4780_v34  ;;  %v6726_v41 = vsel %vm5148_vm0, %v15517_v59, 0.0  ;;  %v7502_v59 = vpop.f32.mrf.mxu0  ;;  %v10311_v34 = vld [vmem:[%s10592_s16 + $0xd80] sm:$0xff] }
 0x423   : > { %v6492_v56 = vadd.f32 %v15289_v58, %v6490_v60  ;;  %v4956_v45 = vcombine.low %v14838_v46, %v14867_v36  ;;  %v4803_v25 = vsel %vm4802_vm15, %v4800_v32, %v4801_v9  ;;  %v4783_v15 = vrot.slane %v4782_v21, 1 }
 0x424   : > { %vm4793_vm7 = vcmp.lt.s32.totalorder %v4791_v18, %v4792_v7  ;;  %v6727_v6 = vsel %vm5149_vm12, %v15547_v30, 0.0  ;;  %v6782_v53 = vsel %vm6734_vm4, %v6726_v41, 0.0  ;;  %vm6836_vm13 = vcmp.eq.s32.totalorder %v12783_v3, %v15595_v12 }
 0x425   : > { %v6494_v27 = vadd.f32 %v15249_v51, %v6492_v56  ;;  %v4794_v8 = vsel %vm4793_vm7, %v4791_v18, %v4792_v7  ;;  %vm4784_vm9 = vcmp.lt.s32.totalorder %v4782_v21, %v4783_v15  ;;  %v6783_v58 = vadd.f32 %v6782_v53, %v15136_v19  ;;  %vm6964_vm14 = vmand %vm6836_vm13, %vm5148_vm0  ;;  %v15648_v18 = vpop.f32.mrf.mxu1  ;;  %v15650_v7 = vpop.f32.mrf.mxu0 }
 0x426   : > { %v15616_v46 = vsel %vm4784_vm9, %v4782_v21, %v4783_v15  ;;  %v6784_v36 = vsel %vm6734_vm4, %v6727_v6, 0.0  ;;  %v4795_v55 = vrot.slane %v4794_v8, 1  ;;  %v4804_v44 = vrot.slane %v4803_v25, 2 }
 0x427   : > { %v6496_v30 = vadd.f32 %v15217_v57, %v6494_v27  ;;  %vm16764_vm10 = vcmask 261120   ;;  %v15621_v29 = vadd.f32 %v6784_v36, %v6783_v58  ;;  %vm6837_vm11 = vcmp.eq.s32.totalorder %v12783_v3, %v15616_v46  ;;  %v7577_v15 = vpop.f32.mrf.mxu1  ;;  %v7507_v6 = vpop.f32.mrf.mxu0 }
 0x428   : > { %v6499_v2 = vsel %vm16764_vm10, %v5572_v26, 0.0  ;;  %vm6965_vm6 = vmand %vm6837_vm11, %vm5149_vm12  ;;  %vm4796_vm2 = vcmp.lt.s32.totalorder %v4794_v8, %v4795_v55  ;;  %vm4805_vm3 = vcmp.lt.s32.totalorder %v4803_v25, %v4804_v44  ;;  %v5086_v19 = vadd.s32 3456, %v13967_v22  ;;  %v16783_v15 = vld [vmem:[#allocation13_spill] sm:$0xff] }
 0x429   : > { %v5085_v57 = vadd.s32 3328, %v13967_v22  ;;  %v6498_v51 = vadd.f32 %v15176_v43, %v6496_v30  ;;  %v4966_v14 = vrot.slane %v4956_v45, %v14039_v39  ;;  %v4957_v16 = vcombine.low %v14886_v50, %v14925_v13  ;;  %9289 = vmatprep.mubr.msk.f32.mxu0 %vm6965_vm6, %v16385_v63  ;;  %vm16767_vm5 = vmmov %vm16764_vm10 }
 0x42a   : > { %v4958_v52 = vcombine.low %v16766_v47, %v16765_v17  ;;  %v6501_v31 = vsel %vm16767_vm5, %v15509_v35, 0.0  ;;  %v4959_v26 = vcombine.low %v16769_v54, %v16768_v62  ;;  %9290 = vmatmul.mubr.msk.f32.vlgmr.msra.gmra.mxu0 %vm6964_vm14, %v16385_v63  ;;  %v15643_v32 = vsel %vm4796_vm2, %v4794_v8, %v4795_v55  ;;  %vm16770_vm10 = vmmov %vm16767_vm5  ;;  %v16776_v17 = vld [vmem:[#allocation52_spill] sm:$0xff] }
 0x42b   : > { %v4806_v43 = vsel %vm4805_vm3, %v4803_v25, %v4804_v44  ;;  %v5588_v9 = vmul.f32 %v10311_v34, %v10311_v34  ;;  %v6500_v60 = vadd.f32 %v6499_v2, %v6498_v51  ;;  %v4973_v50 = vrot.slane %v4957_v16, %v14039_v39  ;;  %v16772_v44 = vld [vmem:[#allocation92_spill] sm:$0xff] }
 0x42c   : > { %v4980_v13 = vrot.slane %v4958_v52, %v14039_v39  ;;  %v4987_v35 = vrot.slane %v4959_v26, %v14039_v39  ;;  %v4807_v21 = vrot.slane %v4806_v43, 1  ;;  %v5119_v41 = vadd.s32 %v13969_v10, %v5086_v19  ;;  %v16773_v2 = vld [vmem:[#allocation72_spill] sm:$0xff] }
 0x42d   : > { %v5118_v56 = vadd.s32 %v13969_v10, %v5085_v57  ;;  %v6502_v45 = vadd.f32 %v6501_v31, %v6500_v60  ;;  %v4988_v25 = vcombine.low %v4966_v14, %v4973_v50  ;;  %vm6838_vm1 = vcmp.eq.s32.totalorder %v12783_v3, %v15643_v32  ;;  %v16774_v57 = vld [vmem:[#allocation56_spill] sm:$0xff]  ;;  %v16775_v14 = vld [vmem:[#allocation57_spill] sm:$0xff]  ;;  %v16778_v31 = vld [vmem:[#allocation35_spill] sm:$0xff] }
 0x42e   : > { %vm6869_vm8 = vcmp.eq.s32.totalorder %v12824_v40, %v15616_v46  ;;  %v4989_v53 = vcombine.low %v4980_v13, %v4987_v35  ;;  %vm4808_vm15 = vcmp.lt.s32.totalorder %v4806_v43, %v4807_v21  ;;  %vm5151_vm7 = vcmp.lt.s32.totalorder %v5119_v41, 10000  ;;  %v16779_v34 = vld [vmem:[#allocation64_spill] sm:$0xff]  ;;  %v16780_v60 = vld [vmem:[#allocation31_spill] sm:$0xff] }
 0x42f   : > { %vm5150_vm13 = vcmp.lt.s32.totalorder %v5118_v56, 10000  ;;  %vm6997_vm9 = vmand %vm6869_vm8, %vm5149_vm12  ;;  %v6504_v59 = vadd.f32 %v15512_v11, %v6502_v45  ;;  %v4996_v27 = vrot.slane %v4988_v25, %v14039_v39  ;;  %v15663_v8 = vsel %vm4808_vm15, %v4806_v43, %v4807_v21  ;;  %v16781_v56 = vld [vmem:[#allocation97_spill] sm:$0xff] }
 0x430   : > { %v15667_v58 = vsel %vm5151_vm7, %v15576_v20, 0.0  ;;  %9291 = vmatprep.mubr.msk.f32.mxu0 %vm6997_vm9, %v16385_v63  ;;  %v15671_v36 = vsel %vm16770_vm10, %v5588_v9, 0.0  ;;  %v5003_v55 = vrot.slane %v4989_v53, %v14039_v39  ;;  %vm6839_vm12 = vcmp.eq.s32.totalorder %v12783_v3, %v15663_v8  ;;  %vm6966_vm11 = vmand %vm6838_vm1, %vm5150_vm13  ;;  %v16771_v20 = vld [vmem:[#allocation69_spill] sm:$0xff] }
 0x431   : > { %v15678_v11 = vsel %vm5150_vm13, %v15554_v49, 0.0  ;;  %v6506_v48 = vadd.f32 %v15499_v1, %v6504_v59  ;;  %vm6967_vm14 = vmand %vm6839_vm12, %vm5151_vm7  ;;  %vm6868_vm6 = vcmp.eq.s32.totalorder %v12824_v40, %v15595_v12  ;;  %vm6871_vm2 = vcmp.eq.s32.totalorder %v12824_v40, %v15663_v8 }
 0x432   : > { %vm6870_vm3 = vcmp.eq.s32.totalorder %v12824_v40, %v15643_v32  ;;  %v5004_v49 = vcombine.low %v4996_v27, %v5003_v55  ;;  %9297 = vmatprep.mubr.msk.f32.mxu1 %vm6967_vm14, %v16385_v63  ;;  %vm6996_vm5 = vmand %vm6868_vm6, %vm5148_vm0  ;;  %v3979_v1 = vmul.f32 2.0, %v16771_v20  ;;  %v3980_v30 = vmul.f32 2.0, %v16772_v44  ;;  %v16786_v27 = vld [vmem:[#allocation78_spill] sm:$0xff]  ;;  %v16787_v55 = vld [vmem:[#allocation81_spill] sm:$0xff] }
 0x433   : > { %v3981_v19 = vmul.f32 2.0, %v16773_v2  ;;  %v6508_v51 = vadd.f32 %v16774_v57, %v6506_v48  ;;  %9298 = vmatmul.mubr.msk.f32.vlgmr.msra.gmra.mxu1 %vm6966_vm11, %v16385_v63  ;;  %9292 = vmatmul.mubr.msk.f32.gmra.mxu0 %vm6996_vm5, %v16385_v63  ;;  %vm6999_vm1 = vmand %vm6871_vm2, %vm5151_vm7  ;;  %v4011_v16 = vmul.f32 2.0, %v16775_v14  ;;  %v3982_v47 = vmul.f32 2.0, %v16776_v17  ;;  %v16789_v20 = vld [vmem:[#allocation80_spill] sm:$0xff] }
 0x434   : > { %v4012_v52 = vmul.f32 2.0, %v16777_v28  ;;  %5056 = vst [vmem:[%s10599_s30 + $0x10] sm:$0xff] %v5004_v49  ;;  %9299 = vmatprep.mubr.msk.f32.mxu1 %vm6999_vm1, %v16385_v63  ;;  %vm6998_vm0 = vmand %vm6870_vm3, %vm5150_vm13  ;;  %v15712_v62 = vsub.f32 %v16778_v31, %v3979_v1  ;;  %v15715_v54 = vsub.f32 %v16778_v31, %v3980_v30  ;;  %v4013_v43 = vmul.f32 2.0, %v15489_v42  ;;  %v16782_v42 = vld [vmem:[#allocation90_spill] sm:$0xff]  ;;  %v16790_v30 = vld [vmem:[#allocation28_spill] sm:$0xff] }
 0x435   : > { %v15718_v26 = vsub.f32 %v16778_v31, %v3981_v19  ;;  %v6510_v9 = vadd.f32 %v16779_v34, %v6508_v51  ;;  %v15723_v50 = vsub.f32 %v16780_v60, %v4011_v16  ;;  %v15726_v13 = vsub.f32 %v16778_v31, %v3982_v47  ;;  %v16792_v16 = vld [vmem:[#allocation86_spill] sm:$0xff] }
 0x436   : > { %v15729_v35 = vsub.f32 %v16780_v60, %v4012_v52  ;;  %v15732_v21 = vsub.f32 %v16780_v60, %v4013_v43  ;;  %v4014_v41 = vmul.f32 2.0, %v15519_v4  ;;  %v7276_v45 = vadd.f32 %v15529_v37, %v16781_v56  ;;  %v16793_v34 = vld [vmem:[#allocation66_spill] sm:$0xff] }
 0x437   : > { %v7281_v25 = vadd.f32 %v15543_v0, %v16782_v42  ;;  %v6512_v6 = vadd.f32 %v16783_v15, %v6510_v9  ;;  %9300 = vmatmul.mubr.msk.f32.gmra.mxu1 %vm6998_vm0, %v16385_v63  ;;  %vm16784_vm8 = vcmask 1041408   ;;  %v971_v48 = vrot.slane %v16787_v55, %v16786_v27 }
 0x438   : > { %v4314_v53 = vsel %vm16784_vm8, %v15723_v50, inf  ;;  %vm16785_vm15 = vmmov %vm16784_vm8  ;;  %v15752_v49 = vsub.f32 %v16780_v60, %v4014_v41  ;;  %v7351_v2 = vadd.f32 %v16790_v30, %v7276_v45  ;;  %v967_v9 = vrot.slane %v16787_v55, %v16793_v34  ;;  %v16794_v60 = vld [vmem:[#allocation25_spill] sm:$0xff] }
 0x439   : > { %v4322_v59 = vsel %vm16785_vm15, %v15729_v35, inf  ;;  %v4315_v4 = vmin.f32 %v15712_v62, %v4314_v53  ;;  %vm16788_vm7 = vmmov %vm16784_vm8  ;;  %v6514_v1 = vadd.f32 %v16789_v20, %v6512_v6  ;;  %v7356_v19 = vadd.f32 %v15569_v23, %v7281_v25  ;;  %v16797_v20 = vld [vmem:[#allocation17_spill] sm:$0xff] }
 0x43a   : > { %v4323_v37 = vmin.f32 %v15715_v54, %v4322_v59  ;;  %v4330_v0 = vsel %vm16788_vm7, %v15732_v21, inf  ;;  %vm16791_vm13 = vmmov %vm16788_vm7  ;;  %vm1041_vm9 = vcmp.eq.s32.totalorder %v12824_v40, %v971_v48  ;;  %v7426_v52 = vadd.f32 %v15567_v5, %v7351_v2  ;;  %v16795_v5 = vld [vmem:[#allocation102_spill] sm:$0xff] }
 0x43b   : > { %v4331_v44 = vmin.f32 %v15718_v26, %v4330_v0  ;;  %v4316_v57 = vrot.slane %v4315_v4, 4  ;;  %v4338_v14 = vsel %vm16791_vm13, %v15752_v49, inf  ;;  %v6516_v17 = vadd.f32 %v16792_v16, %v6514_v1  ;;  %9301 = vmatprep.subr.msk.mxu0 %vm1041_vm9, %v16385_v63  ;;  %v16796_v0 = vld [vmem:[#allocation62_spill] sm:$0xff]  ;;  %v16798_v1 = vld [vmem:[#allocation19_spill] sm:$0xff]  ;;  %vm16803_vm15 = vmmov %vm16788_vm7 }
 0x43c   : > { %v4324_v51 = vrot.slane %v4323_v37, 4  ;;  %v4339_v28 = vmin.f32 %v15726_v13, %v4338_v14  ;;  %v7431_v23 = vadd.f32 %v15587_v38, %v7356_v19  ;;  %v7501_v42 = vadd.f32 %v15603_v24, %v7426_v52 }
 0x43d   : > { %v4332_v47 = vrot.slane %v4331_v44, 4  ;;  %v4317_v31 = vmin.f32 %v4315_v4, %v4316_v57  ;;  %v6518_v41 = vadd.f32 %v16794_v60, %v6516_v17  ;;  %vm1040_vm10 = vcmp.eq.s32.totalorder %v12824_v40, %v967_v9  ;;  %v16799_v57 = vld [vmem:[#allocation23_spill] sm:$0xff] }
 0x43e   : > { %v4325_v43 = vmin.f32 %v4323_v37, %v4324_v51  ;;  %v4340_v45 = vrot.slane %v4339_v28, 4  ;;  %v15771_v6 = vadd.f32 %v15650_v7, %v7431_v23  ;;  %v15776_v27 = vadd.f32 %v15648_v18, %v7501_v42  ;;  %9302 = vmatpush1.xpose.msk.msra.mxu0 %vm1040_vm10, %v16385_v63 }
 0x43f   : > { %v4333_v56 = vmin.f32 %v4331_v44, %v4332_v47  ;;  %v4318_v25 = vrot.slane %v4317_v31, 2  ;;  %v6520_v53 = vadd.f32 %v16795_v5, %v6518_v41  ;;  %v979_v24 = vrot.slane %v16787_v55, %v16796_v0  ;;  %v16800_v47 = vld [vmem:[#allocation61_spill] sm:$0xff] }
 0x440   : > { %v4326_v15 = vrot.slane %v4325_v43, 2  ;;  %v4341_v38 = vmin.f32 %v4339_v28, %v4340_v45  ;;  %v15783_v7 = vrot.slane %v16787_v55, %v16797_v20  ;;  %vm1009_vm12 = vcmp.eq.s32.totalorder %v12783_v3, %v971_v48 }
 0x441   : > { %v4334_v59 = vrot.slane %v4333_v56, 2  ;;  %v4319_v4 = vmin.f32 %v4317_v31, %v4318_v25  ;;  %v6522_v44 = vadd.f32 %v16798_v1, %v6520_v53  ;;  %vm1043_vm11 = vcmp.eq.s32.totalorder %v12824_v40, %v979_v24  ;;  %9303 = vmatprep.subr.msk.mxu0 %vm1009_vm12, %v16385_v63  ;;  %vm16804_vm12 = vmmov %vm16788_vm7  ;;  %v16805_v1 = vld [vmem:[#allocation79_spill] sm:$0xff] }
 0x442   : > { %v4327_v37 = vmin.f32 %v4325_v43, %v4326_v15  ;;  %v4342_v2 = vrot.slane %v4341_v38, 2  ;;  %vm1042_vm14 = vcmp.eq.s32.totalorder %v12824_v40, %v15783_v7  ;;  %9309 = vmatprep.subr.msk.mxu1 %vm1043_vm11, %v16385_v63  ;;  %vm1008_vm6 = vcmp.eq.s32.totalorder %v12783_v3, %v967_v9 }
 0x443   : > { %v4335_v30 = vmin.f32 %v4333_v56, %v4334_v59  ;;  %v4320_v19 = vrot.slane %v4319_v4, 1  ;;  %v6524_v51 = vadd.f32 %v16799_v57, %v6522_v44  ;;  %v15796_v48 = vsel %vm6734_vm4, %v15667_v58, 0.0  ;;  %9310 = vmatpush1.xpose.msk.msra.mxu1 %vm1042_vm14, %v16385_v63  ;;  %9304 = vmatpush1.xpose.msk.msra.mxu0 %vm1008_vm6, %v16385_v63 }
 0x444   : > { %v4328_v18 = vrot.slane %v4327_v37, 1  ;;  %v4343_v55 = vmin.f32 %v4341_v38, %v4342_v2  ;;  %vm1011_vm2 = vcmp.eq.s32.totalorder %v12783_v3, %v979_v24  ;;  %v5005_v52 = vcombine.low %v15595_v12, %v15616_v46  ;;  %v16801_v12 = vld [vmem:[#allocation65_spill] sm:$0xff] }
 0x445   : > { %v4336_v14 = vrot.slane %v4335_v30, 1  ;;  %v15798_v16 = vmin.f32 %v4319_v4, %v4320_v19  ;;  %v6526_v28 = vadd.f32 %v16800_v47, %v6524_v51  ;;  %v5006_v31 = vcombine.low %v15643_v32, %v15663_v8  ;;  %9311 = vmatprep.subr.msk.mxu1 %vm1011_vm2, %v16385_v63 }
 0x446   : > { %v15800_v17 = vmin.f32 %v4327_v37, %v4328_v18  ;;  %v15823_v32 = vrot.slane %v5005_v52, %v14039_v39  ;;  %v5088_v60 = vadd.s32 3712, %v13967_v22  ;;  %v4344_v53 = vrot.slane %v4343_v55, 1  ;;  %v16808_v52 = vld [vmem:[#allocation68_spill] sm:$0xff] }
 0x447   : > { %v15810_v58 = vmin.f32 %v4335_v30, %v4336_v14  ;;  %vm4374_vm3 = vcmp.eq.f32.partialorder %v15712_v62, %v15798_v16  ;;  %vm4406_vm5 = vcmp.eq.f32.partialorder %v15723_v50, %v15798_v16  ;;  %v6528_v46 = vadd.f32 %v16801_v12, %v6526_v28 }
 0x448   : > { %vm4375_vm1 = vcmp.eq.f32.partialorder %v15715_v54, %v15800_v17  ;;  %vm4407_vm0 = vcmp.eq.f32.partialorder %v15729_v35, %v15800_v17  ;;  %v15826_v8 = vrot.slane %v5006_v31, %v14039_v39  ;;  %v4438_v43 = vsel %vm4374_vm3, %v12783_v3, 10  ;;  %v16802_v54 = vld [vmem:[#allocation73_spill] sm:$0xff] }
 0x449   : > { %v4470_v62 = vsel %vm4406_vm5, %v12824_v40, 10  ;;  %v4439_v50 = vsel %vm4375_vm1, %v12783_v3, 10  ;;  %v4471_v23 = vsel %vm4407_vm0, %v12824_v40, 10  ;;  %vm4376_vm8 = vcmp.eq.f32.partialorder %v15718_v26, %v15810_v58 }
 0x44a   : > { %v6530_v35 = vadd.f32 %v16802_v54, %v6528_v46  ;;  %v4810_v34 = vsel %vm16803_vm15, %v4470_v62, 2147483647  ;;  %v4822_v9 = vsel %vm16788_vm7, %v4471_v23, 2147483647  ;;  %v5037_v41 = vcombine.low %v15823_v32, %v15826_v8  ;;  %v16809_v62 = vld [vmem:[#allocation76_spill] sm:$0xff] }
 0x44b   : > { %vm4811_vm13 = vcmp.lt.s32.totalorder %v4438_v43, %v4810_v34  ;;  %vm4823_vm9 = vcmp.lt.s32.totalorder %v4439_v50, %v4822_v9  ;;  %vm4408_vm10 = vcmp.eq.f32.partialorder %v15732_v21, %v15810_v58  ;;  %v4440_v42 = vsel %vm4376_vm8, %v12783_v3, 10  ;;  %vm16806_vm8 = vmmov %vm16788_vm7 }
 0x44c   : > { %v6532_v56 = vadd.f32 %v15671_v36, %v6530_v35  ;;  %v4812_v45 = vsel %vm4811_vm13, %v4438_v43, %v4810_v34  ;;  %v4824_v26 = vsel %vm4823_vm9, %v4439_v50, %v4822_v9  ;;  %v4472_v5 = vsel %vm4408_vm10, %v12824_v40, 10  ;;  %v16810_v9 = vld [vmem:[#allocation83_spill] sm:$0xff] }
 0x44d   : > { %v4813_v25 = vrot.slane %v4812_v45, 4  ;;  %v4825_v15 = vrot.slane %v4824_v26, 4  ;;  %v4834_v38 = vsel %vm16804_vm12, %v4472_v5, 2147483647  ;;  %v15848_v4 = vadd.s32 %v13969_v10, %v5088_v60  ;;  %v16811_v5 = vld [vmem:[#allocation15_spill] sm:$0xff] }
 0x44e   : > { %v6534_v59 = vadd.f32 %v15515_v61, %v6532_v56  ;;  %vm1010_vm11 = vcmp.eq.s32.totalorder %v12783_v3, %v15783_v7  ;;  %vm4835_vm2 = vcmp.lt.s32.totalorder %v4440_v42, %v4834_v38  ;;  %v15852_v36 = vmin.f32 %v4343_v55, %v4344_v53  ;;  %v7580_v7 = vpop.f32.mrf.mxu1 }
 0x44f   : > { %vm4814_vm14 = vcmp.lt.s32.totalorder %v4812_v45, %v4813_v25  ;;  %vm4826_vm6 = vcmp.lt.s32.totalorder %v4824_v26, %v4825_v15  ;;  %9312 = vmatpush1.xpose.msk.msra.mxu1 %vm1010_vm11, %v16385_v63  ;;  %v4836_v61 = vsel %vm4835_vm2, %v4440_v42, %v4834_v38  ;;  %vm5153_vm13 = vcmp.lt.s32.totalorder %v15848_v4, 10000  ;;  %v7650_v42 = vpop.f32.mrf.mxu0  ;;  %v16815_v4 = vld [vmem:[#allocation53_spill] sm:$0xff] }
 0x450   : > { %v6536_v21 = vadd.f32 %v15506_v33, %v6534_v59  ;;  %v4815_v37 = vsel %vm4814_vm14, %v4812_v45, %v4813_v25  ;;  %v4827_v0 = vsel %vm4826_vm6, %v4824_v26, %v4825_v15  ;;  %v4837_v20 = vrot.slane %v4836_v61, 4  ;;  %v7582_v18 = vpop.f32.mrf.mxu1 }
 0x451   : > { %v4816_v24 = vrot.slane %v4815_v37, 2  ;;  %vm4377_vm3 = vcmp.eq.f32.partialorder %v15726_v13, %v15852_v36  ;;  %vm4409_vm5 = vcmp.eq.f32.partialorder %v15752_v49, %v15852_v36  ;;  %v15864_v33 = vadd.f32 %v7580_v7, %v15771_v6  ;;  %v16807_v13 = vld [vmem:[#allocation60_spill] sm:$0xff]  ;;  %v7652_v38 = vpop.f32.mrf.mxu0 }
 0x452   : > { %v6538_v44 = vadd.f32 %v16805_v1, %v6536_v21  ;;  %v4441_v30 = vsel %vm4377_vm3, %v12783_v3, 10  ;;  %v4473_v2 = vsel %vm4409_vm5, %v12824_v40, 10  ;;  %vm4838_vm0 = vcmp.lt.s32.totalorder %v4836_v61, %v4837_v20  ;;  %v16813_v1 = vld [vmem:[#allocation100_spill] sm:$0xff] }
 0x453   : > { %vm4817_vm1 = vcmp.lt.s32.totalorder %v4815_v37, %v4816_v24  ;;  %v4846_v19 = vsel %vm16806_vm8, %v4473_v2, 2147483647  ;;  %v4828_v57 = vrot.slane %v4827_v0, 2  ;;  %v4839_v49 = vsel %vm4838_vm0, %v4836_v61, %v4837_v20 }
 0x454   : > { %v6540_v51 = vadd.f32 %v16807_v13, %v6538_v44  ;;  %v4818_v14 = vsel %vm4817_vm1, %v4815_v37, %v4816_v24  ;;  %vm4847_vm15 = vcmp.lt.s32.totalorder %v4441_v30, %v4846_v19  ;;  %v4840_v55 = vrot.slane %v4839_v49, 2 }
 0x455   : > { %v4848_v47 = vsel %vm4847_vm15, %v4441_v30, %v4846_v19  ;;  %v4819_v28 = vrot.slane %v4818_v14, 1  ;;  %vm4829_vm7 = vcmp.lt.s32.totalorder %v4827_v0, %v4828_v57  ;;  %v5087_v43 = vadd.s32 3584, %v13967_v22 }
 0x456   : > { %v6542_v31 = vadd.f32 %v16808_v52, %v6540_v51  ;;  %v4849_v12 = vrot.slane %v4848_v47, 4  ;;  %v4830_v6 = vsel %vm4829_vm7, %v4827_v0, %v4828_v57  ;;  %vm4841_vm9 = vcmp.lt.s32.totalorder %v4839_v49, %v4840_v55  ;;  %v16814_v57 = vld [vmem:[#allocation37_spill] sm:$0xff]  ;;  %v7725_v51 = vpop.f32.mrf.mxu1 }
 0x457   : > { %vm4820_vm10 = vcmp.lt.s32.totalorder %v4818_v14, %v4819_v28  ;;  %v4831_v46 = vrot.slane %v4830_v6, 1  ;;  %v4842_v23 = vsel %vm4841_vm9, %v4839_v49, %v4840_v55  ;;  %v5120_v34 = vadd.s32 %v13969_v10, %v5087_v43  ;;  %v7655_v49 = vpop.f32.mrf.mxu0 }
 0x458   : > { %v6544_v50 = vadd.f32 %v16809_v62, %v6542_v31  ;;  %vm4850_vm12 = vcmp.lt.s32.totalorder %v4848_v47, %v4849_v12  ;;  %v4821_v54 = vsel %vm4820_vm10, %v4818_v14, %v4819_v28  ;;  %v4843_v45 = vrot.slane %v4842_v23, 1  ;;  %v16816_v31 = vld [vmem:[#allocation77_spill] sm:$0xff] }
 0x459   : > { %v4851_v35 = vsel %vm4850_vm12, %v4848_v47, %v4849_v12  ;;  %vm4832_vm11 = vcmp.lt.s32.totalorder %v4830_v6, %v4831_v46  ;;  %vm6840_vm14 = vcmp.eq.s32.totalorder %v12783_v3, %v4821_v54  ;;  %vm5152_vm2 = vcmp.lt.s32.totalorder %v5120_v34, 10000  ;;  %v7727_v47 = vpop.f32.mrf.mxu1 }
 0x45a   : > { %v6546_v60 = vadd.f32 %v16810_v9, %v6544_v50  ;;  %v4833_v56 = vsel %vm4832_vm11, %v4830_v6, %v4831_v46  ;;  %v4852_v26 = vrot.slane %v4851_v35, 2  ;;  %v5090_v15 = vadd.s32 3968, %v13967_v22  ;;  %vm6968_vm0 = vmand %vm6840_vm14, %vm5152_vm2  ;;  %v7657_v6 = vpop.f32.mrf.mxu0  ;;  %v16818_v46 = vld [vmem:[#allocation88_spill] sm:$0xff] }
 0x45b   : > { %v5007_v25 = vcombine.low %v4821_v54, %v4833_v56  ;;  %vm6841_vm6 = vcmp.eq.s32.totalorder %v12783_v3, %v4833_v56  ;;  %v7651_v59 = vadd.f32 %v7650_v42, %v15776_v27  ;;  %vm4844_vm5 = vcmp.lt.s32.totalorder %v4842_v23, %v4843_v45  ;;  %v16812_v27 = vld [vmem:[#allocation94_spill] sm:$0xff]  ;;  %v7730_v62 = vpop.f32.mrf.mxu1  ;;  %v10321_v47 = vld [vmem:[%s10592_s16 + $0xe48] sm:$0xff] }
 0x45c   : > { %v6548_v53 = vadd.f32 %v16811_v5, %v6546_v60  ;;  %vm6969_vm3 = vmand %vm6841_vm6, %vm5153_vm13  ;;  %vm4853_vm1 = vcmp.lt.s32.totalorder %v4851_v35, %v4852_v26  ;;  %v4845_v37 = vsel %vm4844_vm5, %v4842_v23, %v4843_v45  ;;  %v5123_v61 = vadd.s32 %v13969_v10, %v5090_v15 }
 0x45d   : > { %v15882_v21 = vrot.slane %v5007_v25, %v14039_v39  ;;  %9305 = vmatprep.mubr.msk.f32.mxu0 %vm6969_vm3, %v16385_v63  ;;  %v4854_v0 = vsel %vm4853_vm1, %v4851_v35, %v4852_v26  ;;  %v5089_v7 = vadd.s32 3840, %v13967_v22  ;;  %vm6842_vm8 = vcmp.eq.s32.totalorder %v12783_v3, %v4845_v37  ;;  %v10313_v35 = vld [vmem:[%s10592_s16 + $0xe08] sm:$0xff]  ;;  %v7732_v60 = vpop.f32.mrf.mxu1 }
 0x45e   : > { %v6550_v24 = vadd.f32 %v16812_v27, %v6548_v53  ;;  %9306 = vmatmul.mubr.msk.f32.vlgmr.msra.gmra.mxu0 %vm6968_vm0, %v16385_v63  ;;  %v4855_v20 = vrot.slane %v4854_v0, 1  ;;  %vm5155_vm15 = vcmp.lt.s32.totalorder %v5123_v61, 10000  ;;  %vm6873_vm7 = vcmp.eq.s32.totalorder %v12824_v40, %v4833_v56  ;;  %v10315_v53 = vld [vmem:[%s10592_s16 + $0xe18] sm:$0xff] }
 0x45f   : > { %vm6872_vm9 = vcmp.eq.s32.totalorder %v12824_v40, %v4821_v54  ;;  %vm6874_vm10 = vcmp.eq.s32.totalorder %v12824_v40, %v4845_v37  ;;  %v5122_v30 = vadd.s32 %v13969_v10, %v5089_v7  ;;  %vm7001_vm11 = vmand %vm6873_vm7, %vm5153_vm13  ;;  %v6730_v22 = vsel %vm5152_vm2, %v15798_v16, 0.0 }
 0x460   : > { %v6552_v44 = vadd.f32 %v16813_v1, %v6550_v24  ;;  %vm4856_vm12 = vcmp.lt.s32.totalorder %v4854_v0, %v4855_v20  ;;  %9307 = vmatprep.mubr.msk.f32.mxu0 %vm7001_vm11, %v16385_v63  ;;  %vm7000_vm14 = vmand %vm6872_vm9, %vm5152_vm2  ;;  %v6731_v19 = vsel %vm5153_vm13, %v15800_v17, 0.0  ;;  %v6733_v18 = vsel %vm5155_vm15, %v15852_v36, 0.0  ;;  %v7800_v24 = vpop.f32.mrf.mxu0 }
 0x461   : > { %v4857_v2 = vsel %vm4856_vm12, %v4854_v0, %v4855_v20  ;;  %v6786_v10 = vsel %vm6734_vm4, %v15678_v11, 0.0  ;;  %vm5154_vm3 = vcmp.lt.s32.totalorder %v5122_v30, 10000  ;;  %v7726_v16 = vadd.f32 %v7725_v51, %v7651_v59  ;;  %v10317_v20 = vld [vmem:[%s10592_s16 + $0xe28] sm:$0xff] }
 0x462   : > { %v6554_v13 = vadd.f32 %v16814_v57, %v6552_v44  ;;  %v5008_v14 = vcombine.low %v4845_v37, %v4857_v2  ;;  %vm6843_vm6 = vcmp.eq.s32.totalorder %v12783_v3, %v4857_v2  ;;  %9308 = vmatmul.mubr.msk.f32.gmra.mxu0 %vm7000_vm14, %v16385_v63  ;;  %vm6875_vm2 = vcmp.eq.s32.totalorder %v12824_v40, %v4857_v2  ;;  %vm6970_vm5 = vmand %vm6842_vm8, %vm5154_vm3  ;;  %v10314_v40 = vld [vmem:[%s10592_s16 + $0xe10] sm:$0xff]  ;;  %v10316_v37 = vld [vmem:[%s10592_s16 + $0xe20] sm:$0xff] }
 0x463   : > { %vm6971_vm13 = vmand %vm6843_vm6, %vm5155_vm15  ;;  %v6732_v17 = vsel %vm5154_vm3, %v15810_v58, 0.0  ;;  %v6787_v11 = vadd.f32 %v6786_v10, %v15621_v29  ;;  %v7656_v55 = vadd.f32 %v7655_v49, %v15864_v33  ;;  %v6790_v52 = vsel %vm6734_vm4, %v6730_v22, 0.0  ;;  %v10312_v29 = vld [vmem:[%s10592_s16 + $0xe00] sm:$0xff]  ;;  %v7802_v22 = vpop.f32.mrf.mxu0  ;;  %v10318_v2 = vld [vmem:[%s10592_s16 + $0xe30] sm:$0xff] }
 0x464   : > { %v6556_v36 = vadd.f32 %v16815_v4, %v6554_v13  ;;  %v5036_v28 = vrot.slane %v5008_v14, %v14039_v39  ;;  %9313 = vmatprep.mubr.msk.f32.mxu1 %vm6971_vm13, %v16385_v63  ;;  %vm16817_vm1 = vcmask 261120   ;;  %v5604_v12 = vmul.f32 %v10312_v29, %v10312_v29  ;;  %vm7003_vm0 = vmand %vm6875_vm2, %vm5155_vm15  ;;  %v10319_v13 = vld [vmem:[%s10592_s16 + $0xe38] sm:$0xff]  ;;  %v10320_v4 = vld [vmem:[%s10592_s16 + $0xe40] sm:$0xff] }
 0x465   : > { %v6559_v58 = vsel %vm16817_vm1, %v16816_v31, 0.0  ;;  %9314 = vmatmul.mubr.msk.f32.vlgmr.msra.gmra.mxu1 %vm6970_vm5, %v16385_v63  ;;  %v6789_v33 = vadd.f32 %v15796_v48, %v6787_v11  ;;  %v5045_v43 = vrot.slane %v5037_v41, %v14039_v39  ;;  %vm7002_vm8 = vmand %vm6874_vm10, %vm5154_vm3  ;;  %v6792_v23 = vsel %vm6734_vm4, %v6731_v19, 0.0  ;;  %v16819_v48 = vld [vmem:[#allocation41_spill] sm:$0xff]  ;;  %v7805_v57 = vpop.f32.mrf.mxu0 }
 0x466   : > { %v6558_v3 = vadd.f32 %v16818_v46, %v6556_v36  ;;  %v5038_v50 = vcombine.low %v15882_v21, %v5036_v28  ;;  %9315 = vmatprep.mubr.msk.f32.mxu1 %vm7003_vm0, %v16385_v63  ;;  %vm16820_vm15 = vmmov %vm16817_vm1  ;;  %v5605_v34 = vmul.f32 %v10313_v35, %v10313_v35  ;;  %v7731_v32 = vadd.f32 %v7730_v62, %v7656_v55  ;;  %v10322_v29 = vld [vmem:[%s10592_s16 + $0xe50] sm:$0xff] }
 0x467   : > { %v6561_v54 = vsel %vm16820_vm15, %v16819_v48, 0.0  ;;  %v6791_v8 = vadd.f32 %v6790_v52, %v6789_v33  ;;  %v6794_v56 = vsel %vm6734_vm4, %v6732_v17, 0.0  ;;  %v5606_v45 = vmul.f32 %v10314_v40, %v10314_v40  ;;  %vm16821_vm7 = vmmov %vm16817_vm1  ;;  %v7807_v11 = vpop.f32.mrf.mxu0 }
 0x468   : > { %v6560_v41 = vadd.f32 %v6559_v58, %v6558_v3  ;;  %v5052_v9 = vrot.slane %v5038_v50, %v14039_v39  ;;  %v6563_v26 = vsel %vm16821_vm7, %v5604_v12, 0.0  ;;  %v6796_v5 = vsel %vm6734_vm4, %v6733_v18, 0.0  ;;  %vm16822_vm9 = vmmov %vm16817_vm1  ;;  %v7875_v58 = vpop.f32.mrf.mxu1  ;;  %v10334_v11 = vld [vmem:[%s10592_s16 + $0xeb0] sm:$0xff] }
 0x469   : > { %9316 = vmatmul.mubr.msk.f32.gmra.mxu1 %vm7002_vm8, %v16385_v63  ;;  %v6793_v42 = vadd.f32 %v6792_v23, %v6791_v8  ;;  %v5607_v59 = vmul.f32 %v10315_v53, %v10315_v53  ;;  %v6565_v39 = vsel %vm16822_vm9, %v5605_v34, 0.0  ;;  %v5608_v0 = vmul.f32 %v10316_v37, %v10316_v37  ;;  %vm16823_vm10 = vmmov %vm16817_vm1 }
 0x46a   : > { %v6562_v25 = vadd.f32 %v6561_v54, %v6560_v41  ;;  %v5053_v15 = vcombine.low %v5045_v43, %v5052_v9  ;;  %v6567_v61 = vsel %vm16823_vm10, %v5606_v45, 0.0  ;;  %v5609_v7 = vmul.f32 %v10317_v20, %v10317_v20  ;;  %vm16824_vm4 = vmmov %vm16817_vm1  ;;  %v7877_v3 = vpop.f32.mrf.mxu1  ;;  %v10323_v43 = vld [vmem:[%s10592_s16 + $0xe58] sm:$0xff]  ;;  %v10324_v54 = vld [vmem:[%s10592_s16 + $0xe60] sm:$0xff] }
 0x46b   : > { %v6795_v38 = vadd.f32 %v6794_v56, %v6793_v42  ;;  %v6569_v1 = vsel %vm16824_vm4, %v5607_v59, 0.0  ;;  %v7801_v44 = vadd.f32 %v7800_v24, %v7726_v16  ;;  %v5610_v19 = vmul.f32 %v10318_v2, %v10318_v2  ;;  %vm16825_vm12 = vmmov %vm16817_vm1  ;;  %v10325_v9 = vld [vmem:[%s10592_s16 + $0xe68] sm:$0xff]  ;;  %v10326_v45 = vld [vmem:[%s10592_s16 + $0xe70] sm:$0xff] }
 0x46c   : > { %v6564_v21 = vadd.f32 %v6563_v26, %v6562_v25  ;;  %5057 = vst [vmem:[%s10599_s30 + $0x18] sm:$0xff] %v5053_v15  ;;  %v6571_v18 = vsel %vm16825_vm12, %v5608_v0, 0.0  ;;  %v5611_v51 = vmul.f32 %v10319_v13, %v10319_v13  ;;  %vm16826_vm11 = vmmov %vm16817_vm1  ;;  %v7806_v49 = vadd.f32 %v7805_v57, %v7731_v32  ;;  %v7880_v48 = vpop.f32.mrf.mxu1  ;;  %v10327_v15 = vld [vmem:[%s10592_s16 + $0xe78] sm:$0xff]  ;;  %v10330_v20 = vld [vmem:[%s10592_s16 + $0xe90] sm:$0xff] }
 0x46d   : > { %v15960_v63 = vadd.f32 %v6796_v5, %v6795_v38  ;;  %v6573_v14 = vsel %vm16826_vm11, %v5609_v7, 0.0  ;;  %v5612_v16 = vmul.f32 %v10320_v4, %v10320_v4  ;;  %vm16827_vm14 = vmmov %vm16817_vm1  ;;  %v5613_v28 = vmul.f32 %v10321_v47, %v10321_v47  ;;  %v10328_v38 = vld [vmem:[%s10592_s16 + $0xe80] sm:$0xff] }
 0x46e   : > { %v6566_v27 = vadd.f32 %v6565_v39, %v6564_v21  ;;  %v6575_v36 = vsel %vm16827_vm14, %v5610_v19, 0.0  ;;  %vm16828_vm6 = vmmov %vm16817_vm1  ;;  %v5614_v12 = vmul.f32 %v10322_v29, %v10322_v29  ;;  %v15974_v33 = vadd.f32 %v7875_v58, %v7801_v44  ;;  %v7882_v41 = vpop.f32.mrf.mxu1 }
 0x46f   : > { %v6577_v52 = vsel %vm16828_vm6, %v5611_v51, 0.0  ;;  %vm16829_vm3 = vmmov %vm16817_vm1  ;;  %v5615_v62 = vmul.f32 %v10323_v43, %v10323_v43  ;;  %v5616_v35 = vmul.f32 %v10324_v54, %v10324_v54  ;;  %v15980_v32 = vadd.f32 %v7880_v48, %v7806_v49  ;;  %v10333_v51 = vld [vmem:[%s10592_s16 + $0xea8] sm:$0xff]  ;;  %v10339_v54 = vld [vmem:[%s10592_s16 + $0xed8] sm:$0xff] }
 0x470   : > { %v6568_v30 = vadd.f32 %v6567_v61, %v6566_v27  ;;  %v6579_v6 = vsel %vm16829_vm3, %v5612_v16, 0.0  ;;  %vm16830_vm13 = vmmov %vm16817_vm1  ;;  %v5617_v60 = vmul.f32 %v10325_v9, %v10325_v9  ;;  %v5618_v26 = vmul.f32 %v10326_v45, %v10326_v45  ;;  %v10329_v61 = vld [vmem:[%s10592_s16 + $0xe88] sm:$0xff]  ;;  %v10340_v41 = vld [vmem:[%s10592_s16 + $0xee0] sm:$0xff] }
 0x471   : > { %v6581_v50 = vsel %vm16830_vm13, %v5613_v28, 0.0  ;;  %vm16831_vm2 = vmmov %vm16817_vm1  ;;  %v6587_v42 = vsel %vm16817_vm1, %v5616_v35, 0.0  ;;  %v5619_v5 = vmul.f32 %v10327_v15, %v10327_v15  ;;  %v5620_v21 = vmul.f32 %v10328_v38, %v10328_v38  ;;  %v10341_v45 = vld [vmem:[%s10592_s16 + $0xee8] sm:$0xff] }
 0x472   : > { %v6570_v10 = vadd.f32 %v6569_v1, %v6568_v30  ;;  %v6583_v34 = vsel %vm16831_vm2, %v5614_v12, 0.0  ;;  %vm16832_vm5 = vmmov %vm16817_vm1  ;;  %v5621_v27 = vmul.f32 %v10329_v61, %v10329_v61  ;;  %v5622_v7 = vmul.f32 %v10330_v20, %v10330_v20  ;;  %v10331_v30 = vld [vmem:[%s10592_s16 + $0xe98] sm:$0xff] }
 0x473   : > { %v6585_v56 = vsel %vm16832_vm5, %v5615_v62, 0.0  ;;  %vm16833_vm0 = vmmov %vm16817_vm1  ;;  %v5623_v22 = vmul.f32 %v10331_v30, %v10331_v30  ;;  %v5626_v4 = vmul.f32 %v10334_v11, %v10334_v11  ;;  %v10338_v62 = vld [vmem:[%s10592_s16 + $0xed0] sm:$0xff]  ;;  %v5631_v35 = vmul.f32 %v10339_v54, %v10339_v54 }
 0x474   : > { %v6572_v17 = vadd.f32 %v6571_v18, %v6570_v10  ;;  %v6589_v53 = vsel %vm16833_vm0, %v5617_v60, 0.0  ;;  %vm16834_vm8 = vmmov %vm16833_vm0  ;;  %v10332_v18 = vld [vmem:[%s10592_s16 + $0xea0] sm:$0xff]  ;;  %v5632_v9 = vmul.f32 %v10340_v41, %v10340_v41 }
 0x475   : > { %v6591_v39 = vsel %vm16834_vm8, %v5618_v26, 0.0  ;;  %vm16835_vm15 = vmmov %vm16833_vm0  ;;  %v5624_v10 = vmul.f32 %v10332_v18, %v10332_v18  ;;  %v5633_v26 = vmul.f32 %v10341_v45, %v10341_v45  ;;  %v10345_v18 = vld [vmem:[%s10592_s16 + $0xf08] sm:$0xff]  ;;  %v10354_v45 = vld [vmem:[%s10592_s16 + $0xf50] sm:$0xff] }
 0x476   : > { %v6574_v55 = vadd.f32 %v6573_v14, %v6572_v17  ;;  %v6593_v0 = vsel %vm16835_vm15, %v5619_v5, 0.0  ;;  %vm16836_vm7 = vmmov %vm16833_vm0  ;;  %v5625_v14 = vmul.f32 %v10333_v51, %v10333_v51 }
 0x477   : > { %v6595_v1 = vsel %vm16836_vm7, %v5620_v21, 0.0  ;;  %vm16837_vm9 = vmmov %vm16833_vm0  ;;  %v6621_v61 = vsel %vm16833_vm0, %v5633_v26, 0.0  ;;  %v5646_v26 = vmul.f32 %v10354_v45, %v10354_v45 }
 0x478   : > { %v6576_v31 = vadd.f32 %v6575_v36, %v6574_v55  ;;  %v6597_v2 = vsel %vm16837_vm9, %v5621_v27, 0.0  ;;  %vm16838_vm10 = vmmov %vm16833_vm0  ;;  %v10335_v55 = vld [vmem:[%s10592_s16 + $0xeb8] sm:$0xff] }
 0x479   : > { %v6599_v57 = vsel %vm16838_vm10, %v5622_v7, 0.0  ;;  %vm16839_vm4 = vmmov %vm16833_vm0  ;;  %v5627_v47 = vmul.f32 %v10335_v55, %v10335_v55 }
 0x47a   : > { %v6578_v46 = vadd.f32 %v6577_v52, %v6576_v31  ;;  %v6601_v49 = vsel %vm16839_vm4, %v5623_v22, 0.0  ;;  %vm16840_vm12 = vmmov %vm16833_vm0  ;;  %v10336_v31 = vld [vmem:[%s10592_s16 + $0xec0] sm:$0xff] }
 0x47b   : > { %v6603_v16 = vsel %vm16840_vm12, %v5624_v10, 0.0  ;;  %vm16841_vm11 = vmmov %vm16833_vm0  ;;  %v5628_v58 = vmul.f32 %v10336_v31, %v10336_v31  ;;  %v5637_v10 = vmul.f32 %v10345_v18, %v10345_v18 }
 0x47c   : > { %v6580_v23 = vadd.f32 %v6579_v6, %v6578_v46  ;;  %v6605_v28 = vsel %vm16841_vm11, %v5625_v14, 0.0  ;;  %vm16842_vm14 = vmmov %vm16833_vm0  ;;  %v10337_v6 = vld [vmem:[%s10592_s16 + $0xec8] sm:$0xff] }
 0x47d   : > { %v6607_v29 = vsel %vm16842_vm14, %v5626_v4, 0.0  ;;  %v5629_v46 = vmul.f32 %v10337_v6, %v10337_v6  ;;  %vm16843_vm6 = vmmov %vm16833_vm0  ;;  %v10347_v4 = vld [vmem:[%s10592_s16 + $0xf18] sm:$0xff] }
 0x47e   : > { %v6582_v8 = vadd.f32 %v6581_v50, %v6580_v23  ;;  %v6609_v3 = vsel %vm16843_vm6, %v5627_v47, 0.0  ;;  %v5630_v50 = vmul.f32 %v10338_v62, %v10338_v62  ;;  %vm16844_vm3 = vmmov %vm16833_vm0  ;;  %v10348_v47 = vld [vmem:[%s10592_s16 + $0xf20] sm:$0xff] }
 0x47f   : > { %v6611_v23 = vsel %vm16844_vm3, %v5628_v58, 0.0  ;;  %vm16845_vm13 = vmmov %vm16833_vm0  ;;  %v10349_v58 = vld [vmem:[%s10592_s16 + $0xf28] sm:$0xff] }
 0x480   : > { %v6584_v40 = vadd.f32 %v6583_v34, %v6582_v8  ;;  %v6613_v34 = vsel %vm16845_vm13, %v5629_v46, 0.0  ;;  %vm16846_vm2 = vmmov %vm16833_vm0  ;;  %v10350_v46 = vld [vmem:[%s10592_s16 + $0xf30] sm:$0xff] }
 0x481   : > { %v6615_v60 = vsel %vm16846_vm2, %v5630_v50, 0.0  ;;  %vm16847_vm5 = vmmov %vm16833_vm0  ;;  %v10351_v50 = vld [vmem:[%s10592_s16 + $0xf38] sm:$0xff] }
 0x482   : > { %v6586_v25 = vadd.f32 %v6585_v56, %v6584_v40  ;;  %vm16848_vm1 = vmmov %vm16833_vm0 }
 0x483   : > { %vm16849_vm8 = vmmov %vm16833_vm0 }
 0x484   : > { %v6588_v59 = vadd.f32 %v6587_v42, %v6586_v25  ;;  %v6617_v42 = vsel %vm16847_vm5, %v5631_v35, 0.0  ;;  %vm16850_vm15 = vmmov %vm16833_vm0  ;;  %v10352_v35 = vld [vmem:[%s10592_s16 + $0xf40] sm:$0xff] }
 0x485   : > { %vm16851_vm7 = vmmov %vm16833_vm0 }
 0x486   : > { %v6590_v37 = vadd.f32 %v6589_v53, %v6588_v59  ;;  %v10342_v53 = vld [vmem:[%s10592_s16 + $0xef0] sm:$0xff]  ;;  %vm16852_vm9 = vmmov %vm16833_vm0 }
 0x487   : > { %v5634_v59 = vmul.f32 %v10342_v53, %v10342_v53  ;;  %vm16853_vm10 = vmmov %vm16833_vm0 }
 0x488   : > { %v6592_v24 = vadd.f32 %v6591_v39, %v6590_v37  ;;  %v6619_v39 = vsel %vm16848_vm1, %v5632_v9, 0.0  ;;  %v10343_v37 = vld [vmem:[%s10592_s16 + $0xef8] sm:$0xff]  ;;  %vm16854_vm4 = vmmov %vm16833_vm0  ;;  %v10353_v9 = vld [vmem:[%s10592_s16 + $0xf48] sm:$0xff] }
 0x489   : > { %v6623_v7 = vsel %vm16849_vm8, %v5634_v59, 0.0  ;;  %vm16855_vm12 = vmmov %vm16833_vm0 }
 0x48a   : > { %v6594_v44 = vadd.f32 %v6593_v0, %v6592_v24  ;;  %v5635_v0 = vmul.f32 %v10343_v37, %v10343_v37  ;;  %vm16856_vm11 = vmmov %vm16833_vm0 }
 0x48b   : > { %vm16857_vm14 = vmmov %vm16833_vm0 }
 0x48c   : > { %v6596_v19 = vadd.f32 %v6595_v1, %v6594_v44  ;;  %v10344_v1 = vld [vmem:[%s10592_s16 + $0xf00] sm:$0xff]  ;;  %vm16858_vm6 = vmmov %vm16833_vm0 }
 0x48d   : > { %v7950_v40 = vpop.f32.mrf.mxu0  ;;  %v5636_v44 = vmul.f32 %v10344_v1, %v10344_v1  ;;  %vm16859_vm3 = vmmov %vm16833_vm0 }
 0x48e   : > { %v6598_v13 = vadd.f32 %v6597_v2, %v6596_v19  ;;  %v7951_v25 = vadd.f32 %v7950_v40, %v15974_v33  ;;  %v6625_v19 = vsel %vm16850_vm15, %v5635_v0, 0.0  ;;  %vm16860_vm13 = vmmov %vm16833_vm0  ;;  %v10357_v0 = vld [vmem:[%s10592_s16 + $0xf68] sm:$0xff] }
 0x48f   : > { %v7952_v5 = vpop.f32.mrf.mxu0  ;;  %v6627_v14 = vsel %vm16851_vm7, %v5636_v44, 0.0  ;;  %vm16861_vm2 = vmmov %vm16833_vm0  ;;  %v10359_v44 = vld [vmem:[%s10592_s16 + $0xf78] sm:$0xff] }
 0x490   : > { %v6600_v17 = vadd.f32 %v6599_v57, %v6598_v13  ;;  %v10346_v13 = vld [vmem:[%s10592_s16 + $0xf10] sm:$0xff]  ;;  %vm16862_vm5 = vmmov %vm16833_vm0 }
 0x491   : > { %v7955_v21 = vpop.f32.mrf.mxu0  ;;  %v5638_v51 = vmul.f32 %v10346_v13, %v10346_v13  ;;  %vm16863_vm1 = vmmov %vm16833_vm0 }
 0x492   : > { %v6602_v36 = vadd.f32 %v6601_v49, %v6600_v17  ;;  %v7956_v27 = vadd.f32 %v7955_v21, %v15980_v32  ;;  %v6647_v21 = vsel %vm16861_vm2, %v5646_v26, 0.0  ;;  %vm16864_vm8 = vmmov %vm16833_vm0 }
 0x493   : > { %v8025_v20 = vpop.f32.mrf.mxu1  ;;  %v7957_v33 = vpop.f32.mrf.mxu0  ;;  %vm16865_vm15 = vmmov %vm16833_vm0 }
 0x494   : > { %v6604_v52 = vadd.f32 %v6603_v16, %v6602_v36  ;;  %v16024_v30 = vadd.f32 %v8025_v20, %v7951_v25  ;;  %v5639_v16 = vmul.f32 %v10347_v4, %v10347_v4  ;;  %v6629_v36 = vsel %vm16852_vm9, %v5637_v10, 0.0  ;;  %v10358_v20 = vld [vmem:[%s10592_s16 + $0xf70] sm:$0xff]  ;;  %v10360_v10 = vld [vmem:[%s10592_s16 + $0xf80] sm:$0xff]  ;;  %vm16866_vm7 = vmmov %vm16833_vm0 }
 0x495   : > { %v8027_v2 = vpop.f32.mrf.mxu1  ;;  %v5650_v33 = vmul.f32 %v10358_v20, %v10358_v20  ;;  %vm16867_vm9 = vmmov %vm16833_vm0 }
 0x496   : > { %v6606_v12 = vadd.f32 %v6605_v28, %v6604_v52  ;;  %v5640_v28 = vmul.f32 %v10348_v47, %v10348_v47  ;;  %v6631_v52 = vsel %vm16853_vm10, %v5638_v51, 0.0  ;;  %v10361_v51 = vld [vmem:[%s10592_s16 + $0xf88] sm:$0xff]  ;;  %vm16868_vm10 = vmmov %vm16833_vm0 }
 0x497   : > { %v6655_v18 = vsel %vm16864_vm8, %v5650_v33, 0.0  ;;  %vm16876_vm2 = vmmov %vm16833_vm0 }
 0x498   : > { %v6608_v43 = vadd.f32 %v6607_v29, %v6606_v12  ;;  %v8030_v32 = vpop.f32.mrf.mxu1  ;;  %v5641_v29 = vmul.f32 %v10349_v58, %v10349_v58  ;;  %v6633_v12 = vsel %vm16854_vm4, %v5639_v16, 0.0  ;;  %vm16869_vm4 = vmmov %vm16833_vm0 }
 0x499   : > { %v16030_v49 = vadd.f32 %v8030_v32, %v7956_v27  ;;  %vm16879_vm8 = vmmov %vm16833_vm0 }
 0x49a   : > { %v6610_v48 = vadd.f32 %v6609_v3, %v6608_v43  ;;  %v8032_v11 = vpop.f32.mrf.mxu1  ;;  %v5642_v3 = vmul.f32 %v10350_v46, %v10350_v46  ;;  %v6635_v43 = vsel %vm16855_vm12, %v5640_v28, 0.0  ;;  %vm16870_vm12 = vmmov %vm16833_vm0 }
 0x49b   : > { %v10362_v11 = vld [vmem:[%s10592_s16 + $0xf90] sm:$0xff] }
 0x49c   : > { %v6612_v8 = vadd.f32 %v6611_v23, %v6610_v48  ;;  %v5643_v23 = vmul.f32 %v10351_v50, %v10351_v50  ;;  %v6637_v48 = vsel %vm16856_vm11, %v5641_v29, 0.0  ;;  %v5654_v4 = vmul.f32 %v10362_v11, %v10362_v11  ;;  %vm16871_vm11 = vmmov %vm16833_vm0 }
 0x49e   : > { %v6614_v56 = vadd.f32 %v6613_v34, %v6612_v8  ;;  %v5644_v34 = vmul.f32 %v10352_v35, %v10352_v35  ;;  %v6639_v8 = vsel %vm16857_vm14, %v5642_v3, 0.0  ;;  %v6663_v29 = vsel %vm16868_vm10, %v5654_v4, 0.0  ;;  %vm16872_vm14 = vmmov %vm16833_vm0 }
 0x49f   : > { %vm6810_vm10 = vcmask 0  }
 0x4a0   : > { %v6616_v15 = vadd.f32 %v6615_v60, %v6614_v56  ;;  %v5645_v60 = vmul.f32 %v10353_v9, %v10353_v9  ;;  %v6641_v56 = vsel %vm16858_vm6, %v5643_v23, 0.0  ;;  %vm16873_vm6 = vmmov %vm16833_vm0 }
 0x4a2   : > { %v6618_v38 = vadd.f32 %v6617_v42, %v6616_v15  ;;  %v6643_v42 = vsel %vm16859_vm3, %v5644_v34, 0.0  ;;  %v10355_v15 = vld [vmem:[%s10592_s16 + $0xf58] sm:$0xff]  ;;  %v6645_v53 = vsel %vm16860_vm13, %v5645_v60, 0.0  ;;  %vm16874_vm3 = vmmov %vm16833_vm0 }
 0x4a3   : > { %v5647_v5 = vmul.f32 %v10355_v15, %v10355_v15  ;;  %vm16875_vm13 = vmmov %vm16833_vm0 }
 0x4a4   : > { %v6620_v24 = vadd.f32 %v6619_v39, %v6618_v38  ;;  %v10356_v39 = vld [vmem:[%s10592_s16 + $0xf60] sm:$0xff] }
 0x4a5   : > { %v5648_v38 = vmul.f32 %v10356_v39, %v10356_v39  ;;  %v6649_v27 = vsel %vm16862_vm5, %v5647_v5, 0.0  ;;  %vm16877_vm5 = vmmov %vm16833_vm0 }
 0x4a6   : > { %v6622_v22 = vadd.f32 %v6621_v61, %v6620_v24  ;;  %v5649_v61 = vmul.f32 %v10357_v0, %v10357_v0 }
 0x4a8   : > { %v6624_v57 = vadd.f32 %v6623_v7, %v6622_v22  ;;  %v6651_v7 = vsel %vm16863_vm1, %v5648_v38, 0.0  ;;  %v5651_v22 = vmul.f32 %v10359_v44, %v10359_v44  ;;  %v6653_v2 = vsel %vm16833_vm0, %v5649_v61, 0.0  ;;  %vm16878_vm1 = vmmov %vm16833_vm0 }
 0x4aa   : > { %v6626_v17 = vadd.f32 %v6625_v19, %v6624_v57  ;;  %v5652_v57 = vmul.f32 %v10360_v10, %v10360_v10  ;;  %v6657_v13 = vsel %vm16865_vm15, %v5651_v22, 0.0  ;;  %vm16880_vm15 = vmmov %vm16833_vm0 }
 0x4ac   : > { %v6628_v55 = vadd.f32 %v6627_v14, %v6626_v17  ;;  %v5653_v14 = vmul.f32 %v10361_v51, %v10361_v51  ;;  %v6659_v16 = vsel %vm16866_vm7, %v5652_v57, 0.0  ;;  %vm8336_vm7 = vcmask 80896  }
 0x4ae   : > { %v6630_v31 = vadd.f32 %v6629_v36, %v6628_v55  ;;  %v10363_v55 = vld [vmem:[%s10592_s16 + $0xf98] sm:$0xff]  ;;  %v6661_v28 = vsel %vm16867_vm9, %v5653_v14, 0.0  ;;  %vm8338_vm9 = vcmask 74752  }
 0x4af   : > { %v5655_v47 = vmul.f32 %v10363_v55, %v10363_v55 }
 0x4b0   : > { %v6632_v6 = vadd.f32 %v6631_v52, %v6630_v31  ;;  %v10364_v31 = vld [vmem:[%s10592_s16 + $0xfa0] sm:$0xff] }
 0x4b1   : > { %v5656_v58 = vmul.f32 %v10364_v31, %v10364_v31  ;;  %v6665_v3 = vsel %vm16869_vm4, %v5655_v47, 0.0 }
 0x4b2   : > { %v6634_v62 = vadd.f32 %v6633_v12, %v6632_v6  ;;  %v10365_v6 = vld [vmem:[%s10592_s16 + $0xfa8] sm:$0xff] }
 0x4b3   : > { %v5657_v46 = vmul.f32 %v10365_v6, %v10365_v6  ;;  %v6667_v23 = vsel %vm16870_vm12, %v5656_v58, 0.0 }
 0x4b4   : > { %v6636_v54 = vadd.f32 %v6635_v43, %v6634_v62  ;;  %v10366_v62 = vld [vmem:[%s10592_s16 + $0xfb0] sm:$0xff] }
 0x4b5   : > { %v5658_v50 = vmul.f32 %v10366_v62, %v10366_v62  ;;  %v6669_v34 = vsel %vm16871_vm11, %v5657_v46, 0.0 }
 0x4b6   : > { %v6638_v41 = vadd.f32 %v6637_v48, %v6636_v54  ;;  %v10367_v54 = vld [vmem:[%s10592_s16 + $0xfb8] sm:$0xff] }
 0x4b7   : > { %v5659_v35 = vmul.f32 %v10367_v54, %v10367_v54  ;;  %v6671_v60 = vsel %vm16872_vm14, %v5658_v50, 0.0  ;;  %v7132_v50 = vld [vmem:[#allocation4] sm:$0xff] }
 0x4b8   : > { %v6640_v40 = vadd.f32 %v6639_v8, %v6638_v41  ;;  %v10368_v41 = vld [vmem:[%s10592_s16 + $0xfc0] sm:$0xff] }
 0x4b9   : > { %v5660_v9 = vmul.f32 %v10368_v41, %v10368_v41  ;;  %v6673_v26 = vsel %vm16873_vm6, %v5659_v35, 0.0 }
 0x4ba   : > { %v6642_v25 = vadd.f32 %v6641_v56, %v6640_v40  ;;  %v10369_v40 = vld [vmem:[%s10592_s16 + $0xfc8] sm:$0xff] }
 0x4bb   : > { %v5661_v45 = vmul.f32 %v10369_v40, %v10369_v40  ;;  %v6675_v5 = vsel %vm16874_vm3, %v5660_v9, 0.0 }
 0x4bc   : > { %v6644_v59 = vadd.f32 %v6643_v42, %v6642_v25  ;;  %v10370_v25 = vld [vmem:[%s10592_s16 + $0xfd0] sm:$0xff] }
 0x4bd   : > { %v5662_v15 = vmul.f32 %v10370_v25, %v10370_v25  ;;  %v6677_v38 = vsel %vm16875_vm13, %v5661_v45, 0.0 }
 0x4be   : > { %v6646_v37 = vadd.f32 %v6645_v53, %v6644_v59  ;;  %v10371_v59 = vld [vmem:[%s10592_s16 + $0xfd8] sm:$0xff] }
 0x4bf   : > { %v5663_v39 = vmul.f32 %v10371_v59, %v10371_v59  ;;  %v6679_v61 = vsel %vm16876_vm2, %v5662_v15, 0.0 }
 0x4c0   : > { %v6648_v24 = vadd.f32 %v6647_v21, %v6646_v37  ;;  %v10372_v37 = vld [vmem:[%s10592_s16 + $0xfe0] sm:$0xff] }
 0x4c1   : > { %v5664_v0 = vmul.f32 %v10372_v37, %v10372_v37  ;;  %v6681_v33 = vsel %vm16877_vm5, %v5663_v39, 0.0  ;;  %v6701_v37 = vld [vmem:[#allocation3] sm:$0x1] }
 0x4c2   : > { %v6650_v1 = vadd.f32 %v6649_v27, %v6648_v24  ;;  %v10373_v24 = vld [vmem:[%s10592_s16 + $0xfe8] sm:$0xff] }
 0x4c3   : > { %v5665_v20 = vmul.f32 %v10373_v24, %v10373_v24  ;;  %v6683_v22 = vsel %vm16878_vm1, %v5664_v0, 0.0 }
 0x4c4   : > { %v6652_v19 = vadd.f32 %v6651_v7, %v6650_v1  ;;  %v10374_v1 = vld [vmem:[%s10592_s16 + $0xff0] sm:$0xff] }
 0x4c5   : > { %v5666_v44 = vmul.f32 %v10374_v1, %v10374_v1  ;;  %v6685_v10 = vsel %vm16833_vm0, %v5665_v20, 0.0 }
 0x4c6   : > { %v6654_v32 = vadd.f32 %v6653_v2, %v6652_v19  ;;  %v10375_v19 = vld [vmem:[%s10592_s16 + $0xff8] sm:$0xff] }
 0x4c8   : > { %v6656_v17 = vadd.f32 %v6655_v18, %v6654_v32  ;;  %v5667_v18 = vmul.f32 %v10375_v19, %v10375_v19  ;;  %v6687_v32 = vsel %vm16879_vm8, %v5666_v44, 0.0 }
 0x4ca   : > { %v6658_v36 = vadd.f32 %v6657_v13, %v6656_v17  ;;  %v6689_v51 = vsel %vm16880_vm15, %v5667_v18, 0.0 }
 0x4cc   : > { %v6660_v52 = vadd.f32 %v6659_v16, %v6658_v36 }
 0x4ce   : > { %v6662_v12 = vadd.f32 %v6661_v28, %v6660_v52 }
 0x4d0   : > { %v6664_v43 = vadd.f32 %v6663_v29, %v6662_v12 }
 0x4d2   : > { %v6666_v48 = vadd.f32 %v6665_v3, %v6664_v43 }
 0x4d4   : > { %v6668_v8 = vadd.f32 %v6667_v23, %v6666_v48 }
 0x4d6   : > { %v6670_v56 = vadd.f32 %v6669_v34, %v6668_v8  ;;  %v7133_v34 = vld [vmem:[#allocation4 + $0x8] sm:$0x3] }
 0x4d8   : > { %v6672_v42 = vadd.f32 %v6671_v60, %v6670_v56 }
 0x4da   : > { %v6674_v53 = vadd.f32 %v6673_v26, %v6672_v42 }
 0x4dc   : > { %v6676_v21 = vadd.f32 %v6675_v5, %v6674_v53 }
 0x4de   : > { %v6678_v27 = vadd.f32 %v6677_v38, %v6676_v21 }
 0x4e0   : > { %v6680_v7 = vadd.f32 %v6679_v61, %v6678_v27 }
 0x4e2   : > { %v6682_v2 = vadd.f32 %v6681_v33, %v6680_v7 }
 0x4e4   : > { %v6684_v57 = vadd.f32 %v6683_v22, %v6682_v2 }
 0x4e6   : > { %v6686_v13 = vadd.f32 %v6685_v10, %v6684_v57 }
 0x4e8   : > { %v6688_v14 = vadd.f32 %v6687_v32, %v6686_v13 }
 0x4ea   : > { %v6690_v17 = vadd.f32 %v6689_v51, %v6688_v14  ;;  %v8100_v11 = vpop.f32.mrf.mxu0 }
 0x4eb   : > { %v8101_v31 = vadd.f32 %v8100_v11, %v16024_v30 }
 0x4ec   : > { %6691 = vadd.xlane.f32.xlu1 %v6690_v17  ;;  %v8102_v4 = vpop.f32.mrf.mxu0 }
 0x4f0   : > { %6798 = vadd.xlane.f32.xlu1 %v15960_v63 }
 0x4f3   : > { %v8175_v16 = vpop.f32.mrf.mxu1  ;;  %v8105_v36 = vpop.f32.mrf.mxu0 }
 0x4f4   : > { %v8176_v29 = vadd.f32 %v8175_v16, %v8101_v31  ;;  %v8106_v12 = vadd.f32 %v8105_v36, %v16030_v49 }
 0x4f5   : > { %v8177_v55 = vpop.f32.mrf.mxu1  ;;  %v8107_v47 = vpop.f32.mrf.mxu0 }
 0x4f7   : > { %v8180_v28 = vpop.f32.mrf.mxu1 }
 0x4f8   : > { %v8181_v43 = vadd.f32 %v8180_v28, %v8106_v12 }
 0x4f9   : > { %v8182_v52 = vpop.f32.mrf.mxu1 }
 0x51e   : > { %v8250_v58 = vpop.f32.mrf.mxu0 }
 0x51f   : > { %v8251_v46 = vadd.f32 %v8250_v58, %v8176_v29 }
 0x520   : > { %v8252_v6 = vpop.f32.mrf.mxu0 }
 0x522   : > { %v8255_v3 = vpop.f32.mrf.mxu0 }
 0x523   : > { %v8256_v48 = vadd.f32 %v8255_v3, %v8181_v43 }
 0x524   : > { %v8257_v62 = vpop.f32.mrf.mxu0 }
 0x525   : > { %v8325_v23 = vpop.f32.mrf.mxu1 }
 0x526   : > { %v8326_v63 = vadd.f32 %v8325_v23, %v8251_v46 }
 0x527   : > { %v8327_v54 = vpop.f32.mrf.mxu1 }
 0x528   : > { %v8334_v35 = vadd.f32 %v8326_v63, %v7132_v50 }
 0x529   : > { %v8330_v8 = vpop.f32.mrf.mxu1 }
 0x52a   : > { %8337 = vst.msk [vmem:[#allocation4] sm:$0xff] %vm8336_vm7, %v8334_v35  ;;  %v8331_v30 = vadd.f32 %v8330_v8, %v8256_v48 }
 0x52b   : > { %v8332_v41 = vpop.f32.mrf.mxu1 }
 0x52c   : > { %v8335_v49 = vadd.f32 %v8331_v30, %v7133_v34 }
 0x52e   : > { %8339 = vst.msk [vmem:[#allocation4 + $0x8] sm:$0x3] %vm8338_vm9, %v8335_v49 }
 0x575   : > { %v6692_v9 = vpop.xlane.xlu1 %6691 }
 0x576   : > { %v6693_v60 = vrot.slane %v6692_v9, 4 }
 0x578   : > { %v6694_v56 = vadd.f32 %v6693_v60, %v6692_v9 }
 0x579   : > { %v6799_v40 = vpop.xlane.xlu1 %6798 }
 0x57a   : > { %v6695_v45 = vrot.slane %v6694_v56, 2  ;;  %v6800_v26 = vrot.slane %v6799_v40, 4 }
 0x57c   : > { %v6801_v42 = vadd.f32 %v6800_v26, %v6799_v40  ;;  %v6696_v25 = vadd.f32 %v6695_v45, %v6694_v56 }
 0x57e   : > { %v6802_v15 = vrot.slane %v6801_v42, 2  ;;  %v6697_v5 = vrot.slane %v6696_v25, 1 }
 0x580   : > { %v6803_v53 = vadd.f32 %v6802_v15, %v6801_v42  ;;  %v6698_v59 = vadd.f32 %v6697_v5, %v6696_v25 }
 0x582   : > { %9903 = vpush %v6698_v59  ;;  %v6804_v39 = vrot.slane %v6803_v53, 1 }
 0x584   : > { %v6805_v38 = vadd.f32 %v6804_v39, %v6803_v53 }
 0x586   : > { %9905 = vpush %v6805_v38 }
 0x5b3   : > { %s9904_s16 = spop %9903 }
 0x5b4   : > { %v6700_v21 = vstv %s9904_s16 }
 0x5b7   : > { %s9906_s27 = spop %9905 }
 0x5b8   : > { %v6807_v0 = vstv %s9906_s27 }
 0x5b9   : > { %v6808_v61 = vadd.f32 %v6807_v0, %v6700_v21  ;;  %8343 = sbr.rel (%p9317_p0) target bundleno = 1478 (0x5c6), region = 40 }
 0x5bb   : > { %v6809_v27 = vadd.f32 %v6808_v61, %v6701_v37 }
 0x5bd   : > { %6811 = vst.msk [vmem:[#allocation3] sm:$0x1] %vm6810_vm10, %v6809_v27 }
 0x5be   : > { %v8346_v20 = vld [vmem:[#allocation4] sm:$0xff]  ;;  %v8347_v33 = vld [vmem:[#allocation4 + $0x8] sm:$0x3] }
 0x5bf   : > { %8348 = vst.msk [vmem:[%s16168_s4] sm:$0xff] %vm8336_vm7, %v8346_v20 }
 0x5c0   : > { %8349 = vst.msk [vmem:[%s16168_s4 + $0x8] sm:$0x3] %vm8338_vm9, %v8347_v33 }
 0x5c4   : > { %v8344_v24 = vld [vmem:[#allocation3] sm:$0x1] }
 0x5c5   : > { %8345 = vst.msk [vmem:[#allocation5] sm:$0x1] %vm6810_vm10, %v8344_v24 }
 0x5c6 PF: > { %s10486_s25 = smov [#allocation5]   ;;  %s16110_s26 = scalar_lea.hbm %s16169_s5, %s10581_s9 }
 0x5c7   : > { %s8369_s21 = sshll.u32 %s10486_s25, 4  ;;  %s8370_s21 = int_to_ptr.vmem [resolvable:$true] %s8369_s21 }
 0x5c8   : > { %s10376_s8 = scalar_lea.vmem %s8370_s21, 16  ;;  %s10382_s10 = scalar_lea.vmem %s8370_s21, 32 }
 0x5c9   : > { %p10377_p1 = scmp.ne.s32.totalorder %s8370_s21, %s10376_s8  ;;  %p10383_p6 = scmp.lt.s32.totalorder %s8370_s21, %s8370_s21 }
 0x5ca   : > { %p10384_p7 = scmp.lt.s32.totalorder %s10382_s10, %s10376_s8 }
 0x5cb   : > { %p10378_p3 = pnand %p10377_p1, %p10554_p2 }
 0x5cc   : > { %p10385_p9 = por %p10384_p7, %p10383_p6 }
 0x5cd   : > { %p10379_p5 = pneg %p10378_p3 }
 0x5cf   : > { %p10386_p10 = pnand %p10385_p9, %p10379_p5 }
 0x5d1   : > { %10389 = shalt.err (!%p10386_p10)
}
 0x5d2   : > { %9908 = dma.vmem_to_hbm [thread:$0]  (%p10554_p2), %s8370_s21, 16, %s16167_s3, [#allocation6]  }
 0x5d3   : > { %s8388_s9 = sshll.u32 %s10599_s30, 4  ;;  %s16881_s27 = sand.u32 1, %s10464_s19   ;;  %s8389_s9 = int_to_ptr.vmem [resolvable:$true] %s8388_s9 }
 0x5d4   : > { %s8356_s13 = scalar_lea.sflag [#allocation8], %s16881_s27  ;;  %s10400_s15 = scalar_lea.vmem %s8389_s9, 512 }
 0x5d5   : > { %p10401_p11 = scmp.ne.s32.totalorder %s8389_s9, %s10400_s15  ;;  %s10487_s17 = smov [#allocation7]  }
 0x5d6   : > { %s10404_s24 = sshll.u32 %s10487_s17, 4  ;;  %s10405_s24 = int_to_ptr.vmem [resolvable:$false] %s10404_s24 }
 0x5d7   : > { %p10402_p12 = pnand %p10401_p11, %p10564_p4  ;;  %s10406_s25 = scalar_lea.vmem %s10405_s24, 1024 }
 0x5d8   : > { %p10407_p0 = scmp.lt.s32.totalorder %s8389_s9, %s10405_s24  ;;  %p10408_p1 = scmp.lt.s32.totalorder %s10406_s25, %s10400_s15 }
 0x5d9   : > { %p10403_p13 = pneg %p10402_p12 }
 0x5da   : > { %p10409_p3 = por %p10408_p1, %p10407_p0 }
 0x5dc   : > { %p10410_p5 = pnand %p10409_p3, %p10403_p13 }
 0x5de   : > { %10413 = shalt.err (!%p10410_p5)
}
 0x5df   : > { %s10414_s30 = scalar_lea.hbm %s16110_s26, 512  ;;  %s10418_s14 = scalar_lea.hbm %s16169_s5, 1536 }
 0x5e0   : > { %p10415_p6 = scmp.ne.s32.totalorder %s16110_s26, %s10414_s30  ;;  %p10419_p10 = scmp.lt.s32.totalorder %s16110_s26, %s16169_s5 }
 0x5e1   : > { %p10420_p11 = scmp.lt.s32.totalorder %s10418_s14, %s10414_s30 }
 0x5e2   : > { %p10416_p7 = pnand %p10415_p6, %p10564_p4 }
 0x5e3   : > { %p10421_p12 = por %p10420_p11, %p10419_p10 }
 0x5e4   : > { %p10417_p9 = pneg %p10416_p7 }
 0x5e6   : > { %p10422_p13 = pnand %p10421_p12, %p10417_p9 }
 0x5e8   : > { %10425 = shalt.err (!%p10422_p13)
}
 0x5e9   : > { %9909 = dma.vmem_to_hbm [thread:$0]  (%p10564_p4), %s8389_s9, 512, %s16110_s26, %s8356_s13  }
 0x5ea   : > { %10451 = dma.done.wait (%p10554_p2), [#allocation6], 16  }
 0x5eb   : > { %10453 = vsyncadd (%p10554_p2), [#allocation6], 4294967280 }
 0x5ec PF: > { %p9919_p0 = scmp.ge.s32.totalorder %s10480_s23, 2  ;;  %s8412_s12 = sand.u32 1, %s10460_s18  }
 0x5ed   : > { %s8413_s16 = scalar_lea.sflag [#allocation8], %s8412_s12 }
 0x5ee   : > { %p9914_p1 = pnand %p9919_p0, %p10571_p8 }
 0x5f0   : > { %p9915_p3 = pneg %p9914_p1 }
 0x5f2   : > { %10455 = dma.done.wait (%p9915_p3), %s8413_s16, 512  }
 0x5f3   : > { %10457 = vsyncadd (%p9915_p3), %s8413_s16, 4294966784  ;;  %s20_s23 = sadd.s32 1, %s10480_s23   ;;  %s16882_s28 = sld [smem:[#allocation11_spill]] }
 0x5f4   : > { %p17_p4 = scmp.ge.s32.totalorder %s20_s23, 5   ;;  %s16883_s18 = smov %s10464_s19 }
 0x5f5   : > { %s16884_s19 = smov %s10468_s20  ;;  %s16885_s20 = smov %s10577_s7 }
 0x5f6   : > { %s16886_s21 = smov %s10476_s22  ;;  %19 = sbr.rel (!%p17_p4) target bundleno = 5 (0x5), region = 100 }
 0x5f9   : > { %s16887_s22 = smov %s16882_s28 }
 0x5fb   :  { %8418 = vsyncpa [#allocation6], 1 }
 0x5fc   :  { %8420 = vsyncpa [#allocation6 + $0x1], 1 }
 0x5fd   :  { %8421 = vsyncpa [#allocation8], 1 }
 0x5fe   :  { %8423 = vsyncpa [#allocation8 + $0x1], 1 }

</bundles_post_ra>
